<compile_context>
chip_gen: v6e
topology: v6e:2x2x1
jax: 0.10.0
libtpu: 0.0.40
codegen_flags: <defaults>
</compile_context>

<pallas_src>
import functools

import jax
import jax.numpy as jnp
import numpy as np
from jax.experimental import pallas as pl
from jax.experimental.pallas import tpu as pltpu


# ---------------------------------------------------------------------------
# Fused Pallas kernel: conv stack -> GRU stack -> dense head (single invocation)
# ---------------------------------------------------------------------------

def _conv_gru_kernel(x_ref, p_ref, o_ref, *seq_refs, B, L, padding, spec):
    f32 = jnp.float32
    meta = spec["meta"]

    def P(name):
        off, R, C = meta[name]          # static row offset (multiple of 8), rows, cols
        return p_ref[off:off + R, :C]

    # --- Conv1d stack: pad in registers, K shifted views lane-concatenated,
    # --- ONE im2col matmul per layer.  Rows stay batch-major ((b, t)). --------
    h3 = x_ref[...].astype(f32)                               # (B, L, C_in0)
    L_cur = L
    h2d = None
    for ci, (K, C_in, C_out) in enumerate(spec["conv"]):
        L_out = L_cur + 2 * padding - K + 1
        zpad = jnp.zeros((B, padding, C_in), f32)
        xp = jnp.concatenate([zpad, h3, zpad], axis=1)        # (B, L_cur+2p, C_in) in vregs
        views = [xp[:, k:k + L_out, :] for k in range(K)]     # K static shifted views
        patches = jnp.concatenate(views, axis=-1)             # (B, L_out, K*C_in)
        patches = patches.reshape(B * L_out, K * C_in)        # L_out % 8 == 0 -> layout no-op
        w = P(f"conv{ci}_w")                                  # (K*C_in, C_out)
        b = P(f"conv{ci}_b")                                  # (1, C_out)
        h2d = jnp.dot(patches, w, preferred_element_type=f32) + b
        h3 = h2d.reshape(B, L_out, C_out)
        L_cur = L_out
    T = L_cur

    # --- Stacked GRUs: fused 3-gate matmuls, hoisted input projection,
    # --- b_hh[r]/b_hh[z] pre-folded into b_ih (only b_hn left in the loop). ---
    n_gru = len(spec["gru"])
    x2d = None                                                # time-major (T*B, H) for layers >= 1
    h = None
    for li, (I, H) in enumerate(spec["gru"]):
        wih = P(f"gru{li}_wih")                               # (I, 3H)  [r | z | n] along lanes
        whh = P(f"gru{li}_whh")                               # (H, 3H)
        bih = P(f"gru{li}_bih")                               # (1, 3H)  b_ih + [b_hr, b_hz, 0]
        bhh = P(f"gru{li}_bhh")                               # (1, 3H)  [0, 0, b_hn]
        if li == 0:
            # conv output is batch-major; one big (B*T, I) @ (I, 3H) projection
            gi = jnp.dot(h2d, wih, preferred_element_type=f32) + bih
            gi = gi.reshape(B, T, 3 * H)                      # T % 8 == 0 -> layout no-op
        else:
            # deeper layers read the time-major sequence scratch: no reshape
            gi = jnp.dot(x2d, wih, preferred_element_type=f32) + bih
        keep_seq = li < n_gru - 1
        h = jnp.zeros((B, H), f32)                            # PyTorch default h0 = 0
        for t in range(T):                                    # fully unrolled (T static, small)
            gh = jnp.dot(h, whh, preferred_element_type=f32) + bhh   # ONE MXU push per step
            g = gi[:, t, :] if li == 0 else gi[t * B:(t + 1) * B, :]
            r = jax.nn.sigmoid(g[:, :H] + gh[:, :H])
            z = jax.nn.sigmoid(g[:, H:2 * H] + gh[:, H:2 * H])
            n = jnp.tanh(g[:, 2 * H:] + r * gh[:, 2 * H:])    # b_hn already inside gh_n
            h = (1.0 - z) * n + z * h
            if keep_seq:
                seq_refs[li][pl.ds(t * B, B), :] = h          # time-major rows (t, b)
        if keep_seq:
            x2d = seq_refs[li][...]                           # (T*B, H)

    # --- Dense head (dropout = identity, eval mode) ---------------------------
    feat = h                                                  # only x[:, -1, :] is consumed
    for di in range(spec["n_hidden"]):
        y = jnp.dot(feat, P(f"dense{di}_w"), preferred_element_type=f32) + P(f"dense{di}_b")
        feat = jnp.where(y >= 0.0, y, 0.01 * y)               # LeakyReLU(0.01)
    y = jnp.dot(feat, P("head_w"), preferred_element_type=f32) + P("head_b")  # (B, 2*n_mean)
    col = jax.lax.broadcasted_iota(jnp.int32, y.shape, 1)
    out = jnp.where(col < spec["n_mean"], jnp.tanh(y), jax.nn.sigmoid(y))     # [mean | sigma]
    o_ref[...] = out.astype(o_ref.dtype)


# ---------------------------------------------------------------------------
# Wrapper: one packed weight DMA + x, VMEM scratch for GRU sequences
# ---------------------------------------------------------------------------

def conv_gru_forward(packed, x, spec, padding=1):
    """x: (B, L, in_channel). Returns concat([tanh(mean), sigmoid(sigma)], 1)."""
    B, L, _ = x.shape

    # static shape bookkeeping + advisory cost estimate
    flops, trans = 0, 0
    L_cur = L
    for (K, C_in, C_out) in spec["conv"]:
        L_out = L_cur + 2 * padding - K + 1
        flops += 2 * B * L_out * K * C_in * C_out
        L_cur = L_out
    T = L_cur
    for (I, H) in spec["gru"]:
        flops += 2 * T * B * 3 * H * (I + H)
        trans += 3 * T * B * H
    for di in range(spec["n_hidden"]):
        _, R, C = spec["meta"][f"dense{di}_w"]
        flops += 2 * B * R * C
    _, R, out_dim = spec["meta"]["head_w"]
    flops += 2 * B * R * out_dim
    trans += B * out_dim
    bytes_acc = (x.size * x.dtype.itemsize
                 + packed.size * packed.dtype.itemsize
                 + B * out_dim * 4)

    scratch = [pltpu.VMEM((T * B, H), jnp.float32) for (_, H) in spec["gru"][:-1]]

    kernel = functools.partial(_conv_gru_kernel, B=B, L=L, padding=padding, spec=spec)

    return pl.pallas_call(
        kernel,
        out_shape=jax.ShapeDtypeStruct((B, out_dim), jnp.float32),
        in_specs=[pl.BlockSpec(memory_space=pltpu.MemorySpace.VMEM),
                  pl.BlockSpec(memory_space=pltpu.MemorySpace.VMEM)],
        out_specs=pl.BlockSpec(memory_space=pltpu.MemorySpace.VMEM),
        scratch_shapes=scratch,
        compiler_params=pltpu.CompilerParams(vmem_limit_bytes=32 * 1024 * 1024),
        cost_estimate=pl.CostEstimate(flops=flops, transcendentals=trans,
                                      bytes_accessed=bytes_acc),
    )(x.astype(jnp.float32), packed)


# ---------------------------------------------------------------------------
# One-time parameter preprocessing: transpose / gate-fuse / bias-fold, then
# pack EVERYTHING into one (8,128)-tile-padded buffer + static unpack metadata.
# ---------------------------------------------------------------------------

def prepare_params(params, dtype=jnp.float32):
    blocks = []

    def add(name, a):
        blocks.append((name, jnp.asarray(a, dtype)))

    conv_meta = []
    for ci, (w, b) in enumerate(params["convs"]):
        C_out, C_in, K = w.shape
        # (C_out, C_in, K) -> (K*C_in, C_out), matching the lane-concat im2col order
        add(f"conv{ci}_w", jnp.transpose(w, (2, 1, 0)).reshape(K * C_in, C_out))
        add(f"conv{ci}_b", b.reshape(1, C_out))
        conv_meta.append((K, C_in, C_out))

    gru_meta = []
    li = 0
    for layers in params["grus"]:
        for (w_ih, w_hh, b_ih, b_hh) in layers:               # PyTorch gate order: r, z, n
            H = w_hh.shape[1]
            I = w_ih.shape[1]
            add(f"gru{li}_wih", w_ih.T)                       # (I, 3H), gates along lanes
            add(f"gru{li}_whh", w_hh.T)                       # (H, 3H)
            # fold b_hh[r], b_hh[z] into b_ih; b_hn must stay inside r*(h@W_hn + b_hn)
            bih = b_ih + jnp.concatenate([b_hh[:2 * H], jnp.zeros((H,), b_hh.dtype)])
            bhh = jnp.concatenate([jnp.zeros((2 * H,), b_hh.dtype), b_hh[2 * H:]])
            add(f"gru{li}_bih", bih.reshape(1, 3 * H))
            add(f"gru{li}_bhh", bhh.reshape(1, 3 * H))
            gru_meta.append((int(I), int(H)))
            li += 1

    denses = params["denses"]
    n_hidden = len(denses) - 2
    for di, (w, b) in enumerate(denses[:n_hidden]):
        add(f"dense{di}_w", w.T)
        add(f"dense{di}_b", b.reshape(1, -1))
    (w_m, b_m), (w_s, b_s) = denses[-2], denses[-1]
    add("head_w", jnp.concatenate([w_m.T, w_s.T], axis=1))    # fused (D, 2*out) head
    add("head_b", jnp.concatenate([b_m, b_s]).reshape(1, -1))
    n_mean = int(w_m.shape[0])

    lane_w = max(int(a.shape[1]) for _, a in blocks)
    lane_w = ((lane_w + 127) // 128) * 128                    # lane-tile padded width
    meta, padded, row = {}, [], 0
    for name, a in blocks:
        R, C = int(a.shape[0]), int(a.shape[1])
        Rp = ((R + 7) // 8) * 8                               # sublane-tile padded rows
        meta[name] = (row, R, C)
        padded.append(jnp.pad(a, ((0, Rp - R), (0, lane_w - C))))
        row += Rp
    packed = jnp.concatenate(padded, axis=0)                  # ONE DMA for all parameters

    spec = {"meta": meta, "conv": conv_meta, "gru": gru_meta,
            "n_hidden": n_hidden, "n_mean": n_mean}
    return packed, spec


# ---------------------------------------------------------------------------
# Deterministic parameter construction (shapes as in the PyTorch __init__)
# ---------------------------------------------------------------------------

def init_params(key, *, kernels, channels, gru_dim, lin_dim, num_l, in_channel):
    keys = iter(jax.random.split(key, 64))
    params = {"convs": [], "grus": [], "denses": []}

    c_prev = in_channel
    for k, c in zip(kernels, channels):
        fan_in, fan_out = c_prev * k, c * k
        bound = np.sqrt(2.0) * np.sqrt(6.0 / (fan_in + fan_out))
        w = jax.random.uniform(next(keys), (c, c_prev, k), jnp.float32, -bound, bound)
        bb = 1.0 / np.sqrt(fan_in)
        b = jax.random.uniform(next(keys), (c,), jnp.float32, -bb, bb)
        params["convs"].append((w, b))
        c_prev = c

    in_dim = channels[-1]
    for gi, h in enumerate(gru_dim):
        n_layers = num_l if gi == 0 else 1
        layers, layer_in, s = [], in_dim, 1.0 / np.sqrt(h)
        for _ in range(n_layers):
            w_ih = jax.random.uniform(next(keys), (3 * h, layer_in), jnp.float32, -s, s)
            w_hh = jax.random.uniform(next(keys), (3 * h, h), jnp.float32, -s, s)
            b_ih = jax.random.uniform(next(keys), (3 * h,), jnp.float32, -s, s)
            b_hh = jax.random.uniform(next(keys), (3 * h,), jnp.float32, -s, s)
            layers.append((w_ih, w_hh, b_ih, b_hh))
            layer_in = h
        params["grus"].append(layers)
        in_dim = h

    dims = [gru_dim[-1]] + list(lin_dim)
    for d_in, d_out in zip(dims[:-1], dims[1:]):
        w = 0.02 * jax.random.normal(next(keys), (d_out, d_in), jnp.float32)
        params["denses"].append((w, jnp.zeros((d_out,), jnp.float32)))
    w = 0.02 * jax.random.normal(next(keys), (lin_dim[-1], lin_dim[-2]), jnp.float32)
    params["denses"].append((w, jnp.zeros((lin_dim[-1],), jnp.float32)))
    return params


# ---------------------------------------------------------------------------
# Pure-JAX reference (correctness check for the Pallas kernel)
# ---------------------------------------------------------------------------

def _im2col_nlc(x, K, padding):
    B, L, C = x.shape
    x_pad = jnp.pad(x, ((0, 0), (padding, padding), (0, 0)))
    L_out = L + 2 * padding - K + 1
    patches = jnp.stack([x_pad[:, k:k + L_out, :] for k in range(K)], axis=2)
    return patches.reshape(B * L_out, K * C), L_out


def _gru_layer_ref(x_tm, w_ih, w_hh, b_ih, b_hh):
    T, B, _ = x_tm.shape
    H = w_hh.shape[1]

    def step(h, x_t):
        gi = x_t @ w_ih.T + b_ih
        gh = h @ w_hh.T + b_hh
        r = jax.nn.sigmoid(gi[:, :H] + gh[:, :H])
        z = jax.nn.sigmoid(gi[:, H:2 * H] + gh[:, H:2 * H])
        n = jnp.tanh(gi[:, 2 * H:] + r * gh[:, 2 * H:])
        h_new = (1.0 - z) * n + z * h
        return h_new, h_new

    _, ys = jax.lax.scan(step, jnp.zeros((B, H), jnp.float32), x_tm)
    return ys


def conv_gru_forward_ref(params, x, padding=1):
    h = x.astype(jnp.float32)
    for (w, b) in params["convs"]:
        B, L, C_in = h.shape
        C_out, _, K = w.shape
        patches, L_out = _im2col_nlc(h, K, padding)
        w_t = jnp.transpose(w, (2, 1, 0)).reshape(K * C_in, C_out)
        h = (patches @ w_t + b).reshape(B, L_out, C_out)
    x_tm = jnp.transpose(h, (1, 0, 2))
    for layers in params["grus"]:
        for (w_ih, w_hh, b_ih, b_hh) in layers:
            x_tm = _gru_layer_ref(x_tm, w_ih, w_hh, b_ih, b_hh)
    feat = x_tm[-1]
    for (w, b) in params["denses"][:-2]:
        y = feat @ w.T + b
        feat = jnp.where(y >= 0.0, y, 0.01 * y)
    w_m, b_m = params["denses"][-2]
    w_s, b_s = params["denses"][-1]
    mean = jnp.tanh(feat @ w_m.T + b_m)
    sigma = jax.nn.sigmoid(feat @ w_s.T + b_s)
    return jnp.concatenate([mean, sigma], axis=1)


if __name__ == "__main__":
    kernels = [3, 3]
    channels = [4, 8]
    gru_dim = [32, 16]
    lin_dim = [8, 1]
    dropout = 0.1          # identity in eval-mode forward
    padding = 1
    num_l = 2
    in_channel = 1
    B, L = 2, 16

    key = jax.random.PRNGKey(0)
    pkey, xkey = jax.random.split(key)
    params = init_params(pkey, kernels=kernels, channels=channels, gru_dim=gru_dim,
                         lin_dim=lin_dim, num_l=num_l, in_channel=in_channel)
    packed, spec = prepare_params(params)              # one-time packing / preprocessing
    x = jax.random.normal(xkey, (B, L, in_channel), jnp.float32)   # (batch, seq, in_channel)

    fwd = jax.jit(lambda p, xx: conv_gru_forward(p, xx, spec, padding=padding))
    out = jax.block_until_ready(fwd(packed, x))

    ref = conv_gru_forward_ref(params, x, padding=padding)
    assert out.shape == (B, 2 * lin_dim[-1]), out.shape
    np.testing.assert_allclose(np.asarray(out), np.asarray(ref), rtol=2e-3, atol=2e-3)
    print("KERNEL_OK")
</pallas_src>

<mosaic_0001>
module attributes {stable_mosaic.version = 11 : i64} {
  func.func @_conv_gru_kernel(%arg0: memref<2x16x1xf32, #tpu.memory_space<vmem>>, %arg1: memref<280x128xf32, #tpu.memory_space<vmem>>, %arg2: memref<2x2xf32, #tpu.memory_space<vmem>>, %arg3: memref<32x32xf32, #tpu.memory_space<vmem>>, %arg4: memref<32x32xf32, #tpu.memory_space<vmem>>) attributes {dimension_semantics = [], scalar_prefetch = 0 : i64, scratch_operands = 2 : i64, tpu.core_type = #tpu.core_type<tc>} {
    %c0 = arith.constant 0 : index
    %c0_0 = arith.constant 0 : index
    %c0_1 = arith.constant 0 : index
    %0 = vector.load %arg0[%c0, %c0_0, %c0_1] : memref<2x16x1xf32, #tpu.memory_space<vmem>>, vector<2x16x1xf32>
    %cst = arith.constant 0.000000e+00 : f32
    %1 = vector.broadcast %cst : f32 to vector<2x1x1xf32>
    %2 = tpu.concatenate %1, %0, %1 in 1 : vector<2x1x1xf32>, vector<2x16x1xf32>, vector<2x1x1xf32> -> vector<2x18x1xf32>
    %3 = vector.extract_strided_slice %2 {offsets = [0, 0, 0], sizes = [2, 16, 1], strides = [1, 1, 1]} : vector<2x18x1xf32> to vector<2x16x1xf32>
    %4 = vector.extract_strided_slice %2 {offsets = [0, 1, 0], sizes = [2, 16, 1], strides = [1, 1, 1]} : vector<2x18x1xf32> to vector<2x16x1xf32>
    %5 = vector.extract_strided_slice %2 {offsets = [0, 2, 0], sizes = [2, 16, 1], strides = [1, 1, 1]} : vector<2x18x1xf32> to vector<2x16x1xf32>
    %6 = tpu.concatenate %3, %4, %5 in 2 : vector<2x16x1xf32>, vector<2x16x1xf32>, vector<2x16x1xf32> -> vector<2x16x3xf32>
    %7 = vector.shape_cast %6 : vector<2x16x3xf32> to vector<32x3xf32>
    %c0_2 = arith.constant 0 : index
    %c0_3 = arith.constant 0 : index
    %8 = vector.load %arg1[%c0_2, %c0_3] : memref<280x128xf32, #tpu.memory_space<vmem>>, vector<3x4xf32>
    %c8 = arith.constant 8 : index
    %c0_4 = arith.constant 0 : index
    %9 = vector.load %arg1[%c8, %c0_4] : memref<280x128xf32, #tpu.memory_space<vmem>>, vector<1x4xf32>
    %cst_5 = arith.constant dense<0.000000e+00> : vector<32x4xf32>
    %10 = tpu.matmul %7, %8, %cst_5 {dimension_numbers = #tpu.dot_dimension_numbers<[1], [0], [0], [1], [0, 0, 1, 1], [], []>} : vector<32x3xf32>, vector<3x4xf32>, vector<32x4xf32> -> vector<32x4xf32>
    %11 = vector.broadcast %9 : vector<1x4xf32> to vector<32x4xf32>
    %12 = arith.addf %10, %11 : vector<32x4xf32>
    %13 = vector.shape_cast %12 : vector<32x4xf32> to vector<2x16x4xf32>
    %cst_6 = arith.constant 0.000000e+00 : f32
    %14 = vector.broadcast %cst_6 : f32 to vector<2x1x4xf32>
    %15 = tpu.concatenate %14, %13, %14 in 1 : vector<2x1x4xf32>, vector<2x16x4xf32>, vector<2x1x4xf32> -> vector<2x18x4xf32>
    %16 = vector.extract_strided_slice %15 {offsets = [0, 0, 0], sizes = [2, 16, 4], strides = [1, 1, 1]} : vector<2x18x4xf32> to vector<2x16x4xf32>
    %17 = vector.extract_strided_slice %15 {offsets = [0, 1, 0], sizes = [2, 16, 4], strides = [1, 1, 1]} : vector<2x18x4xf32> to vector<2x16x4xf32>
    %18 = vector.extract_strided_slice %15 {offsets = [0, 2, 0], sizes = [2, 16, 4], strides = [1, 1, 1]} : vector<2x18x4xf32> to vector<2x16x4xf32>
    %19 = tpu.concatenate %16, %17, %18 in 2 : vector<2x16x4xf32>, vector<2x16x4xf32>, vector<2x16x4xf32> -> vector<2x16x12xf32>
    %20 = vector.shape_cast %19 : vector<2x16x12xf32> to vector<32x12xf32>
    %c16 = arith.constant 16 : index
    %c0_7 = arith.constant 0 : index
    %21 = vector.load %arg1[%c16, %c0_7] : memref<280x128xf32, #tpu.memory_space<vmem>>, vector<12x8xf32>
    %c32 = arith.constant 32 : index
    %c0_8 = arith.constant 0 : index
    %22 = vector.load %arg1[%c32, %c0_8] : memref<280x128xf32, #tpu.memory_space<vmem>>, vector<1x8xf32>
    %cst_9 = arith.constant dense<0.000000e+00> : vector<32x8xf32>
    %23 = tpu.matmul %20, %21, %cst_9 {dimension_numbers = #tpu.dot_dimension_numbers<[1], [0], [0], [1], [0, 0, 1, 1], [], []>} : vector<32x12xf32>, vector<12x8xf32>, vector<32x8xf32> -> vector<32x8xf32>
    %24 = vector.broadcast %22 : vector<1x8xf32> to vector<32x8xf32>
    %25 = arith.addf %23, %24 : vector<32x8xf32>
    %c40 = arith.constant 40 : index
    %c0_10 = arith.constant 0 : index
    %26 = vector.load %arg1[%c40, %c0_10] : memref<280x128xf32, #tpu.memory_space<vmem>>, vector<8x96xf32>
    %c48 = arith.constant 48 : index
    %c0_11 = arith.constant 0 : index
    %27 = vector.load %arg1[%c48, %c0_11] : memref<280x128xf32, #tpu.memory_space<vmem>>, vector<32x96xf32>
    %c80 = arith.constant 80 : index
    %c0_12 = arith.constant 0 : index
    %28 = vector.load %arg1[%c80, %c0_12] : memref<280x128xf32, #tpu.memory_space<vmem>>, vector<1x96xf32>
    %c88 = arith.constant 88 : index
    %c0_13 = arith.constant 0 : index
    %29 = vector.load %arg1[%c88, %c0_13] : memref<280x128xf32, #tpu.memory_space<vmem>>, vector<1x96xf32>
    %cst_14 = arith.constant dense<0.000000e+00> : vector<32x96xf32>
    %30 = tpu.matmul %25, %26, %cst_14 {dimension_numbers = #tpu.dot_dimension_numbers<[1], [0], [0], [1], [0, 0, 1, 1], [], []>} : vector<32x8xf32>, vector<8x96xf32>, vector<32x96xf32> -> vector<32x96xf32>
    %31 = vector.broadcast %28 : vector<1x96xf32> to vector<32x96xf32>
    %32 = arith.addf %30, %31 : vector<32x96xf32>
    %33 = vector.shape_cast %32 : vector<32x96xf32> to vector<2x16x96xf32>
    %cst_15 = arith.constant 0.000000e+00 : f32
    %34 = vector.broadcast %cst_15 : f32 to vector<2x32xf32>
    %cst_16 = arith.constant dense<0.000000e+00> : vector<2x96xf32>
    %35 = tpu.matmul %34, %27, %cst_16 {dimension_numbers = #tpu.dot_dimension_numbers<[1], [0], [0], [1], [0, 0, 1, 1], [], []>} : vector<2x32xf32>, vector<32x96xf32>, vector<2x96xf32> -> vector<2x96xf32>
    %36 = vector.broadcast %29 : vector<1x96xf32> to vector<2x96xf32>
    %37 = arith.addf %35, %36 : vector<2x96xf32>
    %38 = vector.extract_strided_slice %33 {offsets = [0, 0, 0], sizes = [2, 1, 96], strides = [1, 1, 1]} : vector<2x16x96xf32> to vector<2x1x96xf32>
    %39 = vector.shape_cast %38 : vector<2x1x96xf32> to vector<2x96xf32>
    %40 = vector.extract_strided_slice %39 {offsets = [0, 0], sizes = [2, 32], strides = [1, 1]} : vector<2x96xf32> to vector<2x32xf32>
    %41 = vector.extract_strided_slice %37 {offsets = [0, 0], sizes = [2, 32], strides = [1, 1]} : vector<2x96xf32> to vector<2x32xf32>
    %42 = arith.addf %40, %41 : vector<2x32xf32>
    %43 = arith.negf %42 : vector<2x32xf32>
    %44 = math.exp %43 : vector<2x32xf32>
    %cst_17 = arith.constant 1.000000e+00 : f32
    %45 = vector.broadcast %cst_17 : f32 to vector<2x32xf32>
    %46 = arith.addf %45, %44 : vector<2x32xf32>
    %47 = arith.divf %45, %46 : vector<2x32xf32>
    %48 = vector.extract_strided_slice %39 {offsets = [0, 32], sizes = [2, 32], strides = [1, 1]} : vector<2x96xf32> to vector<2x32xf32>
    %49 = vector.extract_strided_slice %37 {offsets = [0, 32], sizes = [2, 32], strides = [1, 1]} : vector<2x96xf32> to vector<2x32xf32>
    %50 = arith.addf %48, %49 : vector<2x32xf32>
    %51 = arith.negf %50 : vector<2x32xf32>
    %52 = math.exp %51 : vector<2x32xf32>
    %cst_18 = arith.constant 1.000000e+00 : f32
    %53 = vector.broadcast %cst_18 : f32 to vector<2x32xf32>
    %54 = arith.addf %53, %52 : vector<2x32xf32>
    %55 = arith.divf %53, %54 : vector<2x32xf32>
    %56 = vector.extract_strided_slice %39 {offsets = [0, 64], sizes = [2, 32], strides = [1, 1]} : vector<2x96xf32> to vector<2x32xf32>
    %57 = vector.extract_strided_slice %37 {offsets = [0, 64], sizes = [2, 32], strides = [1, 1]} : vector<2x96xf32> to vector<2x32xf32>
    %58 = arith.mulf %47, %57 : vector<2x32xf32>
    %59 = arith.addf %56, %58 : vector<2x32xf32>
    %60 = math.tanh %59 : vector<2x32xf32>
    %cst_19 = arith.constant 1.000000e+00 : f32
    %61 = vector.broadcast %cst_19 : f32 to vector<2x32xf32>
    %62 = arith.subf %61, %55 : vector<2x32xf32>
    %63 = arith.mulf %62, %60 : vector<2x32xf32>
    %64 = arith.mulf %55, %34 : vector<2x32xf32>
    %65 = arith.addf %63, %64 : vector<2x32xf32>
    %c0_20 = arith.constant 0 : index
    %c0_21 = arith.constant 0 : index
    %66 = vector.load %arg3[%c0_20, %c0_21] : memref<32x32xf32, #tpu.memory_space<vmem>>, vector<2x32xf32>
    tpu.vector_store %arg3[%c0_20, %c0_21], %65 {strides = array<i32>} : memref<32x32xf32, #tpu.memory_space<vmem>>, vector<2x32xf32>,
    %cst_22 = arith.constant dense<0.000000e+00> : vector<2x96xf32>
    %67 = tpu.matmul %65, %27, %cst_22 {dimension_numbers = #tpu.dot_dimension_numbers<[1], [0], [0], [1], [0, 0, 1, 1], [], []>} : vector<2x32xf32>, vector<32x96xf32>, vector<2x96xf32> -> vector<2x96xf32>
    %68 = vector.broadcast %29 : vector<1x96xf32> to vector<2x96xf32>
    %69 = arith.addf %67, %68 : vector<2x96xf32>
    %70 = vector.extract_strided_slice %33 {offsets = [0, 1, 0], sizes = [2, 1, 96], strides = [1, 1, 1]} : vector<2x16x96xf32> to vector<2x1x96xf32>
    %71 = vector.shape_cast %70 : vector<2x1x96xf32> to vector<2x96xf32>
    %72 = vector.extract_strided_slice %71 {offsets = [0, 0], sizes = [2, 32], strides = [1, 1]} : vector<2x96xf32> to vector<2x32xf32>
    %73 = vector.extract_strided_slice %69 {offsets = [0, 0], sizes = [2, 32], strides = [1, 1]} : vector<2x96xf32> to vector<2x32xf32>
    %74 = arith.addf %72, %73 : vector<2x32xf32>
    %75 = arith.negf %74 : vector<2x32xf32>
    %76 = math.exp %75 : vector<2x32xf32>
    %cst_23 = arith.constant 1.000000e+00 : f32
    %77 = vector.broadcast %cst_23 : f32 to vector<2x32xf32>
    %78 = arith.addf %77, %76 : vector<2x32xf32>
    %79 = arith.divf %77, %78 : vector<2x32xf32>
    %80 = vector.extract_strided_slice %71 {offsets = [0, 32], sizes = [2, 32], strides = [1, 1]} : vector<2x96xf32> to vector<2x32xf32>
    %81 = vector.extract_strided_slice %69 {offsets = [0, 32], sizes = [2, 32], strides = [1, 1]} : vector<2x96xf32> to vector<2x32xf32>
    %82 = arith.addf %80, %81 : vector<2x32xf32>
    %83 = arith.negf %82 : vector<2x32xf32>
    %84 = math.exp %83 : vector<2x32xf32>
    %cst_24 = arith.constant 1.000000e+00 : f32
    %85 = vector.broadcast %cst_24 : f32 to vector<2x32xf32>
    %86 = arith.addf %85, %84 : vector<2x32xf32>
    %87 = arith.divf %85, %86 : vector<2x32xf32>
    %88 = vector.extract_strided_slice %71 {offsets = [0, 64], sizes = [2, 32], strides = [1, 1]} : vector<2x96xf32> to vector<2x32xf32>
    %89 = vector.extract_strided_slice %69 {offsets = [0, 64], sizes = [2, 32], strides = [1, 1]} : vector<2x96xf32> to vector<2x32xf32>
    %90 = arith.mulf %79, %89 : vector<2x32xf32>
    %91 = arith.addf %88, %90 : vector<2x32xf32>
    %92 = math.tanh %91 : vector<2x32xf32>
    %cst_25 = arith.constant 1.000000e+00 : f32
    %93 = vector.broadcast %cst_25 : f32 to vector<2x32xf32>
    %94 = arith.subf %93, %87 : vector<2x32xf32>
    %95 = arith.mulf %94, %92 : vector<2x32xf32>
    %96 = arith.mulf %87, %65 : vector<2x32xf32>
    %97 = arith.addf %95, %96 : vector<2x32xf32>
    %c2 = arith.constant 2 : index
    %c0_26 = arith.constant 0 : index
    %98 = vector.load %arg3[%c2, %c0_26] : memref<32x32xf32, #tpu.memory_space<vmem>>, vector<2x32xf32>
    tpu.vector_store %arg3[%c2, %c0_26], %97 {strides = array<i32>} : memref<32x32xf32, #tpu.memory_space<vmem>>, vector<2x32xf32>,
    %cst_27 = arith.constant dense<0.000000e+00> : vector<2x96xf32>
    %99 = tpu.matmul %97, %27, %cst_27 {dimension_numbers = #tpu.dot_dimension_numbers<[1], [0], [0], [1], [0, 0, 1, 1], [], []>} : vector<2x32xf32>, vector<32x96xf32>, vector<2x96xf32> -> vector<2x96xf32>
    %100 = vector.broadcast %29 : vector<1x96xf32> to vector<2x96xf32>
    %101 = arith.addf %99, %100 : vector<2x96xf32>
    %102 = vector.extract_strided_slice %33 {offsets = [0, 2, 0], sizes = [2, 1, 96], strides = [1, 1, 1]} : vector<2x16x96xf32> to vector<2x1x96xf32>
    %103 = vector.shape_cast %102 : vector<2x1x96xf32> to vector<2x96xf32>
    %104 = vector.extract_strided_slice %103 {offsets = [0, 0], sizes = [2, 32], strides = [1, 1]} : vector<2x96xf32> to vector<2x32xf32>
    %105 = vector.extract_strided_slice %101 {offsets = [0, 0], sizes = [2, 32], strides = [1, 1]} : vector<2x96xf32> to vector<2x32xf32>
    %106 = arith.addf %104, %105 : vector<2x32xf32>
    %107 = arith.negf %106 : vector<2x32xf32>
    %108 = math.exp %107 : vector<2x32xf32>
    %cst_28 = arith.constant 1.000000e+00 : f32
    %109 = vector.broadcast %cst_28 : f32 to vector<2x32xf32>
    %110 = arith.addf %109, %108 : vector<2x32xf32>
    %111 = arith.divf %109, %110 : vector<2x32xf32>
    %112 = vector.extract_strided_slice %103 {offsets = [0, 32], sizes = [2, 32], strides = [1, 1]} : vector<2x96xf32> to vector<2x32xf32>
    %113 = vector.extract_strided_slice %101 {offsets = [0, 32], sizes = [2, 32], strides = [1, 1]} : vector<2x96xf32> to vector<2x32xf32>
    %114 = arith.addf %112, %113 : vector<2x32xf32>
    %115 = arith.negf %114 : vector<2x32xf32>
    %116 = math.exp %115 : vector<2x32xf32>
    %cst_29 = arith.constant 1.000000e+00 : f32
    %117 = vector.broadcast %cst_29 : f32 to vector<2x32xf32>
    %118 = arith.addf %117, %116 : vector<2x32xf32>
    %119 = arith.divf %117, %118 : vector<2x32xf32>
    %120 = vector.extract_strided_slice %103 {offsets = [0, 64], sizes = [2, 32], strides = [1, 1]} : vector<2x96xf32> to vector<2x32xf32>
    %121 = vector.extract_strided_slice %101 {offsets = [0, 64], sizes = [2, 32], strides = [1, 1]} : vector<2x96xf32> to vector<2x32xf32>
    %122 = arith.mulf %111, %121 : vector<2x32xf32>
    %123 = arith.addf %120, %122 : vector<2x32xf32>
    %124 = math.tanh %123 : vector<2x32xf32>
    %cst_30 = arith.constant 1.000000e+00 : f32
    %125 = vector.broadcast %cst_30 : f32 to vector<2x32xf32>
    %126 = arith.subf %125, %119 : vector<2x32xf32>
    %127 = arith.mulf %126, %124 : vector<2x32xf32>
    %128 = arith.mulf %119, %97 : vector<2x32xf32>
    %129 = arith.addf %127, %128 : vector<2x32xf32>
    %c4 = arith.constant 4 : index
    %c0_31 = arith.constant 0 : index
    %130 = vector.load %arg3[%c4, %c0_31] : memref<32x32xf32, #tpu.memory_space<vmem>>, vector<2x32xf32>
    tpu.vector_store %arg3[%c4, %c0_31], %129 {strides = array<i32>} : memref<32x32xf32, #tpu.memory_space<vmem>>, vector<2x32xf32>,
    %cst_32 = arith.constant dense<0.000000e+00> : vector<2x96xf32>
    %131 = tpu.matmul %129, %27, %cst_32 {dimension_numbers = #tpu.dot_dimension_numbers<[1], [0], [0], [1], [0, 0, 1, 1], [], []>} : vector<2x32xf32>, vector<32x96xf32>, vector<2x96xf32> -> vector<2x96xf32>
    %132 = vector.broadcast %29 : vector<1x96xf32> to vector<2x96xf32>
    %133 = arith.addf %131, %132 : vector<2x96xf32>
    %134 = vector.extract_strided_slice %33 {offsets = [0, 3, 0], sizes = [2, 1, 96], strides = [1, 1, 1]} : vector<2x16x96xf32> to vector<2x1x96xf32>
    %135 = vector.shape_cast %134 : vector<2x1x96xf32> to vector<2x96xf32>
    %136 = vector.extract_strided_slice %135 {offsets = [0, 0], sizes = [2, 32], strides = [1, 1]} : vector<2x96xf32> to vector<2x32xf32>
    %137 = vector.extract_strided_slice %133 {offsets = [0, 0], sizes = [2, 32], strides = [1, 1]} : vector<2x96xf32> to vector<2x32xf32>
    %138 = arith.addf %136, %137 : vector<2x32xf32>
    %139 = arith.negf %138 : vector<2x32xf32>
    %140 = math.exp %139 : vector<2x32xf32>
    %cst_33 = arith.constant 1.000000e+00 : f32
    %141 = vector.broadcast %cst_33 : f32 to vector<2x32xf32>
    %142 = arith.addf %141, %140 : vector<2x32xf32>
    %143 = arith.divf %141, %142 : vector<2x32xf32>
    %144 = vector.extract_strided_slice %135 {offsets = [0, 32], sizes = [2, 32], strides = [1, 1]} : vector<2x96xf32> to vector<2x32xf32>
    %145 = vector.extract_strided_slice %133 {offsets = [0, 32], sizes = [2, 32], strides = [1, 1]} : vector<2x96xf32> to vector<2x32xf32>
    %146 = arith.addf %144, %145 : vector<2x32xf32>
    %147 = arith.negf %146 : vector<2x32xf32>
    %148 = math.exp %147 : vector<2x32xf32>
    %cst_34 = arith.constant 1.000000e+00 : f32
    %149 = vector.broadcast %cst_34 : f32 to vector<2x32xf32>
    %150 = arith.addf %149, %148 : vector<2x32xf32>
    %151 = arith.divf %149, %150 : vector<2x32xf32>
    %152 = vector.extract_strided_slice %135 {offsets = [0, 64], sizes = [2, 32], strides = [1, 1]} : vector<2x96xf32> to vector<2x32xf32>
    %153 = vector.extract_strided_slice %133 {offsets = [0, 64], sizes = [2, 32], strides = [1, 1]} : vector<2x96xf32> to vector<2x32xf32>
    %154 = arith.mulf %143, %153 : vector<2x32xf32>
    %155 = arith.addf %152, %154 : vector<2x32xf32>
    %156 = math.tanh %155 : vector<2x32xf32>
    %cst_35 = arith.constant 1.000000e+00 : f32
    %157 = vector.broadcast %cst_35 : f32 to vector<2x32xf32>
    %158 = arith.subf %157, %151 : vector<2x32xf32>
    %159 = arith.mulf %158, %156 : vector<2x32xf32>
    %160 = arith.mulf %151, %129 : vector<2x32xf32>
    %161 = arith.addf %159, %160 : vector<2x32xf32>
    %c6 = arith.constant 6 : index
    %c0_36 = arith.constant 0 : index
    %162 = vector.load %arg3[%c6, %c0_36] : memref<32x32xf32, #tpu.memory_space<vmem>>, vector<2x32xf32>
    tpu.vector_store %arg3[%c6, %c0_36], %161 {strides = array<i32>} : memref<32x32xf32, #tpu.memory_space<vmem>>, vector<2x32xf32>,
    %cst_37 = arith.constant dense<0.000000e+00> : vector<2x96xf32>
    %163 = tpu.matmul %161, %27, %cst_37 {dimension_numbers = #tpu.dot_dimension_numbers<[1], [0], [0], [1], [0, 0, 1, 1], [], []>} : vector<2x32xf32>, vector<32x96xf32>, vector<2x96xf32> -> vector<2x96xf32>
    %164 = vector.broadcast %29 : vector<1x96xf32> to vector<2x96xf32>
    %165 = arith.addf %163, %164 : vector<2x96xf32>
    %166 = vector.extract_strided_slice %33 {offsets = [0, 4, 0], sizes = [2, 1, 96], strides = [1, 1, 1]} : vector<2x16x96xf32> to vector<2x1x96xf32>
    %167 = vector.shape_cast %166 : vector<2x1x96xf32> to vector<2x96xf32>
    %168 = vector.extract_strided_slice %167 {offsets = [0, 0], sizes = [2, 32], strides = [1, 1]} : vector<2x96xf32> to vector<2x32xf32>
    %169 = vector.extract_strided_slice %165 {offsets = [0, 0], sizes = [2, 32], strides = [1, 1]} : vector<2x96xf32> to vector<2x32xf32>
    %170 = arith.addf %168, %169 : vector<2x32xf32>
    %171 = arith.negf %170 : vector<2x32xf32>
    %172 = math.exp %171 : vector<2x32xf32>
    %cst_38 = arith.constant 1.000000e+00 : f32
    %173 = vector.broadcast %cst_38 : f32 to vector<2x32xf32>
    %174 = arith.addf %173, %172 : vector<2x32xf32>
    %175 = arith.divf %173, %174 : vector<2x32xf32>
    %176 = vector.extract_strided_slice %167 {offsets = [0, 32], sizes = [2, 32], strides = [1, 1]} : vector<2x96xf32> to vector<2x32xf32>
    %177 = vector.extract_strided_slice %165 {offsets = [0, 32], sizes = [2, 32], strides = [1, 1]} : vector<2x96xf32> to vector<2x32xf32>
    %178 = arith.addf %176, %177 : vector<2x32xf32>
    %179 = arith.negf %178 : vector<2x32xf32>
    %180 = math.exp %179 : vector<2x32xf32>
    %cst_39 = arith.constant 1.000000e+00 : f32
    %181 = vector.broadcast %cst_39 : f32 to vector<2x32xf32>
    %182 = arith.addf %181, %180 : vector<2x32xf32>
    %183 = arith.divf %181, %182 : vector<2x32xf32>
    %184 = vector.extract_strided_slice %167 {offsets = [0, 64], sizes = [2, 32], strides = [1, 1]} : vector<2x96xf32> to vector<2x32xf32>
    %185 = vector.extract_strided_slice %165 {offsets = [0, 64], sizes = [2, 32], strides = [1, 1]} : vector<2x96xf32> to vector<2x32xf32>
    %186 = arith.mulf %175, %185 : vector<2x32xf32>
    %187 = arith.addf %184, %186 : vector<2x32xf32>
    %188 = math.tanh %187 : vector<2x32xf32>
    %cst_40 = arith.constant 1.000000e+00 : f32
    %189 = vector.broadcast %cst_40 : f32 to vector<2x32xf32>
    %190 = arith.subf %189, %183 : vector<2x32xf32>
    %191 = arith.mulf %190, %188 : vector<2x32xf32>
    %192 = arith.mulf %183, %161 : vector<2x32xf32>
    %193 = arith.addf %191, %192 : vector<2x32xf32>
    %c8_41 = arith.constant 8 : index
    %c0_42 = arith.constant 0 : index
    %194 = vector.load %arg3[%c8_41, %c0_42] : memref<32x32xf32, #tpu.memory_space<vmem>>, vector<2x32xf32>
    tpu.vector_store %arg3[%c8_41, %c0_42], %193 {strides = array<i32>} : memref<32x32xf32, #tpu.memory_space<vmem>>, vector<2x32xf32>,
    %cst_43 = arith.constant dense<0.000000e+00> : vector<2x96xf32>
    %195 = tpu.matmul %193, %27, %cst_43 {dimension_numbers = #tpu.dot_dimension_numbers<[1], [0], [0], [1], [0, 0, 1, 1], [], []>} : vector<2x32xf32>, vector<32x96xf32>, vector<2x96xf32> -> vector<2x96xf32>
    %196 = vector.broadcast %29 : vector<1x96xf32> to vector<2x96xf32>
    %197 = arith.addf %195, %196 : vector<2x96xf32>
    %198 = vector.extract_strided_slice %33 {offsets = [0, 5, 0], sizes = [2, 1, 96], strides = [1, 1, 1]} : vector<2x16x96xf32> to vector<2x1x96xf32>
    %199 = vector.shape_cast %198 : vector<2x1x96xf32> to vector<2x96xf32>
    %200 = vector.extract_strided_slice %199 {offsets = [0, 0], sizes = [2, 32], strides = [1, 1]} : vector<2x96xf32> to vector<2x32xf32>
    %201 = vector.extract_strided_slice %197 {offsets = [0, 0], sizes = [2, 32], strides = [1, 1]} : vector<2x96xf32> to vector<2x32xf32>
    %202 = arith.addf %200, %201 : vector<2x32xf32>
    %203 = arith.negf %202 : vector<2x32xf32>
    %204 = math.exp %203 : vector<2x32xf32>
    %cst_44 = arith.constant 1.000000e+00 : f32
    %205 = vector.broadcast %cst_44 : f32 to vector<2x32xf32>
    %206 = arith.addf %205, %204 : vector<2x32xf32>
    %207 = arith.divf %205, %206 : vector<2x32xf32>
    %208 = vector.extract_strided_slice %199 {offsets = [0, 32], sizes = [2, 32], strides = [1, 1]} : vector<2x96xf32> to vector<2x32xf32>
    %209 = vector.extract_strided_slice %197 {offsets = [0, 32], sizes = [2, 32], strides = [1, 1]} : vector<2x96xf32> to vector<2x32xf32>
    %210 = arith.addf %208, %209 : vector<2x32xf32>
    %211 = arith.negf %210 : vector<2x32xf32>
    %212 = math.exp %211 : vector<2x32xf32>
    %cst_45 = arith.constant 1.000000e+00 : f32
    %213 = vector.broadcast %cst_45 : f32 to vector<2x32xf32>
    %214 = arith.addf %213, %212 : vector<2x32xf32>
    %215 = arith.divf %213, %214 : vector<2x32xf32>
    %216 = vector.extract_strided_slice %199 {offsets = [0, 64], sizes = [2, 32], strides = [1, 1]} : vector<2x96xf32> to vector<2x32xf32>
    %217 = vector.extract_strided_slice %197 {offsets = [0, 64], sizes = [2, 32], strides = [1, 1]} : vector<2x96xf32> to vector<2x32xf32>
    %218 = arith.mulf %207, %217 : vector<2x32xf32>
    %219 = arith.addf %216, %218 : vector<2x32xf32>
    %220 = math.tanh %219 : vector<2x32xf32>
    %cst_46 = arith.constant 1.000000e+00 : f32
    %221 = vector.broadcast %cst_46 : f32 to vector<2x32xf32>
    %222 = arith.subf %221, %215 : vector<2x32xf32>
    %223 = arith.mulf %222, %220 : vector<2x32xf32>
    %224 = arith.mulf %215, %193 : vector<2x32xf32>
    %225 = arith.addf %223, %224 : vector<2x32xf32>
    %c10 = arith.constant 10 : index
    %c0_47 = arith.constant 0 : index
    %226 = vector.load %arg3[%c10, %c0_47] : memref<32x32xf32, #tpu.memory_space<vmem>>, vector<2x32xf32>
    tpu.vector_store %arg3[%c10, %c0_47], %225 {strides = array<i32>} : memref<32x32xf32, #tpu.memory_space<vmem>>, vector<2x32xf32>,
    %cst_48 = arith.constant dense<0.000000e+00> : vector<2x96xf32>
    %227 = tpu.matmul %225, %27, %cst_48 {dimension_numbers = #tpu.dot_dimension_numbers<[1], [0], [0], [1], [0, 0, 1, 1], [], []>} : vector<2x32xf32>, vector<32x96xf32>, vector<2x96xf32> -> vector<2x96xf32>
    %228 = vector.broadcast %29 : vector<1x96xf32> to vector<2x96xf32>
    %229 = arith.addf %227, %228 : vector<2x96xf32>
    %230 = vector.extract_strided_slice %33 {offsets = [0, 6, 0], sizes = [2, 1, 96], strides = [1, 1, 1]} : vector<2x16x96xf32> to vector<2x1x96xf32>
    %231 = vector.shape_cast %230 : vector<2x1x96xf32> to vector<2x96xf32>
    %232 = vector.extract_strided_slice %231 {offsets = [0, 0], sizes = [2, 32], strides = [1, 1]} : vector<2x96xf32> to vector<2x32xf32>
    %233 = vector.extract_strided_slice %229 {offsets = [0, 0], sizes = [2, 32], strides = [1, 1]} : vector<2x96xf32> to vector<2x32xf32>
    %234 = arith.addf %232, %233 : vector<2x32xf32>
    %235 = arith.negf %234 : vector<2x32xf32>
    %236 = math.exp %235 : vector<2x32xf32>
    %cst_49 = arith.constant 1.000000e+00 : f32
    %237 = vector.broadcast %cst_49 : f32 to vector<2x32xf32>
    %238 = arith.addf %237, %236 : vector<2x32xf32>
    %239 = arith.divf %237, %238 : vector<2x32xf32>
    %240 = vector.extract_strided_slice %231 {offsets = [0, 32], sizes = [2, 32], strides = [1, 1]} : vector<2x96xf32> to vector<2x32xf32>
    %241 = vector.extract_strided_slice %229 {offsets = [0, 32], sizes = [2, 32], strides = [1, 1]} : vector<2x96xf32> to vector<2x32xf32>
    %242 = arith.addf %240, %241 : vector<2x32xf32>
    %243 = arith.negf %242 : vector<2x32xf32>
    %244 = math.exp %243 : vector<2x32xf32>
    %cst_50 = arith.constant 1.000000e+00 : f32
    %245 = vector.broadcast %cst_50 : f32 to vector<2x32xf32>
    %246 = arith.addf %245, %244 : vector<2x32xf32>
    %247 = arith.divf %245, %246 : vector<2x32xf32>
    %248 = vector.extract_strided_slice %231 {offsets = [0, 64], sizes = [2, 32], strides = [1, 1]} : vector<2x96xf32> to vector<2x32xf32>
    %249 = vector.extract_strided_slice %229 {offsets = [0, 64], sizes = [2, 32], strides = [1, 1]} : vector<2x96xf32> to vector<2x32xf32>
    %250 = arith.mulf %239, %249 : vector<2x32xf32>
    %251 = arith.addf %248, %250 : vector<2x32xf32>
    %252 = math.tanh %251 : vector<2x32xf32>
    %cst_51 = arith.constant 1.000000e+00 : f32
    %253 = vector.broadcast %cst_51 : f32 to vector<2x32xf32>
    %254 = arith.subf %253, %247 : vector<2x32xf32>
    %255 = arith.mulf %254, %252 : vector<2x32xf32>
    %256 = arith.mulf %247, %225 : vector<2x32xf32>
    %257 = arith.addf %255, %256 : vector<2x32xf32>
    %c12 = arith.constant 12 : index
    %c0_52 = arith.constant 0 : index
    %258 = vector.load %arg3[%c12, %c0_52] : memref<32x32xf32, #tpu.memory_space<vmem>>, vector<2x32xf32>
    tpu.vector_store %arg3[%c12, %c0_52], %257 {strides = array<i32>} : memref<32x32xf32, #tpu.memory_space<vmem>>, vector<2x32xf32>,
    %cst_53 = arith.constant dense<0.000000e+00> : vector<2x96xf32>
    %259 = tpu.matmul %257, %27, %cst_53 {dimension_numbers = #tpu.dot_dimension_numbers<[1], [0], [0], [1], [0, 0, 1, 1], [], []>} : vector<2x32xf32>, vector<32x96xf32>, vector<2x96xf32> -> vector<2x96xf32>
    %260 = vector.broadcast %29 : vector<1x96xf32> to vector<2x96xf32>
    %261 = arith.addf %259, %260 : vector<2x96xf32>
    %262 = vector.extract_strided_slice %33 {offsets = [0, 7, 0], sizes = [2, 1, 96], strides = [1, 1, 1]} : vector<2x16x96xf32> to vector<2x1x96xf32>
    %263 = vector.shape_cast %262 : vector<2x1x96xf32> to vector<2x96xf32>
    %264 = vector.extract_strided_slice %263 {offsets = [0, 0], sizes = [2, 32], strides = [1, 1]} : vector<2x96xf32> to vector<2x32xf32>
    %265 = vector.extract_strided_slice %261 {offsets = [0, 0], sizes = [2, 32], strides = [1, 1]} : vector<2x96xf32> to vector<2x32xf32>
    %266 = arith.addf %264, %265 : vector<2x32xf32>
    %267 = arith.negf %266 : vector<2x32xf32>
    %268 = math.exp %267 : vector<2x32xf32>
    %cst_54 = arith.constant 1.000000e+00 : f32
    %269 = vector.broadcast %cst_54 : f32 to vector<2x32xf32>
    %270 = arith.addf %269, %268 : vector<2x32xf32>
    %271 = arith.divf %269, %270 : vector<2x32xf32>
    %272 = vector.extract_strided_slice %263 {offsets = [0, 32], sizes = [2, 32], strides = [1, 1]} : vector<2x96xf32> to vector<2x32xf32>
    %273 = vector.extract_strided_slice %261 {offsets = [0, 32], sizes = [2, 32], strides = [1, 1]} : vector<2x96xf32> to vector<2x32xf32>
    %274 = arith.addf %272, %273 : vector<2x32xf32>
    %275 = arith.negf %274 : vector<2x32xf32>
    %276 = math.exp %275 : vector<2x32xf32>
    %cst_55 = arith.constant 1.000000e+00 : f32
    %277 = vector.broadcast %cst_55 : f32 to vector<2x32xf32>
    %278 = arith.addf %277, %276 : vector<2x32xf32>
    %279 = arith.divf %277, %278 : vector<2x32xf32>
    %280 = vector.extract_strided_slice %263 {offsets = [0, 64], sizes = [2, 32], strides = [1, 1]} : vector<2x96xf32> to vector<2x32xf32>
    %281 = vector.extract_strided_slice %261 {offsets = [0, 64], sizes = [2, 32], strides = [1, 1]} : vector<2x96xf32> to vector<2x32xf32>
    %282 = arith.mulf %271, %281 : vector<2x32xf32>
    %283 = arith.addf %280, %282 : vector<2x32xf32>
    %284 = math.tanh %283 : vector<2x32xf32>
    %cst_56 = arith.constant 1.000000e+00 : f32
    %285 = vector.broadcast %cst_56 : f32 to vector<2x32xf32>
    %286 = arith.subf %285, %279 : vector<2x32xf32>
    %287 = arith.mulf %286, %284 : vector<2x32xf32>
    %288 = arith.mulf %279, %257 : vector<2x32xf32>
    %289 = arith.addf %287, %288 : vector<2x32xf32>
    %c14 = arith.constant 14 : index
    %c0_57 = arith.constant 0 : index
    %290 = vector.load %arg3[%c14, %c0_57] : memref<32x32xf32, #tpu.memory_space<vmem>>, vector<2x32xf32>
    tpu.vector_store %arg3[%c14, %c0_57], %289 {strides = array<i32>} : memref<32x32xf32, #tpu.memory_space<vmem>>, vector<2x32xf32>,
    %cst_58 = arith.constant dense<0.000000e+00> : vector<2x96xf32>
    %291 = tpu.matmul %289, %27, %cst_58 {dimension_numbers = #tpu.dot_dimension_numbers<[1], [0], [0], [1], [0, 0, 1, 1], [], []>} : vector<2x32xf32>, vector<32x96xf32>, vector<2x96xf32> -> vector<2x96xf32>
    %292 = vector.broadcast %29 : vector<1x96xf32> to vector<2x96xf32>
    %293 = arith.addf %291, %292 : vector<2x96xf32>
    %294 = vector.extract_strided_slice %33 {offsets = [0, 8, 0], sizes = [2, 1, 96], strides = [1, 1, 1]} : vector<2x16x96xf32> to vector<2x1x96xf32>
    %295 = vector.shape_cast %294 : vector<2x1x96xf32> to vector<2x96xf32>
    %296 = vector.extract_strided_slice %295 {offsets = [0, 0], sizes = [2, 32], strides = [1, 1]} : vector<2x96xf32> to vector<2x32xf32>
    %297 = vector.extract_strided_slice %293 {offsets = [0, 0], sizes = [2, 32], strides = [1, 1]} : vector<2x96xf32> to vector<2x32xf32>
    %298 = arith.addf %296, %297 : vector<2x32xf32>
    %299 = arith.negf %298 : vector<2x32xf32>
    %300 = math.exp %299 : vector<2x32xf32>
    %cst_59 = arith.constant 1.000000e+00 : f32
    %301 = vector.broadcast %cst_59 : f32 to vector<2x32xf32>
    %302 = arith.addf %301, %300 : vector<2x32xf32>
    %303 = arith.divf %301, %302 : vector<2x32xf32>
    %304 = vector.extract_strided_slice %295 {offsets = [0, 32], sizes = [2, 32], strides = [1, 1]} : vector<2x96xf32> to vector<2x32xf32>
    %305 = vector.extract_strided_slice %293 {offsets = [0, 32], sizes = [2, 32], strides = [1, 1]} : vector<2x96xf32> to vector<2x32xf32>
    %306 = arith.addf %304, %305 : vector<2x32xf32>
    %307 = arith.negf %306 : vector<2x32xf32>
    %308 = math.exp %307 : vector<2x32xf32>
    %cst_60 = arith.constant 1.000000e+00 : f32
    %309 = vector.broadcast %cst_60 : f32 to vector<2x32xf32>
    %310 = arith.addf %309, %308 : vector<2x32xf32>
    %311 = arith.divf %309, %310 : vector<2x32xf32>
    %312 = vector.extract_strided_slice %295 {offsets = [0, 64], sizes = [2, 32], strides = [1, 1]} : vector<2x96xf32> to vector<2x32xf32>
    %313 = vector.extract_strided_slice %293 {offsets = [0, 64], sizes = [2, 32], strides = [1, 1]} : vector<2x96xf32> to vector<2x32xf32>
    %314 = arith.mulf %303, %313 : vector<2x32xf32>
    %315 = arith.addf %312, %314 : vector<2x32xf32>
    %316 = math.tanh %315 : vector<2x32xf32>
    %cst_61 = arith.constant 1.000000e+00 : f32
    %317 = vector.broadcast %cst_61 : f32 to vector<2x32xf32>
    %318 = arith.subf %317, %311 : vector<2x32xf32>
    %319 = arith.mulf %318, %316 : vector<2x32xf32>
    %320 = arith.mulf %311, %289 : vector<2x32xf32>
    %321 = arith.addf %319, %320 : vector<2x32xf32>
    %c16_62 = arith.constant 16 : index
    %c0_63 = arith.constant 0 : index
    %322 = vector.load %arg3[%c16_62, %c0_63] : memref<32x32xf32, #tpu.memory_space<vmem>>, vector<2x32xf32>
    tpu.vector_store %arg3[%c16_62, %c0_63], %321 {strides = array<i32>} : memref<32x32xf32, #tpu.memory_space<vmem>>, vector<2x32xf32>,
    %cst_64 = arith.constant dense<0.000000e+00> : vector<2x96xf32>
    %323 = tpu.matmul %321, %27, %cst_64 {dimension_numbers = #tpu.dot_dimension_numbers<[1], [0], [0], [1], [0, 0, 1, 1], [], []>} : vector<2x32xf32>, vector<32x96xf32>, vector<2x96xf32> -> vector<2x96xf32>
    %324 = vector.broadcast %29 : vector<1x96xf32> to vector<2x96xf32>
    %325 = arith.addf %323, %324 : vector<2x96xf32>
    %326 = vector.extract_strided_slice %33 {offsets = [0, 9, 0], sizes = [2, 1, 96], strides = [1, 1, 1]} : vector<2x16x96xf32> to vector<2x1x96xf32>
    %327 = vector.shape_cast %326 : vector<2x1x96xf32> to vector<2x96xf32>
    %328 = vector.extract_strided_slice %327 {offsets = [0, 0], sizes = [2, 32], strides = [1, 1]} : vector<2x96xf32> to vector<2x32xf32>
    %329 = vector.extract_strided_slice %325 {offsets = [0, 0], sizes = [2, 32], strides = [1, 1]} : vector<2x96xf32> to vector<2x32xf32>
    %330 = arith.addf %328, %329 : vector<2x32xf32>
    %331 = arith.negf %330 : vector<2x32xf32>
    %332 = math.exp %331 : vector<2x32xf32>
    %cst_65 = arith.constant 1.000000e+00 : f32
    %333 = vector.broadcast %cst_65 : f32 to vector<2x32xf32>
    %334 = arith.addf %333, %332 : vector<2x32xf32>
    %335 = arith.divf %333, %334 : vector<2x32xf32>
    %336 = vector.extract_strided_slice %327 {offsets = [0, 32], sizes = [2, 32], strides = [1, 1]} : vector<2x96xf32> to vector<2x32xf32>
    %337 = vector.extract_strided_slice %325 {offsets = [0, 32], sizes = [2, 32], strides = [1, 1]} : vector<2x96xf32> to vector<2x32xf32>
    %338 = arith.addf %336, %337 : vector<2x32xf32>
    %339 = arith.negf %338 : vector<2x32xf32>
    %340 = math.exp %339 : vector<2x32xf32>
    %cst_66 = arith.constant 1.000000e+00 : f32
    %341 = vector.broadcast %cst_66 : f32 to vector<2x32xf32>
    %342 = arith.addf %341, %340 : vector<2x32xf32>
    %343 = arith.divf %341, %342 : vector<2x32xf32>
    %344 = vector.extract_strided_slice %327 {offsets = [0, 64], sizes = [2, 32], strides = [1, 1]} : vector<2x96xf32> to vector<2x32xf32>
    %345 = vector.extract_strided_slice %325 {offsets = [0, 64], sizes = [2, 32], strides = [1, 1]} : vector<2x96xf32> to vector<2x32xf32>
    %346 = arith.mulf %335, %345 : vector<2x32xf32>
    %347 = arith.addf %344, %346 : vector<2x32xf32>
    %348 = math.tanh %347 : vector<2x32xf32>
    %cst_67 = arith.constant 1.000000e+00 : f32
    %349 = vector.broadcast %cst_67 : f32 to vector<2x32xf32>
    %350 = arith.subf %349, %343 : vector<2x32xf32>
    %351 = arith.mulf %350, %348 : vector<2x32xf32>
    %352 = arith.mulf %343, %321 : vector<2x32xf32>
    %353 = arith.addf %351, %352 : vector<2x32xf32>
    %c18 = arith.constant 18 : index
    %c0_68 = arith.constant 0 : index
    %354 = vector.load %arg3[%c18, %c0_68] : memref<32x32xf32, #tpu.memory_space<vmem>>, vector<2x32xf32>
    tpu.vector_store %arg3[%c18, %c0_68], %353 {strides = array<i32>} : memref<32x32xf32, #tpu.memory_space<vmem>>, vector<2x32xf32>,
    %cst_69 = arith.constant dense<0.000000e+00> : vector<2x96xf32>
    %355 = tpu.matmul %353, %27, %cst_69 {dimension_numbers = #tpu.dot_dimension_numbers<[1], [0], [0], [1], [0, 0, 1, 1], [], []>} : vector<2x32xf32>, vector<32x96xf32>, vector<2x96xf32> -> vector<2x96xf32>
    %356 = vector.broadcast %29 : vector<1x96xf32> to vector<2x96xf32>
    %357 = arith.addf %355, %356 : vector<2x96xf32>
    %358 = vector.extract_strided_slice %33 {offsets = [0, 10, 0], sizes = [2, 1, 96], strides = [1, 1, 1]} : vector<2x16x96xf32> to vector<2x1x96xf32>
    %359 = vector.shape_cast %358 : vector<2x1x96xf32> to vector<2x96xf32>
    %360 = vector.extract_strided_slice %359 {offsets = [0, 0], sizes = [2, 32], strides = [1, 1]} : vector<2x96xf32> to vector<2x32xf32>
    %361 = vector.extract_strided_slice %357 {offsets = [0, 0], sizes = [2, 32], strides = [1, 1]} : vector<2x96xf32> to vector<2x32xf32>
    %362 = arith.addf %360, %361 : vector<2x32xf32>
    %363 = arith.negf %362 : vector<2x32xf32>
    %364 = math.exp %363 : vector<2x32xf32>
    %cst_70 = arith.constant 1.000000e+00 : f32
    %365 = vector.broadcast %cst_70 : f32 to vector<2x32xf32>
    %366 = arith.addf %365, %364 : vector<2x32xf32>
    %367 = arith.divf %365, %366 : vector<2x32xf32>
    %368 = vector.extract_strided_slice %359 {offsets = [0, 32], sizes = [2, 32], strides = [1, 1]} : vector<2x96xf32> to vector<2x32xf32>
    %369 = vector.extract_strided_slice %357 {offsets = [0, 32], sizes = [2, 32], strides = [1, 1]} : vector<2x96xf32> to vector<2x32xf32>
    %370 = arith.addf %368, %369 : vector<2x32xf32>
    %371 = arith.negf %370 : vector<2x32xf32>
    %372 = math.exp %371 : vector<2x32xf32>
    %cst_71 = arith.constant 1.000000e+00 : f32
    %373 = vector.broadcast %cst_71 : f32 to vector<2x32xf32>
    %374 = arith.addf %373, %372 : vector<2x32xf32>
    %375 = arith.divf %373, %374 : vector<2x32xf32>
    %376 = vector.extract_strided_slice %359 {offsets = [0, 64], sizes = [2, 32], strides = [1, 1]} : vector<2x96xf32> to vector<2x32xf32>
    %377 = vector.extract_strided_slice %357 {offsets = [0, 64], sizes = [2, 32], strides = [1, 1]} : vector<2x96xf32> to vector<2x32xf32>
    %378 = arith.mulf %367, %377 : vector<2x32xf32>
    %379 = arith.addf %376, %378 : vector<2x32xf32>
    %380 = math.tanh %379 : vector<2x32xf32>
    %cst_72 = arith.constant 1.000000e+00 : f32
    %381 = vector.broadcast %cst_72 : f32 to vector<2x32xf32>
    %382 = arith.subf %381, %375 : vector<2x32xf32>
    %383 = arith.mulf %382, %380 : vector<2x32xf32>
    %384 = arith.mulf %375, %353 : vector<2x32xf32>
    %385 = arith.addf %383, %384 : vector<2x32xf32>
    %c20 = arith.constant 20 : index
    %c0_73 = arith.constant 0 : index
    %386 = vector.load %arg3[%c20, %c0_73] : memref<32x32xf32, #tpu.memory_space<vmem>>, vector<2x32xf32>
    tpu.vector_store %arg3[%c20, %c0_73], %385 {strides = array<i32>} : memref<32x32xf32, #tpu.memory_space<vmem>>, vector<2x32xf32>,
    %cst_74 = arith.constant dense<0.000000e+00> : vector<2x96xf32>
    %387 = tpu.matmul %385, %27, %cst_74 {dimension_numbers = #tpu.dot_dimension_numbers<[1], [0], [0], [1], [0, 0, 1, 1], [], []>} : vector<2x32xf32>, vector<32x96xf32>, vector<2x96xf32> -> vector<2x96xf32>
    %388 = vector.broadcast %29 : vector<1x96xf32> to vector<2x96xf32>
    %389 = arith.addf %387, %388 : vector<2x96xf32>
    %390 = vector.extract_strided_slice %33 {offsets = [0, 11, 0], sizes = [2, 1, 96], strides = [1, 1, 1]} : vector<2x16x96xf32> to vector<2x1x96xf32>
    %391 = vector.shape_cast %390 : vector<2x1x96xf32> to vector<2x96xf32>
    %392 = vector.extract_strided_slice %391 {offsets = [0, 0], sizes = [2, 32], strides = [1, 1]} : vector<2x96xf32> to vector<2x32xf32>
    %393 = vector.extract_strided_slice %389 {offsets = [0, 0], sizes = [2, 32], strides = [1, 1]} : vector<2x96xf32> to vector<2x32xf32>
    %394 = arith.addf %392, %393 : vector<2x32xf32>
    %395 = arith.negf %394 : vector<2x32xf32>
    %396 = math.exp %395 : vector<2x32xf32>
    %cst_75 = arith.constant 1.000000e+00 : f32
    %397 = vector.broadcast %cst_75 : f32 to vector<2x32xf32>
    %398 = arith.addf %397, %396 : vector<2x32xf32>
    %399 = arith.divf %397, %398 : vector<2x32xf32>
    %400 = vector.extract_strided_slice %391 {offsets = [0, 32], sizes = [2, 32], strides = [1, 1]} : vector<2x96xf32> to vector<2x32xf32>
    %401 = vector.extract_strided_slice %389 {offsets = [0, 32], sizes = [2, 32], strides = [1, 1]} : vector<2x96xf32> to vector<2x32xf32>
    %402 = arith.addf %400, %401 : vector<2x32xf32>
    %403 = arith.negf %402 : vector<2x32xf32>
    %404 = math.exp %403 : vector<2x32xf32>
    %cst_76 = arith.constant 1.000000e+00 : f32
    %405 = vector.broadcast %cst_76 : f32 to vector<2x32xf32>
    %406 = arith.addf %405, %404 : vector<2x32xf32>
    %407 = arith.divf %405, %406 : vector<2x32xf32>
    %408 = vector.extract_strided_slice %391 {offsets = [0, 64], sizes = [2, 32], strides = [1, 1]} : vector<2x96xf32> to vector<2x32xf32>
    %409 = vector.extract_strided_slice %389 {offsets = [0, 64], sizes = [2, 32], strides = [1, 1]} : vector<2x96xf32> to vector<2x32xf32>
    %410 = arith.mulf %399, %409 : vector<2x32xf32>
    %411 = arith.addf %408, %410 : vector<2x32xf32>
    %412 = math.tanh %411 : vector<2x32xf32>
    %cst_77 = arith.constant 1.000000e+00 : f32
    %413 = vector.broadcast %cst_77 : f32 to vector<2x32xf32>
    %414 = arith.subf %413, %407 : vector<2x32xf32>
    %415 = arith.mulf %414, %412 : vector<2x32xf32>
    %416 = arith.mulf %407, %385 : vector<2x32xf32>
    %417 = arith.addf %415, %416 : vector<2x32xf32>
    %c22 = arith.constant 22 : index
    %c0_78 = arith.constant 0 : index
    %418 = vector.load %arg3[%c22, %c0_78] : memref<32x32xf32, #tpu.memory_space<vmem>>, vector<2x32xf32>
    tpu.vector_store %arg3[%c22, %c0_78], %417 {strides = array<i32>} : memref<32x32xf32, #tpu.memory_space<vmem>>, vector<2x32xf32>,
    %cst_79 = arith.constant dense<0.000000e+00> : vector<2x96xf32>
    %419 = tpu.matmul %417, %27, %cst_79 {dimension_numbers = #tpu.dot_dimension_numbers<[1], [0], [0], [1], [0, 0, 1, 1], [], []>} : vector<2x32xf32>, vector<32x96xf32>, vector<2x96xf32> -> vector<2x96xf32>
    %420 = vector.broadcast %29 : vector<1x96xf32> to vector<2x96xf32>
    %421 = arith.addf %419, %420 : vector<2x96xf32>
    %422 = vector.extract_strided_slice %33 {offsets = [0, 12, 0], sizes = [2, 1, 96], strides = [1, 1, 1]} : vector<2x16x96xf32> to vector<2x1x96xf32>
    %423 = vector.shape_cast %422 : vector<2x1x96xf32> to vector<2x96xf32>
    %424 = vector.extract_strided_slice %423 {offsets = [0, 0], sizes = [2, 32], strides = [1, 1]} : vector<2x96xf32> to vector<2x32xf32>
    %425 = vector.extract_strided_slice %421 {offsets = [0, 0], sizes = [2, 32], strides = [1, 1]} : vector<2x96xf32> to vector<2x32xf32>
    %426 = arith.addf %424, %425 : vector<2x32xf32>
    %427 = arith.negf %426 : vector<2x32xf32>
    %428 = math.exp %427 : vector<2x32xf32>
    %cst_80 = arith.constant 1.000000e+00 : f32
    %429 = vector.broadcast %cst_80 : f32 to vector<2x32xf32>
    %430 = arith.addf %429, %428 : vector<2x32xf32>
    %431 = arith.divf %429, %430 : vector<2x32xf32>
    %432 = vector.extract_strided_slice %423 {offsets = [0, 32], sizes = [2, 32], strides = [1, 1]} : vector<2x96xf32> to vector<2x32xf32>
    %433 = vector.extract_strided_slice %421 {offsets = [0, 32], sizes = [2, 32], strides = [1, 1]} : vector<2x96xf32> to vector<2x32xf32>
    %434 = arith.addf %432, %433 : vector<2x32xf32>
    %435 = arith.negf %434 : vector<2x32xf32>
    %436 = math.exp %435 : vector<2x32xf32>
    %cst_81 = arith.constant 1.000000e+00 : f32
    %437 = vector.broadcast %cst_81 : f32 to vector<2x32xf32>
    %438 = arith.addf %437, %436 : vector<2x32xf32>
    %439 = arith.divf %437, %438 : vector<2x32xf32>
    %440 = vector.extract_strided_slice %423 {offsets = [0, 64], sizes = [2, 32], strides = [1, 1]} : vector<2x96xf32> to vector<2x32xf32>
    %441 = vector.extract_strided_slice %421 {offsets = [0, 64], sizes = [2, 32], strides = [1, 1]} : vector<2x96xf32> to vector<2x32xf32>
    %442 = arith.mulf %431, %441 : vector<2x32xf32>
    %443 = arith.addf %440, %442 : vector<2x32xf32>
    %444 = math.tanh %443 : vector<2x32xf32>
    %cst_82 = arith.constant 1.000000e+00 : f32
    %445 = vector.broadcast %cst_82 : f32 to vector<2x32xf32>
    %446 = arith.subf %445, %439 : vector<2x32xf32>
    %447 = arith.mulf %446, %444 : vector<2x32xf32>
    %448 = arith.mulf %439, %417 : vector<2x32xf32>
    %449 = arith.addf %447, %448 : vector<2x32xf32>
    %c24 = arith.constant 24 : index
    %c0_83 = arith.constant 0 : index
    %450 = vector.load %arg3[%c24, %c0_83] : memref<32x32xf32, #tpu.memory_space<vmem>>, vector<2x32xf32>
    tpu.vector_store %arg3[%c24, %c0_83], %449 {strides = array<i32>} : memref<32x32xf32, #tpu.memory_space<vmem>>, vector<2x32xf32>,
    %cst_84 = arith.constant dense<0.000000e+00> : vector<2x96xf32>
    %451 = tpu.matmul %449, %27, %cst_84 {dimension_numbers = #tpu.dot_dimension_numbers<[1], [0], [0], [1], [0, 0, 1, 1], [], []>} : vector<2x32xf32>, vector<32x96xf32>, vector<2x96xf32> -> vector<2x96xf32>
    %452 = vector.broadcast %29 : vector<1x96xf32> to vector<2x96xf32>
    %453 = arith.addf %451, %452 : vector<2x96xf32>
    %454 = vector.extract_strided_slice %33 {offsets = [0, 13, 0], sizes = [2, 1, 96], strides = [1, 1, 1]} : vector<2x16x96xf32> to vector<2x1x96xf32>
    %455 = vector.shape_cast %454 : vector<2x1x96xf32> to vector<2x96xf32>
    %456 = vector.extract_strided_slice %455 {offsets = [0, 0], sizes = [2, 32], strides = [1, 1]} : vector<2x96xf32> to vector<2x32xf32>
    %457 = vector.extract_strided_slice %453 {offsets = [0, 0], sizes = [2, 32], strides = [1, 1]} : vector<2x96xf32> to vector<2x32xf32>
    %458 = arith.addf %456, %457 : vector<2x32xf32>
    %459 = arith.negf %458 : vector<2x32xf32>
    %460 = math.exp %459 : vector<2x32xf32>
    %cst_85 = arith.constant 1.000000e+00 : f32
    %461 = vector.broadcast %cst_85 : f32 to vector<2x32xf32>
    %462 = arith.addf %461, %460 : vector<2x32xf32>
    %463 = arith.divf %461, %462 : vector<2x32xf32>
    %464 = vector.extract_strided_slice %455 {offsets = [0, 32], sizes = [2, 32], strides = [1, 1]} : vector<2x96xf32> to vector<2x32xf32>
    %465 = vector.extract_strided_slice %453 {offsets = [0, 32], sizes = [2, 32], strides = [1, 1]} : vector<2x96xf32> to vector<2x32xf32>
    %466 = arith.addf %464, %465 : vector<2x32xf32>
    %467 = arith.negf %466 : vector<2x32xf32>
    %468 = math.exp %467 : vector<2x32xf32>
    %cst_86 = arith.constant 1.000000e+00 : f32
    %469 = vector.broadcast %cst_86 : f32 to vector<2x32xf32>
    %470 = arith.addf %469, %468 : vector<2x32xf32>
    %471 = arith.divf %469, %470 : vector<2x32xf32>
    %472 = vector.extract_strided_slice %455 {offsets = [0, 64], sizes = [2, 32], strides = [1, 1]} : vector<2x96xf32> to vector<2x32xf32>
    %473 = vector.extract_strided_slice %453 {offsets = [0, 64], sizes = [2, 32], strides = [1, 1]} : vector<2x96xf32> to vector<2x32xf32>
    %474 = arith.mulf %463, %473 : vector<2x32xf32>
    %475 = arith.addf %472, %474 : vector<2x32xf32>
    %476 = math.tanh %475 : vector<2x32xf32>
    %cst_87 = arith.constant 1.000000e+00 : f32
    %477 = vector.broadcast %cst_87 : f32 to vector<2x32xf32>
    %478 = arith.subf %477, %471 : vector<2x32xf32>
    %479 = arith.mulf %478, %476 : vector<2x32xf32>
    %480 = arith.mulf %471, %449 : vector<2x32xf32>
    %481 = arith.addf %479, %480 : vector<2x32xf32>
    %c26 = arith.constant 26 : index
    %c0_88 = arith.constant 0 : index
    %482 = vector.load %arg3[%c26, %c0_88] : memref<32x32xf32, #tpu.memory_space<vmem>>, vector<2x32xf32>
    tpu.vector_store %arg3[%c26, %c0_88], %481 {strides = array<i32>} : memref<32x32xf32, #tpu.memory_space<vmem>>, vector<2x32xf32>,
    %cst_89 = arith.constant dense<0.000000e+00> : vector<2x96xf32>
    %483 = tpu.matmul %481, %27, %cst_89 {dimension_numbers = #tpu.dot_dimension_numbers<[1], [0], [0], [1], [0, 0, 1, 1], [], []>} : vector<2x32xf32>, vector<32x96xf32>, vector<2x96xf32> -> vector<2x96xf32>
    %484 = vector.broadcast %29 : vector<1x96xf32> to vector<2x96xf32>
    %485 = arith.addf %483, %484 : vector<2x96xf32>
    %486 = vector.extract_strided_slice %33 {offsets = [0, 14, 0], sizes = [2, 1, 96], strides = [1, 1, 1]} : vector<2x16x96xf32> to vector<2x1x96xf32>
    %487 = vector.shape_cast %486 : vector<2x1x96xf32> to vector<2x96xf32>
    %488 = vector.extract_strided_slice %487 {offsets = [0, 0], sizes = [2, 32], strides = [1, 1]} : vector<2x96xf32> to vector<2x32xf32>
    %489 = vector.extract_strided_slice %485 {offsets = [0, 0], sizes = [2, 32], strides = [1, 1]} : vector<2x96xf32> to vector<2x32xf32>
    %490 = arith.addf %488, %489 : vector<2x32xf32>
    %491 = arith.negf %490 : vector<2x32xf32>
    %492 = math.exp %491 : vector<2x32xf32>
    %cst_90 = arith.constant 1.000000e+00 : f32
    %493 = vector.broadcast %cst_90 : f32 to vector<2x32xf32>
    %494 = arith.addf %493, %492 : vector<2x32xf32>
    %495 = arith.divf %493, %494 : vector<2x32xf32>
    %496 = vector.extract_strided_slice %487 {offsets = [0, 32], sizes = [2, 32], strides = [1, 1]} : vector<2x96xf32> to vector<2x32xf32>
    %497 = vector.extract_strided_slice %485 {offsets = [0, 32], sizes = [2, 32], strides = [1, 1]} : vector<2x96xf32> to vector<2x32xf32>
    %498 = arith.addf %496, %497 : vector<2x32xf32>
    %499 = arith.negf %498 : vector<2x32xf32>
    %500 = math.exp %499 : vector<2x32xf32>
    %cst_91 = arith.constant 1.000000e+00 : f32
    %501 = vector.broadcast %cst_91 : f32 to vector<2x32xf32>
    %502 = arith.addf %501, %500 : vector<2x32xf32>
    %503 = arith.divf %501, %502 : vector<2x32xf32>
    %504 = vector.extract_strided_slice %487 {offsets = [0, 64], sizes = [2, 32], strides = [1, 1]} : vector<2x96xf32> to vector<2x32xf32>
    %505 = vector.extract_strided_slice %485 {offsets = [0, 64], sizes = [2, 32], strides = [1, 1]} : vector<2x96xf32> to vector<2x32xf32>
    %506 = arith.mulf %495, %505 : vector<2x32xf32>
    %507 = arith.addf %504, %506 : vector<2x32xf32>
    %508 = math.tanh %507 : vector<2x32xf32>
    %cst_92 = arith.constant 1.000000e+00 : f32
    %509 = vector.broadcast %cst_92 : f32 to vector<2x32xf32>
    %510 = arith.subf %509, %503 : vector<2x32xf32>
    %511 = arith.mulf %510, %508 : vector<2x32xf32>
    %512 = arith.mulf %503, %481 : vector<2x32xf32>
    %513 = arith.addf %511, %512 : vector<2x32xf32>
    %c28 = arith.constant 28 : index
    %c0_93 = arith.constant 0 : index
    %514 = vector.load %arg3[%c28, %c0_93] : memref<32x32xf32, #tpu.memory_space<vmem>>, vector<2x32xf32>
    tpu.vector_store %arg3[%c28, %c0_93], %513 {strides = array<i32>} : memref<32x32xf32, #tpu.memory_space<vmem>>, vector<2x32xf32>,
    %cst_94 = arith.constant dense<0.000000e+00> : vector<2x96xf32>
    %515 = tpu.matmul %513, %27, %cst_94 {dimension_numbers = #tpu.dot_dimension_numbers<[1], [0], [0], [1], [0, 0, 1, 1], [], []>} : vector<2x32xf32>, vector<32x96xf32>, vector<2x96xf32> -> vector<2x96xf32>
    %516 = vector.broadcast %29 : vector<1x96xf32> to vector<2x96xf32>
    %517 = arith.addf %515, %516 : vector<2x96xf32>
    %518 = vector.extract_strided_slice %33 {offsets = [0, 15, 0], sizes = [2, 1, 96], strides = [1, 1, 1]} : vector<2x16x96xf32> to vector<2x1x96xf32>
    %519 = vector.shape_cast %518 : vector<2x1x96xf32> to vector<2x96xf32>
    %520 = vector.extract_strided_slice %519 {offsets = [0, 0], sizes = [2, 32], strides = [1, 1]} : vector<2x96xf32> to vector<2x32xf32>
    %521 = vector.extract_strided_slice %517 {offsets = [0, 0], sizes = [2, 32], strides = [1, 1]} : vector<2x96xf32> to vector<2x32xf32>
    %522 = arith.addf %520, %521 : vector<2x32xf32>
    %523 = arith.negf %522 : vector<2x32xf32>
    %524 = math.exp %523 : vector<2x32xf32>
    %cst_95 = arith.constant 1.000000e+00 : f32
    %525 = vector.broadcast %cst_95 : f32 to vector<2x32xf32>
    %526 = arith.addf %525, %524 : vector<2x32xf32>
    %527 = arith.divf %525, %526 : vector<2x32xf32>
    %528 = vector.extract_strided_slice %519 {offsets = [0, 32], sizes = [2, 32], strides = [1, 1]} : vector<2x96xf32> to vector<2x32xf32>
    %529 = vector.extract_strided_slice %517 {offsets = [0, 32], sizes = [2, 32], strides = [1, 1]} : vector<2x96xf32> to vector<2x32xf32>
    %530 = arith.addf %528, %529 : vector<2x32xf32>
    %531 = arith.negf %530 : vector<2x32xf32>
    %532 = math.exp %531 : vector<2x32xf32>
    %cst_96 = arith.constant 1.000000e+00 : f32
    %533 = vector.broadcast %cst_96 : f32 to vector<2x32xf32>
    %534 = arith.addf %533, %532 : vector<2x32xf32>
    %535 = arith.divf %533, %534 : vector<2x32xf32>
    %536 = vector.extract_strided_slice %519 {offsets = [0, 64], sizes = [2, 32], strides = [1, 1]} : vector<2x96xf32> to vector<2x32xf32>
    %537 = vector.extract_strided_slice %517 {offsets = [0, 64], sizes = [2, 32], strides = [1, 1]} : vector<2x96xf32> to vector<2x32xf32>
    %538 = arith.mulf %527, %537 : vector<2x32xf32>
    %539 = arith.addf %536, %538 : vector<2x32xf32>
    %540 = math.tanh %539 : vector<2x32xf32>
    %cst_97 = arith.constant 1.000000e+00 : f32
    %541 = vector.broadcast %cst_97 : f32 to vector<2x32xf32>
    %542 = arith.subf %541, %535 : vector<2x32xf32>
    %543 = arith.mulf %542, %540 : vector<2x32xf32>
    %544 = arith.mulf %535, %513 : vector<2x32xf32>
    %545 = arith.addf %543, %544 : vector<2x32xf32>
    %c30 = arith.constant 30 : index
    %c0_98 = arith.constant 0 : index
    %546 = vector.load %arg3[%c30, %c0_98] : memref<32x32xf32, #tpu.memory_space<vmem>>, vector<2x32xf32>
    tpu.vector_store %arg3[%c30, %c0_98], %545 {strides = array<i32>} : memref<32x32xf32, #tpu.memory_space<vmem>>, vector<2x32xf32>,
    %c0_99 = arith.constant 0 : index
    %c0_100 = arith.constant 0 : index
    %547 = vector.load %arg3[%c0_99, %c0_100] : memref<32x32xf32, #tpu.memory_space<vmem>>, vector<32x32xf32>
    %c96 = arith.constant 96 : index
    %c0_101 = arith.constant 0 : index
    %548 = vector.load %arg1[%c96, %c0_101] : memref<280x128xf32, #tpu.memory_space<vmem>>, vector<32x96xf32>
    %c128 = arith.constant 128 : index
    %c0_102 = arith.constant 0 : index
    %549 = vector.load %arg1[%c128, %c0_102] : memref<280x128xf32, #tpu.memory_space<vmem>>, vector<32x96xf32>
    %c160 = arith.constant 160 : index
    %c0_103 = arith.constant 0 : index
    %550 = vector.load %arg1[%c160, %c0_103] : memref<280x128xf32, #tpu.memory_space<vmem>>, vector<1x96xf32>
    %c168 = arith.constant 168 : index
    %c0_104 = arith.constant 0 : index
    %551 = vector.load %arg1[%c168, %c0_104] : memref<280x128xf32, #tpu.memory_space<vmem>>, vector<1x96xf32>
    %cst_105 = arith.constant dense<0.000000e+00> : vector<32x96xf32>
    %552 = tpu.matmul %547, %548, %cst_105 {dimension_numbers = #tpu.dot_dimension_numbers<[1], [0], [0], [1], [0, 0, 1, 1], [], []>} : vector<32x32xf32>, vector<32x96xf32>, vector<32x96xf32> -> vector<32x96xf32>
    %553 = vector.broadcast %550 : vector<1x96xf32> to vector<32x96xf32>
    %554 = arith.addf %552, %553 : vector<32x96xf32>
    %cst_106 = arith.constant 0.000000e+00 : f32
    %555 = vector.broadcast %cst_106 : f32 to vector<2x32xf32>
    %cst_107 = arith.constant dense<0.000000e+00> : vector<2x96xf32>
    %556 = tpu.matmul %555, %549, %cst_107 {dimension_numbers = #tpu.dot_dimension_numbers<[1], [0], [0], [1], [0, 0, 1, 1], [], []>} : vector<2x32xf32>, vector<32x96xf32>, vector<2x96xf32> -> vector<2x96xf32>
    %557 = vector.broadcast %551 : vector<1x96xf32> to vector<2x96xf32>
    %558 = arith.addf %556, %557 : vector<2x96xf32>
    %559 = vector.extract_strided_slice %554 {offsets = [0, 0], sizes = [2, 96], strides = [1, 1]} : vector<32x96xf32> to vector<2x96xf32>
    %560 = vector.extract_strided_slice %559 {offsets = [0, 0], sizes = [2, 32], strides = [1, 1]} : vector<2x96xf32> to vector<2x32xf32>
    %561 = vector.extract_strided_slice %558 {offsets = [0, 0], sizes = [2, 32], strides = [1, 1]} : vector<2x96xf32> to vector<2x32xf32>
    %562 = arith.addf %560, %561 : vector<2x32xf32>
    %563 = arith.negf %562 : vector<2x32xf32>
    %564 = math.exp %563 : vector<2x32xf32>
    %cst_108 = arith.constant 1.000000e+00 : f32
    %565 = vector.broadcast %cst_108 : f32 to vector<2x32xf32>
    %566 = arith.addf %565, %564 : vector<2x32xf32>
    %567 = arith.divf %565, %566 : vector<2x32xf32>
    %568 = vector.extract_strided_slice %559 {offsets = [0, 32], sizes = [2, 32], strides = [1, 1]} : vector<2x96xf32> to vector<2x32xf32>
    %569 = vector.extract_strided_slice %558 {offsets = [0, 32], sizes = [2, 32], strides = [1, 1]} : vector<2x96xf32> to vector<2x32xf32>
    %570 = arith.addf %568, %569 : vector<2x32xf32>
    %571 = arith.negf %570 : vector<2x32xf32>
    %572 = math.exp %571 : vector<2x32xf32>
    %cst_109 = arith.constant 1.000000e+00 : f32
    %573 = vector.broadcast %cst_109 : f32 to vector<2x32xf32>
    %574 = arith.addf %573, %572 : vector<2x32xf32>
    %575 = arith.divf %573, %574 : vector<2x32xf32>
    %576 = vector.extract_strided_slice %559 {offsets = [0, 64], sizes = [2, 32], strides = [1, 1]} : vector<2x96xf32> to vector<2x32xf32>
    %577 = vector.extract_strided_slice %558 {offsets = [0, 64], sizes = [2, 32], strides = [1, 1]} : vector<2x96xf32> to vector<2x32xf32>
    %578 = arith.mulf %567, %577 : vector<2x32xf32>
    %579 = arith.addf %576, %578 : vector<2x32xf32>
    %580 = math.tanh %579 : vector<2x32xf32>
    %cst_110 = arith.constant 1.000000e+00 : f32
    %581 = vector.broadcast %cst_110 : f32 to vector<2x32xf32>
    %582 = arith.subf %581, %575 : vector<2x32xf32>
    %583 = arith.mulf %582, %580 : vector<2x32xf32>
    %584 = arith.mulf %575, %555 : vector<2x32xf32>
    %585 = arith.addf %583, %584 : vector<2x32xf32>
    %c0_111 = arith.constant 0 : index
    %c0_112 = arith.constant 0 : index
    %586 = vector.load %arg4[%c0_111, %c0_112] : memref<32x32xf32, #tpu.memory_space<vmem>>, vector<2x32xf32>
    tpu.vector_store %arg4[%c0_111, %c0_112], %585 {strides = array<i32>} : memref<32x32xf32, #tpu.memory_space<vmem>>, vector<2x32xf32>,
    %cst_113 = arith.constant dense<0.000000e+00> : vector<2x96xf32>
    %587 = tpu.matmul %585, %549, %cst_113 {dimension_numbers = #tpu.dot_dimension_numbers<[1], [0], [0], [1], [0, 0, 1, 1], [], []>} : vector<2x32xf32>, vector<32x96xf32>, vector<2x96xf32> -> vector<2x96xf32>
    %588 = vector.broadcast %551 : vector<1x96xf32> to vector<2x96xf32>
    %589 = arith.addf %587, %588 : vector<2x96xf32>
    %590 = vector.extract_strided_slice %554 {offsets = [2, 0], sizes = [2, 96], strides = [1, 1]} : vector<32x96xf32> to vector<2x96xf32>
    %591 = vector.extract_strided_slice %590 {offsets = [0, 0], sizes = [2, 32], strides = [1, 1]} : vector<2x96xf32> to vector<2x32xf32>
    %592 = vector.extract_strided_slice %589 {offsets = [0, 0], sizes = [2, 32], strides = [1, 1]} : vector<2x96xf32> to vector<2x32xf32>
    %593 = arith.addf %591, %592 : vector<2x32xf32>
    %594 = arith.negf %593 : vector<2x32xf32>
    %595 = math.exp %594 : vector<2x32xf32>
    %cst_114 = arith.constant 1.000000e+00 : f32
    %596 = vector.broadcast %cst_114 : f32 to vector<2x32xf32>
    %597 = arith.addf %596, %595 : vector<2x32xf32>
    %598 = arith.divf %596, %597 : vector<2x32xf32>
    %599 = vector.extract_strided_slice %590 {offsets = [0, 32], sizes = [2, 32], strides = [1, 1]} : vector<2x96xf32> to vector<2x32xf32>
    %600 = vector.extract_strided_slice %589 {offsets = [0, 32], sizes = [2, 32], strides = [1, 1]} : vector<2x96xf32> to vector<2x32xf32>
    %601 = arith.addf %599, %600 : vector<2x32xf32>
    %602 = arith.negf %601 : vector<2x32xf32>
    %603 = math.exp %602 : vector<2x32xf32>
    %cst_115 = arith.constant 1.000000e+00 : f32
    %604 = vector.broadcast %cst_115 : f32 to vector<2x32xf32>
    %605 = arith.addf %604, %603 : vector<2x32xf32>
    %606 = arith.divf %604, %605 : vector<2x32xf32>
    %607 = vector.extract_strided_slice %590 {offsets = [0, 64], sizes = [2, 32], strides = [1, 1]} : vector<2x96xf32> to vector<2x32xf32>
    %608 = vector.extract_strided_slice %589 {offsets = [0, 64], sizes = [2, 32], strides = [1, 1]} : vector<2x96xf32> to vector<2x32xf32>
    %609 = arith.mulf %598, %608 : vector<2x32xf32>
    %610 = arith.addf %607, %609 : vector<2x32xf32>
    %611 = math.tanh %610 : vector<2x32xf32>
    %cst_116 = arith.constant 1.000000e+00 : f32
    %612 = vector.broadcast %cst_116 : f32 to vector<2x32xf32>
    %613 = arith.subf %612, %606 : vector<2x32xf32>
    %614 = arith.mulf %613, %611 : vector<2x32xf32>
    %615 = arith.mulf %606, %585 : vector<2x32xf32>
    %616 = arith.addf %614, %615 : vector<2x32xf32>
    %c2_117 = arith.constant 2 : index
    %c0_118 = arith.constant 0 : index
    %617 = vector.load %arg4[%c2_117, %c0_118] : memref<32x32xf32, #tpu.memory_space<vmem>>, vector<2x32xf32>
    tpu.vector_store %arg4[%c2_117, %c0_118], %616 {strides = array<i32>} : memref<32x32xf32, #tpu.memory_space<vmem>>, vector<2x32xf32>,
    %cst_119 = arith.constant dense<0.000000e+00> : vector<2x96xf32>
    %618 = tpu.matmul %616, %549, %cst_119 {dimension_numbers = #tpu.dot_dimension_numbers<[1], [0], [0], [1], [0, 0, 1, 1], [], []>} : vector<2x32xf32>, vector<32x96xf32>, vector<2x96xf32> -> vector<2x96xf32>
    %619 = vector.broadcast %551 : vector<1x96xf32> to vector<2x96xf32>
    %620 = arith.addf %618, %619 : vector<2x96xf32>
    %621 = vector.extract_strided_slice %554 {offsets = [4, 0], sizes = [2, 96], strides = [1, 1]} : vector<32x96xf32> to vector<2x96xf32>
    %622 = vector.extract_strided_slice %621 {offsets = [0, 0], sizes = [2, 32], strides = [1, 1]} : vector<2x96xf32> to vector<2x32xf32>
    %623 = vector.extract_strided_slice %620 {offsets = [0, 0], sizes = [2, 32], strides = [1, 1]} : vector<2x96xf32> to vector<2x32xf32>
    %624 = arith.addf %622, %623 : vector<2x32xf32>
    %625 = arith.negf %624 : vector<2x32xf32>
    %626 = math.exp %625 : vector<2x32xf32>
    %cst_120 = arith.constant 1.000000e+00 : f32
    %627 = vector.broadcast %cst_120 : f32 to vector<2x32xf32>
    %628 = arith.addf %627, %626 : vector<2x32xf32>
    %629 = arith.divf %627, %628 : vector<2x32xf32>
    %630 = vector.extract_strided_slice %621 {offsets = [0, 32], sizes = [2, 32], strides = [1, 1]} : vector<2x96xf32> to vector<2x32xf32>
    %631 = vector.extract_strided_slice %620 {offsets = [0, 32], sizes = [2, 32], strides = [1, 1]} : vector<2x96xf32> to vector<2x32xf32>
    %632 = arith.addf %630, %631 : vector<2x32xf32>
    %633 = arith.negf %632 : vector<2x32xf32>
    %634 = math.exp %633 : vector<2x32xf32>
    %cst_121 = arith.constant 1.000000e+00 : f32
    %635 = vector.broadcast %cst_121 : f32 to vector<2x32xf32>
    %636 = arith.addf %635, %634 : vector<2x32xf32>
    %637 = arith.divf %635, %636 : vector<2x32xf32>
    %638 = vector.extract_strided_slice %621 {offsets = [0, 64], sizes = [2, 32], strides = [1, 1]} : vector<2x96xf32> to vector<2x32xf32>
    %639 = vector.extract_strided_slice %620 {offsets = [0, 64], sizes = [2, 32], strides = [1, 1]} : vector<2x96xf32> to vector<2x32xf32>
    %640 = arith.mulf %629, %639 : vector<2x32xf32>
    %641 = arith.addf %638, %640 : vector<2x32xf32>
    %642 = math.tanh %641 : vector<2x32xf32>
    %cst_122 = arith.constant 1.000000e+00 : f32
    %643 = vector.broadcast %cst_122 : f32 to vector<2x32xf32>
    %644 = arith.subf %643, %637 : vector<2x32xf32>
    %645 = arith.mulf %644, %642 : vector<2x32xf32>
    %646 = arith.mulf %637, %616 : vector<2x32xf32>
    %647 = arith.addf %645, %646 : vector<2x32xf32>
    %c4_123 = arith.constant 4 : index
    %c0_124 = arith.constant 0 : index
    %648 = vector.load %arg4[%c4_123, %c0_124] : memref<32x32xf32, #tpu.memory_space<vmem>>, vector<2x32xf32>
    tpu.vector_store %arg4[%c4_123, %c0_124], %647 {strides = array<i32>} : memref<32x32xf32, #tpu.memory_space<vmem>>, vector<2x32xf32>,
    %cst_125 = arith.constant dense<0.000000e+00> : vector<2x96xf32>
    %649 = tpu.matmul %647, %549, %cst_125 {dimension_numbers = #tpu.dot_dimension_numbers<[1], [0], [0], [1], [0, 0, 1, 1], [], []>} : vector<2x32xf32>, vector<32x96xf32>, vector<2x96xf32> -> vector<2x96xf32>
    %650 = vector.broadcast %551 : vector<1x96xf32> to vector<2x96xf32>
    %651 = arith.addf %649, %650 : vector<2x96xf32>
    %652 = vector.extract_strided_slice %554 {offsets = [6, 0], sizes = [2, 96], strides = [1, 1]} : vector<32x96xf32> to vector<2x96xf32>
    %653 = vector.extract_strided_slice %652 {offsets = [0, 0], sizes = [2, 32], strides = [1, 1]} : vector<2x96xf32> to vector<2x32xf32>
    %654 = vector.extract_strided_slice %651 {offsets = [0, 0], sizes = [2, 32], strides = [1, 1]} : vector<2x96xf32> to vector<2x32xf32>
    %655 = arith.addf %653, %654 : vector<2x32xf32>
    %656 = arith.negf %655 : vector<2x32xf32>
    %657 = math.exp %656 : vector<2x32xf32>
    %cst_126 = arith.constant 1.000000e+00 : f32
    %658 = vector.broadcast %cst_126 : f32 to vector<2x32xf32>
    %659 = arith.addf %658, %657 : vector<2x32xf32>
    %660 = arith.divf %658, %659 : vector<2x32xf32>
    %661 = vector.extract_strided_slice %652 {offsets = [0, 32], sizes = [2, 32], strides = [1, 1]} : vector<2x96xf32> to vector<2x32xf32>
    %662 = vector.extract_strided_slice %651 {offsets = [0, 32], sizes = [2, 32], strides = [1, 1]} : vector<2x96xf32> to vector<2x32xf32>
    %663 = arith.addf %661, %662 : vector<2x32xf32>
    %664 = arith.negf %663 : vector<2x32xf32>
    %665 = math.exp %664 : vector<2x32xf32>
    %cst_127 = arith.constant 1.000000e+00 : f32
    %666 = vector.broadcast %cst_127 : f32 to vector<2x32xf32>
    %667 = arith.addf %666, %665 : vector<2x32xf32>
    %668 = arith.divf %666, %667 : vector<2x32xf32>
    %669 = vector.extract_strided_slice %652 {offsets = [0, 64], sizes = [2, 32], strides = [1, 1]} : vector<2x96xf32> to vector<2x32xf32>
    %670 = vector.extract_strided_slice %651 {offsets = [0, 64], sizes = [2, 32], strides = [1, 1]} : vector<2x96xf32> to vector<2x32xf32>
    %671 = arith.mulf %660, %670 : vector<2x32xf32>
    %672 = arith.addf %669, %671 : vector<2x32xf32>
    %673 = math.tanh %672 : vector<2x32xf32>
    %cst_128 = arith.constant 1.000000e+00 : f32
    %674 = vector.broadcast %cst_128 : f32 to vector<2x32xf32>
    %675 = arith.subf %674, %668 : vector<2x32xf32>
    %676 = arith.mulf %675, %673 : vector<2x32xf32>
    %677 = arith.mulf %668, %647 : vector<2x32xf32>
    %678 = arith.addf %676, %677 : vector<2x32xf32>
    %c6_129 = arith.constant 6 : index
    %c0_130 = arith.constant 0 : index
    %679 = vector.load %arg4[%c6_129, %c0_130] : memref<32x32xf32, #tpu.memory_space<vmem>>, vector<2x32xf32>
    tpu.vector_store %arg4[%c6_129, %c0_130], %678 {strides = array<i32>} : memref<32x32xf32, #tpu.memory_space<vmem>>, vector<2x32xf32>,
    %cst_131 = arith.constant dense<0.000000e+00> : vector<2x96xf32>
    %680 = tpu.matmul %678, %549, %cst_131 {dimension_numbers = #tpu.dot_dimension_numbers<[1], [0], [0], [1], [0, 0, 1, 1], [], []>} : vector<2x32xf32>, vector<32x96xf32>, vector<2x96xf32> -> vector<2x96xf32>
    %681 = vector.broadcast %551 : vector<1x96xf32> to vector<2x96xf32>
    %682 = arith.addf %680, %681 : vector<2x96xf32>
    %683 = vector.extract_strided_slice %554 {offsets = [8, 0], sizes = [2, 96], strides = [1, 1]} : vector<32x96xf32> to vector<2x96xf32>
    %684 = vector.extract_strided_slice %683 {offsets = [0, 0], sizes = [2, 32], strides = [1, 1]} : vector<2x96xf32> to vector<2x32xf32>
    %685 = vector.extract_strided_slice %682 {offsets = [0, 0], sizes = [2, 32], strides = [1, 1]} : vector<2x96xf32> to vector<2x32xf32>
    %686 = arith.addf %684, %685 : vector<2x32xf32>
    %687 = arith.negf %686 : vector<2x32xf32>
    %688 = math.exp %687 : vector<2x32xf32>
    %cst_132 = arith.constant 1.000000e+00 : f32
    %689 = vector.broadcast %cst_132 : f32 to vector<2x32xf32>
    %690 = arith.addf %689, %688 : vector<2x32xf32>
    %691 = arith.divf %689, %690 : vector<2x32xf32>
    %692 = vector.extract_strided_slice %683 {offsets = [0, 32], sizes = [2, 32], strides = [1, 1]} : vector<2x96xf32> to vector<2x32xf32>
    %693 = vector.extract_strided_slice %682 {offsets = [0, 32], sizes = [2, 32], strides = [1, 1]} : vector<2x96xf32> to vector<2x32xf32>
    %694 = arith.addf %692, %693 : vector<2x32xf32>
    %695 = arith.negf %694 : vector<2x32xf32>
    %696 = math.exp %695 : vector<2x32xf32>
    %cst_133 = arith.constant 1.000000e+00 : f32
    %697 = vector.broadcast %cst_133 : f32 to vector<2x32xf32>
    %698 = arith.addf %697, %696 : vector<2x32xf32>
    %699 = arith.divf %697, %698 : vector<2x32xf32>
    %700 = vector.extract_strided_slice %683 {offsets = [0, 64], sizes = [2, 32], strides = [1, 1]} : vector<2x96xf32> to vector<2x32xf32>
    %701 = vector.extract_strided_slice %682 {offsets = [0, 64], sizes = [2, 32], strides = [1, 1]} : vector<2x96xf32> to vector<2x32xf32>
    %702 = arith.mulf %691, %701 : vector<2x32xf32>
    %703 = arith.addf %700, %702 : vector<2x32xf32>
    %704 = math.tanh %703 : vector<2x32xf32>
    %cst_134 = arith.constant 1.000000e+00 : f32
    %705 = vector.broadcast %cst_134 : f32 to vector<2x32xf32>
    %706 = arith.subf %705, %699 : vector<2x32xf32>
    %707 = arith.mulf %706, %704 : vector<2x32xf32>
    %708 = arith.mulf %699, %678 : vector<2x32xf32>
    %709 = arith.addf %707, %708 : vector<2x32xf32>
    %c8_135 = arith.constant 8 : index
    %c0_136 = arith.constant 0 : index
    %710 = vector.load %arg4[%c8_135, %c0_136] : memref<32x32xf32, #tpu.memory_space<vmem>>, vector<2x32xf32>
    tpu.vector_store %arg4[%c8_135, %c0_136], %709 {strides = array<i32>} : memref<32x32xf32, #tpu.memory_space<vmem>>, vector<2x32xf32>,
    %cst_137 = arith.constant dense<0.000000e+00> : vector<2x96xf32>
    %711 = tpu.matmul %709, %549, %cst_137 {dimension_numbers = #tpu.dot_dimension_numbers<[1], [0], [0], [1], [0, 0, 1, 1], [], []>} : vector<2x32xf32>, vector<32x96xf32>, vector<2x96xf32> -> vector<2x96xf32>
    %712 = vector.broadcast %551 : vector<1x96xf32> to vector<2x96xf32>
    %713 = arith.addf %711, %712 : vector<2x96xf32>
    %714 = vector.extract_strided_slice %554 {offsets = [10, 0], sizes = [2, 96], strides = [1, 1]} : vector<32x96xf32> to vector<2x96xf32>
    %715 = vector.extract_strided_slice %714 {offsets = [0, 0], sizes = [2, 32], strides = [1, 1]} : vector<2x96xf32> to vector<2x32xf32>
    %716 = vector.extract_strided_slice %713 {offsets = [0, 0], sizes = [2, 32], strides = [1, 1]} : vector<2x96xf32> to vector<2x32xf32>
    %717 = arith.addf %715, %716 : vector<2x32xf32>
    %718 = arith.negf %717 : vector<2x32xf32>
    %719 = math.exp %718 : vector<2x32xf32>
    %cst_138 = arith.constant 1.000000e+00 : f32
    %720 = vector.broadcast %cst_138 : f32 to vector<2x32xf32>
    %721 = arith.addf %720, %719 : vector<2x32xf32>
    %722 = arith.divf %720, %721 : vector<2x32xf32>
    %723 = vector.extract_strided_slice %714 {offsets = [0, 32], sizes = [2, 32], strides = [1, 1]} : vector<2x96xf32> to vector<2x32xf32>
    %724 = vector.extract_strided_slice %713 {offsets = [0, 32], sizes = [2, 32], strides = [1, 1]} : vector<2x96xf32> to vector<2x32xf32>
    %725 = arith.addf %723, %724 : vector<2x32xf32>
    %726 = arith.negf %725 : vector<2x32xf32>
    %727 = math.exp %726 : vector<2x32xf32>
    %cst_139 = arith.constant 1.000000e+00 : f32
    %728 = vector.broadcast %cst_139 : f32 to vector<2x32xf32>
    %729 = arith.addf %728, %727 : vector<2x32xf32>
    %730 = arith.divf %728, %729 : vector<2x32xf32>
    %731 = vector.extract_strided_slice %714 {offsets = [0, 64], sizes = [2, 32], strides = [1, 1]} : vector<2x96xf32> to vector<2x32xf32>
    %732 = vector.extract_strided_slice %713 {offsets = [0, 64], sizes = [2, 32], strides = [1, 1]} : vector<2x96xf32> to vector<2x32xf32>
    %733 = arith.mulf %722, %732 : vector<2x32xf32>
    %734 = arith.addf %731, %733 : vector<2x32xf32>
    %735 = math.tanh %734 : vector<2x32xf32>
    %cst_140 = arith.constant 1.000000e+00 : f32
    %736 = vector.broadcast %cst_140 : f32 to vector<2x32xf32>
    %737 = arith.subf %736, %730 : vector<2x32xf32>
    %738 = arith.mulf %737, %735 : vector<2x32xf32>
    %739 = arith.mulf %730, %709 : vector<2x32xf32>
    %740 = arith.addf %738, %739 : vector<2x32xf32>
    %c10_141 = arith.constant 10 : index
    %c0_142 = arith.constant 0 : index
    %741 = vector.load %arg4[%c10_141, %c0_142] : memref<32x32xf32, #tpu.memory_space<vmem>>, vector<2x32xf32>
    tpu.vector_store %arg4[%c10_141, %c0_142], %740 {strides = array<i32>} : memref<32x32xf32, #tpu.memory_space<vmem>>, vector<2x32xf32>,
    %cst_143 = arith.constant dense<0.000000e+00> : vector<2x96xf32>
    %742 = tpu.matmul %740, %549, %cst_143 {dimension_numbers = #tpu.dot_dimension_numbers<[1], [0], [0], [1], [0, 0, 1, 1], [], []>} : vector<2x32xf32>, vector<32x96xf32>, vector<2x96xf32> -> vector<2x96xf32>
    %743 = vector.broadcast %551 : vector<1x96xf32> to vector<2x96xf32>
    %744 = arith.addf %742, %743 : vector<2x96xf32>
    %745 = vector.extract_strided_slice %554 {offsets = [12, 0], sizes = [2, 96], strides = [1, 1]} : vector<32x96xf32> to vector<2x96xf32>
    %746 = vector.extract_strided_slice %745 {offsets = [0, 0], sizes = [2, 32], strides = [1, 1]} : vector<2x96xf32> to vector<2x32xf32>
    %747 = vector.extract_strided_slice %744 {offsets = [0, 0], sizes = [2, 32], strides = [1, 1]} : vector<2x96xf32> to vector<2x32xf32>
    %748 = arith.addf %746, %747 : vector<2x32xf32>
    %749 = arith.negf %748 : vector<2x32xf32>
    %750 = math.exp %749 : vector<2x32xf32>
    %cst_144 = arith.constant 1.000000e+00 : f32
    %751 = vector.broadcast %cst_144 : f32 to vector<2x32xf32>
    %752 = arith.addf %751, %750 : vector<2x32xf32>
    %753 = arith.divf %751, %752 : vector<2x32xf32>
    %754 = vector.extract_strided_slice %745 {offsets = [0, 32], sizes = [2, 32], strides = [1, 1]} : vector<2x96xf32> to vector<2x32xf32>
    %755 = vector.extract_strided_slice %744 {offsets = [0, 32], sizes = [2, 32], strides = [1, 1]} : vector<2x96xf32> to vector<2x32xf32>
    %756 = arith.addf %754, %755 : vector<2x32xf32>
    %757 = arith.negf %756 : vector<2x32xf32>
    %758 = math.exp %757 : vector<2x32xf32>
    %cst_145 = arith.constant 1.000000e+00 : f32
    %759 = vector.broadcast %cst_145 : f32 to vector<2x32xf32>
    %760 = arith.addf %759, %758 : vector<2x32xf32>
    %761 = arith.divf %759, %760 : vector<2x32xf32>
    %762 = vector.extract_strided_slice %745 {offsets = [0, 64], sizes = [2, 32], strides = [1, 1]} : vector<2x96xf32> to vector<2x32xf32>
    %763 = vector.extract_strided_slice %744 {offsets = [0, 64], sizes = [2, 32], strides = [1, 1]} : vector<2x96xf32> to vector<2x32xf32>
    %764 = arith.mulf %753, %763 : vector<2x32xf32>
    %765 = arith.addf %762, %764 : vector<2x32xf32>
    %766 = math.tanh %765 : vector<2x32xf32>
    %cst_146 = arith.constant 1.000000e+00 : f32
    %767 = vector.broadcast %cst_146 : f32 to vector<2x32xf32>
    %768 = arith.subf %767, %761 : vector<2x32xf32>
    %769 = arith.mulf %768, %766 : vector<2x32xf32>
    %770 = arith.mulf %761, %740 : vector<2x32xf32>
    %771 = arith.addf %769, %770 : vector<2x32xf32>
    %c12_147 = arith.constant 12 : index
    %c0_148 = arith.constant 0 : index
    %772 = vector.load %arg4[%c12_147, %c0_148] : memref<32x32xf32, #tpu.memory_space<vmem>>, vector<2x32xf32>
    tpu.vector_store %arg4[%c12_147, %c0_148], %771 {strides = array<i32>} : memref<32x32xf32, #tpu.memory_space<vmem>>, vector<2x32xf32>,
    %cst_149 = arith.constant dense<0.000000e+00> : vector<2x96xf32>
    %773 = tpu.matmul %771, %549, %cst_149 {dimension_numbers = #tpu.dot_dimension_numbers<[1], [0], [0], [1], [0, 0, 1, 1], [], []>} : vector<2x32xf32>, vector<32x96xf32>, vector<2x96xf32> -> vector<2x96xf32>
    %774 = vector.broadcast %551 : vector<1x96xf32> to vector<2x96xf32>
    %775 = arith.addf %773, %774 : vector<2x96xf32>
    %776 = vector.extract_strided_slice %554 {offsets = [14, 0], sizes = [2, 96], strides = [1, 1]} : vector<32x96xf32> to vector<2x96xf32>
    %777 = vector.extract_strided_slice %776 {offsets = [0, 0], sizes = [2, 32], strides = [1, 1]} : vector<2x96xf32> to vector<2x32xf32>
    %778 = vector.extract_strided_slice %775 {offsets = [0, 0], sizes = [2, 32], strides = [1, 1]} : vector<2x96xf32> to vector<2x32xf32>
    %779 = arith.addf %777, %778 : vector<2x32xf32>
    %780 = arith.negf %779 : vector<2x32xf32>
    %781 = math.exp %780 : vector<2x32xf32>
    %cst_150 = arith.constant 1.000000e+00 : f32
    %782 = vector.broadcast %cst_150 : f32 to vector<2x32xf32>
    %783 = arith.addf %782, %781 : vector<2x32xf32>
    %784 = arith.divf %782, %783 : vector<2x32xf32>
    %785 = vector.extract_strided_slice %776 {offsets = [0, 32], sizes = [2, 32], strides = [1, 1]} : vector<2x96xf32> to vector<2x32xf32>
    %786 = vector.extract_strided_slice %775 {offsets = [0, 32], sizes = [2, 32], strides = [1, 1]} : vector<2x96xf32> to vector<2x32xf32>
    %787 = arith.addf %785, %786 : vector<2x32xf32>
    %788 = arith.negf %787 : vector<2x32xf32>
    %789 = math.exp %788 : vector<2x32xf32>
    %cst_151 = arith.constant 1.000000e+00 : f32
    %790 = vector.broadcast %cst_151 : f32 to vector<2x32xf32>
    %791 = arith.addf %790, %789 : vector<2x32xf32>
    %792 = arith.divf %790, %791 : vector<2x32xf32>
    %793 = vector.extract_strided_slice %776 {offsets = [0, 64], sizes = [2, 32], strides = [1, 1]} : vector<2x96xf32> to vector<2x32xf32>
    %794 = vector.extract_strided_slice %775 {offsets = [0, 64], sizes = [2, 32], strides = [1, 1]} : vector<2x96xf32> to vector<2x32xf32>
    %795 = arith.mulf %784, %794 : vector<2x32xf32>
    %796 = arith.addf %793, %795 : vector<2x32xf32>
    %797 = math.tanh %796 : vector<2x32xf32>
    %cst_152 = arith.constant 1.000000e+00 : f32
    %798 = vector.broadcast %cst_152 : f32 to vector<2x32xf32>
    %799 = arith.subf %798, %792 : vector<2x32xf32>
    %800 = arith.mulf %799, %797 : vector<2x32xf32>
    %801 = arith.mulf %792, %771 : vector<2x32xf32>
    %802 = arith.addf %800, %801 : vector<2x32xf32>
    %c14_153 = arith.constant 14 : index
    %c0_154 = arith.constant 0 : index
    %803 = vector.load %arg4[%c14_153, %c0_154] : memref<32x32xf32, #tpu.memory_space<vmem>>, vector<2x32xf32>
    tpu.vector_store %arg4[%c14_153, %c0_154], %802 {strides = array<i32>} : memref<32x32xf32, #tpu.memory_space<vmem>>, vector<2x32xf32>,
    %cst_155 = arith.constant dense<0.000000e+00> : vector<2x96xf32>
    %804 = tpu.matmul %802, %549, %cst_155 {dimension_numbers = #tpu.dot_dimension_numbers<[1], [0], [0], [1], [0, 0, 1, 1], [], []>} : vector<2x32xf32>, vector<32x96xf32>, vector<2x96xf32> -> vector<2x96xf32>
    %805 = vector.broadcast %551 : vector<1x96xf32> to vector<2x96xf32>
    %806 = arith.addf %804, %805 : vector<2x96xf32>
    %807 = vector.extract_strided_slice %554 {offsets = [16, 0], sizes = [2, 96], strides = [1, 1]} : vector<32x96xf32> to vector<2x96xf32>
    %808 = vector.extract_strided_slice %807 {offsets = [0, 0], sizes = [2, 32], strides = [1, 1]} : vector<2x96xf32> to vector<2x32xf32>
    %809 = vector.extract_strided_slice %806 {offsets = [0, 0], sizes = [2, 32], strides = [1, 1]} : vector<2x96xf32> to vector<2x32xf32>
    %810 = arith.addf %808, %809 : vector<2x32xf32>
    %811 = arith.negf %810 : vector<2x32xf32>
    %812 = math.exp %811 : vector<2x32xf32>
    %cst_156 = arith.constant 1.000000e+00 : f32
    %813 = vector.broadcast %cst_156 : f32 to vector<2x32xf32>
    %814 = arith.addf %813, %812 : vector<2x32xf32>
    %815 = arith.divf %813, %814 : vector<2x32xf32>
    %816 = vector.extract_strided_slice %807 {offsets = [0, 32], sizes = [2, 32], strides = [1, 1]} : vector<2x96xf32> to vector<2x32xf32>
    %817 = vector.extract_strided_slice %806 {offsets = [0, 32], sizes = [2, 32], strides = [1, 1]} : vector<2x96xf32> to vector<2x32xf32>
    %818 = arith.addf %816, %817 : vector<2x32xf32>
    %819 = arith.negf %818 : vector<2x32xf32>
    %820 = math.exp %819 : vector<2x32xf32>
    %cst_157 = arith.constant 1.000000e+00 : f32
    %821 = vector.broadcast %cst_157 : f32 to vector<2x32xf32>
    %822 = arith.addf %821, %820 : vector<2x32xf32>
    %823 = arith.divf %821, %822 : vector<2x32xf32>
    %824 = vector.extract_strided_slice %807 {offsets = [0, 64], sizes = [2, 32], strides = [1, 1]} : vector<2x96xf32> to vector<2x32xf32>
    %825 = vector.extract_strided_slice %806 {offsets = [0, 64], sizes = [2, 32], strides = [1, 1]} : vector<2x96xf32> to vector<2x32xf32>
    %826 = arith.mulf %815, %825 : vector<2x32xf32>
    %827 = arith.addf %824, %826 : vector<2x32xf32>
    %828 = math.tanh %827 : vector<2x32xf32>
    %cst_158 = arith.constant 1.000000e+00 : f32
    %829 = vector.broadcast %cst_158 : f32 to vector<2x32xf32>
    %830 = arith.subf %829, %823 : vector<2x32xf32>
    %831 = arith.mulf %830, %828 : vector<2x32xf32>
    %832 = arith.mulf %823, %802 : vector<2x32xf32>
    %833 = arith.addf %831, %832 : vector<2x32xf32>
    %c16_159 = arith.constant 16 : index
    %c0_160 = arith.constant 0 : index
    %834 = vector.load %arg4[%c16_159, %c0_160] : memref<32x32xf32, #tpu.memory_space<vmem>>, vector<2x32xf32>
    tpu.vector_store %arg4[%c16_159, %c0_160], %833 {strides = array<i32>} : memref<32x32xf32, #tpu.memory_space<vmem>>, vector<2x32xf32>,
    %cst_161 = arith.constant dense<0.000000e+00> : vector<2x96xf32>
    %835 = tpu.matmul %833, %549, %cst_161 {dimension_numbers = #tpu.dot_dimension_numbers<[1], [0], [0], [1], [0, 0, 1, 1], [], []>} : vector<2x32xf32>, vector<32x96xf32>, vector<2x96xf32> -> vector<2x96xf32>
    %836 = vector.broadcast %551 : vector<1x96xf32> to vector<2x96xf32>
    %837 = arith.addf %835, %836 : vector<2x96xf32>
    %838 = vector.extract_strided_slice %554 {offsets = [18, 0], sizes = [2, 96], strides = [1, 1]} : vector<32x96xf32> to vector<2x96xf32>
    %839 = vector.extract_strided_slice %838 {offsets = [0, 0], sizes = [2, 32], strides = [1, 1]} : vector<2x96xf32> to vector<2x32xf32>
    %840 = vector.extract_strided_slice %837 {offsets = [0, 0], sizes = [2, 32], strides = [1, 1]} : vector<2x96xf32> to vector<2x32xf32>
    %841 = arith.addf %839, %840 : vector<2x32xf32>
    %842 = arith.negf %841 : vector<2x32xf32>
    %843 = math.exp %842 : vector<2x32xf32>
    %cst_162 = arith.constant 1.000000e+00 : f32
    %844 = vector.broadcast %cst_162 : f32 to vector<2x32xf32>
    %845 = arith.addf %844, %843 : vector<2x32xf32>
    %846 = arith.divf %844, %845 : vector<2x32xf32>
    %847 = vector.extract_strided_slice %838 {offsets = [0, 32], sizes = [2, 32], strides = [1, 1]} : vector<2x96xf32> to vector<2x32xf32>
    %848 = vector.extract_strided_slice %837 {offsets = [0, 32], sizes = [2, 32], strides = [1, 1]} : vector<2x96xf32> to vector<2x32xf32>
    %849 = arith.addf %847, %848 : vector<2x32xf32>
    %850 = arith.negf %849 : vector<2x32xf32>
    %851 = math.exp %850 : vector<2x32xf32>
    %cst_163 = arith.constant 1.000000e+00 : f32
    %852 = vector.broadcast %cst_163 : f32 to vector<2x32xf32>
    %853 = arith.addf %852, %851 : vector<2x32xf32>
    %854 = arith.divf %852, %853 : vector<2x32xf32>
    %855 = vector.extract_strided_slice %838 {offsets = [0, 64], sizes = [2, 32], strides = [1, 1]} : vector<2x96xf32> to vector<2x32xf32>
    %856 = vector.extract_strided_slice %837 {offsets = [0, 64], sizes = [2, 32], strides = [1, 1]} : vector<2x96xf32> to vector<2x32xf32>
    %857 = arith.mulf %846, %856 : vector<2x32xf32>
    %858 = arith.addf %855, %857 : vector<2x32xf32>
    %859 = math.tanh %858 : vector<2x32xf32>
    %cst_164 = arith.constant 1.000000e+00 : f32
    %860 = vector.broadcast %cst_164 : f32 to vector<2x32xf32>
    %861 = arith.subf %860, %854 : vector<2x32xf32>
    %862 = arith.mulf %861, %859 : vector<2x32xf32>
    %863 = arith.mulf %854, %833 : vector<2x32xf32>
    %864 = arith.addf %862, %863 : vector<2x32xf32>
    %c18_165 = arith.constant 18 : index
    %c0_166 = arith.constant 0 : index
    %865 = vector.load %arg4[%c18_165, %c0_166] : memref<32x32xf32, #tpu.memory_space<vmem>>, vector<2x32xf32>
    tpu.vector_store %arg4[%c18_165, %c0_166], %864 {strides = array<i32>} : memref<32x32xf32, #tpu.memory_space<vmem>>, vector<2x32xf32>,
    %cst_167 = arith.constant dense<0.000000e+00> : vector<2x96xf32>
    %866 = tpu.matmul %864, %549, %cst_167 {dimension_numbers = #tpu.dot_dimension_numbers<[1], [0], [0], [1], [0, 0, 1, 1], [], []>} : vector<2x32xf32>, vector<32x96xf32>, vector<2x96xf32> -> vector<2x96xf32>
    %867 = vector.broadcast %551 : vector<1x96xf32> to vector<2x96xf32>
    %868 = arith.addf %866, %867 : vector<2x96xf32>
    %869 = vector.extract_strided_slice %554 {offsets = [20, 0], sizes = [2, 96], strides = [1, 1]} : vector<32x96xf32> to vector<2x96xf32>
    %870 = vector.extract_strided_slice %869 {offsets = [0, 0], sizes = [2, 32], strides = [1, 1]} : vector<2x96xf32> to vector<2x32xf32>
    %871 = vector.extract_strided_slice %868 {offsets = [0, 0], sizes = [2, 32], strides = [1, 1]} : vector<2x96xf32> to vector<2x32xf32>
    %872 = arith.addf %870, %871 : vector<2x32xf32>
    %873 = arith.negf %872 : vector<2x32xf32>
    %874 = math.exp %873 : vector<2x32xf32>
    %cst_168 = arith.constant 1.000000e+00 : f32
    %875 = vector.broadcast %cst_168 : f32 to vector<2x32xf32>
    %876 = arith.addf %875, %874 : vector<2x32xf32>
    %877 = arith.divf %875, %876 : vector<2x32xf32>
    %878 = vector.extract_strided_slice %869 {offsets = [0, 32], sizes = [2, 32], strides = [1, 1]} : vector<2x96xf32> to vector<2x32xf32>
    %879 = vector.extract_strided_slice %868 {offsets = [0, 32], sizes = [2, 32], strides = [1, 1]} : vector<2x96xf32> to vector<2x32xf32>
    %880 = arith.addf %878, %879 : vector<2x32xf32>
    %881 = arith.negf %880 : vector<2x32xf32>
    %882 = math.exp %881 : vector<2x32xf32>
    %cst_169 = arith.constant 1.000000e+00 : f32
    %883 = vector.broadcast %cst_169 : f32 to vector<2x32xf32>
    %884 = arith.addf %883, %882 : vector<2x32xf32>
    %885 = arith.divf %883, %884 : vector<2x32xf32>
    %886 = vector.extract_strided_slice %869 {offsets = [0, 64], sizes = [2, 32], strides = [1, 1]} : vector<2x96xf32> to vector<2x32xf32>
    %887 = vector.extract_strided_slice %868 {offsets = [0, 64], sizes = [2, 32], strides = [1, 1]} : vector<2x96xf32> to vector<2x32xf32>
    %888 = arith.mulf %877, %887 : vector<2x32xf32>
    %889 = arith.addf %886, %888 : vector<2x32xf32>
    %890 = math.tanh %889 : vector<2x32xf32>
    %cst_170 = arith.constant 1.000000e+00 : f32
    %891 = vector.broadcast %cst_170 : f32 to vector<2x32xf32>
    %892 = arith.subf %891, %885 : vector<2x32xf32>
    %893 = arith.mulf %892, %890 : vector<2x32xf32>
    %894 = arith.mulf %885, %864 : vector<2x32xf32>
    %895 = arith.addf %893, %894 : vector<2x32xf32>
    %c20_171 = arith.constant 20 : index
    %c0_172 = arith.constant 0 : index
    %896 = vector.load %arg4[%c20_171, %c0_172] : memref<32x32xf32, #tpu.memory_space<vmem>>, vector<2x32xf32>
    tpu.vector_store %arg4[%c20_171, %c0_172], %895 {strides = array<i32>} : memref<32x32xf32, #tpu.memory_space<vmem>>, vector<2x32xf32>,
    %cst_173 = arith.constant dense<0.000000e+00> : vector<2x96xf32>
    %897 = tpu.matmul %895, %549, %cst_173 {dimension_numbers = #tpu.dot_dimension_numbers<[1], [0], [0], [1], [0, 0, 1, 1], [], []>} : vector<2x32xf32>, vector<32x96xf32>, vector<2x96xf32> -> vector<2x96xf32>
    %898 = vector.broadcast %551 : vector<1x96xf32> to vector<2x96xf32>
    %899 = arith.addf %897, %898 : vector<2x96xf32>
    %900 = vector.extract_strided_slice %554 {offsets = [22, 0], sizes = [2, 96], strides = [1, 1]} : vector<32x96xf32> to vector<2x96xf32>
    %901 = vector.extract_strided_slice %900 {offsets = [0, 0], sizes = [2, 32], strides = [1, 1]} : vector<2x96xf32> to vector<2x32xf32>
    %902 = vector.extract_strided_slice %899 {offsets = [0, 0], sizes = [2, 32], strides = [1, 1]} : vector<2x96xf32> to vector<2x32xf32>
    %903 = arith.addf %901, %902 : vector<2x32xf32>
    %904 = arith.negf %903 : vector<2x32xf32>
    %905 = math.exp %904 : vector<2x32xf32>
    %cst_174 = arith.constant 1.000000e+00 : f32
    %906 = vector.broadcast %cst_174 : f32 to vector<2x32xf32>
    %907 = arith.addf %906, %905 : vector<2x32xf32>
    %908 = arith.divf %906, %907 : vector<2x32xf32>
    %909 = vector.extract_strided_slice %900 {offsets = [0, 32], sizes = [2, 32], strides = [1, 1]} : vector<2x96xf32> to vector<2x32xf32>
    %910 = vector.extract_strided_slice %899 {offsets = [0, 32], sizes = [2, 32], strides = [1, 1]} : vector<2x96xf32> to vector<2x32xf32>
    %911 = arith.addf %909, %910 : vector<2x32xf32>
    %912 = arith.negf %911 : vector<2x32xf32>
    %913 = math.exp %912 : vector<2x32xf32>
    %cst_175 = arith.constant 1.000000e+00 : f32
    %914 = vector.broadcast %cst_175 : f32 to vector<2x32xf32>
    %915 = arith.addf %914, %913 : vector<2x32xf32>
    %916 = arith.divf %914, %915 : vector<2x32xf32>
    %917 = vector.extract_strided_slice %900 {offsets = [0, 64], sizes = [2, 32], strides = [1, 1]} : vector<2x96xf32> to vector<2x32xf32>
    %918 = vector.extract_strided_slice %899 {offsets = [0, 64], sizes = [2, 32], strides = [1, 1]} : vector<2x96xf32> to vector<2x32xf32>
    %919 = arith.mulf %908, %918 : vector<2x32xf32>
    %920 = arith.addf %917, %919 : vector<2x32xf32>
    %921 = math.tanh %920 : vector<2x32xf32>
    %cst_176 = arith.constant 1.000000e+00 : f32
    %922 = vector.broadcast %cst_176 : f32 to vector<2x32xf32>
    %923 = arith.subf %922, %916 : vector<2x32xf32>
    %924 = arith.mulf %923, %921 : vector<2x32xf32>
    %925 = arith.mulf %916, %895 : vector<2x32xf32>
    %926 = arith.addf %924, %925 : vector<2x32xf32>
    %c22_177 = arith.constant 22 : index
    %c0_178 = arith.constant 0 : index
    %927 = vector.load %arg4[%c22_177, %c0_178] : memref<32x32xf32, #tpu.memory_space<vmem>>, vector<2x32xf32>
    tpu.vector_store %arg4[%c22_177, %c0_178], %926 {strides = array<i32>} : memref<32x32xf32, #tpu.memory_space<vmem>>, vector<2x32xf32>,
    %cst_179 = arith.constant dense<0.000000e+00> : vector<2x96xf32>
    %928 = tpu.matmul %926, %549, %cst_179 {dimension_numbers = #tpu.dot_dimension_numbers<[1], [0], [0], [1], [0, 0, 1, 1], [], []>} : vector<2x32xf32>, vector<32x96xf32>, vector<2x96xf32> -> vector<2x96xf32>
    %929 = vector.broadcast %551 : vector<1x96xf32> to vector<2x96xf32>
    %930 = arith.addf %928, %929 : vector<2x96xf32>
    %931 = vector.extract_strided_slice %554 {offsets = [24, 0], sizes = [2, 96], strides = [1, 1]} : vector<32x96xf32> to vector<2x96xf32>
    %932 = vector.extract_strided_slice %931 {offsets = [0, 0], sizes = [2, 32], strides = [1, 1]} : vector<2x96xf32> to vector<2x32xf32>
    %933 = vector.extract_strided_slice %930 {offsets = [0, 0], sizes = [2, 32], strides = [1, 1]} : vector<2x96xf32> to vector<2x32xf32>
    %934 = arith.addf %932, %933 : vector<2x32xf32>
    %935 = arith.negf %934 : vector<2x32xf32>
    %936 = math.exp %935 : vector<2x32xf32>
    %cst_180 = arith.constant 1.000000e+00 : f32
    %937 = vector.broadcast %cst_180 : f32 to vector<2x32xf32>
    %938 = arith.addf %937, %936 : vector<2x32xf32>
    %939 = arith.divf %937, %938 : vector<2x32xf32>
    %940 = vector.extract_strided_slice %931 {offsets = [0, 32], sizes = [2, 32], strides = [1, 1]} : vector<2x96xf32> to vector<2x32xf32>
    %941 = vector.extract_strided_slice %930 {offsets = [0, 32], sizes = [2, 32], strides = [1, 1]} : vector<2x96xf32> to vector<2x32xf32>
    %942 = arith.addf %940, %941 : vector<2x32xf32>
    %943 = arith.negf %942 : vector<2x32xf32>
    %944 = math.exp %943 : vector<2x32xf32>
    %cst_181 = arith.constant 1.000000e+00 : f32
    %945 = vector.broadcast %cst_181 : f32 to vector<2x32xf32>
    %946 = arith.addf %945, %944 : vector<2x32xf32>
    %947 = arith.divf %945, %946 : vector<2x32xf32>
    %948 = vector.extract_strided_slice %931 {offsets = [0, 64], sizes = [2, 32], strides = [1, 1]} : vector<2x96xf32> to vector<2x32xf32>
    %949 = vector.extract_strided_slice %930 {offsets = [0, 64], sizes = [2, 32], strides = [1, 1]} : vector<2x96xf32> to vector<2x32xf32>
    %950 = arith.mulf %939, %949 : vector<2x32xf32>
    %951 = arith.addf %948, %950 : vector<2x32xf32>
    %952 = math.tanh %951 : vector<2x32xf32>
    %cst_182 = arith.constant 1.000000e+00 : f32
    %953 = vector.broadcast %cst_182 : f32 to vector<2x32xf32>
    %954 = arith.subf %953, %947 : vector<2x32xf32>
    %955 = arith.mulf %954, %952 : vector<2x32xf32>
    %956 = arith.mulf %947, %926 : vector<2x32xf32>
    %957 = arith.addf %955, %956 : vector<2x32xf32>
    %c24_183 = arith.constant 24 : index
    %c0_184 = arith.constant 0 : index
    %958 = vector.load %arg4[%c24_183, %c0_184] : memref<32x32xf32, #tpu.memory_space<vmem>>, vector<2x32xf32>
    tpu.vector_store %arg4[%c24_183, %c0_184], %957 {strides = array<i32>} : memref<32x32xf32, #tpu.memory_space<vmem>>, vector<2x32xf32>,
    %cst_185 = arith.constant dense<0.000000e+00> : vector<2x96xf32>
    %959 = tpu.matmul %957, %549, %cst_185 {dimension_numbers = #tpu.dot_dimension_numbers<[1], [0], [0], [1], [0, 0, 1, 1], [], []>} : vector<2x32xf32>, vector<32x96xf32>, vector<2x96xf32> -> vector<2x96xf32>
    %960 = vector.broadcast %551 : vector<1x96xf32> to vector<2x96xf32>
    %961 = arith.addf %959, %960 : vector<2x96xf32>
    %962 = vector.extract_strided_slice %554 {offsets = [26, 0], sizes = [2, 96], strides = [1, 1]} : vector<32x96xf32> to vector<2x96xf32>
    %963 = vector.extract_strided_slice %962 {offsets = [0, 0], sizes = [2, 32], strides = [1, 1]} : vector<2x96xf32> to vector<2x32xf32>
    %964 = vector.extract_strided_slice %961 {offsets = [0, 0], sizes = [2, 32], strides = [1, 1]} : vector<2x96xf32> to vector<2x32xf32>
    %965 = arith.addf %963, %964 : vector<2x32xf32>
    %966 = arith.negf %965 : vector<2x32xf32>
    %967 = math.exp %966 : vector<2x32xf32>
    %cst_186 = arith.constant 1.000000e+00 : f32
    %968 = vector.broadcast %cst_186 : f32 to vector<2x32xf32>
    %969 = arith.addf %968, %967 : vector<2x32xf32>
    %970 = arith.divf %968, %969 : vector<2x32xf32>
    %971 = vector.extract_strided_slice %962 {offsets = [0, 32], sizes = [2, 32], strides = [1, 1]} : vector<2x96xf32> to vector<2x32xf32>
    %972 = vector.extract_strided_slice %961 {offsets = [0, 32], sizes = [2, 32], strides = [1, 1]} : vector<2x96xf32> to vector<2x32xf32>
    %973 = arith.addf %971, %972 : vector<2x32xf32>
    %974 = arith.negf %973 : vector<2x32xf32>
    %975 = math.exp %974 : vector<2x32xf32>
    %cst_187 = arith.constant 1.000000e+00 : f32
    %976 = vector.broadcast %cst_187 : f32 to vector<2x32xf32>
    %977 = arith.addf %976, %975 : vector<2x32xf32>
    %978 = arith.divf %976, %977 : vector<2x32xf32>
    %979 = vector.extract_strided_slice %962 {offsets = [0, 64], sizes = [2, 32], strides = [1, 1]} : vector<2x96xf32> to vector<2x32xf32>
    %980 = vector.extract_strided_slice %961 {offsets = [0, 64], sizes = [2, 32], strides = [1, 1]} : vector<2x96xf32> to vector<2x32xf32>
    %981 = arith.mulf %970, %980 : vector<2x32xf32>
    %982 = arith.addf %979, %981 : vector<2x32xf32>
    %983 = math.tanh %982 : vector<2x32xf32>
    %cst_188 = arith.constant 1.000000e+00 : f32
    %984 = vector.broadcast %cst_188 : f32 to vector<2x32xf32>
    %985 = arith.subf %984, %978 : vector<2x32xf32>
    %986 = arith.mulf %985, %983 : vector<2x32xf32>
    %987 = arith.mulf %978, %957 : vector<2x32xf32>
    %988 = arith.addf %986, %987 : vector<2x32xf32>
    %c26_189 = arith.constant 26 : index
    %c0_190 = arith.constant 0 : index
    %989 = vector.load %arg4[%c26_189, %c0_190] : memref<32x32xf32, #tpu.memory_space<vmem>>, vector<2x32xf32>
    tpu.vector_store %arg4[%c26_189, %c0_190], %988 {strides = array<i32>} : memref<32x32xf32, #tpu.memory_space<vmem>>, vector<2x32xf32>,
    %cst_191 = arith.constant dense<0.000000e+00> : vector<2x96xf32>
    %990 = tpu.matmul %988, %549, %cst_191 {dimension_numbers = #tpu.dot_dimension_numbers<[1], [0], [0], [1], [0, 0, 1, 1], [], []>} : vector<2x32xf32>, vector<32x96xf32>, vector<2x96xf32> -> vector<2x96xf32>
    %991 = vector.broadcast %551 : vector<1x96xf32> to vector<2x96xf32>
    %992 = arith.addf %990, %991 : vector<2x96xf32>
    %993 = vector.extract_strided_slice %554 {offsets = [28, 0], sizes = [2, 96], strides = [1, 1]} : vector<32x96xf32> to vector<2x96xf32>
    %994 = vector.extract_strided_slice %993 {offsets = [0, 0], sizes = [2, 32], strides = [1, 1]} : vector<2x96xf32> to vector<2x32xf32>
    %995 = vector.extract_strided_slice %992 {offsets = [0, 0], sizes = [2, 32], strides = [1, 1]} : vector<2x96xf32> to vector<2x32xf32>
    %996 = arith.addf %994, %995 : vector<2x32xf32>
    %997 = arith.negf %996 : vector<2x32xf32>
    %998 = math.exp %997 : vector<2x32xf32>
    %cst_192 = arith.constant 1.000000e+00 : f32
    %999 = vector.broadcast %cst_192 : f32 to vector<2x32xf32>
    %1000 = arith.addf %999, %998 : vector<2x32xf32>
    %1001 = arith.divf %999, %1000 : vector<2x32xf32>
    %1002 = vector.extract_strided_slice %993 {offsets = [0, 32], sizes = [2, 32], strides = [1, 1]} : vector<2x96xf32> to vector<2x32xf32>
    %1003 = vector.extract_strided_slice %992 {offsets = [0, 32], sizes = [2, 32], strides = [1, 1]} : vector<2x96xf32> to vector<2x32xf32>
    %1004 = arith.addf %1002, %1003 : vector<2x32xf32>
    %1005 = arith.negf %1004 : vector<2x32xf32>
    %1006 = math.exp %1005 : vector<2x32xf32>
    %cst_193 = arith.constant 1.000000e+00 : f32
    %1007 = vector.broadcast %cst_193 : f32 to vector<2x32xf32>
    %1008 = arith.addf %1007, %1006 : vector<2x32xf32>
    %1009 = arith.divf %1007, %1008 : vector<2x32xf32>
    %1010 = vector.extract_strided_slice %993 {offsets = [0, 64], sizes = [2, 32], strides = [1, 1]} : vector<2x96xf32> to vector<2x32xf32>
    %1011 = vector.extract_strided_slice %992 {offsets = [0, 64], sizes = [2, 32], strides = [1, 1]} : vector<2x96xf32> to vector<2x32xf32>
    %1012 = arith.mulf %1001, %1011 : vector<2x32xf32>
    %1013 = arith.addf %1010, %1012 : vector<2x32xf32>
    %1014 = math.tanh %1013 : vector<2x32xf32>
    %cst_194 = arith.constant 1.000000e+00 : f32
    %1015 = vector.broadcast %cst_194 : f32 to vector<2x32xf32>
    %1016 = arith.subf %1015, %1009 : vector<2x32xf32>
    %1017 = arith.mulf %1016, %1014 : vector<2x32xf32>
    %1018 = arith.mulf %1009, %988 : vector<2x32xf32>
    %1019 = arith.addf %1017, %1018 : vector<2x32xf32>
    %c28_195 = arith.constant 28 : index
    %c0_196 = arith.constant 0 : index
    %1020 = vector.load %arg4[%c28_195, %c0_196] : memref<32x32xf32, #tpu.memory_space<vmem>>, vector<2x32xf32>
    tpu.vector_store %arg4[%c28_195, %c0_196], %1019 {strides = array<i32>} : memref<32x32xf32, #tpu.memory_space<vmem>>, vector<2x32xf32>,
    %cst_197 = arith.constant dense<0.000000e+00> : vector<2x96xf32>
    %1021 = tpu.matmul %1019, %549, %cst_197 {dimension_numbers = #tpu.dot_dimension_numbers<[1], [0], [0], [1], [0, 0, 1, 1], [], []>} : vector<2x32xf32>, vector<32x96xf32>, vector<2x96xf32> -> vector<2x96xf32>
    %1022 = vector.broadcast %551 : vector<1x96xf32> to vector<2x96xf32>
    %1023 = arith.addf %1021, %1022 : vector<2x96xf32>
    %1024 = vector.extract_strided_slice %554 {offsets = [30, 0], sizes = [2, 96], strides = [1, 1]} : vector<32x96xf32> to vector<2x96xf32>
    %1025 = vector.extract_strided_slice %1024 {offsets = [0, 0], sizes = [2, 32], strides = [1, 1]} : vector<2x96xf32> to vector<2x32xf32>
    %1026 = vector.extract_strided_slice %1023 {offsets = [0, 0], sizes = [2, 32], strides = [1, 1]} : vector<2x96xf32> to vector<2x32xf32>
    %1027 = arith.addf %1025, %1026 : vector<2x32xf32>
    %1028 = arith.negf %1027 : vector<2x32xf32>
    %1029 = math.exp %1028 : vector<2x32xf32>
    %cst_198 = arith.constant 1.000000e+00 : f32
    %1030 = vector.broadcast %cst_198 : f32 to vector<2x32xf32>
    %1031 = arith.addf %1030, %1029 : vector<2x32xf32>
    %1032 = arith.divf %1030, %1031 : vector<2x32xf32>
    %1033 = vector.extract_strided_slice %1024 {offsets = [0, 32], sizes = [2, 32], strides = [1, 1]} : vector<2x96xf32> to vector<2x32xf32>
    %1034 = vector.extract_strided_slice %1023 {offsets = [0, 32], sizes = [2, 32], strides = [1, 1]} : vector<2x96xf32> to vector<2x32xf32>
    %1035 = arith.addf %1033, %1034 : vector<2x32xf32>
    %1036 = arith.negf %1035 : vector<2x32xf32>
    %1037 = math.exp %1036 : vector<2x32xf32>
    %cst_199 = arith.constant 1.000000e+00 : f32
    %1038 = vector.broadcast %cst_199 : f32 to vector<2x32xf32>
    %1039 = arith.addf %1038, %1037 : vector<2x32xf32>
    %1040 = arith.divf %1038, %1039 : vector<2x32xf32>
    %1041 = vector.extract_strided_slice %1024 {offsets = [0, 64], sizes = [2, 32], strides = [1, 1]} : vector<2x96xf32> to vector<2x32xf32>
    %1042 = vector.extract_strided_slice %1023 {offsets = [0, 64], sizes = [2, 32], strides = [1, 1]} : vector<2x96xf32> to vector<2x32xf32>
    %1043 = arith.mulf %1032, %1042 : vector<2x32xf32>
    %1044 = arith.addf %1041, %1043 : vector<2x32xf32>
    %1045 = math.tanh %1044 : vector<2x32xf32>
    %cst_200 = arith.constant 1.000000e+00 : f32
    %1046 = vector.broadcast %cst_200 : f32 to vector<2x32xf32>
    %1047 = arith.subf %1046, %1040 : vector<2x32xf32>
    %1048 = arith.mulf %1047, %1045 : vector<2x32xf32>
    %1049 = arith.mulf %1040, %1019 : vector<2x32xf32>
    %1050 = arith.addf %1048, %1049 : vector<2x32xf32>
    %c30_201 = arith.constant 30 : index
    %c0_202 = arith.constant 0 : index
    %1051 = vector.load %arg4[%c30_201, %c0_202] : memref<32x32xf32, #tpu.memory_space<vmem>>, vector<2x32xf32>
    tpu.vector_store %arg4[%c30_201, %c0_202], %1050 {strides = array<i32>} : memref<32x32xf32, #tpu.memory_space<vmem>>, vector<2x32xf32>,
    %c0_203 = arith.constant 0 : index
    %c0_204 = arith.constant 0 : index
    %1052 = vector.load %arg4[%c0_203, %c0_204] : memref<32x32xf32, #tpu.memory_space<vmem>>, vector<32x32xf32>
    %c176 = arith.constant 176 : index
    %c0_205 = arith.constant 0 : index
    %1053 = vector.load %arg1[%c176, %c0_205] : memref<280x128xf32, #tpu.memory_space<vmem>>, vector<32x48xf32>
    %c208 = arith.constant 208 : index
    %c0_206 = arith.constant 0 : index
    %1054 = vector.load %arg1[%c208, %c0_206] : memref<280x128xf32, #tpu.memory_space<vmem>>, vector<16x48xf32>
    %c224 = arith.constant 224 : index
    %c0_207 = arith.constant 0 : index
    %1055 = vector.load %arg1[%c224, %c0_207] : memref<280x128xf32, #tpu.memory_space<vmem>>, vector<1x48xf32>
    %c232 = arith.constant 232 : index
    %c0_208 = arith.constant 0 : index
    %1056 = vector.load %arg1[%c232, %c0_208] : memref<280x128xf32, #tpu.memory_space<vmem>>, vector<1x48xf32>
    %cst_209 = arith.constant dense<0.000000e+00> : vector<32x48xf32>
    %1057 = tpu.matmul %1052, %1053, %cst_209 {dimension_numbers = #tpu.dot_dimension_numbers<[1], [0], [0], [1], [0, 0, 1, 1], [], []>} : vector<32x32xf32>, vector<32x48xf32>, vector<32x48xf32> -> vector<32x48xf32>
    %1058 = vector.broadcast %1055 : vector<1x48xf32> to vector<32x48xf32>
    %1059 = arith.addf %1057, %1058 : vector<32x48xf32>
    %cst_210 = arith.constant 0.000000e+00 : f32
    %1060 = vector.broadcast %cst_210 : f32 to vector<2x16xf32>
    %cst_211 = arith.constant dense<0.000000e+00> : vector<2x48xf32>
    %1061 = tpu.matmul %1060, %1054, %cst_211 {dimension_numbers = #tpu.dot_dimension_numbers<[1], [0], [0], [1], [0, 0, 1, 1], [], []>} : vector<2x16xf32>, vector<16x48xf32>, vector<2x48xf32> -> vector<2x48xf32>
    %1062 = vector.broadcast %1056 : vector<1x48xf32> to vector<2x48xf32>
    %1063 = arith.addf %1061, %1062 : vector<2x48xf32>
    %1064 = vector.extract_strided_slice %1059 {offsets = [0, 0], sizes = [2, 48], strides = [1, 1]} : vector<32x48xf32> to vector<2x48xf32>
    %1065 = vector.extract_strided_slice %1064 {offsets = [0, 0], sizes = [2, 16], strides = [1, 1]} : vector<2x48xf32> to vector<2x16xf32>
    %1066 = vector.extract_strided_slice %1063 {offsets = [0, 0], sizes = [2, 16], strides = [1, 1]} : vector<2x48xf32> to vector<2x16xf32>
    %1067 = arith.addf %1065, %1066 : vector<2x16xf32>
    %1068 = arith.negf %1067 : vector<2x16xf32>
    %1069 = math.exp %1068 : vector<2x16xf32>
    %cst_212 = arith.constant 1.000000e+00 : f32
    %1070 = vector.broadcast %cst_212 : f32 to vector<2x16xf32>
    %1071 = arith.addf %1070, %1069 : vector<2x16xf32>
    %1072 = arith.divf %1070, %1071 : vector<2x16xf32>
    %1073 = vector.extract_strided_slice %1064 {offsets = [0, 16], sizes = [2, 16], strides = [1, 1]} : vector<2x48xf32> to vector<2x16xf32>
    %1074 = vector.extract_strided_slice %1063 {offsets = [0, 16], sizes = [2, 16], strides = [1, 1]} : vector<2x48xf32> to vector<2x16xf32>
    %1075 = arith.addf %1073, %1074 : vector<2x16xf32>
    %1076 = arith.negf %1075 : vector<2x16xf32>
    %1077 = math.exp %1076 : vector<2x16xf32>
    %cst_213 = arith.constant 1.000000e+00 : f32
    %1078 = vector.broadcast %cst_213 : f32 to vector<2x16xf32>
    %1079 = arith.addf %1078, %1077 : vector<2x16xf32>
    %1080 = arith.divf %1078, %1079 : vector<2x16xf32>
    %1081 = vector.extract_strided_slice %1064 {offsets = [0, 32], sizes = [2, 16], strides = [1, 1]} : vector<2x48xf32> to vector<2x16xf32>
    %1082 = vector.extract_strided_slice %1063 {offsets = [0, 32], sizes = [2, 16], strides = [1, 1]} : vector<2x48xf32> to vector<2x16xf32>
    %1083 = arith.mulf %1072, %1082 : vector<2x16xf32>
    %1084 = arith.addf %1081, %1083 : vector<2x16xf32>
    %1085 = math.tanh %1084 : vector<2x16xf32>
    %cst_214 = arith.constant 1.000000e+00 : f32
    %1086 = vector.broadcast %cst_214 : f32 to vector<2x16xf32>
    %1087 = arith.subf %1086, %1080 : vector<2x16xf32>
    %1088 = arith.mulf %1087, %1085 : vector<2x16xf32>
    %1089 = arith.mulf %1080, %1060 : vector<2x16xf32>
    %1090 = arith.addf %1088, %1089 : vector<2x16xf32>
    %cst_215 = arith.constant dense<0.000000e+00> : vector<2x48xf32>
    %1091 = tpu.matmul %1090, %1054, %cst_215 {dimension_numbers = #tpu.dot_dimension_numbers<[1], [0], [0], [1], [0, 0, 1, 1], [], []>} : vector<2x16xf32>, vector<16x48xf32>, vector<2x48xf32> -> vector<2x48xf32>
    %1092 = vector.broadcast %1056 : vector<1x48xf32> to vector<2x48xf32>
    %1093 = arith.addf %1091, %1092 : vector<2x48xf32>
    %1094 = vector.extract_strided_slice %1059 {offsets = [2, 0], sizes = [2, 48], strides = [1, 1]} : vector<32x48xf32> to vector<2x48xf32>
    %1095 = vector.extract_strided_slice %1094 {offsets = [0, 0], sizes = [2, 16], strides = [1, 1]} : vector<2x48xf32> to vector<2x16xf32>
    %1096 = vector.extract_strided_slice %1093 {offsets = [0, 0], sizes = [2, 16], strides = [1, 1]} : vector<2x48xf32> to vector<2x16xf32>
    %1097 = arith.addf %1095, %1096 : vector<2x16xf32>
    %1098 = arith.negf %1097 : vector<2x16xf32>
    %1099 = math.exp %1098 : vector<2x16xf32>
    %cst_216 = arith.constant 1.000000e+00 : f32
    %1100 = vector.broadcast %cst_216 : f32 to vector<2x16xf32>
    %1101 = arith.addf %1100, %1099 : vector<2x16xf32>
    %1102 = arith.divf %1100, %1101 : vector<2x16xf32>
    %1103 = vector.extract_strided_slice %1094 {offsets = [0, 16], sizes = [2, 16], strides = [1, 1]} : vector<2x48xf32> to vector<2x16xf32>
    %1104 = vector.extract_strided_slice %1093 {offsets = [0, 16], sizes = [2, 16], strides = [1, 1]} : vector<2x48xf32> to vector<2x16xf32>
    %1105 = arith.addf %1103, %1104 : vector<2x16xf32>
    %1106 = arith.negf %1105 : vector<2x16xf32>
    %1107 = math.exp %1106 : vector<2x16xf32>
    %cst_217 = arith.constant 1.000000e+00 : f32
    %1108 = vector.broadcast %cst_217 : f32 to vector<2x16xf32>
    %1109 = arith.addf %1108, %1107 : vector<2x16xf32>
    %1110 = arith.divf %1108, %1109 : vector<2x16xf32>
    %1111 = vector.extract_strided_slice %1094 {offsets = [0, 32], sizes = [2, 16], strides = [1, 1]} : vector<2x48xf32> to vector<2x16xf32>
    %1112 = vector.extract_strided_slice %1093 {offsets = [0, 32], sizes = [2, 16], strides = [1, 1]} : vector<2x48xf32> to vector<2x16xf32>
    %1113 = arith.mulf %1102, %1112 : vector<2x16xf32>
    %1114 = arith.addf %1111, %1113 : vector<2x16xf32>
    %1115 = math.tanh %1114 : vector<2x16xf32>
    %cst_218 = arith.constant 1.000000e+00 : f32
    %1116 = vector.broadcast %cst_218 : f32 to vector<2x16xf32>
    %1117 = arith.subf %1116, %1110 : vector<2x16xf32>
    %1118 = arith.mulf %1117, %1115 : vector<2x16xf32>
    %1119 = arith.mulf %1110, %1090 : vector<2x16xf32>
    %1120 = arith.addf %1118, %1119 : vector<2x16xf32>
    %cst_219 = arith.constant dense<0.000000e+00> : vector<2x48xf32>
    %1121 = tpu.matmul %1120, %1054, %cst_219 {dimension_numbers = #tpu.dot_dimension_numbers<[1], [0], [0], [1], [0, 0, 1, 1], [], []>} : vector<2x16xf32>, vector<16x48xf32>, vector<2x48xf32> -> vector<2x48xf32>
    %1122 = vector.broadcast %1056 : vector<1x48xf32> to vector<2x48xf32>
    %1123 = arith.addf %1121, %1122 : vector<2x48xf32>
    %1124 = vector.extract_strided_slice %1059 {offsets = [4, 0], sizes = [2, 48], strides = [1, 1]} : vector<32x48xf32> to vector<2x48xf32>
    %1125 = vector.extract_strided_slice %1124 {offsets = [0, 0], sizes = [2, 16], strides = [1, 1]} : vector<2x48xf32> to vector<2x16xf32>
    %1126 = vector.extract_strided_slice %1123 {offsets = [0, 0], sizes = [2, 16], strides = [1, 1]} : vector<2x48xf32> to vector<2x16xf32>
    %1127 = arith.addf %1125, %1126 : vector<2x16xf32>
    %1128 = arith.negf %1127 : vector<2x16xf32>
    %1129 = math.exp %1128 : vector<2x16xf32>
    %cst_220 = arith.constant 1.000000e+00 : f32
    %1130 = vector.broadcast %cst_220 : f32 to vector<2x16xf32>
    %1131 = arith.addf %1130, %1129 : vector<2x16xf32>
    %1132 = arith.divf %1130, %1131 : vector<2x16xf32>
    %1133 = vector.extract_strided_slice %1124 {offsets = [0, 16], sizes = [2, 16], strides = [1, 1]} : vector<2x48xf32> to vector<2x16xf32>
    %1134 = vector.extract_strided_slice %1123 {offsets = [0, 16], sizes = [2, 16], strides = [1, 1]} : vector<2x48xf32> to vector<2x16xf32>
    %1135 = arith.addf %1133, %1134 : vector<2x16xf32>
    %1136 = arith.negf %1135 : vector<2x16xf32>
    %1137 = math.exp %1136 : vector<2x16xf32>
    %cst_221 = arith.constant 1.000000e+00 : f32
    %1138 = vector.broadcast %cst_221 : f32 to vector<2x16xf32>
    %1139 = arith.addf %1138, %1137 : vector<2x16xf32>
    %1140 = arith.divf %1138, %1139 : vector<2x16xf32>
    %1141 = vector.extract_strided_slice %1124 {offsets = [0, 32], sizes = [2, 16], strides = [1, 1]} : vector<2x48xf32> to vector<2x16xf32>
    %1142 = vector.extract_strided_slice %1123 {offsets = [0, 32], sizes = [2, 16], strides = [1, 1]} : vector<2x48xf32> to vector<2x16xf32>
    %1143 = arith.mulf %1132, %1142 : vector<2x16xf32>
    %1144 = arith.addf %1141, %1143 : vector<2x16xf32>
    %1145 = math.tanh %1144 : vector<2x16xf32>
    %cst_222 = arith.constant 1.000000e+00 : f32
    %1146 = vector.broadcast %cst_222 : f32 to vector<2x16xf32>
    %1147 = arith.subf %1146, %1140 : vector<2x16xf32>
    %1148 = arith.mulf %1147, %1145 : vector<2x16xf32>
    %1149 = arith.mulf %1140, %1120 : vector<2x16xf32>
    %1150 = arith.addf %1148, %1149 : vector<2x16xf32>
    %cst_223 = arith.constant dense<0.000000e+00> : vector<2x48xf32>
    %1151 = tpu.matmul %1150, %1054, %cst_223 {dimension_numbers = #tpu.dot_dimension_numbers<[1], [0], [0], [1], [0, 0, 1, 1], [], []>} : vector<2x16xf32>, vector<16x48xf32>, vector<2x48xf32> -> vector<2x48xf32>
    %1152 = vector.broadcast %1056 : vector<1x48xf32> to vector<2x48xf32>
    %1153 = arith.addf %1151, %1152 : vector<2x48xf32>
    %1154 = vector.extract_strided_slice %1059 {offsets = [6, 0], sizes = [2, 48], strides = [1, 1]} : vector<32x48xf32> to vector<2x48xf32>
    %1155 = vector.extract_strided_slice %1154 {offsets = [0, 0], sizes = [2, 16], strides = [1, 1]} : vector<2x48xf32> to vector<2x16xf32>
    %1156 = vector.extract_strided_slice %1153 {offsets = [0, 0], sizes = [2, 16], strides = [1, 1]} : vector<2x48xf32> to vector<2x16xf32>
    %1157 = arith.addf %1155, %1156 : vector<2x16xf32>
    %1158 = arith.negf %1157 : vector<2x16xf32>
    %1159 = math.exp %1158 : vector<2x16xf32>
    %cst_224 = arith.constant 1.000000e+00 : f32
    %1160 = vector.broadcast %cst_224 : f32 to vector<2x16xf32>
    %1161 = arith.addf %1160, %1159 : vector<2x16xf32>
    %1162 = arith.divf %1160, %1161 : vector<2x16xf32>
    %1163 = vector.extract_strided_slice %1154 {offsets = [0, 16], sizes = [2, 16], strides = [1, 1]} : vector<2x48xf32> to vector<2x16xf32>
    %1164 = vector.extract_strided_slice %1153 {offsets = [0, 16], sizes = [2, 16], strides = [1, 1]} : vector<2x48xf32> to vector<2x16xf32>
    %1165 = arith.addf %1163, %1164 : vector<2x16xf32>
    %1166 = arith.negf %1165 : vector<2x16xf32>
    %1167 = math.exp %1166 : vector<2x16xf32>
    %cst_225 = arith.constant 1.000000e+00 : f32
    %1168 = vector.broadcast %cst_225 : f32 to vector<2x16xf32>
    %1169 = arith.addf %1168, %1167 : vector<2x16xf32>
    %1170 = arith.divf %1168, %1169 : vector<2x16xf32>
    %1171 = vector.extract_strided_slice %1154 {offsets = [0, 32], sizes = [2, 16], strides = [1, 1]} : vector<2x48xf32> to vector<2x16xf32>
    %1172 = vector.extract_strided_slice %1153 {offsets = [0, 32], sizes = [2, 16], strides = [1, 1]} : vector<2x48xf32> to vector<2x16xf32>
    %1173 = arith.mulf %1162, %1172 : vector<2x16xf32>
    %1174 = arith.addf %1171, %1173 : vector<2x16xf32>
    %1175 = math.tanh %1174 : vector<2x16xf32>
    %cst_226 = arith.constant 1.000000e+00 : f32
    %1176 = vector.broadcast %cst_226 : f32 to vector<2x16xf32>
    %1177 = arith.subf %1176, %1170 : vector<2x16xf32>
    %1178 = arith.mulf %1177, %1175 : vector<2x16xf32>
    %1179 = arith.mulf %1170, %1150 : vector<2x16xf32>
    %1180 = arith.addf %1178, %1179 : vector<2x16xf32>
    %cst_227 = arith.constant dense<0.000000e+00> : vector<2x48xf32>
    %1181 = tpu.matmul %1180, %1054, %cst_227 {dimension_numbers = #tpu.dot_dimension_numbers<[1], [0], [0], [1], [0, 0, 1, 1], [], []>} : vector<2x16xf32>, vector<16x48xf32>, vector<2x48xf32> -> vector<2x48xf32>
    %1182 = vector.broadcast %1056 : vector<1x48xf32> to vector<2x48xf32>
    %1183 = arith.addf %1181, %1182 : vector<2x48xf32>
    %1184 = vector.extract_strided_slice %1059 {offsets = [8, 0], sizes = [2, 48], strides = [1, 1]} : vector<32x48xf32> to vector<2x48xf32>
    %1185 = vector.extract_strided_slice %1184 {offsets = [0, 0], sizes = [2, 16], strides = [1, 1]} : vector<2x48xf32> to vector<2x16xf32>
    %1186 = vector.extract_strided_slice %1183 {offsets = [0, 0], sizes = [2, 16], strides = [1, 1]} : vector<2x48xf32> to vector<2x16xf32>
    %1187 = arith.addf %1185, %1186 : vector<2x16xf32>
    %1188 = arith.negf %1187 : vector<2x16xf32>
    %1189 = math.exp %1188 : vector<2x16xf32>
    %cst_228 = arith.constant 1.000000e+00 : f32
    %1190 = vector.broadcast %cst_228 : f32 to vector<2x16xf32>
    %1191 = arith.addf %1190, %1189 : vector<2x16xf32>
    %1192 = arith.divf %1190, %1191 : vector<2x16xf32>
    %1193 = vector.extract_strided_slice %1184 {offsets = [0, 16], sizes = [2, 16], strides = [1, 1]} : vector<2x48xf32> to vector<2x16xf32>
    %1194 = vector.extract_strided_slice %1183 {offsets = [0, 16], sizes = [2, 16], strides = [1, 1]} : vector<2x48xf32> to vector<2x16xf32>
    %1195 = arith.addf %1193, %1194 : vector<2x16xf32>
    %1196 = arith.negf %1195 : vector<2x16xf32>
    %1197 = math.exp %1196 : vector<2x16xf32>
    %cst_229 = arith.constant 1.000000e+00 : f32
    %1198 = vector.broadcast %cst_229 : f32 to vector<2x16xf32>
    %1199 = arith.addf %1198, %1197 : vector<2x16xf32>
    %1200 = arith.divf %1198, %1199 : vector<2x16xf32>
    %1201 = vector.extract_strided_slice %1184 {offsets = [0, 32], sizes = [2, 16], strides = [1, 1]} : vector<2x48xf32> to vector<2x16xf32>
    %1202 = vector.extract_strided_slice %1183 {offsets = [0, 32], sizes = [2, 16], strides = [1, 1]} : vector<2x48xf32> to vector<2x16xf32>
    %1203 = arith.mulf %1192, %1202 : vector<2x16xf32>
    %1204 = arith.addf %1201, %1203 : vector<2x16xf32>
    %1205 = math.tanh %1204 : vector<2x16xf32>
    %cst_230 = arith.constant 1.000000e+00 : f32
    %1206 = vector.broadcast %cst_230 : f32 to vector<2x16xf32>
    %1207 = arith.subf %1206, %1200 : vector<2x16xf32>
    %1208 = arith.mulf %1207, %1205 : vector<2x16xf32>
    %1209 = arith.mulf %1200, %1180 : vector<2x16xf32>
    %1210 = arith.addf %1208, %1209 : vector<2x16xf32>
    %cst_231 = arith.constant dense<0.000000e+00> : vector<2x48xf32>
    %1211 = tpu.matmul %1210, %1054, %cst_231 {dimension_numbers = #tpu.dot_dimension_numbers<[1], [0], [0], [1], [0, 0, 1, 1], [], []>} : vector<2x16xf32>, vector<16x48xf32>, vector<2x48xf32> -> vector<2x48xf32>
    %1212 = vector.broadcast %1056 : vector<1x48xf32> to vector<2x48xf32>
    %1213 = arith.addf %1211, %1212 : vector<2x48xf32>
    %1214 = vector.extract_strided_slice %1059 {offsets = [10, 0], sizes = [2, 48], strides = [1, 1]} : vector<32x48xf32> to vector<2x48xf32>
    %1215 = vector.extract_strided_slice %1214 {offsets = [0, 0], sizes = [2, 16], strides = [1, 1]} : vector<2x48xf32> to vector<2x16xf32>
    %1216 = vector.extract_strided_slice %1213 {offsets = [0, 0], sizes = [2, 16], strides = [1, 1]} : vector<2x48xf32> to vector<2x16xf32>
    %1217 = arith.addf %1215, %1216 : vector<2x16xf32>
    %1218 = arith.negf %1217 : vector<2x16xf32>
    %1219 = math.exp %1218 : vector<2x16xf32>
    %cst_232 = arith.constant 1.000000e+00 : f32
    %1220 = vector.broadcast %cst_232 : f32 to vector<2x16xf32>
    %1221 = arith.addf %1220, %1219 : vector<2x16xf32>
    %1222 = arith.divf %1220, %1221 : vector<2x16xf32>
    %1223 = vector.extract_strided_slice %1214 {offsets = [0, 16], sizes = [2, 16], strides = [1, 1]} : vector<2x48xf32> to vector<2x16xf32>
    %1224 = vector.extract_strided_slice %1213 {offsets = [0, 16], sizes = [2, 16], strides = [1, 1]} : vector<2x48xf32> to vector<2x16xf32>
    %1225 = arith.addf %1223, %1224 : vector<2x16xf32>
    %1226 = arith.negf %1225 : vector<2x16xf32>
    %1227 = math.exp %1226 : vector<2x16xf32>
    %cst_233 = arith.constant 1.000000e+00 : f32
    %1228 = vector.broadcast %cst_233 : f32 to vector<2x16xf32>
    %1229 = arith.addf %1228, %1227 : vector<2x16xf32>
    %1230 = arith.divf %1228, %1229 : vector<2x16xf32>
    %1231 = vector.extract_strided_slice %1214 {offsets = [0, 32], sizes = [2, 16], strides = [1, 1]} : vector<2x48xf32> to vector<2x16xf32>
    %1232 = vector.extract_strided_slice %1213 {offsets = [0, 32], sizes = [2, 16], strides = [1, 1]} : vector<2x48xf32> to vector<2x16xf32>
    %1233 = arith.mulf %1222, %1232 : vector<2x16xf32>
    %1234 = arith.addf %1231, %1233 : vector<2x16xf32>
    %1235 = math.tanh %1234 : vector<2x16xf32>
    %cst_234 = arith.constant 1.000000e+00 : f32
    %1236 = vector.broadcast %cst_234 : f32 to vector<2x16xf32>
    %1237 = arith.subf %1236, %1230 : vector<2x16xf32>
    %1238 = arith.mulf %1237, %1235 : vector<2x16xf32>
    %1239 = arith.mulf %1230, %1210 : vector<2x16xf32>
    %1240 = arith.addf %1238, %1239 : vector<2x16xf32>
    %cst_235 = arith.constant dense<0.000000e+00> : vector<2x48xf32>
    %1241 = tpu.matmul %1240, %1054, %cst_235 {dimension_numbers = #tpu.dot_dimension_numbers<[1], [0], [0], [1], [0, 0, 1, 1], [], []>} : vector<2x16xf32>, vector<16x48xf32>, vector<2x48xf32> -> vector<2x48xf32>
    %1242 = vector.broadcast %1056 : vector<1x48xf32> to vector<2x48xf32>
    %1243 = arith.addf %1241, %1242 : vector<2x48xf32>
    %1244 = vector.extract_strided_slice %1059 {offsets = [12, 0], sizes = [2, 48], strides = [1, 1]} : vector<32x48xf32> to vector<2x48xf32>
    %1245 = vector.extract_strided_slice %1244 {offsets = [0, 0], sizes = [2, 16], strides = [1, 1]} : vector<2x48xf32> to vector<2x16xf32>
    %1246 = vector.extract_strided_slice %1243 {offsets = [0, 0], sizes = [2, 16], strides = [1, 1]} : vector<2x48xf32> to vector<2x16xf32>
    %1247 = arith.addf %1245, %1246 : vector<2x16xf32>
    %1248 = arith.negf %1247 : vector<2x16xf32>
    %1249 = math.exp %1248 : vector<2x16xf32>
    %cst_236 = arith.constant 1.000000e+00 : f32
    %1250 = vector.broadcast %cst_236 : f32 to vector<2x16xf32>
    %1251 = arith.addf %1250, %1249 : vector<2x16xf32>
    %1252 = arith.divf %1250, %1251 : vector<2x16xf32>
    %1253 = vector.extract_strided_slice %1244 {offsets = [0, 16], sizes = [2, 16], strides = [1, 1]} : vector<2x48xf32> to vector<2x16xf32>
    %1254 = vector.extract_strided_slice %1243 {offsets = [0, 16], sizes = [2, 16], strides = [1, 1]} : vector<2x48xf32> to vector<2x16xf32>
    %1255 = arith.addf %1253, %1254 : vector<2x16xf32>
    %1256 = arith.negf %1255 : vector<2x16xf32>
    %1257 = math.exp %1256 : vector<2x16xf32>
    %cst_237 = arith.constant 1.000000e+00 : f32
    %1258 = vector.broadcast %cst_237 : f32 to vector<2x16xf32>
    %1259 = arith.addf %1258, %1257 : vector<2x16xf32>
    %1260 = arith.divf %1258, %1259 : vector<2x16xf32>
    %1261 = vector.extract_strided_slice %1244 {offsets = [0, 32], sizes = [2, 16], strides = [1, 1]} : vector<2x48xf32> to vector<2x16xf32>
    %1262 = vector.extract_strided_slice %1243 {offsets = [0, 32], sizes = [2, 16], strides = [1, 1]} : vector<2x48xf32> to vector<2x16xf32>
    %1263 = arith.mulf %1252, %1262 : vector<2x16xf32>
    %1264 = arith.addf %1261, %1263 : vector<2x16xf32>
    %1265 = math.tanh %1264 : vector<2x16xf32>
    %cst_238 = arith.constant 1.000000e+00 : f32
    %1266 = vector.broadcast %cst_238 : f32 to vector<2x16xf32>
    %1267 = arith.subf %1266, %1260 : vector<2x16xf32>
    %1268 = arith.mulf %1267, %1265 : vector<2x16xf32>
    %1269 = arith.mulf %1260, %1240 : vector<2x16xf32>
    %1270 = arith.addf %1268, %1269 : vector<2x16xf32>
    %cst_239 = arith.constant dense<0.000000e+00> : vector<2x48xf32>
    %1271 = tpu.matmul %1270, %1054, %cst_239 {dimension_numbers = #tpu.dot_dimension_numbers<[1], [0], [0], [1], [0, 0, 1, 1], [], []>} : vector<2x16xf32>, vector<16x48xf32>, vector<2x48xf32> -> vector<2x48xf32>
    %1272 = vector.broadcast %1056 : vector<1x48xf32> to vector<2x48xf32>
    %1273 = arith.addf %1271, %1272 : vector<2x48xf32>
    %1274 = vector.extract_strided_slice %1059 {offsets = [14, 0], sizes = [2, 48], strides = [1, 1]} : vector<32x48xf32> to vector<2x48xf32>
    %1275 = vector.extract_strided_slice %1274 {offsets = [0, 0], sizes = [2, 16], strides = [1, 1]} : vector<2x48xf32> to vector<2x16xf32>
    %1276 = vector.extract_strided_slice %1273 {offsets = [0, 0], sizes = [2, 16], strides = [1, 1]} : vector<2x48xf32> to vector<2x16xf32>
    %1277 = arith.addf %1275, %1276 : vector<2x16xf32>
    %1278 = arith.negf %1277 : vector<2x16xf32>
    %1279 = math.exp %1278 : vector<2x16xf32>
    %cst_240 = arith.constant 1.000000e+00 : f32
    %1280 = vector.broadcast %cst_240 : f32 to vector<2x16xf32>
    %1281 = arith.addf %1280, %1279 : vector<2x16xf32>
    %1282 = arith.divf %1280, %1281 : vector<2x16xf32>
    %1283 = vector.extract_strided_slice %1274 {offsets = [0, 16], sizes = [2, 16], strides = [1, 1]} : vector<2x48xf32> to vector<2x16xf32>
    %1284 = vector.extract_strided_slice %1273 {offsets = [0, 16], sizes = [2, 16], strides = [1, 1]} : vector<2x48xf32> to vector<2x16xf32>
    %1285 = arith.addf %1283, %1284 : vector<2x16xf32>
    %1286 = arith.negf %1285 : vector<2x16xf32>
    %1287 = math.exp %1286 : vector<2x16xf32>
    %cst_241 = arith.constant 1.000000e+00 : f32
    %1288 = vector.broadcast %cst_241 : f32 to vector<2x16xf32>
    %1289 = arith.addf %1288, %1287 : vector<2x16xf32>
    %1290 = arith.divf %1288, %1289 : vector<2x16xf32>
    %1291 = vector.extract_strided_slice %1274 {offsets = [0, 32], sizes = [2, 16], strides = [1, 1]} : vector<2x48xf32> to vector<2x16xf32>
    %1292 = vector.extract_strided_slice %1273 {offsets = [0, 32], sizes = [2, 16], strides = [1, 1]} : vector<2x48xf32> to vector<2x16xf32>
    %1293 = arith.mulf %1282, %1292 : vector<2x16xf32>
    %1294 = arith.addf %1291, %1293 : vector<2x16xf32>
    %1295 = math.tanh %1294 : vector<2x16xf32>
    %cst_242 = arith.constant 1.000000e+00 : f32
    %1296 = vector.broadcast %cst_242 : f32 to vector<2x16xf32>
    %1297 = arith.subf %1296, %1290 : vector<2x16xf32>
    %1298 = arith.mulf %1297, %1295 : vector<2x16xf32>
    %1299 = arith.mulf %1290, %1270 : vector<2x16xf32>
    %1300 = arith.addf %1298, %1299 : vector<2x16xf32>
    %cst_243 = arith.constant dense<0.000000e+00> : vector<2x48xf32>
    %1301 = tpu.matmul %1300, %1054, %cst_243 {dimension_numbers = #tpu.dot_dimension_numbers<[1], [0], [0], [1], [0, 0, 1, 1], [], []>} : vector<2x16xf32>, vector<16x48xf32>, vector<2x48xf32> -> vector<2x48xf32>
    %1302 = vector.broadcast %1056 : vector<1x48xf32> to vector<2x48xf32>
    %1303 = arith.addf %1301, %1302 : vector<2x48xf32>
    %1304 = vector.extract_strided_slice %1059 {offsets = [16, 0], sizes = [2, 48], strides = [1, 1]} : vector<32x48xf32> to vector<2x48xf32>
    %1305 = vector.extract_strided_slice %1304 {offsets = [0, 0], sizes = [2, 16], strides = [1, 1]} : vector<2x48xf32> to vector<2x16xf32>
    %1306 = vector.extract_strided_slice %1303 {offsets = [0, 0], sizes = [2, 16], strides = [1, 1]} : vector<2x48xf32> to vector<2x16xf32>
    %1307 = arith.addf %1305, %1306 : vector<2x16xf32>
    %1308 = arith.negf %1307 : vector<2x16xf32>
    %1309 = math.exp %1308 : vector<2x16xf32>
    %cst_244 = arith.constant 1.000000e+00 : f32
    %1310 = vector.broadcast %cst_244 : f32 to vector<2x16xf32>
    %1311 = arith.addf %1310, %1309 : vector<2x16xf32>
    %1312 = arith.divf %1310, %1311 : vector<2x16xf32>
    %1313 = vector.extract_strided_slice %1304 {offsets = [0, 16], sizes = [2, 16], strides = [1, 1]} : vector<2x48xf32> to vector<2x16xf32>
    %1314 = vector.extract_strided_slice %1303 {offsets = [0, 16], sizes = [2, 16], strides = [1, 1]} : vector<2x48xf32> to vector<2x16xf32>
    %1315 = arith.addf %1313, %1314 : vector<2x16xf32>
    %1316 = arith.negf %1315 : vector<2x16xf32>
    %1317 = math.exp %1316 : vector<2x16xf32>
    %cst_245 = arith.constant 1.000000e+00 : f32
    %1318 = vector.broadcast %cst_245 : f32 to vector<2x16xf32>
    %1319 = arith.addf %1318, %1317 : vector<2x16xf32>
    %1320 = arith.divf %1318, %1319 : vector<2x16xf32>
    %1321 = vector.extract_strided_slice %1304 {offsets = [0, 32], sizes = [2, 16], strides = [1, 1]} : vector<2x48xf32> to vector<2x16xf32>
    %1322 = vector.extract_strided_slice %1303 {offsets = [0, 32], sizes = [2, 16], strides = [1, 1]} : vector<2x48xf32> to vector<2x16xf32>
    %1323 = arith.mulf %1312, %1322 : vector<2x16xf32>
    %1324 = arith.addf %1321, %1323 : vector<2x16xf32>
    %1325 = math.tanh %1324 : vector<2x16xf32>
    %cst_246 = arith.constant 1.000000e+00 : f32
    %1326 = vector.broadcast %cst_246 : f32 to vector<2x16xf32>
    %1327 = arith.subf %1326, %1320 : vector<2x16xf32>
    %1328 = arith.mulf %1327, %1325 : vector<2x16xf32>
    %1329 = arith.mulf %1320, %1300 : vector<2x16xf32>
    %1330 = arith.addf %1328, %1329 : vector<2x16xf32>
    %cst_247 = arith.constant dense<0.000000e+00> : vector<2x48xf32>
    %1331 = tpu.matmul %1330, %1054, %cst_247 {dimension_numbers = #tpu.dot_dimension_numbers<[1], [0], [0], [1], [0, 0, 1, 1], [], []>} : vector<2x16xf32>, vector<16x48xf32>, vector<2x48xf32> -> vector<2x48xf32>
    %1332 = vector.broadcast %1056 : vector<1x48xf32> to vector<2x48xf32>
    %1333 = arith.addf %1331, %1332 : vector<2x48xf32>
    %1334 = vector.extract_strided_slice %1059 {offsets = [18, 0], sizes = [2, 48], strides = [1, 1]} : vector<32x48xf32> to vector<2x48xf32>
    %1335 = vector.extract_strided_slice %1334 {offsets = [0, 0], sizes = [2, 16], strides = [1, 1]} : vector<2x48xf32> to vector<2x16xf32>
    %1336 = vector.extract_strided_slice %1333 {offsets = [0, 0], sizes = [2, 16], strides = [1, 1]} : vector<2x48xf32> to vector<2x16xf32>
    %1337 = arith.addf %1335, %1336 : vector<2x16xf32>
    %1338 = arith.negf %1337 : vector<2x16xf32>
    %1339 = math.exp %1338 : vector<2x16xf32>
    %cst_248 = arith.constant 1.000000e+00 : f32
    %1340 = vector.broadcast %cst_248 : f32 to vector<2x16xf32>
    %1341 = arith.addf %1340, %1339 : vector<2x16xf32>
    %1342 = arith.divf %1340, %1341 : vector<2x16xf32>
    %1343 = vector.extract_strided_slice %1334 {offsets = [0, 16], sizes = [2, 16], strides = [1, 1]} : vector<2x48xf32> to vector<2x16xf32>
    %1344 = vector.extract_strided_slice %1333 {offsets = [0, 16], sizes = [2, 16], strides = [1, 1]} : vector<2x48xf32> to vector<2x16xf32>
    %1345 = arith.addf %1343, %1344 : vector<2x16xf32>
    %1346 = arith.negf %1345 : vector<2x16xf32>
    %1347 = math.exp %1346 : vector<2x16xf32>
    %cst_249 = arith.constant 1.000000e+00 : f32
    %1348 = vector.broadcast %cst_249 : f32 to vector<2x16xf32>
    %1349 = arith.addf %1348, %1347 : vector<2x16xf32>
    %1350 = arith.divf %1348, %1349 : vector<2x16xf32>
    %1351 = vector.extract_strided_slice %1334 {offsets = [0, 32], sizes = [2, 16], strides = [1, 1]} : vector<2x48xf32> to vector<2x16xf32>
    %1352 = vector.extract_strided_slice %1333 {offsets = [0, 32], sizes = [2, 16], strides = [1, 1]} : vector<2x48xf32> to vector<2x16xf32>
    %1353 = arith.mulf %1342, %1352 : vector<2x16xf32>
    %1354 = arith.addf %1351, %1353 : vector<2x16xf32>
    %1355 = math.tanh %1354 : vector<2x16xf32>
    %cst_250 = arith.constant 1.000000e+00 : f32
    %1356 = vector.broadcast %cst_250 : f32 to vector<2x16xf32>
    %1357 = arith.subf %1356, %1350 : vector<2x16xf32>
    %1358 = arith.mulf %1357, %1355 : vector<2x16xf32>
    %1359 = arith.mulf %1350, %1330 : vector<2x16xf32>
    %1360 = arith.addf %1358, %1359 : vector<2x16xf32>
    %cst_251 = arith.constant dense<0.000000e+00> : vector<2x48xf32>
    %1361 = tpu.matmul %1360, %1054, %cst_251 {dimension_numbers = #tpu.dot_dimension_numbers<[1], [0], [0], [1], [0, 0, 1, 1], [], []>} : vector<2x16xf32>, vector<16x48xf32>, vector<2x48xf32> -> vector<2x48xf32>
    %1362 = vector.broadcast %1056 : vector<1x48xf32> to vector<2x48xf32>
    %1363 = arith.addf %1361, %1362 : vector<2x48xf32>
    %1364 = vector.extract_strided_slice %1059 {offsets = [20, 0], sizes = [2, 48], strides = [1, 1]} : vector<32x48xf32> to vector<2x48xf32>
    %1365 = vector.extract_strided_slice %1364 {offsets = [0, 0], sizes = [2, 16], strides = [1, 1]} : vector<2x48xf32> to vector<2x16xf32>
    %1366 = vector.extract_strided_slice %1363 {offsets = [0, 0], sizes = [2, 16], strides = [1, 1]} : vector<2x48xf32> to vector<2x16xf32>
    %1367 = arith.addf %1365, %1366 : vector<2x16xf32>
    %1368 = arith.negf %1367 : vector<2x16xf32>
    %1369 = math.exp %1368 : vector<2x16xf32>
    %cst_252 = arith.constant 1.000000e+00 : f32
    %1370 = vector.broadcast %cst_252 : f32 to vector<2x16xf32>
    %1371 = arith.addf %1370, %1369 : vector<2x16xf32>
    %1372 = arith.divf %1370, %1371 : vector<2x16xf32>
    %1373 = vector.extract_strided_slice %1364 {offsets = [0, 16], sizes = [2, 16], strides = [1, 1]} : vector<2x48xf32> to vector<2x16xf32>
    %1374 = vector.extract_strided_slice %1363 {offsets = [0, 16], sizes = [2, 16], strides = [1, 1]} : vector<2x48xf32> to vector<2x16xf32>
    %1375 = arith.addf %1373, %1374 : vector<2x16xf32>
    %1376 = arith.negf %1375 : vector<2x16xf32>
    %1377 = math.exp %1376 : vector<2x16xf32>
    %cst_253 = arith.constant 1.000000e+00 : f32
    %1378 = vector.broadcast %cst_253 : f32 to vector<2x16xf32>
    %1379 = arith.addf %1378, %1377 : vector<2x16xf32>
    %1380 = arith.divf %1378, %1379 : vector<2x16xf32>
    %1381 = vector.extract_strided_slice %1364 {offsets = [0, 32], sizes = [2, 16], strides = [1, 1]} : vector<2x48xf32> to vector<2x16xf32>
    %1382 = vector.extract_strided_slice %1363 {offsets = [0, 32], sizes = [2, 16], strides = [1, 1]} : vector<2x48xf32> to vector<2x16xf32>
    %1383 = arith.mulf %1372, %1382 : vector<2x16xf32>
    %1384 = arith.addf %1381, %1383 : vector<2x16xf32>
    %1385 = math.tanh %1384 : vector<2x16xf32>
    %cst_254 = arith.constant 1.000000e+00 : f32
    %1386 = vector.broadcast %cst_254 : f32 to vector<2x16xf32>
    %1387 = arith.subf %1386, %1380 : vector<2x16xf32>
    %1388 = arith.mulf %1387, %1385 : vector<2x16xf32>
    %1389 = arith.mulf %1380, %1360 : vector<2x16xf32>
    %1390 = arith.addf %1388, %1389 : vector<2x16xf32>
    %cst_255 = arith.constant dense<0.000000e+00> : vector<2x48xf32>
    %1391 = tpu.matmul %1390, %1054, %cst_255 {dimension_numbers = #tpu.dot_dimension_numbers<[1], [0], [0], [1], [0, 0, 1, 1], [], []>} : vector<2x16xf32>, vector<16x48xf32>, vector<2x48xf32> -> vector<2x48xf32>
    %1392 = vector.broadcast %1056 : vector<1x48xf32> to vector<2x48xf32>
    %1393 = arith.addf %1391, %1392 : vector<2x48xf32>
    %1394 = vector.extract_strided_slice %1059 {offsets = [22, 0], sizes = [2, 48], strides = [1, 1]} : vector<32x48xf32> to vector<2x48xf32>
    %1395 = vector.extract_strided_slice %1394 {offsets = [0, 0], sizes = [2, 16], strides = [1, 1]} : vector<2x48xf32> to vector<2x16xf32>
    %1396 = vector.extract_strided_slice %1393 {offsets = [0, 0], sizes = [2, 16], strides = [1, 1]} : vector<2x48xf32> to vector<2x16xf32>
    %1397 = arith.addf %1395, %1396 : vector<2x16xf32>
    %1398 = arith.negf %1397 : vector<2x16xf32>
    %1399 = math.exp %1398 : vector<2x16xf32>
    %cst_256 = arith.constant 1.000000e+00 : f32
    %1400 = vector.broadcast %cst_256 : f32 to vector<2x16xf32>
    %1401 = arith.addf %1400, %1399 : vector<2x16xf32>
    %1402 = arith.divf %1400, %1401 : vector<2x16xf32>
    %1403 = vector.extract_strided_slice %1394 {offsets = [0, 16], sizes = [2, 16], strides = [1, 1]} : vector<2x48xf32> to vector<2x16xf32>
    %1404 = vector.extract_strided_slice %1393 {offsets = [0, 16], sizes = [2, 16], strides = [1, 1]} : vector<2x48xf32> to vector<2x16xf32>
    %1405 = arith.addf %1403, %1404 : vector<2x16xf32>
    %1406 = arith.negf %1405 : vector<2x16xf32>
    %1407 = math.exp %1406 : vector<2x16xf32>
    %cst_257 = arith.constant 1.000000e+00 : f32
    %1408 = vector.broadcast %cst_257 : f32 to vector<2x16xf32>
    %1409 = arith.addf %1408, %1407 : vector<2x16xf32>
    %1410 = arith.divf %1408, %1409 : vector<2x16xf32>
    %1411 = vector.extract_strided_slice %1394 {offsets = [0, 32], sizes = [2, 16], strides = [1, 1]} : vector<2x48xf32> to vector<2x16xf32>
    %1412 = vector.extract_strided_slice %1393 {offsets = [0, 32], sizes = [2, 16], strides = [1, 1]} : vector<2x48xf32> to vector<2x16xf32>
    %1413 = arith.mulf %1402, %1412 : vector<2x16xf32>
    %1414 = arith.addf %1411, %1413 : vector<2x16xf32>
    %1415 = math.tanh %1414 : vector<2x16xf32>
    %cst_258 = arith.constant 1.000000e+00 : f32
    %1416 = vector.broadcast %cst_258 : f32 to vector<2x16xf32>
    %1417 = arith.subf %1416, %1410 : vector<2x16xf32>
    %1418 = arith.mulf %1417, %1415 : vector<2x16xf32>
    %1419 = arith.mulf %1410, %1390 : vector<2x16xf32>
    %1420 = arith.addf %1418, %1419 : vector<2x16xf32>
    %cst_259 = arith.constant dense<0.000000e+00> : vector<2x48xf32>
    %1421 = tpu.matmul %1420, %1054, %cst_259 {dimension_numbers = #tpu.dot_dimension_numbers<[1], [0], [0], [1], [0, 0, 1, 1], [], []>} : vector<2x16xf32>, vector<16x48xf32>, vector<2x48xf32> -> vector<2x48xf32>
    %1422 = vector.broadcast %1056 : vector<1x48xf32> to vector<2x48xf32>
    %1423 = arith.addf %1421, %1422 : vector<2x48xf32>
    %1424 = vector.extract_strided_slice %1059 {offsets = [24, 0], sizes = [2, 48], strides = [1, 1]} : vector<32x48xf32> to vector<2x48xf32>
    %1425 = vector.extract_strided_slice %1424 {offsets = [0, 0], sizes = [2, 16], strides = [1, 1]} : vector<2x48xf32> to vector<2x16xf32>
    %1426 = vector.extract_strided_slice %1423 {offsets = [0, 0], sizes = [2, 16], strides = [1, 1]} : vector<2x48xf32> to vector<2x16xf32>
    %1427 = arith.addf %1425, %1426 : vector<2x16xf32>
    %1428 = arith.negf %1427 : vector<2x16xf32>
    %1429 = math.exp %1428 : vector<2x16xf32>
    %cst_260 = arith.constant 1.000000e+00 : f32
    %1430 = vector.broadcast %cst_260 : f32 to vector<2x16xf32>
    %1431 = arith.addf %1430, %1429 : vector<2x16xf32>
    %1432 = arith.divf %1430, %1431 : vector<2x16xf32>
    %1433 = vector.extract_strided_slice %1424 {offsets = [0, 16], sizes = [2, 16], strides = [1, 1]} : vector<2x48xf32> to vector<2x16xf32>
    %1434 = vector.extract_strided_slice %1423 {offsets = [0, 16], sizes = [2, 16], strides = [1, 1]} : vector<2x48xf32> to vector<2x16xf32>
    %1435 = arith.addf %1433, %1434 : vector<2x16xf32>
    %1436 = arith.negf %1435 : vector<2x16xf32>
    %1437 = math.exp %1436 : vector<2x16xf32>
    %cst_261 = arith.constant 1.000000e+00 : f32
    %1438 = vector.broadcast %cst_261 : f32 to vector<2x16xf32>
    %1439 = arith.addf %1438, %1437 : vector<2x16xf32>
    %1440 = arith.divf %1438, %1439 : vector<2x16xf32>
    %1441 = vector.extract_strided_slice %1424 {offsets = [0, 32], sizes = [2, 16], strides = [1, 1]} : vector<2x48xf32> to vector<2x16xf32>
    %1442 = vector.extract_strided_slice %1423 {offsets = [0, 32], sizes = [2, 16], strides = [1, 1]} : vector<2x48xf32> to vector<2x16xf32>
    %1443 = arith.mulf %1432, %1442 : vector<2x16xf32>
    %1444 = arith.addf %1441, %1443 : vector<2x16xf32>
    %1445 = math.tanh %1444 : vector<2x16xf32>
    %cst_262 = arith.constant 1.000000e+00 : f32
    %1446 = vector.broadcast %cst_262 : f32 to vector<2x16xf32>
    %1447 = arith.subf %1446, %1440 : vector<2x16xf32>
    %1448 = arith.mulf %1447, %1445 : vector<2x16xf32>
    %1449 = arith.mulf %1440, %1420 : vector<2x16xf32>
    %1450 = arith.addf %1448, %1449 : vector<2x16xf32>
    %cst_263 = arith.constant dense<0.000000e+00> : vector<2x48xf32>
    %1451 = tpu.matmul %1450, %1054, %cst_263 {dimension_numbers = #tpu.dot_dimension_numbers<[1], [0], [0], [1], [0, 0, 1, 1], [], []>} : vector<2x16xf32>, vector<16x48xf32>, vector<2x48xf32> -> vector<2x48xf32>
    %1452 = vector.broadcast %1056 : vector<1x48xf32> to vector<2x48xf32>
    %1453 = arith.addf %1451, %1452 : vector<2x48xf32>
    %1454 = vector.extract_strided_slice %1059 {offsets = [26, 0], sizes = [2, 48], strides = [1, 1]} : vector<32x48xf32> to vector<2x48xf32>
    %1455 = vector.extract_strided_slice %1454 {offsets = [0, 0], sizes = [2, 16], strides = [1, 1]} : vector<2x48xf32> to vector<2x16xf32>
    %1456 = vector.extract_strided_slice %1453 {offsets = [0, 0], sizes = [2, 16], strides = [1, 1]} : vector<2x48xf32> to vector<2x16xf32>
    %1457 = arith.addf %1455, %1456 : vector<2x16xf32>
    %1458 = arith.negf %1457 : vector<2x16xf32>
    %1459 = math.exp %1458 : vector<2x16xf32>
    %cst_264 = arith.constant 1.000000e+00 : f32
    %1460 = vector.broadcast %cst_264 : f32 to vector<2x16xf32>
    %1461 = arith.addf %1460, %1459 : vector<2x16xf32>
    %1462 = arith.divf %1460, %1461 : vector<2x16xf32>
    %1463 = vector.extract_strided_slice %1454 {offsets = [0, 16], sizes = [2, 16], strides = [1, 1]} : vector<2x48xf32> to vector<2x16xf32>
    %1464 = vector.extract_strided_slice %1453 {offsets = [0, 16], sizes = [2, 16], strides = [1, 1]} : vector<2x48xf32> to vector<2x16xf32>
    %1465 = arith.addf %1463, %1464 : vector<2x16xf32>
    %1466 = arith.negf %1465 : vector<2x16xf32>
    %1467 = math.exp %1466 : vector<2x16xf32>
    %cst_265 = arith.constant 1.000000e+00 : f32
    %1468 = vector.broadcast %cst_265 : f32 to vector<2x16xf32>
    %1469 = arith.addf %1468, %1467 : vector<2x16xf32>
    %1470 = arith.divf %1468, %1469 : vector<2x16xf32>
    %1471 = vector.extract_strided_slice %1454 {offsets = [0, 32], sizes = [2, 16], strides = [1, 1]} : vector<2x48xf32> to vector<2x16xf32>
    %1472 = vector.extract_strided_slice %1453 {offsets = [0, 32], sizes = [2, 16], strides = [1, 1]} : vector<2x48xf32> to vector<2x16xf32>
    %1473 = arith.mulf %1462, %1472 : vector<2x16xf32>
    %1474 = arith.addf %1471, %1473 : vector<2x16xf32>
    %1475 = math.tanh %1474 : vector<2x16xf32>
    %cst_266 = arith.constant 1.000000e+00 : f32
    %1476 = vector.broadcast %cst_266 : f32 to vector<2x16xf32>
    %1477 = arith.subf %1476, %1470 : vector<2x16xf32>
    %1478 = arith.mulf %1477, %1475 : vector<2x16xf32>
    %1479 = arith.mulf %1470, %1450 : vector<2x16xf32>
    %1480 = arith.addf %1478, %1479 : vector<2x16xf32>
    %cst_267 = arith.constant dense<0.000000e+00> : vector<2x48xf32>
    %1481 = tpu.matmul %1480, %1054, %cst_267 {dimension_numbers = #tpu.dot_dimension_numbers<[1], [0], [0], [1], [0, 0, 1, 1], [], []>} : vector<2x16xf32>, vector<16x48xf32>, vector<2x48xf32> -> vector<2x48xf32>
    %1482 = vector.broadcast %1056 : vector<1x48xf32> to vector<2x48xf32>
    %1483 = arith.addf %1481, %1482 : vector<2x48xf32>
    %1484 = vector.extract_strided_slice %1059 {offsets = [28, 0], sizes = [2, 48], strides = [1, 1]} : vector<32x48xf32> to vector<2x48xf32>
    %1485 = vector.extract_strided_slice %1484 {offsets = [0, 0], sizes = [2, 16], strides = [1, 1]} : vector<2x48xf32> to vector<2x16xf32>
    %1486 = vector.extract_strided_slice %1483 {offsets = [0, 0], sizes = [2, 16], strides = [1, 1]} : vector<2x48xf32> to vector<2x16xf32>
    %1487 = arith.addf %1485, %1486 : vector<2x16xf32>
    %1488 = arith.negf %1487 : vector<2x16xf32>
    %1489 = math.exp %1488 : vector<2x16xf32>
    %cst_268 = arith.constant 1.000000e+00 : f32
    %1490 = vector.broadcast %cst_268 : f32 to vector<2x16xf32>
    %1491 = arith.addf %1490, %1489 : vector<2x16xf32>
    %1492 = arith.divf %1490, %1491 : vector<2x16xf32>
    %1493 = vector.extract_strided_slice %1484 {offsets = [0, 16], sizes = [2, 16], strides = [1, 1]} : vector<2x48xf32> to vector<2x16xf32>
    %1494 = vector.extract_strided_slice %1483 {offsets = [0, 16], sizes = [2, 16], strides = [1, 1]} : vector<2x48xf32> to vector<2x16xf32>
    %1495 = arith.addf %1493, %1494 : vector<2x16xf32>
    %1496 = arith.negf %1495 : vector<2x16xf32>
    %1497 = math.exp %1496 : vector<2x16xf32>
    %cst_269 = arith.constant 1.000000e+00 : f32
    %1498 = vector.broadcast %cst_269 : f32 to vector<2x16xf32>
    %1499 = arith.addf %1498, %1497 : vector<2x16xf32>
    %1500 = arith.divf %1498, %1499 : vector<2x16xf32>
    %1501 = vector.extract_strided_slice %1484 {offsets = [0, 32], sizes = [2, 16], strides = [1, 1]} : vector<2x48xf32> to vector<2x16xf32>
    %1502 = vector.extract_strided_slice %1483 {offsets = [0, 32], sizes = [2, 16], strides = [1, 1]} : vector<2x48xf32> to vector<2x16xf32>
    %1503 = arith.mulf %1492, %1502 : vector<2x16xf32>
    %1504 = arith.addf %1501, %1503 : vector<2x16xf32>
    %1505 = math.tanh %1504 : vector<2x16xf32>
    %cst_270 = arith.constant 1.000000e+00 : f32
    %1506 = vector.broadcast %cst_270 : f32 to vector<2x16xf32>
    %1507 = arith.subf %1506, %1500 : vector<2x16xf32>
    %1508 = arith.mulf %1507, %1505 : vector<2x16xf32>
    %1509 = arith.mulf %1500, %1480 : vector<2x16xf32>
    %1510 = arith.addf %1508, %1509 : vector<2x16xf32>
    %cst_271 = arith.constant dense<0.000000e+00> : vector<2x48xf32>
    %1511 = tpu.matmul %1510, %1054, %cst_271 {dimension_numbers = #tpu.dot_dimension_numbers<[1], [0], [0], [1], [0, 0, 1, 1], [], []>} : vector<2x16xf32>, vector<16x48xf32>, vector<2x48xf32> -> vector<2x48xf32>
    %1512 = vector.broadcast %1056 : vector<1x48xf32> to vector<2x48xf32>
    %1513 = arith.addf %1511, %1512 : vector<2x48xf32>
    %1514 = vector.extract_strided_slice %1059 {offsets = [30, 0], sizes = [2, 48], strides = [1, 1]} : vector<32x48xf32> to vector<2x48xf32>
    %1515 = vector.extract_strided_slice %1514 {offsets = [0, 0], sizes = [2, 16], strides = [1, 1]} : vector<2x48xf32> to vector<2x16xf32>
    %1516 = vector.extract_strided_slice %1513 {offsets = [0, 0], sizes = [2, 16], strides = [1, 1]} : vector<2x48xf32> to vector<2x16xf32>
    %1517 = arith.addf %1515, %1516 : vector<2x16xf32>
    %1518 = arith.negf %1517 : vector<2x16xf32>
    %1519 = math.exp %1518 : vector<2x16xf32>
    %cst_272 = arith.constant 1.000000e+00 : f32
    %1520 = vector.broadcast %cst_272 : f32 to vector<2x16xf32>
    %1521 = arith.addf %1520, %1519 : vector<2x16xf32>
    %1522 = arith.divf %1520, %1521 : vector<2x16xf32>
    %1523 = vector.extract_strided_slice %1514 {offsets = [0, 16], sizes = [2, 16], strides = [1, 1]} : vector<2x48xf32> to vector<2x16xf32>
    %1524 = vector.extract_strided_slice %1513 {offsets = [0, 16], sizes = [2, 16], strides = [1, 1]} : vector<2x48xf32> to vector<2x16xf32>
    %1525 = arith.addf %1523, %1524 : vector<2x16xf32>
    %1526 = arith.negf %1525 : vector<2x16xf32>
    %1527 = math.exp %1526 : vector<2x16xf32>
    %cst_273 = arith.constant 1.000000e+00 : f32
    %1528 = vector.broadcast %cst_273 : f32 to vector<2x16xf32>
    %1529 = arith.addf %1528, %1527 : vector<2x16xf32>
    %1530 = arith.divf %1528, %1529 : vector<2x16xf32>
    %1531 = vector.extract_strided_slice %1514 {offsets = [0, 32], sizes = [2, 16], strides = [1, 1]} : vector<2x48xf32> to vector<2x16xf32>
    %1532 = vector.extract_strided_slice %1513 {offsets = [0, 32], sizes = [2, 16], strides = [1, 1]} : vector<2x48xf32> to vector<2x16xf32>
    %1533 = arith.mulf %1522, %1532 : vector<2x16xf32>
    %1534 = arith.addf %1531, %1533 : vector<2x16xf32>
    %1535 = math.tanh %1534 : vector<2x16xf32>
    %cst_274 = arith.constant 1.000000e+00 : f32
    %1536 = vector.broadcast %cst_274 : f32 to vector<2x16xf32>
    %1537 = arith.subf %1536, %1530 : vector<2x16xf32>
    %1538 = arith.mulf %1537, %1535 : vector<2x16xf32>
    %1539 = arith.mulf %1530, %1510 : vector<2x16xf32>
    %1540 = arith.addf %1538, %1539 : vector<2x16xf32>
    %c240 = arith.constant 240 : index
    %c0_275 = arith.constant 0 : index
    %1541 = vector.load %arg1[%c240, %c0_275] : memref<280x128xf32, #tpu.memory_space<vmem>>, vector<16x8xf32>
    %cst_276 = arith.constant dense<0.000000e+00> : vector<2x8xf32>
    %1542 = tpu.matmul %1540, %1541, %cst_276 {dimension_numbers = #tpu.dot_dimension_numbers<[1], [0], [0], [1], [0, 0, 1, 1], [], []>} : vector<2x16xf32>, vector<16x8xf32>, vector<2x8xf32> -> vector<2x8xf32>
    %c256 = arith.constant 256 : index
    %c0_277 = arith.constant 0 : index
    %1543 = vector.load %arg1[%c256, %c0_277] : memref<280x128xf32, #tpu.memory_space<vmem>>, vector<1x8xf32>
    %1544 = vector.broadcast %1543 : vector<1x8xf32> to vector<2x8xf32>
    %1545 = arith.addf %1542, %1544 : vector<2x8xf32>
    %cst_278 = arith.constant 0.000000e+00 : f32
    %1546 = vector.broadcast %cst_278 : f32 to vector<2x8xf32>
    %1547 = arith.cmpf oge, %1545, %1546 : vector<2x8xf32>
    %cst_279 = arith.constant 0.00999999977 : f32
    %1548 = vector.broadcast %cst_279 : f32 to vector<2x8xf32>
    %1549 = arith.mulf %1548, %1545 : vector<2x8xf32>
    %1550 = arith.select %1547, %1545, %1549 : vector<2x8xi1>, vector<2x8xf32>
    %c264 = arith.constant 264 : index
    %c0_280 = arith.constant 0 : index
    %1551 = vector.load %arg1[%c264, %c0_280] : memref<280x128xf32, #tpu.memory_space<vmem>>, vector<8x2xf32>
    %cst_281 = arith.constant dense<0.000000e+00> : vector<2x2xf32>
    %1552 = tpu.matmul %1550, %1551, %cst_281 {dimension_numbers = #tpu.dot_dimension_numbers<[1], [0], [0], [1], [0, 0, 1, 1], [], []>} : vector<2x8xf32>, vector<8x2xf32>, vector<2x2xf32> -> vector<2x2xf32>
    %c272 = arith.constant 272 : index
    %c0_282 = arith.constant 0 : index
    %1553 = vector.load %arg1[%c272, %c0_282] : memref<280x128xf32, #tpu.memory_space<vmem>>, vector<1x2xf32>
    %1554 = vector.broadcast %1553 : vector<1x2xf32> to vector<2x2xf32>
    %1555 = arith.addf %1552, %1554 : vector<2x2xf32>
    %1556 = tpu.iota {dimensions = array<i32: 1>} : vector<2x2xi32>
    %c1_i32 = arith.constant 1 : i32
    %1557 = vector.broadcast %c1_i32 : i32 to vector<2x2xi32>
    %1558 = arith.cmpi slt, %1556, %1557 : vector<2x2xi32>
    %1559 = math.tanh %1555 : vector<2x2xf32>
    %1560 = arith.negf %1555 : vector<2x2xf32>
    %1561 = math.exp %1560 : vector<2x2xf32>
    %cst_283 = arith.constant 1.000000e+00 : f32
    %1562 = vector.broadcast %cst_283 : f32 to vector<2x2xf32>
    %1563 = arith.addf %1562, %1561 : vector<2x2xf32>
    %1564 = arith.divf %1562, %1563 : vector<2x2xf32>
    %1565 = arith.select %1558, %1559, %1564 : vector<2x2xi1>, vector<2x2xf32>
    %c0_284 = arith.constant 0 : index
    %c0_285 = arith.constant 0 : index
    %1566 = vector.load %arg2[%c0_284, %c0_285] : memref<2x2xf32, #tpu.memory_space<vmem>>, vector<2x2xf32>
    tpu.vector_store %arg2[%c0_284, %c0_285], %1565 {strides = array<i32>} : memref<2x2xf32, #tpu.memory_space<vmem>>, vector<2x2xf32>,
    return
  }
}

</mosaic_0001>

<bundles_post_ra>
// kernel: _lambda_.1
= control target key start
LH: loop header
LB: loop body
LE: loop exit
PB: predicated region body
PF: predicated region fallthrough
CT: control target
= control target key end

     0   :  { %7 = vsyncpa [#allocation5], 0  ;;  %s9431_s0 = inlined_call_operand.vmem [shape: f32[2,16,1], index: 0, kind: input, shape index: {}]   ;;  %s9432_s1 = inlined_call_operand.hbm [shape: f32[280,128], index: 1, kind: input, shape index: {}]   ;;  %s9433_s2 = inlined_call_operand.hbm [shape: f32[2,2], index: 2, kind: output, shape index: {}]  }
   0x1   :  { %8 = vsyncpa [#allocation6], 0  ;;  %s8021_s9 = smov [#allocation4]  }
   0x2   :  { %s16_s10 = sshll.u32 %s8021_s9, 4  ;;  %s17_s10 = int_to_ptr.vmem [resolvable:$true] %s16_s10 }
   0x3   :  { %s7985_s11 = scalar_lea.vmem %s17_s10, 4480  ;;  %p7990_p1 = scmp.lt.s32.totalorder %s17_s10, %s17_s10 }
   0x4   :  { %p7986_p0 = scmp.ne.s32.totalorder %s17_s10, %s7985_s11  ;;  %p7991_p2 = scmp.lt.s32.totalorder %s7985_s11, %s7985_s11 }
   0x6   :  { %p7992_p3 = por %p7991_p2, %p7990_p1 }
   0x8   :  { %p7993_p4 = pnand %p7992_p3, %p7986_p0 }
   0xa   :  { %7996 = shalt.err (!%p7993_p4)
}
   0xb   :  { %s8022_s12 = smov 128   ;;  %s8023_s13 = smov 8  }
   0xc   :  { %22 = dma.hbm_to_vmem [thread:$0]  %s9432_s1, 4480, %s17_s10, [#allocation5], %s8022_s12, %s8022_s12, %s8023_s13  }
   0xd   :  { %8017 = dma.done.wait [#allocation5], 4480  }
   0xe   :  { %8018 = vsyncadd [#allocation5], 4294962816  ;;  %vm130_vm0 = vcmask 1042432   ;;  %v26_v0 = vld [vmem:[%s9431_s0] sm:$0xff]  ;;  %v27_v1 = vld [vmem:[%s9431_s0 + $0x8] sm:$0xff]  ;;  %vm34_vm1 = vcmask 1040384  }
   0xf   :  { %v28_v2 = vld [vmem:[%s9431_s0 + $0x10] sm:$0xff]  ;;  %v35_v3 = vrot.slane %v26_v0, 7  ;;  %v36_v4 = vrot.slane %v27_v1, 7  ;;  %v29_v5 = vld [vmem:[%s9431_s0 + $0x18] sm:$0xff]  ;;  %v111_v7 = vld [vmem:[#allocation4] sm:$0x7] }
  0x10   :  { %v38_v6 = vrot.slane %v28_v2, 7  ;;  %vm78_vm2 = vcmask 1045504   ;;  %vm55_vm3 = vcmask 1046528   ;;  %v39_v8 = vrot.slane %v29_v5, 7  ;;  %7029 = vmatprep.subr.msk.mxu0 %vm130_vm0, %v111_v7  ;;  %s8024_s0 = smov 2   ;;  %s8025_s23 = smov 1  }
  0x11   :  { %v37_v9 = vsel %vm34_vm1, %v35_v3, %v36_v4  ;;  %v47_v10 = vsel %vm34_vm1, 0.0, %v35_v3  ;;  %v49_v11 = vsel %vm34_vm1, %v36_v4, 0.0  ;;  %7030 = vmatpush3.msk.msra.mxu0 %vm130_vm0, %v111_v7  ;;  %vm101_vm4 = vcmask 7168   ;;  %v6640_v51 = vld [vmem:[#allocation4 + $0x8] ss:$0 sm:$0xff]  ;;  %v297_v55 = vld [vmem:[#allocation4 + $0x10] sm:$0xff] }
  0x12   :  { %v48_v12 = vsel %vm34_vm1, 0.0, %v38_v6  ;;  %v79_v13 = vrot.slane %v47_v10, 2  ;;  %v80_v14 = vrot.slane %v37_v9, 2  ;;  %v56_v15 = vrot.slane %v47_v10, 1  ;;  %v298_v52 = vld [vmem:[#allocation4 + $0x18] sm:$0xf] }
  0x13   :  { %v57_v16 = vrot.slane %v37_v9, 1  ;;  %v82_v17 = vrot.slane %v49_v11, 2  ;;  %v59_v18 = vrot.slane %v49_v11, 1  ;;  %v40_v19 = vsel %vm34_vm1, %v38_v6, %v39_v8  ;;  %s8026_s24 = smov 4   ;;  %s8029_s25 = smov 64  }
  0x14   :  { %v50_v20 = vsel %vm34_vm1, %v39_v8, 0.0  ;;  %v81_v21 = vsel %vm78_vm2, %v79_v13, %v80_v14  ;;  %v62_v23 = vrot.slane %v40_v19, 1  ;;  %v61_v27 = vrot.slane %v48_v12, 1  ;;  %s8030_s26 = smov 96   ;;  %s8031_s27 = smov 32  }
  0x15   :  { %v58_v22 = vsel %vm55_vm3, %v56_v15, %v57_v16  ;;  %89 = vrot.lane.b32.xlu1 %v81_v21, %s8024_s0  ;;  %v83_v24 = vsel %vm78_vm2, %v80_v14, %v82_v17  ;;  %v60_v25 = vsel %vm55_vm3, %v57_v16, %v59_v18  ;;  %v64_v26 = vrot.slane %v50_v20, 1  ;;  %s8032_s28 = smov 112   ;;  %s8033_s29 = smov [#allocation7]  }
  0x16   :  { %66 = vrot.lane.b32.xlu0 %v58_v22, %s8025_s23  ;;  %v85_v28 = vrot.slane %v40_v19, 2  ;;  %v63_v30 = vsel %vm55_vm3, %v61_v27, %v62_v23  ;;  %v87_v31 = vrot.slane %v50_v20, 2  ;;  %v84_v32 = vrot.slane %v48_v12, 2  ;;  %s6631_s30 = sshll.u32 %s8033_s29, 4  ;;  %s6632_s30 = int_to_ptr.vmem [resolvable:$true] %s6631_s30 }
  0x17   :  { %v65_v29 = vsel %vm55_vm3, %v62_v23, %v64_v26  ;;  %vm106_vm5 = vcmask 15360   ;;  %vm117_vm6 = vcmask 23552   ;;  %vm317_vm7 = vcmask 1043456   ;;  %s7997_s3 = scalar_lea.vmem %s6632_s30, 32  ;;  %p8002_p6 = scmp.lt.s32.totalorder %s6632_s30, %s6632_s30 }
  0x18   :  { %v88_v33 = vsel %vm78_vm2, %v85_v28, %v87_v31  ;;  %v86_v34 = vsel %vm78_vm2, %v84_v32, %v85_v28  ;;  %7037 = vmatprep.subr.msk.mxu1 %vm317_vm7, %v298_v52  ;;  %v8027_v14 = vmov 0.0   ;;  %vm287_vm8 = vcmask 31744   ;;  %p7998_p5 = scmp.ne.s32.totalorder %s6632_s30, %s7997_s3  ;;  %p8003_p7 = scmp.lt.s32.totalorder %s7997_s3, %s7997_s3 }
  0x19   :  { %91 = vrot.lane.b32.xlu1 %v83_v24, %s8024_s0  ;;  %7038 = vmatpush3.msk.msra.mxu1 %vm317_vm7, %v298_v52  ;;  %vm9434_vm9 = vcmask 64512   ;;  %vm304_vm10 = vcmask 97280   ;;  %vm8028_vm11 = vmmov 0   ;;  %vm649_vm12 = vcmask 1041409  }
  0x1a   :  { %68 = vrot.lane.b32.xlu0 %v60_v25, %s8025_s23  ;;  %7039 = vmatprep.subr.mxu1 %v297_v55  ;;  %vm9435_vm13 = vcmask 254976   ;;  %vm518_vm14 = vcmask 261120   ;;  %vm788_vm15 = vcmask 1042434   ;;  %vm1077_vm0 = vcmask 1044484   ;;  %p8004_p8 = por %p8003_p7, %p8002_p6 }
  0x1b   :  { %7040 = vmatpush3.msra.mxu1 %v297_v55  ;;  %vm1663_vm7 = vcmask 261127  }
  0x1c   :  { %7055 = vmatprep.subr.mxu1 %v8027_v14  ;;  %p8005_p9 = pnand %p8004_p8, %p7998_p5 }
  0x1d   :  { %72 = vrot.lane.b32.xlu1 %v65_v29, %s8025_s23 }
  0x1e   :  { %70 = vrot.lane.b32.xlu0 %v63_v30, %s8025_s23 }
  0x21   :  { %95 = vrot.lane.b32.xlu1 %v88_v33, %s8024_s0 }
  0x22   :  { %93 = vrot.lane.b32.xlu0 %v86_v34, %s8024_s0 }
  0x87   :  { %v90_v35 = vpop.permute.xlu1 %89 }
  0x88   :  { %v67_v36 = vpop.permute.xlu0 %66 }
  0x89   :  { %v102_v37 = vsel %vm101_vm4, %v47_v10, %v67_v36 }
  0x8a   :  { %v107_v38 = vsel %vm106_vm5, %v102_v37, %v90_v35  ;;  %v8116_v37 = vld [vmem:[#allocation4 + $0x48] sm:$0xff] }
  0x8b   :  { %7031 = vmatprep.mubr.msk.f32.mxu0 %vm117_vm6, %v107_v38  ;;  %v92_v39 = vpop.permute.xlu1 %91  ;;  %v8120_v38 = vld [vmem:[#allocation4 + $0x40] sm:$0xff] }
  0x8c   :  { %v69_v40 = vpop.permute.xlu0 %68 }
  0x8d   :  { %v103_v41 = vsel %vm101_vm4, %v37_v9, %v69_v40 }
  0x8e   :  { %v108_v42 = vsel %vm106_vm5, %v103_v41, %v92_v39  ;;  %v8124_v41 = vld [vmem:[#allocation4 + $0x38] sm:$0xff] }
  0x8f   :  { %7032 = vmatmul.mubr.msk.f32.vlgmr.msra.gmra.mxu0 %vm117_vm6, %v108_v42  ;;  %v73_v43 = vpop.permute.xlu1 %72  ;;  %v8128_v42 = vld [vmem:[#allocation4 + $0x30] sm:$0xff] }
  0x90   :  { %v71_v44 = vpop.permute.xlu0 %70  ;;  %v105_v45 = vsel %vm101_vm4, %v40_v19, %v73_v43 }
  0x91   :  { %v104_v46 = vsel %vm101_vm4, %v48_v12, %v71_v44  ;;  %vm932_vm4 = vcmask 1043459  }
  0x93   :  { %v96_v47 = vpop.permute.xlu1 %95 }
  0x94   :  { %v94_v48 = vpop.permute.xlu0 %93  ;;  %v110_v49 = vsel %vm106_vm5, %v105_v45, %v96_v47 }
  0x95   :  { %v109_v50 = vsel %vm106_vm5, %v104_v46, %v94_v48  ;;  %vm1372_vm5 = vcmask 260101  }
  0x96   :  { %7034 = vmatprep.mubr.msk.f32.mxu0 %vm117_vm6, %v109_v50 }
  0x97   :  { %7035 = vmatmul.mubr.msk.f32.gmra.mxu0 %vm117_vm6, %v110_v49  ;;  %v406_v49 = vld [vmem:[#allocation4 + $0x28] sm:$0xff]  ;;  %vm1222_vm6 = vcmask 1045509  }
  0x98   :  { %7047 = vmatprep.subr.mxu0 %v406_v49 }
  0x99   :  { %7048 = vmatpush3.msra.mxu0 %v406_v49 }
  0x9a   :  { %7066 = vmatprep.subr.mxu0 %v8027_v14 }
 0x14f   :  { %v7033_v53 = vpop.f32.mrf.mxu0 }
 0x150   :  { %v206_v54 = vadd.f32 %v7033_v53, %v6640_v51 }
 0x151   :  { %v200_v56 = vpop.f32.mrf.mxu0 }
 0x152   :  { %v224_v57 = vrot.slane %v206_v54, 7  ;;  %v201_v58 = vadd.f32 %v6640_v51, %v200_v56 }
 0x154   :  { %v237_v59 = vsel %vm34_vm1, %v224_v57, 0.0  ;;  %v223_v60 = vrot.slane %v201_v58, 7 }
 0x155   :  { %v246_v63 = vrot.slane %v237_v59, 1  ;;  %v268_v11 = vrot.slane %v237_v59, 2 }
 0x156   :  { %v225_v61 = vsel %vm34_vm1, %v223_v60, %v224_v57  ;;  %v235_v62 = vsel %vm34_vm1, 0.0, %v223_v60  ;;  %v8159_v57 = vld [vmem:[#allocation4 + $0x58] ss:$0 sm:$0xff] }
 0x157   :  { %v243_v0 = vrot.slane %v235_v62, 1  ;;  %v7036_v1 = vpop.f32.mrf.mxu0  ;;  %v244_v2 = vrot.slane %v225_v61, 1  ;;  %v266_v7 = vrot.slane %v225_v61, 2  ;;  %v265_v8 = vrot.slane %v235_v62, 2 }
 0x158   :  { %v216_v3 = vadd.f32 %v7036_v1, %v6640_v51 }
 0x159   :  { %v210_v4 = vpop.f32.mrf.mxu0  ;;  %v247_v5 = vsel %vm55_vm3, %v244_v2, %v246_v63  ;;  %v245_v6 = vsel %vm55_vm3, %v243_v0, %v244_v2  ;;  %v269_v15 = vsel %vm78_vm2, %v266_v7, %v268_v11  ;;  %v267_v16 = vsel %vm78_vm2, %v265_v8, %v266_v7  ;;  %v6652_v0 = vld [vmem:[#allocation4 + $0x50] ss:$0 sm:$0xff] }
 0x15a   :  { %v227_v9 = vrot.slane %v216_v3, 7  ;;  %v211_v10 = vadd.f32 %v6640_v51, %v210_v4  ;;  %255 = vrot.lane.b32.xlu1 %v247_v5, %s8026_s24  ;;  %253 = vrot.lane.b32.xlu0 %v245_v6, %s8026_s24  ;;  %v6646_v51 = vld [vmem:[#allocation4 + $0x20] ss:$0 sm:$0xff] }
 0x15c   :  { %v238_v12 = vsel %vm34_vm1, %v227_v9, 0.0  ;;  %v226_v13 = vrot.slane %v211_v10, 7 }
 0x15d   :  { %v251_v19 = vrot.slane %v238_v12, 1  ;;  %v273_v26 = vrot.slane %v238_v12, 2 }
 0x15e   :  { %v228_v17 = vsel %vm34_vm1, %v226_v13, %v227_v9  ;;  %v236_v18 = vsel %vm34_vm1, 0.0, %v226_v13  ;;  %277 = vrot.lane.b32.xlu1 %v269_v15, %s8023_s13  ;;  %275 = vrot.lane.b32.xlu0 %v267_v16, %s8023_s13  ;;  %vm1367_vm1 = vcmask 1046534  }
 0x15f   :  { %v248_v20 = vrot.slane %v236_v18, 1  ;;  %v249_v21 = vrot.slane %v228_v17, 1  ;;  %v271_v24 = vrot.slane %v228_v17, 2  ;;  %v270_v25 = vrot.slane %v236_v18, 2 }
 0x161   :  { %v252_v22 = vsel %vm55_vm3, %v249_v21, %v251_v19  ;;  %v250_v23 = vsel %vm55_vm3, %v248_v20, %v249_v21  ;;  %v274_v27 = vsel %vm78_vm2, %v271_v24, %v273_v26  ;;  %v272_v28 = vsel %vm78_vm2, %v270_v25, %v271_v24 }
 0x162   :  { %259 = vrot.lane.b32.xlu1 %v252_v22, %s8026_s24  ;;  %257 = vrot.lane.b32.xlu0 %v250_v23, %s8026_s24  ;;  %vm793_vm2 = vcmask 256001   ;;  %vm1082_vm3 = vcmask 258051  }
 0x166   :  { %281 = vrot.lane.b32.xlu1 %v274_v27, %s8023_s13  ;;  %279 = vrot.lane.b32.xlu0 %v272_v28, %s8023_s13 }
 0x1cc   :  { %v256_v29 = vpop.permute.xlu1 %255  ;;  %v254_v30 = vpop.permute.xlu0 %253 }
 0x1cd   :  { %v289_v31 = vsel %vm287_vm8, %v225_v61, %v256_v29  ;;  %v288_v32 = vsel %vm287_vm8, %v235_v62, %v254_v30 }
 0x1d0   :  { %v278_v33 = vpop.permute.xlu1 %277  ;;  %v276_v34 = vpop.permute.xlu0 %275 }
 0x1d1   :  { %v294_v35 = vsel %vm9434_vm9, %v289_v31, %v278_v33  ;;  %v293_v36 = vsel %vm9434_vm9, %v288_v32, %v276_v34 }
 0x1d2   :  { %7041 = vmatprep.mubr.msk.f32.mxu1 %vm304_vm10, %v293_v36 }
 0x1d3   :  { %7042 = vmatmul.mubr.msk.f32.vlgmr.msra.gmra.mxu1 %vm304_vm10, %v294_v35 }
 0x1d4   :  { %v260_v39 = vpop.permute.xlu1 %259  ;;  %v258_v40 = vpop.permute.xlu0 %257  ;;  %7056 = vmatpush3.msra.mxu1 %v8116_v37 }
 0x1d5   :  { %7057 = vmatprep.subr.mxu1 %v8027_v14  ;;  %v291_v43 = vsel %vm287_vm8, %v228_v17, %v260_v39  ;;  %v290_v44 = vsel %vm287_vm8, %v236_v18, %v258_v40  ;;  %vm1512_vm8 = vcmask 1047559  }
 0x1d6   :  { %7058 = vmatpush3.msra.mxu1 %v8120_v38 }
 0x1d7   :  { %7059 = vmatprep.subr.mxu1 %v8027_v14 }
 0x1d8   :  { %v282_v45 = vpop.permute.xlu1 %281  ;;  %v280_v46 = vpop.permute.xlu0 %279  ;;  %7060 = vmatpush3.msra.mxu1 %v8124_v41 }
 0x1d9   :  { %v296_v47 = vsel %vm9434_vm9, %v291_v43, %v282_v45  ;;  %v295_v48 = vsel %vm9434_vm9, %v290_v44, %v280_v46  ;;  %7061 = vmatprep.subr.mxu1 %v8027_v14 }
 0x1da   :  { %7044 = vmatprep.mubr.msk.f32.mxu1 %vm304_vm10, %v295_v48  ;;  %7062 = vmatpush3.msra.mxu1 %v8128_v42 }
 0x1db   :  { %7045 = vmatmul.mubr.msk.f32.gmra.mxu1 %vm304_vm10, %v296_v47  ;;  %7077 = vmatprep.subr.mxu1 %v8027_v14  ;;  %vm937_vm10 = vcmask 257026  }
 0x1dc   :  { %7063 = vmatprep.mubr.msk.f32.mxu1 %vm8028_vm11, %v8027_v14 }
 0x1df   :  { %7064 = vmatmul.mubr.f32.vlgmr.msra.gmra.mxu1 %v8027_v14 }
 0x1e0   :  { %7078 = vmatpush3.msra.mxu1 %v8116_v37  ;;  %7085 = vmatprep.mubr.msk.f32.mxu1 %vm8028_vm11, %v8027_v14 }
 0x1e1   :  { %7079 = vmatprep.subr.mxu1 %v8027_v14 }
 0x1e2   :  { %7080 = vmatpush3.msra.mxu1 %v8120_v38 }
 0x1e3   :  { %7081 = vmatprep.subr.mxu1 %v8027_v14 }
 0x1e4   :  { %7082 = vmatpush3.msra.mxu1 %v8124_v41 }
 0x1e5   :  { %7083 = vmatprep.subr.mxu1 %v8027_v14 }
 0x1e6   :  { %7084 = vmatpush3.msra.mxu1 %v8128_v42 }
 0x1e7   :  { %7099 = vmatprep.subr.mxu1 %v8027_v14 }
 0x293   :  { %v7043_v50 = vpop.f32.mrf.mxu1 }
 0x294   :  { %v393_v54 = vadd.f32 %v7043_v50, %v6646_v51 }
 0x295   :  { %v387_v52 = vpop.f32.mrf.mxu1 }
 0x296   :  { %v388_v53 = vadd.f32 %v6646_v51, %v387_v52 }
 0x298   :  { %7049 = vmatprep.mubr.msk.f32.mxu0 %vm9434_vm9, %v388_v53 }
 0x299   :  { %7050 = vmatmul.mubr.msk.f32.vlgmr.msra.gmra.mxu0 %vm9434_vm9, %v393_v54 }
 0x29a   :  { %7067 = vmatpush3.msra.mxu0 %v8116_v37 }
 0x29b   :  { %v7046_v55 = vpop.f32.mrf.mxu1  ;;  %7068 = vmatprep.subr.mxu0 %v8027_v14 }
 0x29c   :  { %7069 = vmatpush3.msra.mxu0 %v8120_v38  ;;  %v403_v59 = vadd.f32 %v7046_v55, %v6646_v51 }
 0x29d   :  { %v397_v56 = vpop.f32.mrf.mxu1  ;;  %7070 = vmatprep.subr.mxu0 %v8027_v14 }
 0x29e   :  { %v398_v58 = vadd.f32 %v6646_v51, %v397_v56  ;;  %7071 = vmatpush3.msra.mxu0 %v8124_v41 }
 0x29f   :  { %v588_v60 = vpop.f32.mrf.mxu1  ;;  %7072 = vmatprep.subr.mxu0 %v8027_v14 }
 0x2a0   :  { %7052 = vmatprep.mubr.msk.f32.mxu0 %vm9434_vm9, %v398_v58  ;;  %v589_v61 = vadd.f32 %v8159_v57, %v588_v60  ;;  %7073 = vmatpush3.msra.mxu0 %v8128_v42 }
 0x2a1   :  { %7053 = vmatmul.mubr.msk.f32.gmra.mxu0 %vm9434_vm9, %v403_v59  ;;  %v7065_v62 = vpop.f32.mrf.mxu1  ;;  %7088 = vmatprep.subr.mxu0 %v8027_v14  ;;  %vm1517_vm9 = vcmask 261126  }
 0x2a2   :  { %610 = vrot.lane.b32.xlu1 %v589_v61, %s8029_s25  ;;  %v593_v63 = vrot.slane %v589_v61, 1  ;;  %7074 = vmatprep.mubr.msk.f32.mxu0 %vm8028_vm11, %v8027_v14 }
 0x2a4   :  { %612 = vrot.lane.b32.xlu0 %v593_v63, %s8029_s25 }
 0x314   :  { %v611_v18 = vpop.permute.xlu1 %610 }
 0x316   :  { %v613_v21 = vpop.permute.xlu0 %612 }
 0x359   :  { %v7051_v1 = vpop.f32.mrf.mxu0 }
 0x35a   :  { %v8173_v2 = vadd.f32 %v7051_v1, %v6652_v0 }
 0x35b   :  { %v495_v3 = vpop.f32.mrf.mxu0 }
 0x35c   :  { %v8175_v4 = vadd.f32 %v6652_v0, %v495_v3 }
 0x35e   :  { %v596_v5 = vadd.f32 %v589_v61, %v8175_v4 }
 0x360   :  { %v6658_v6 = vmul.f32 -1.442695, %v596_v5 }
 0x361   :  { %v7054_v7 = vpop.f32.mrf.mxu0 }
 0x362   :  { %v8178_v8 = vadd.f32 %v7054_v7, %v6652_v0  ;;  %7572 = vpow2.f32 %v6658_v6 }
 0x363   :  { %v505_v9 = vpop.f32.mrf.mxu0 }
 0x364   :  { %v8180_v10 = vadd.f32 %v6652_v0, %v505_v9 }
 0x366   :  { %v597_v11 = vadd.f32 %v593_v63, %v8180_v10 }
 0x368   :  { %v6659_v12 = vmul.f32 -1.442695, %v597_v11 }
 0x36a   :  { %7574 = vpow2.f32 %v6659_v12 }
 0x36f   :  { %v7573_v13 = vpop.eup %7572 }
 0x370   :  { %v604_v15 = vadd.f32 1.0, %v7573_v13 }
 0x372   :  { %7576 = vrcp.f32 %v604_v15 }
 0x377   :  { %v7575_v16 = vpop.eup %7574 }
 0x378   :  { %v605_v17 = vadd.f32 1.0, %v7575_v16 }
 0x37a   :  { %7578 = vrcp.f32 %v605_v17 }
 0x37f   :  { %v7577_v19 = vpop.eup %7576 }
 0x380   :  { %v616_v20 = vmul.f32 %v7577_v19, %v611_v18  ;;  %v630_v31 = vsub.f32 1.0, %v7577_v19  ;;  %v642_v39 = vmul.f32 0.0, %v7577_v19 }
 0x382   :  { %620 = vrot.lane.b32.xlu1 %v616_v20, %s8029_s25 }
 0x387   :  { %v7579_v22 = vpop.eup %7578 }
 0x388   :  { %v617_v23 = vmul.f32 %v7579_v22, %v613_v21  ;;  %v631_v32 = vsub.f32 1.0, %v7579_v22  ;;  %v643_v35 = vmul.f32 0.0, %v7579_v22 }
 0x38a   :  { %622 = vrot.lane.b32.xlu0 %v617_v23, %s8029_s25 }
 0x3f4   :  { %v621_v24 = vpop.permute.xlu1 %620 }
 0x3f5   :  { %v626_v25 = vadd.f32 %v621_v24, %v8175_v4 }
 0x3f7   :  { %7580 = vtanh.f32 %v626_v25 }
 0x3fc   :  { %v623_v26 = vpop.permute.xlu0 %622 }
 0x3fd   :  { %v627_v27 = vadd.f32 %v623_v26, %v8180_v10 }
 0x3ff   :  { %7582 = vtanh.f32 %v627_v27 }
 0x404   :  { %v7581_v28 = vpop.eup %7580 }
 0x405   :  { %634 = vrot.lane.b32.xlu1 %v7581_v28, %s8030_s26 }
 0x40c   :  { %v7583_v29 = vpop.eup %7582 }
 0x40d   :  { %636 = vrot.lane.b32.xlu0 %v7583_v29, %s8030_s26 }
 0x477   :  { %v635_v30 = vpop.permute.xlu1 %634 }
 0x478   :  { %v640_v34 = vmul.f32 %v635_v30, %v630_v31 }
 0x47a   :  { %v644_v43 = vadd.f32 %v642_v39, %v640_v34 }
 0x47c   :  { %v778_v13 = vrot.slane %v644_v43, 7 }
 0x47f   :  { %v637_v33 = vpop.permute.xlu0 %636 }
 0x480   :  { %v641_v36 = vmul.f32 %v637_v33, %v631_v32 }
 0x482   :  { %v8189_v40 = vadd.f32 %v643_v35, %v641_v36 }
 0x484   :  { %v648_v44 = vrot.slane %v8189_v40, 7 }
 0x486   :  { %v650_v45 = vsel %vm649_vm12, %v648_v44, %v644_v43 }
 0x487   :  { %651 = vrot.lane.b32.xlu0 %v650_v45, %s8030_s26 }
 0x4f9   :  { %v652_v46 = vpop.permute.xlu0 %651 }
 0x4fa   :  { %655 = vst.msk [vmem:[#allocation2] sm:$0x3] %vm9435_vm13, %v652_v46  ;;  %7075 = vmatmul.mubr.msk.f32.vlgmr.msra.gmra.mxu0 %vm518_vm14, %v652_v46 }
 0x4fb   :  { %7089 = vmatpush3.msra.mxu0 %v8116_v37  ;;  %7096 = vmatprep.mubr.msk.f32.mxu0 %vm8028_vm11, %v8027_v14 }
 0x4fc   :  { %7090 = vmatprep.subr.mxu0 %v8027_v14 }
 0x4fd   :  { %7091 = vmatpush3.msra.mxu0 %v8120_v38 }
 0x4fe   :  { %7092 = vmatprep.subr.mxu0 %v8027_v14 }
 0x4ff   :  { %7093 = vmatpush3.msra.mxu0 %v8124_v41 }
 0x500   :  { %7094 = vmatprep.subr.mxu0 %v8027_v14 }
 0x501   :  { %7095 = vmatpush3.msra.mxu0 %v8128_v42 }
 0x502   :  { %7110 = vmatprep.subr.mxu0 %v8027_v14 }
 0x5ba   :  { %v724_v47 = vpop.f32.mrf.mxu0 }
 0x5bb   :  { %v725_v48 = vadd.f32 %v8159_v57, %v724_v47 }
 0x5bc   :  { %v7076_v49 = vpop.f32.mrf.mxu0 }
 0x5bd   :  { %748 = vrot.lane.b32.xlu0 %v725_v48, %s8029_s25  ;;  %v729_v50 = vrot.slane %v725_v48, 7  ;;  %v733_v51 = vadd.f32 %v725_v48, %v8180_v10 }
 0x5bf   :  { %746 = vrot.lane.b32.xlu1 %v729_v50, %s8029_s25  ;;  %v732_v52 = vadd.f32 %v729_v50, %v8175_v4  ;;  %v6662_v53 = vmul.f32 -1.442695, %v733_v51 }
 0x5c1   :  { %v6661_v54 = vmul.f32 -1.442695, %v732_v52  ;;  %7584 = vpow2.f32 %v6662_v53 }
 0x5c3   :  { %7586 = vpow2.f32 %v6661_v54 }
 0x5ce   :  { %v7585_v55 = vpop.eup %7584 }
 0x5cf   :  { %v741_v58 = vadd.f32 1.0, %v7585_v55 }
 0x5d0   :  { %v7587_v56 = vpop.eup %7586 }
 0x5d1   :  { %v740_v59 = vadd.f32 1.0, %v7587_v56  ;;  %7588 = vrcp.f32 %v741_v58 }
 0x5d3   :  { %7590 = vrcp.f32 %v740_v59 }
 0x5de   :  { %v7589_v60 = vpop.eup %7588 }
 0x5df   :  { %v767_v15 = vsub.f32 1.0, %v7589_v60  ;;  %v782_v21 = vmul.f32 %v7589_v60, %v648_v44 }
 0x5e0   :  { %v7591_v63 = vpop.eup %7590 }
 0x5e1   :  { %v766_v16 = vsub.f32 1.0, %v7591_v63  ;;  %v781_v19 = vmul.f32 %v7591_v63, %v778_v13 }
 0x62f   :  { %v749_v61 = vpop.permute.xlu0 %748 }
 0x630   :  { %v753_v62 = vmul.f32 %v7589_v60, %v749_v61 }
 0x631   :  { %v747_v0 = vpop.permute.xlu1 %746 }
 0x632   :  { %v752_v1 = vmul.f32 %v7591_v63, %v747_v0  ;;  %758 = vrot.lane.b32.xlu0 %v753_v62, %s8029_s25 }
 0x634   :  { %756 = vrot.lane.b32.xlu1 %v752_v1, %s8029_s25 }
 0x6a4   :  { %v759_v3 = vpop.permute.xlu0 %758 }
 0x6a5   :  { %v763_v5 = vadd.f32 %v759_v3, %v8180_v10 }
 0x6a6   :  { %v757_v6 = vpop.permute.xlu1 %756 }
 0x6a7   :  { %7592 = vtanh.f32 %v763_v5  ;;  %v762_v7 = vadd.f32 %v757_v6, %v8175_v4 }
 0x6a9   :  { %7594 = vtanh.f32 %v762_v7 }
 0x6b4   :  { %v7593_v9 = vpop.eup %7592 }
 0x6b5   :  { %772 = vrot.lane.b32.xlu0 %v7593_v9, %s8030_s26 }
 0x6b6   :  { %v7595_v11 = vpop.eup %7594 }
 0x6b7   :  { %770 = vrot.lane.b32.xlu1 %v7595_v11, %s8030_s26 }
 0x727   :  { %v773_v12 = vpop.permute.xlu0 %772 }
 0x728   :  { %v777_v18 = vmul.f32 %v773_v12, %v767_v15 }
 0x729   :  { %v771_v17 = vpop.permute.xlu1 %770 }
 0x72a   :  { %v776_v20 = vmul.f32 %v771_v17, %v766_v16  ;;  %v8219_v23 = vadd.f32 %v782_v21, %v777_v18 }
 0x72c   :  { %v8217_v22 = vadd.f32 %v781_v19, %v776_v20  ;;  %v787_v56 = vrot.slane %v8219_v23, 7 }
 0x72e   :  { %v795_v24 = vrot.slane %v8217_v22, 1  ;;  %v922_v61 = vrot.slane %v8217_v22, 7 }
 0x730   :  { %v796_v25 = vsel %vm649_vm12, %v8219_v23, %v795_v24 }
 0x731   :  { %797 = vrot.lane.b32.xlu1 %v796_v25, %s8030_s26 }
 0x7a3   :  { %v798_v26 = vpop.permute.xlu1 %797 }
 0x7a4   :  { %7086 = vmatmul.mubr.msk.f32.vlgmr.msra.gmra.mxu1 %vm518_vm14, %v798_v26 }
 0x7a5   :  { %7100 = vmatpush3.msra.mxu1 %v8116_v37  ;;  %7107 = vmatprep.mubr.msk.f32.mxu1 %vm8028_vm11, %v8027_v14 }
 0x7a6   :  { %7101 = vmatprep.subr.mxu1 %v8027_v14 }
 0x7a7   :  { %7102 = vmatpush3.msra.mxu1 %v8120_v38 }
 0x7a8   :  { %7103 = vmatprep.subr.mxu1 %v8027_v14 }
 0x7a9   :  { %7104 = vmatpush3.msra.mxu1 %v8124_v41 }
 0x7aa   :  { %7105 = vmatprep.subr.mxu1 %v8027_v14 }
 0x7ab   :  { %7106 = vmatpush3.msra.mxu1 %v8128_v42 }
 0x7ac   :  { %7121 = vmatprep.subr.mxu1 %v8027_v14 }
 0x864   :  { %v867_v27 = vpop.f32.mrf.mxu1 }
 0x865   :  { %v868_v28 = vadd.f32 %v8159_v57, %v867_v27 }
 0x866   :  { %v7087_v29 = vpop.f32.mrf.mxu1 }
 0x867   :  { %v872_v30 = vrot.slane %v868_v28, 6  ;;  %v873_v31 = vrot.slane %v868_v28, 7 }
 0x869   :  { %892 = vrot.lane.b32.xlu1 %v873_v31, %s8029_s25  ;;  %890 = vrot.lane.b32.xlu0 %v872_v30, %s8029_s25  ;;  %v876_v32 = vadd.f32 %v872_v30, %v8175_v4  ;;  %v877_v33 = vadd.f32 %v873_v31, %v8180_v10 }
 0x86b   :  { %v6664_v34 = vmul.f32 -1.442695, %v876_v32  ;;  %v6665_v35 = vmul.f32 -1.442695, %v877_v33 }
 0x86d   :  { %7596 = vpow2.f32 %v6664_v34 }
 0x86e   :  { %7598 = vpow2.f32 %v6665_v35 }
 0x87a   :  { %v7597_v36 = vpop.eup %7596 }
 0x87b   :  { %v7599_v39 = vpop.eup %7598  ;;  %v884_v40 = vadd.f32 1.0, %v7597_v36 }
 0x87c   :  { %v885_v43 = vadd.f32 1.0, %v7599_v39 }
 0x87d   :  { %7600 = vrcp.f32 %v884_v40 }
 0x87e   :  { %7602 = vrcp.f32 %v885_v43 }
 0x88a   :  { %v7601_v44 = vpop.eup %7600 }
 0x88b   :  { %v7603_v45 = vpop.eup %7602  ;;  %v910_v60 = vsub.f32 1.0, %v7601_v44  ;;  %v925_v1 = vmul.f32 %v7601_v44, %v922_v61 }
 0x88c   :  { %v911_v58 = vsub.f32 1.0, %v7603_v45  ;;  %v926_v62 = vmul.f32 %v7603_v45, %v787_v56 }
 0x8db   :  { %v893_v46 = vpop.permute.xlu1 %892  ;;  %v891_v47 = vpop.permute.xlu0 %890 }
 0x8dc   :  { %v897_v48 = vmul.f32 %v7603_v45, %v893_v46  ;;  %v896_v49 = vmul.f32 %v7601_v44, %v891_v47 }
 0x8de   :  { %902 = vrot.lane.b32.xlu1 %v897_v48, %s8029_s25  ;;  %900 = vrot.lane.b32.xlu0 %v896_v49, %s8029_s25 }
 0x950   :  { %v903_v50 = vpop.permute.xlu1 %902  ;;  %v901_v51 = vpop.permute.xlu0 %900 }
 0x951   :  { %v907_v52 = vadd.f32 %v903_v50, %v8180_v10  ;;  %v906_v53 = vadd.f32 %v901_v51, %v8175_v4 }
 0x953   :  { %7604 = vtanh.f32 %v907_v52 }
 0x954   :  { %7606 = vtanh.f32 %v906_v53 }
 0x960   :  { %v7605_v54 = vpop.eup %7604 }
 0x961   :  { %v7607_v55 = vpop.eup %7606  ;;  %916 = vrot.lane.b32.xlu1 %v7605_v54, %s8030_s26 }
 0x962   :  { %914 = vrot.lane.b32.xlu0 %v7607_v55, %s8030_s26 }
 0x9d3   :  { %v917_v59 = vpop.permute.xlu1 %916 }
 0x9d4   :  { %v921_v63 = vmul.f32 %v917_v59, %v911_v58  ;;  %v915_v0 = vpop.permute.xlu0 %914 }
 0x9d5   :  { %v920_v3 = vmul.f32 %v915_v0, %v910_v60 }
 0x9d6   :  { %v8251_v5 = vadd.f32 %v926_v62, %v921_v63 }
 0x9d7   :  { %v8253_v6 = vadd.f32 %v925_v1, %v920_v3 }
 0x9d8   :  { %v940_v7 = vrot.slane %v8251_v5, 1  ;;  %v931_v45 = vrot.slane %v8251_v5, 7 }
 0x9d9   :  { %v939_v9 = vrot.slane %v8253_v6, 2  ;;  %v1067_v49 = vrot.slane %v8253_v6, 7 }
 0x9db   :  { %v941_v11 = vsel %vm649_vm12, %v940_v7, %v939_v9 }
 0x9dc   :  { %942 = vrot.lane.b32.xlu0 %v941_v11, %s8030_s26 }
 0xa4e   :  { %v943_v12 = vpop.permute.xlu0 %942 }
 0xa4f   :  { %7097 = vmatmul.mubr.msk.f32.vlgmr.msra.gmra.mxu0 %vm518_vm14, %v943_v12 }
 0xa50   :  { %7111 = vmatpush3.msra.mxu0 %v8116_v37  ;;  %7118 = vmatprep.mubr.msk.f32.mxu0 %vm8028_vm11, %v8027_v14 }
 0xa51   :  { %7112 = vmatprep.subr.mxu0 %v8027_v14 }
 0xa52   :  { %7113 = vmatpush3.msra.mxu0 %v8120_v38 }
 0xa53   :  { %7114 = vmatprep.subr.mxu0 %v8027_v14 }
 0xa54   :  { %7115 = vmatpush3.msra.mxu0 %v8124_v41 }
 0xa55   :  { %7116 = vmatprep.subr.mxu0 %v8027_v14 }
 0xa56   :  { %7117 = vmatpush3.msra.mxu0 %v8128_v42 }
 0xa57   :  { %7132 = vmatprep.subr.mxu0 %v8027_v14 }
 0xb0f   :  { %v1012_v13 = vpop.f32.mrf.mxu0 }
 0xb10   :  { %v1013_v15 = vadd.f32 %v8159_v57, %v1012_v13 }
 0xb11   :  { %v7098_v16 = vpop.f32.mrf.mxu0 }
 0xb12   :  { %v1017_v17 = vrot.slane %v1013_v15, 5  ;;  %v1018_v18 = vrot.slane %v1013_v15, 6 }
 0xb14   :  { %1037 = vrot.lane.b32.xlu0 %v1018_v18, %s8029_s25  ;;  %1035 = vrot.lane.b32.xlu1 %v1017_v17, %s8029_s25  ;;  %v1021_v19 = vadd.f32 %v1017_v17, %v8175_v4  ;;  %v1022_v20 = vadd.f32 %v1018_v18, %v8180_v10 }
 0xb16   :  { %v6667_v21 = vmul.f32 -1.442695, %v1021_v19  ;;  %v6668_v24 = vmul.f32 -1.442695, %v1022_v20 }
 0xb18   :  { %7608 = vpow2.f32 %v6667_v21 }
 0xb19   :  { %7610 = vpow2.f32 %v6668_v24 }
 0xb25   :  { %v7609_v25 = vpop.eup %7608 }
 0xb26   :  { %v7611_v26 = vpop.eup %7610  ;;  %v1029_v27 = vadd.f32 1.0, %v7609_v25 }
 0xb27   :  { %v1030_v28 = vadd.f32 1.0, %v7611_v26 }
 0xb28   :  { %7612 = vrcp.f32 %v1029_v27 }
 0xb29   :  { %7614 = vrcp.f32 %v1030_v28 }
 0xb35   :  { %v7613_v29 = vpop.eup %7612 }
 0xb36   :  { %v7615_v30 = vpop.eup %7614  ;;  %v1055_v48 = vsub.f32 1.0, %v7613_v29  ;;  %v1070_v53 = vmul.f32 %v7613_v29, %v1067_v49 }
 0xb37   :  { %v1056_v46 = vsub.f32 1.0, %v7615_v30  ;;  %v1071_v50 = vmul.f32 %v7615_v30, %v931_v45 }
 0xb86   :  { %v1038_v31 = vpop.permute.xlu0 %1037  ;;  %v1036_v32 = vpop.permute.xlu1 %1035 }
 0xb87   :  { %v1042_v33 = vmul.f32 %v7615_v30, %v1038_v31  ;;  %v1041_v34 = vmul.f32 %v7613_v29, %v1036_v32 }
 0xb89   :  { %1047 = vrot.lane.b32.xlu0 %v1042_v33, %s8029_s25  ;;  %1045 = vrot.lane.b32.xlu1 %v1041_v34, %s8029_s25 }
 0xbfb   :  { %v1048_v35 = vpop.permute.xlu0 %1047  ;;  %v1046_v36 = vpop.permute.xlu1 %1045 }
 0xbfc   :  { %v1052_v39 = vadd.f32 %v1048_v35, %v8180_v10  ;;  %v1051_v40 = vadd.f32 %v1046_v36, %v8175_v4 }
 0xbfe   :  { %7616 = vtanh.f32 %v1052_v39 }
 0xbff   :  { %7618 = vtanh.f32 %v1051_v40 }
 0xc0b   :  { %v7617_v43 = vpop.eup %7616 }
 0xc0c   :  { %v7619_v44 = vpop.eup %7618  ;;  %1061 = vrot.lane.b32.xlu0 %v7617_v43, %s8030_s26 }
 0xc0d   :  { %1059 = vrot.lane.b32.xlu1 %v7619_v44, %s8030_s26 }
 0xc7e   :  { %v1062_v47 = vpop.permute.xlu0 %1061 }
 0xc7f   :  { %v1066_v51 = vmul.f32 %v1062_v47, %v1056_v46  ;;  %v1060_v52 = vpop.permute.xlu1 %1059 }
 0xc80   :  { %v1065_v54 = vmul.f32 %v1060_v52, %v1055_v48 }
 0xc81   :  { %v8285_v55 = vadd.f32 %v1071_v50, %v1066_v51 }
 0xc82   :  { %v8287_v58 = vadd.f32 %v1070_v53, %v1065_v54 }
 0xc83   :  { %v1085_v59 = vrot.slane %v8285_v55, 2  ;;  %v1076_v33 = vrot.slane %v8285_v55, 7 }
 0xc84   :  { %v1084_v60 = vrot.slane %v8287_v58, 3  ;;  %v1212_v39 = vrot.slane %v8287_v58, 7 }
 0xc86   :  { %v1086_v61 = vsel %vm649_vm12, %v1085_v59, %v1084_v60 }
 0xc87   :  { %1087 = vrot.lane.b32.xlu1 %v1086_v61, %s8030_s26 }
 0xcf9   :  { %v1088_v62 = vpop.permute.xlu1 %1087 }
 0xcfa   :  { %7108 = vmatmul.mubr.msk.f32.vlgmr.msra.gmra.mxu1 %vm518_vm14, %v1088_v62 }
 0xcfb   :  { %7122 = vmatpush3.msra.mxu1 %v8116_v37  ;;  %7129 = vmatprep.mubr.msk.f32.mxu1 %vm8028_vm11, %v8027_v14 }
 0xcfc   :  { %7123 = vmatprep.subr.mxu1 %v8027_v14 }
 0xcfd   :  { %7124 = vmatpush3.msra.mxu1 %v8120_v38 }
 0xcfe   :  { %7125 = vmatprep.subr.mxu1 %v8027_v14 }
 0xcff   :  { %7126 = vmatpush3.msra.mxu1 %v8124_v41 }
 0xd00   :  { %7127 = vmatprep.subr.mxu1 %v8027_v14 }
 0xd01   :  { %7128 = vmatpush3.msra.mxu1 %v8128_v42 }
 0xd02   :  { %7143 = vmatprep.subr.mxu1 %v8027_v14 }
 0xdba   :  { %v1157_v63 = vpop.f32.mrf.mxu1 }
 0xdbb   :  { %v1158_v0 = vadd.f32 %v8159_v57, %v1157_v63 }
 0xdbc   :  { %v7109_v1 = vpop.f32.mrf.mxu1 }
 0xdbd   :  { %v1162_v3 = vrot.slane %v1158_v0, 4  ;;  %v1163_v7 = vrot.slane %v1158_v0, 5 }
 0xdbf   :  { %1182 = vrot.lane.b32.xlu1 %v1163_v7, %s8029_s25  ;;  %1180 = vrot.lane.b32.xlu0 %v1162_v3, %s8029_s25  ;;  %v1166_v9 = vadd.f32 %v1162_v3, %v8175_v4  ;;  %v1167_v11 = vadd.f32 %v1163_v7, %v8180_v10 }
 0xdc1   :  { %v6670_v12 = vmul.f32 -1.442695, %v1166_v9  ;;  %v6671_v13 = vmul.f32 -1.442695, %v1167_v11 }
 0xdc3   :  { %7620 = vpow2.f32 %v6670_v12 }
 0xdc4   :  { %7622 = vpow2.f32 %v6671_v13 }
 0xdd0   :  { %v7621_v15 = vpop.eup %7620 }
 0xdd1   :  { %v7623_v16 = vpop.eup %7622  ;;  %v1174_v17 = vadd.f32 1.0, %v7621_v15 }
 0xdd2   :  { %v1175_v18 = vadd.f32 1.0, %v7623_v16 }
 0xdd3   :  { %7624 = vrcp.f32 %v1174_v17 }
 0xdd4   :  { %7626 = vrcp.f32 %v1175_v18 }
 0xde0   :  { %v7625_v19 = vpop.eup %7624 }
 0xde1   :  { %v7627_v20 = vpop.eup %7626  ;;  %v1200_v36 = vsub.f32 1.0, %v7625_v19  ;;  %v1215_v46 = vmul.f32 %v7625_v19, %v1212_v39 }
 0xde2   :  { %v1201_v34 = vsub.f32 1.0, %v7627_v20  ;;  %v1216_v40 = vmul.f32 %v7627_v20, %v1076_v33 }
 0xe31   :  { %v1183_v21 = vpop.permute.xlu1 %1182  ;;  %v1181_v24 = vpop.permute.xlu0 %1180 }
 0xe32   :  { %v1187_v25 = vmul.f32 %v7627_v20, %v1183_v21  ;;  %v1186_v26 = vmul.f32 %v7625_v19, %v1181_v24 }
 0xe34   :  { %1192 = vrot.lane.b32.xlu1 %v1187_v25, %s8029_s25  ;;  %1190 = vrot.lane.b32.xlu0 %v1186_v26, %s8029_s25 }
 0xea6   :  { %v1193_v27 = vpop.permute.xlu1 %1192  ;;  %v1191_v28 = vpop.permute.xlu0 %1190 }
 0xea7   :  { %v1197_v29 = vadd.f32 %v1193_v27, %v8180_v10  ;;  %v1196_v30 = vadd.f32 %v1191_v28, %v8175_v4 }
 0xea9   :  { %7628 = vtanh.f32 %v1197_v29 }
 0xeaa   :  { %7630 = vtanh.f32 %v1196_v30 }
 0xeb6   :  { %v7629_v31 = vpop.eup %7628 }
 0xeb7   :  { %v7631_v32 = vpop.eup %7630  ;;  %1206 = vrot.lane.b32.xlu1 %v7629_v31, %s8030_s26 }
 0xeb8   :  { %1204 = vrot.lane.b32.xlu0 %v7631_v32, %s8030_s26 }
 0xf29   :  { %v1207_v35 = vpop.permute.xlu1 %1206 }
 0xf2a   :  { %v1211_v43 = vmul.f32 %v1207_v35, %v1201_v34  ;;  %v1205_v44 = vpop.permute.xlu0 %1204 }
 0xf2b   :  { %v1210_v47 = vmul.f32 %v1205_v44, %v1200_v36 }
 0xf2c   :  { %v8319_v48 = vadd.f32 %v1216_v40, %v1211_v43 }
 0xf2d   :  { %v8321_v49 = vadd.f32 %v1215_v46, %v1210_v47 }
 0xf2e   :  { %v1230_v50 = vrot.slane %v8319_v48, 3  ;;  %v1221_v28 = vrot.slane %v8319_v48, 7  ;;  %v8700_v48 = vld [vmem:[#allocation4 + $0x98] sm:$0xff] }
 0xf2f   :  { %v1229_v51 = vrot.slane %v8321_v49, 4  ;;  %v1357_v32 = vrot.slane %v8321_v49, 7 }
 0xf30   :  { %v1223_v5 = vsel %vm1222_vm6, %v1221_v28, %v8321_v49 }
 0xf31   :  { %v1231_v52 = vsel %vm649_vm12, %v1230_v50, %v1229_v51 }
 0xf32   :  { %1232 = vrot.lane.b32.xlu0 %v1231_v52, %s8030_s26 }
 0xfa4   :  { %v1233_v53 = vpop.permute.xlu0 %1232 }
 0xfa5   :  { %7119 = vmatmul.mubr.msk.f32.vlgmr.msra.gmra.mxu0 %vm518_vm14, %v1233_v53 }
 0xfa6   :  { %7133 = vmatpush3.msra.mxu0 %v8116_v37  ;;  %7140 = vmatprep.mubr.msk.f32.mxu0 %vm8028_vm11, %v8027_v14 }
 0xfa7   :  { %7134 = vmatprep.subr.mxu0 %v8027_v14 }
 0xfa8   :  { %7135 = vmatpush3.msra.mxu0 %v8120_v38 }
 0xfa9   :  { %7136 = vmatprep.subr.mxu0 %v8027_v14 }
 0xfaa   :  { %7137 = vmatpush3.msra.mxu0 %v8124_v41 }
 0xfab   :  { %7138 = vmatprep.subr.mxu0 %v8027_v14 }
 0xfac   :  { %7139 = vmatpush3.msra.mxu0 %v8128_v42 }
 0xfad   :  { %7154 = vmatprep.subr.mxu0 %v8027_v14 }
0x1065   :  { %v1302_v54 = vpop.f32.mrf.mxu0 }
0x1066   :  { %v1303_v59 = vadd.f32 %v8159_v57, %v1302_v54 }
0x1067   :  { %v7120_v60 = vpop.f32.mrf.mxu0 }
0x1068   :  { %v1307_v61 = vrot.slane %v1303_v59, 3  ;;  %v1308_v62 = vrot.slane %v1303_v59, 4 }
0x106a   :  { %1327 = vrot.lane.b32.xlu0 %v1308_v62, %s8029_s25  ;;  %1325 = vrot.lane.b32.xlu1 %v1307_v61, %s8029_s25  ;;  %v1311_v63 = vadd.f32 %v1307_v61, %v8175_v4  ;;  %v1312_v0 = vadd.f32 %v1308_v62, %v8180_v10 }
0x106c   :  { %v6673_v1 = vmul.f32 -1.442695, %v1311_v63  ;;  %v6674_v3 = vmul.f32 -1.442695, %v1312_v0 }
0x106e   :  { %7632 = vpow2.f32 %v6673_v1 }
0x106f   :  { %7634 = vpow2.f32 %v6674_v3 }
0x107b   :  { %v7633_v7 = vpop.eup %7632 }
0x107c   :  { %v7635_v9 = vpop.eup %7634  ;;  %v1319_v11 = vadd.f32 1.0, %v7633_v7 }
0x107d   :  { %v1320_v12 = vadd.f32 1.0, %v7635_v9 }
0x107e   :  { %7636 = vrcp.f32 %v1319_v11 }
0x107f   :  { %7638 = vrcp.f32 %v1320_v12 }
0x108b   :  { %v7637_v13 = vpop.eup %7636 }
0x108c   :  { %v7639_v15 = vpop.eup %7638  ;;  %v1345_v31 = vsub.f32 1.0, %v7637_v13  ;;  %v1360_v39 = vmul.f32 %v7637_v13, %v1357_v32 }
0x108d   :  { %v1346_v29 = vsub.f32 1.0, %v7639_v15  ;;  %v1361_v34 = vmul.f32 %v7639_v15, %v1221_v28  ;;  %v8703_v28 = vld [vmem:[#allocation4 + $0x90] sm:$0xff] }
0x10dc   :  { %v1328_v16 = vpop.permute.xlu0 %1327  ;;  %v1326_v17 = vpop.permute.xlu1 %1325 }
0x10dd   :  { %v1332_v18 = vmul.f32 %v7639_v15, %v1328_v16  ;;  %v1331_v19 = vmul.f32 %v7637_v13, %v1326_v17 }
0x10df   :  { %1337 = vrot.lane.b32.xlu0 %v1332_v18, %s8029_s25  ;;  %1335 = vrot.lane.b32.xlu1 %v1331_v19, %s8029_s25 }
0x1151   :  { %v1338_v20 = vpop.permute.xlu0 %1337  ;;  %v1336_v21 = vpop.permute.xlu1 %1335 }
0x1152   :  { %v1342_v24 = vadd.f32 %v1338_v20, %v8180_v10  ;;  %v1341_v25 = vadd.f32 %v1336_v21, %v8175_v4 }
0x1154   :  { %7640 = vtanh.f32 %v1342_v24 }
0x1155   :  { %7642 = vtanh.f32 %v1341_v25 }
0x1161   :  { %v7641_v26 = vpop.eup %7640 }
0x1162   :  { %v7643_v27 = vpop.eup %7642  ;;  %1351 = vrot.lane.b32.xlu0 %v7641_v26, %s8030_s26 }
0x1163   :  { %1349 = vrot.lane.b32.xlu1 %v7643_v27, %s8030_s26 }
0x11d4   :  { %v1352_v30 = vpop.permute.xlu0 %1351 }
0x11d5   :  { %v1356_v35 = vmul.f32 %v1352_v30, %v1346_v29  ;;  %v1350_v36 = vpop.permute.xlu1 %1349 }
0x11d6   :  { %v1355_v40 = vmul.f32 %v1350_v36, %v1345_v31 }
0x11d7   :  { %v8353_v43 = vadd.f32 %v1361_v34, %v1356_v35 }
0x11d8   :  { %v8355_v44 = vadd.f32 %v1360_v39, %v1355_v40 }
0x11d9   :  { %v1375_v46 = vrot.slane %v8353_v43, 4  ;;  %v1366_v26 = vrot.slane %v8353_v43, 7 }
0x11da   :  { %v1374_v47 = vrot.slane %v8355_v44, 5  ;;  %v1502_v31 = vrot.slane %v8355_v44, 7 }
0x11dc   :  { %v1376_v50 = vsel %vm649_vm12, %v1375_v46, %v1374_v47 }
0x11dd   :  { %1377 = vrot.lane.b32.xlu1 %v1376_v50, %s8030_s26 }
0x124f   :  { %v1378_v51 = vpop.permute.xlu1 %1377 }
0x1250   :  { %7130 = vmatmul.mubr.msk.f32.vlgmr.msra.gmra.mxu1 %vm518_vm14, %v1378_v51 }
0x1251   :  { %7144 = vmatpush3.msra.mxu1 %v8116_v37  ;;  %7151 = vmatprep.mubr.msk.f32.mxu1 %vm8028_vm11, %v8027_v14 }
0x1252   :  { %7145 = vmatprep.subr.mxu1 %v8027_v14 }
0x1253   :  { %7146 = vmatpush3.msra.mxu1 %v8120_v38 }
0x1254   :  { %7147 = vmatprep.subr.mxu1 %v8027_v14 }
0x1255   :  { %7148 = vmatpush3.msra.mxu1 %v8124_v41 }
0x1256   :  { %7149 = vmatprep.subr.mxu1 %v8027_v14 }
0x1257   :  { %7150 = vmatpush3.msra.mxu1 %v8128_v42 }
0x1258   :  { %7165 = vmatprep.subr.mxu1 %v8027_v14 }
0x1310   :  { %v1447_v52 = vpop.f32.mrf.mxu1 }
0x1311   :  { %v1448_v53 = vadd.f32 %v8159_v57, %v1447_v52 }
0x1312   :  { %v7131_v54 = vpop.f32.mrf.mxu1 }
0x1313   :  { %v1452_v59 = vrot.slane %v1448_v53, 2  ;;  %v1453_v60 = vrot.slane %v1448_v53, 3 }
0x1315   :  { %1472 = vrot.lane.b32.xlu1 %v1453_v60, %s8029_s25  ;;  %1470 = vrot.lane.b32.xlu0 %v1452_v59, %s8029_s25  ;;  %v1456_v61 = vadd.f32 %v1452_v59, %v8175_v4  ;;  %v1457_v62 = vadd.f32 %v1453_v60, %v8180_v10 }
0x1317   :  { %v6676_v63 = vmul.f32 -1.442695, %v1456_v61  ;;  %v6677_v0 = vmul.f32 -1.442695, %v1457_v62 }
0x1319   :  { %7644 = vpow2.f32 %v6676_v63 }
0x131a   :  { %7646 = vpow2.f32 %v6677_v0 }
0x1326   :  { %v7645_v1 = vpop.eup %7644 }
0x1327   :  { %v7647_v3 = vpop.eup %7646  ;;  %v1464_v7 = vadd.f32 1.0, %v7645_v1 }
0x1328   :  { %v1465_v9 = vadd.f32 1.0, %v7647_v3 }
0x1329   :  { %7648 = vrcp.f32 %v1464_v7 }
0x132a   :  { %7650 = vrcp.f32 %v1465_v9 }
0x1336   :  { %v7649_v11 = vpop.eup %7648 }
0x1337   :  { %v7651_v12 = vpop.eup %7650  ;;  %v1490_v30 = vsub.f32 1.0, %v7649_v11  ;;  %v1505_v36 = vmul.f32 %v7649_v11, %v1502_v31 }
0x1338   :  { %v1491_v27 = vsub.f32 1.0, %v7651_v12  ;;  %v1506_v32 = vmul.f32 %v7651_v12, %v1366_v26 }
0x1387   :  { %v1473_v13 = vpop.permute.xlu1 %1472  ;;  %v1471_v15 = vpop.permute.xlu0 %1470 }
0x1388   :  { %v1477_v16 = vmul.f32 %v7651_v12, %v1473_v13  ;;  %v1476_v17 = vmul.f32 %v7649_v11, %v1471_v15 }
0x138a   :  { %1482 = vrot.lane.b32.xlu1 %v1477_v16, %s8029_s25  ;;  %1480 = vrot.lane.b32.xlu0 %v1476_v17, %s8029_s25 }
0x13fc   :  { %v1483_v18 = vpop.permute.xlu1 %1482  ;;  %v1481_v19 = vpop.permute.xlu0 %1480 }
0x13fd   :  { %v1487_v20 = vadd.f32 %v1483_v18, %v8180_v10  ;;  %v1486_v21 = vadd.f32 %v1481_v19, %v8175_v4 }
0x13ff   :  { %7652 = vtanh.f32 %v1487_v20 }
0x1400   :  { %7654 = vtanh.f32 %v1486_v21 }
0x140c   :  { %v7653_v24 = vpop.eup %7652 }
0x140d   :  { %v7655_v25 = vpop.eup %7654  ;;  %1496 = vrot.lane.b32.xlu1 %v7653_v24, %s8030_s26 }
0x140e   :  { %1494 = vrot.lane.b32.xlu0 %v7655_v25, %s8030_s26 }
0x147f   :  { %v1497_v29 = vpop.permute.xlu1 %1496 }
0x1480   :  { %v1501_v34 = vmul.f32 %v1497_v29, %v1491_v27  ;;  %v1495_v35 = vpop.permute.xlu0 %1494 }
0x1481   :  { %v1500_v39 = vmul.f32 %v1495_v35, %v1490_v30 }
0x1482   :  { %v8387_v40 = vadd.f32 %v1506_v32, %v1501_v34 }
0x1483   :  { %v8389_v46 = vadd.f32 %v1505_v36, %v1500_v39 }
0x1484   :  { %v1520_v47 = vrot.slane %v8387_v40, 5  ;;  %v1511_v20 = vrot.slane %v8387_v40, 7  ;;  %v8709_v40 = vld [vmem:[#allocation4 + $0x88] sm:$0xff] }
0x1485   :  { %v1519_v50 = vrot.slane %v8389_v46, 6  ;;  %v1647_v27 = vrot.slane %v8389_v46, 7 }
0x1487   :  { %v1521_v51 = vsel %vm649_vm12, %v1520_v47, %v1519_v50  ;;  %v8432_v50 = vld [vmem:[#allocation4 + $0x48] sm:$0xff] }
0x1488   :  { %1522 = vrot.lane.b32.xlu0 %v1521_v51, %s8030_s26  ;;  %v8438_v51 = vld [vmem:[#allocation4 + $0x40] sm:$0xff] }
0x14fa   :  { %v1523_v52 = vpop.permute.xlu0 %1522 }
0x14fb   :  { %7141 = vmatmul.mubr.msk.f32.vlgmr.msra.gmra.mxu0 %vm518_vm14, %v1523_v52  ;;  %v8442_v52 = vld [vmem:[#allocation4 + $0x38] sm:$0xff] }
0x14fc   :  { %7155 = vmatpush3.msra.mxu0 %v8116_v37  ;;  %7162 = vmatprep.mubr.msk.f32.mxu0 %vm8028_vm11, %v8027_v14 }
0x14fd   :  { %7156 = vmatprep.subr.mxu0 %v8027_v14 }
0x14fe   :  { %7157 = vmatpush3.msra.mxu0 %v8120_v38 }
0x14ff   :  { %7158 = vmatprep.subr.mxu0 %v8027_v14 }
0x1500   :  { %7159 = vmatpush3.msra.mxu0 %v8124_v41 }
0x1501   :  { %7160 = vmatprep.subr.mxu0 %v8027_v14 }
0x1502   :  { %7161 = vmatpush3.msra.mxu0 %v8128_v42 }
0x1503   :  { %7176 = vmatprep.subr.mxu0 %v8027_v14 }
0x15bb   :  { %v1592_v53 = vpop.f32.mrf.mxu0 }
0x15bc   :  { %v1593_v37 = vadd.f32 %v8159_v57, %v1592_v53  ;;  %v8446_v53 = vld [vmem:[#allocation4 + $0x30] sm:$0xff] }
0x15bd   :  { %v7142_v54 = vpop.f32.mrf.mxu0 }
0x15be   :  { %v1597_v59 = vrot.slane %v1593_v37, 1  ;;  %v1598_v60 = vrot.slane %v1593_v37, 2  ;;  %v8450_v54 = vld [vmem:[#allocation4 + $0x58] ss:$0 sm:$0xff] }
0x15c0   :  { %1617 = vrot.lane.b32.xlu0 %v1598_v60, %s8029_s25  ;;  %1615 = vrot.lane.b32.xlu1 %v1597_v59, %s8029_s25  ;;  %v1601_v38 = vadd.f32 %v1597_v59, %v8175_v4  ;;  %v1602_v41 = vadd.f32 %v1598_v60, %v8180_v10 }
0x15c2   :  { %v6679_v61 = vmul.f32 -1.442695, %v1601_v38  ;;  %v6680_v62 = vmul.f32 -1.442695, %v1602_v41 }
0x15c4   :  { %7656 = vpow2.f32 %v6679_v61 }
0x15c5   :  { %7658 = vpow2.f32 %v6680_v62 }
0x15d1   :  { %v7657_v42 = vpop.eup %7656 }
0x15d2   :  { %v7659_v63 = vpop.eup %7658  ;;  %v1609_v0 = vadd.f32 1.0, %v7657_v42 }
0x15d3   :  { %v1610_v1 = vadd.f32 1.0, %v7659_v63 }
0x15d4   :  { %7660 = vrcp.f32 %v1609_v0 }
0x15d5   :  { %7662 = vrcp.f32 %v1610_v1 }
0x15e1   :  { %v7661_v57 = vpop.eup %7660 }
0x15e2   :  { %v7663_v3 = vpop.eup %7662  ;;  %v1635_v25 = vsub.f32 1.0, %v7661_v57  ;;  %v1650_v30 = vmul.f32 %v7661_v57, %v1647_v27 }
0x15e3   :  { %v1636_v21 = vsub.f32 1.0, %v7663_v3 }
0x1632   :  { %v1618_v7 = vpop.permute.xlu0 %1617  ;;  %v1616_v9 = vpop.permute.xlu1 %1615 }
0x1633   :  { %v1622_v11 = vmul.f32 %v7663_v3, %v1618_v7  ;;  %v1621_v12 = vmul.f32 %v7661_v57, %v1616_v9 }
0x1635   :  { %1627 = vrot.lane.b32.xlu0 %v1622_v11, %s8029_s25  ;;  %1625 = vrot.lane.b32.xlu1 %v1621_v12, %s8029_s25 }
0x16a7   :  { %v1628_v13 = vpop.permute.xlu0 %1627  ;;  %v1626_v15 = vpop.permute.xlu1 %1625 }
0x16a8   :  { %v1632_v16 = vadd.f32 %v1628_v13, %v8180_v10  ;;  %v1631_v17 = vadd.f32 %v1626_v15, %v8175_v4  ;;  %v1651_v10 = vmul.f32 %v7663_v3, %v1511_v20 }
0x16aa   :  { %7664 = vtanh.f32 %v1632_v16 }
0x16ab   :  { %7666 = vtanh.f32 %v1631_v17 }
0x16b7   :  { %v7665_v18 = vpop.eup %7664 }
0x16b8   :  { %v7667_v19 = vpop.eup %7666  ;;  %1641 = vrot.lane.b32.xlu0 %v7665_v18, %s8030_s26 }
0x16b9   :  { %1639 = vrot.lane.b32.xlu1 %v7667_v19, %s8030_s26 }
0x172a   :  { %v1642_v24 = vpop.permute.xlu0 %1641 }
0x172b   :  { %v1646_v29 = vmul.f32 %v1642_v24, %v1636_v21  ;;  %v1640_v4 = vpop.permute.xlu1 %1639 }
0x172c   :  { %v1645_v31 = vmul.f32 %v1640_v4, %v1635_v25 }
0x172d   :  { %v8421_v32 = vadd.f32 %v1651_v10, %v1646_v29 }
0x172e   :  { %v8423_v34 = vadd.f32 %v1650_v30, %v1645_v31 }
0x172f   :  { %v1668_v35 = vrot.slane %v8421_v32, 6  ;;  %v1656_v25 = vrot.slane %v8421_v32, 7 }
0x1730   :  { %v1667_v36 = vrot.slane %v8423_v34, 7 }
0x1732   :  { %v1669_v39 = vsel %vm649_vm12, %v1668_v35, %v1667_v36 }
0x1733   :  { %1670 = vrot.lane.b32.xlu1 %v1669_v39, %s8030_s26 }
0x17a5   :  { %v1671_v47 = vpop.permute.xlu1 %1670 }
0x17a6   :  { %7152 = vmatmul.mubr.msk.f32.vlgmr.msra.gmra.mxu1 %vm518_vm14, %v1671_v47 }
0x17a7   :  { %7166 = vmatpush3.msra.mxu1 %v8432_v50  ;;  %7173 = vmatprep.mubr.msk.f32.mxu1 %vm8028_vm11, %v8027_v14 }
0x17a8   :  { %7167 = vmatprep.subr.mxu1 %v8027_v14 }
0x17a9   :  { %7168 = vmatpush3.msra.mxu1 %v8438_v51 }
0x17aa   :  { %7169 = vmatprep.subr.mxu1 %v8027_v14 }
0x17ab   :  { %7170 = vmatpush3.msra.mxu1 %v8442_v52 }
0x17ac   :  { %7171 = vmatprep.subr.mxu1 %v8027_v14 }
0x17ad   :  { %7172 = vmatpush3.msra.mxu1 %v8446_v53 }
0x17ae   :  { %7187 = vmatprep.subr.mxu1 %v8027_v14 }
0x1866   :  { %v1740_v37 = vpop.f32.mrf.mxu1 }
0x1867   :  { %v1741_v59 = vadd.f32 %v8450_v54, %v1740_v37 }
0x1868   :  { %v7153_v60 = vpop.f32.mrf.mxu1 }
0x1869   :  { %1762 = vrot.lane.b32.xlu1 %v1741_v59, %s8029_s25  ;;  %v1745_v38 = vrot.slane %v1741_v59, 1  ;;  %v1748_v41 = vadd.f32 %v1741_v59, %v8173_v2 }
0x186b   :  { %1764 = vrot.lane.b32.xlu0 %v1745_v38, %s8029_s25  ;;  %v1749_v61 = vadd.f32 %v1745_v38, %v8178_v8  ;;  %v6682_v62 = vmul.f32 -1.442695, %v1748_v41 }
0x186d   :  { %v6683_v42 = vmul.f32 -1.442695, %v1749_v61  ;;  %7668 = vpow2.f32 %v6682_v62 }
0x186f   :  { %7670 = vpow2.f32 %v6683_v42 }
0x187a   :  { %v7669_v63 = vpop.eup %7668 }
0x187b   :  { %v1756_v1 = vadd.f32 1.0, %v7669_v63 }
0x187c   :  { %v7671_v0 = vpop.eup %7670 }
0x187d   :  { %v1757_v57 = vadd.f32 1.0, %v7671_v0  ;;  %7672 = vrcp.f32 %v1756_v1 }
0x187f   :  { %7674 = vrcp.f32 %v1757_v57 }
0x188a   :  { %v7673_v3 = vpop.eup %7672 }
0x188b   :  { %v1782_v27 = vsub.f32 1.0, %v7673_v3  ;;  %v1796_v35 = vmul.f32 %v7673_v3, %v1667_v36 }
0x188c   :  { %v7675_v11 = vpop.eup %7674 }
0x188d   :  { %v1783_v10 = vsub.f32 1.0, %v7675_v11  ;;  %v1797_v30 = vmul.f32 %v7675_v11, %v1656_v25 }
0x18db   :  { %v1763_v7 = vpop.permute.xlu1 %1762 }
0x18dc   :  { %v1768_v9 = vmul.f32 %v7673_v3, %v1763_v7 }
0x18dd   :  { %v1765_v12 = vpop.permute.xlu0 %1764 }
0x18de   :  { %v1769_v13 = vmul.f32 %v7675_v11, %v1765_v12  ;;  %1772 = vrot.lane.b32.xlu1 %v1768_v9, %s8029_s25 }
0x18e0   :  { %1774 = vrot.lane.b32.xlu0 %v1769_v13, %s8029_s25 }
0x1950   :  { %v1773_v15 = vpop.permute.xlu1 %1772 }
0x1951   :  { %v1778_v16 = vadd.f32 %v1773_v15, %v8173_v2 }
0x1952   :  { %v1775_v17 = vpop.permute.xlu0 %1774 }
0x1953   :  { %7676 = vtanh.f32 %v1778_v16  ;;  %v1779_v18 = vadd.f32 %v1775_v17, %v8178_v8 }
0x1955   :  { %7678 = vtanh.f32 %v1779_v18 }
0x1960   :  { %v7677_v19 = vpop.eup %7676 }
0x1961   :  { %1786 = vrot.lane.b32.xlu1 %v7677_v19, %s8030_s26 }
0x1962   :  { %v7679_v21 = vpop.eup %7678 }
0x1963   :  { %1788 = vrot.lane.b32.xlu0 %v7679_v21, %s8030_s26 }
0x19d3   :  { %v1787_v24 = vpop.permute.xlu1 %1786 }
0x19d4   :  { %v1792_v4 = vmul.f32 %v1787_v24, %v1782_v27 }
0x19d5   :  { %v1789_v29 = vpop.permute.xlu0 %1788 }
0x19d6   :  { %v1793_v31 = vmul.f32 %v1789_v29, %v1783_v10  ;;  %v1798_v47 = vadd.f32 %v1796_v35, %v1792_v4 }
0x19d8   :  { %v1799_v39 = vadd.f32 %v1797_v30, %v1793_v31  ;;  %v1930_v29 = vrot.slane %v1798_v47, 7 }
0x19da   :  { %v1802_v37 = vrot.slane %v1799_v39, 7 }
0x19dc   :  { %v1803_v59 = vsel %vm649_vm12, %v1802_v37, %v1798_v47 }
0x19dd   :  { %1804 = vrot.lane.b32.xlu0 %v1803_v59, %s8030_s26 }
0x1a4f   :  { %v1805_v60 = vpop.permute.xlu0 %1804 }
0x1a50   :  { %1807 = vst.msk [vmem:[#allocation2 + $0x10] sm:$0x3] %vm9435_vm13, %v1805_v60  ;;  %7163 = vmatmul.mubr.msk.f32.vlgmr.msra.gmra.mxu0 %vm518_vm14, %v1805_v60  ;;  %vm1665_vm13 = vcmask 253952  }
0x1a51   :  { %7177 = vmatpush3.msra.mxu0 %v8432_v50  ;;  %7184 = vmatprep.mubr.msk.f32.mxu0 %vm8028_vm11, %v8027_v14 }
0x1a52   :  { %7178 = vmatprep.subr.mxu0 %v8027_v14 }
0x1a53   :  { %7179 = vmatpush3.msra.mxu0 %v8438_v51 }
0x1a54   :  { %7180 = vmatprep.subr.mxu0 %v8027_v14 }
0x1a55   :  { %7181 = vmatpush3.msra.mxu0 %v8442_v52 }
0x1a56   :  { %7182 = vmatprep.subr.mxu0 %v8027_v14 }
0x1a57   :  { %7183 = vmatpush3.msra.mxu0 %v8446_v53 }
0x1a58   :  { %7198 = vmatprep.subr.mxu0 %v8027_v14 }
0x1b10   :  { %v1876_v36 = vpop.f32.mrf.mxu0 }
0x1b11   :  { %v1877_v38 = vadd.f32 %v8450_v54, %v1876_v36 }
0x1b12   :  { %v7164_v41 = vpop.f32.mrf.mxu0 }
0x1b13   :  { %1900 = vrot.lane.b32.xlu0 %v1877_v38, %s8029_s25  ;;  %v1881_v61 = vrot.slane %v1877_v38, 7  ;;  %v1885_v62 = vadd.f32 %v1877_v38, %v8178_v8 }
0x1b15   :  { %1898 = vrot.lane.b32.xlu1 %v1881_v61, %s8029_s25  ;;  %v1884_v42 = vadd.f32 %v1881_v61, %v8173_v2  ;;  %v6686_v63 = vmul.f32 -1.442695, %v1885_v62 }
0x1b17   :  { %v6685_v0 = vmul.f32 -1.442695, %v1884_v42  ;;  %7680 = vpow2.f32 %v6686_v63 }
0x1b19   :  { %7682 = vpow2.f32 %v6685_v0 }
0x1b24   :  { %v7681_v1 = vpop.eup %7680 }
0x1b25   :  { %v1893_v3 = vadd.f32 1.0, %v7681_v1 }
0x1b26   :  { %v7683_v57 = vpop.eup %7682 }
0x1b27   :  { %v1892_v7 = vadd.f32 1.0, %v7683_v57  ;;  %7684 = vrcp.f32 %v1893_v3 }
0x1b29   :  { %7686 = vrcp.f32 %v1892_v7 }
0x1b34   :  { %v7685_v9 = vpop.eup %7684 }
0x1b35   :  { %v1919_v4 = vsub.f32 1.0, %v7685_v9  ;;  %v1934_v60 = vmul.f32 %v7685_v9, %v1802_v37 }
0x1b36   :  { %v7687_v13 = vpop.eup %7686 }
0x1b37   :  { %v1918_v30 = vsub.f32 1.0, %v7687_v13  ;;  %v1933_v39 = vmul.f32 %v7687_v13, %v1930_v29 }
0x1b85   :  { %v1901_v11 = vpop.permute.xlu0 %1900 }
0x1b86   :  { %v1905_v12 = vmul.f32 %v7685_v9, %v1901_v11 }
0x1b87   :  { %v1899_v15 = vpop.permute.xlu1 %1898 }
0x1b88   :  { %v1904_v16 = vmul.f32 %v7687_v13, %v1899_v15  ;;  %1910 = vrot.lane.b32.xlu0 %v1905_v12, %s8029_s25 }
0x1b8a   :  { %1908 = vrot.lane.b32.xlu1 %v1904_v16, %s8029_s25 }
0x1bfa   :  { %v1911_v17 = vpop.permute.xlu0 %1910 }
0x1bfb   :  { %v1915_v18 = vadd.f32 %v1911_v17, %v8178_v8 }
0x1bfc   :  { %v1909_v19 = vpop.permute.xlu1 %1908 }
0x1bfd   :  { %7688 = vtanh.f32 %v1915_v18  ;;  %v1914_v21 = vadd.f32 %v1909_v19, %v8173_v2 }
0x1bff   :  { %7690 = vtanh.f32 %v1914_v21 }
0x1c0a   :  { %v7689_v24 = vpop.eup %7688 }
0x1c0b   :  { %1924 = vrot.lane.b32.xlu0 %v7689_v24, %s8030_s26 }
0x1c0c   :  { %v7691_v27 = vpop.eup %7690 }
0x1c0d   :  { %1922 = vrot.lane.b32.xlu1 %v7691_v27, %s8030_s26 }
0x1c7d   :  { %v1925_v10 = vpop.permute.xlu0 %1924 }
0x1c7e   :  { %v1929_v35 = vmul.f32 %v1925_v10, %v1919_v4 }
0x1c7f   :  { %v1923_v31 = vpop.permute.xlu1 %1922 }
0x1c80   :  { %v1928_v59 = vmul.f32 %v1923_v31, %v1918_v30  ;;  %v8495_v38 = vadd.f32 %v1934_v60, %v1929_v35 }
0x1c82   :  { %v8493_v36 = vadd.f32 %v1933_v39, %v1928_v59  ;;  %v1939_v31 = vrot.slane %v8495_v38, 7 }
0x1c84   :  { %v1945_v41 = vrot.slane %v8493_v36, 1  ;;  %v2072_v60 = vrot.slane %v8493_v36, 7 }
0x1c86   :  { %v1946_v61 = vsel %vm649_vm12, %v8495_v38, %v1945_v41 }
0x1c87   :  { %1947 = vrot.lane.b32.xlu1 %v1946_v61, %s8030_s26 }
0x1cf9   :  { %v1948_v62 = vpop.permute.xlu1 %1947 }
0x1cfa   :  { %7174 = vmatmul.mubr.msk.f32.vlgmr.msra.gmra.mxu1 %vm518_vm14, %v1948_v62 }
0x1cfb   :  { %7188 = vmatpush3.msra.mxu1 %v8432_v50  ;;  %7195 = vmatprep.mubr.msk.f32.mxu1 %vm8028_vm11, %v8027_v14 }
0x1cfc   :  { %7189 = vmatprep.subr.mxu1 %v8027_v14 }
0x1cfd   :  { %7190 = vmatpush3.msra.mxu1 %v8438_v51 }
0x1cfe   :  { %7191 = vmatprep.subr.mxu1 %v8027_v14 }
0x1cff   :  { %7192 = vmatpush3.msra.mxu1 %v8442_v52 }
0x1d00   :  { %7193 = vmatprep.subr.mxu1 %v8027_v14 }
0x1d01   :  { %7194 = vmatpush3.msra.mxu1 %v8446_v53 }
0x1d02   :  { %7209 = vmatprep.subr.mxu1 %v8027_v14 }
0x1dba   :  { %v2017_v47 = vpop.f32.mrf.mxu1 }
0x1dbb   :  { %v2018_v37 = vadd.f32 %v8450_v54, %v2017_v47 }
0x1dbc   :  { %v7175_v42 = vpop.f32.mrf.mxu1 }
0x1dbd   :  { %v2022_v63 = vrot.slane %v2018_v37, 6  ;;  %v2023_v0 = vrot.slane %v2018_v37, 7 }
0x1dbf   :  { %2042 = vrot.lane.b32.xlu1 %v2023_v0, %s8029_s25  ;;  %2040 = vrot.lane.b32.xlu0 %v2022_v63, %s8029_s25  ;;  %v2026_v1 = vadd.f32 %v2022_v63, %v8173_v2  ;;  %v2027_v57 = vadd.f32 %v2023_v0, %v8178_v8 }
0x1dc1   :  { %v6688_v3 = vmul.f32 -1.442695, %v2026_v1  ;;  %v6689_v7 = vmul.f32 -1.442695, %v2027_v57 }
0x1dc3   :  { %7692 = vpow2.f32 %v6688_v3 }
0x1dc4   :  { %7694 = vpow2.f32 %v6689_v7 }
0x1dd0   :  { %v7693_v9 = vpop.eup %7692 }
0x1dd1   :  { %v7695_v11 = vpop.eup %7694  ;;  %v2034_v12 = vadd.f32 1.0, %v7693_v9 }
0x1dd2   :  { %v2035_v13 = vadd.f32 1.0, %v7695_v11 }
0x1dd3   :  { %7696 = vrcp.f32 %v2034_v12 }
0x1dd4   :  { %7698 = vrcp.f32 %v2035_v13 }
0x1de0   :  { %v7697_v15 = vpop.eup %7696 }
0x1de1   :  { %v7699_v16 = vpop.eup %7698  ;;  %v2060_v59 = vsub.f32 1.0, %v7697_v15  ;;  %v2075_v47 = vmul.f32 %v7697_v15, %v2072_v60 }
0x1de2   :  { %v2061_v35 = vsub.f32 1.0, %v7699_v16  ;;  %v2076_v41 = vmul.f32 %v7699_v16, %v1939_v31 }
0x1e31   :  { %v2043_v17 = vpop.permute.xlu1 %2042  ;;  %v2041_v18 = vpop.permute.xlu0 %2040 }
0x1e32   :  { %v2047_v19 = vmul.f32 %v7699_v16, %v2043_v17  ;;  %v2046_v21 = vmul.f32 %v7697_v15, %v2041_v18 }
0x1e34   :  { %2052 = vrot.lane.b32.xlu1 %v2047_v19, %s8029_s25  ;;  %2050 = vrot.lane.b32.xlu0 %v2046_v21, %s8029_s25 }
0x1ea6   :  { %v2053_v24 = vpop.permute.xlu1 %2052  ;;  %v2051_v27 = vpop.permute.xlu0 %2050 }
0x1ea7   :  { %v2057_v10 = vadd.f32 %v2053_v24, %v8178_v8  ;;  %v2056_v29 = vadd.f32 %v2051_v27, %v8173_v2 }
0x1ea9   :  { %7700 = vtanh.f32 %v2057_v10 }
0x1eaa   :  { %7702 = vtanh.f32 %v2056_v29 }
0x1eb6   :  { %v7701_v4 = vpop.eup %7700 }
0x1eb7   :  { %v7703_v30 = vpop.eup %7702  ;;  %2066 = vrot.lane.b32.xlu1 %v7701_v4, %s8030_s26 }
0x1eb8   :  { %2064 = vrot.lane.b32.xlu0 %v7703_v30, %s8030_s26 }
0x1f29   :  { %v2067_v39 = vpop.permute.xlu1 %2066 }
0x1f2a   :  { %v2071_v61 = vmul.f32 %v2067_v39, %v2061_v35  ;;  %v2065_v62 = vpop.permute.xlu0 %2064 }
0x1f2b   :  { %v2070_v37 = vmul.f32 %v2065_v62, %v2060_v59 }
0x1f2c   :  { %v8527_v42 = vadd.f32 %v2076_v41, %v2071_v61 }
0x1f2d   :  { %v8529_v63 = vadd.f32 %v2075_v47, %v2070_v37 }
0x1f2e   :  { %v2088_v0 = vrot.slane %v8527_v42, 1  ;;  %v2081_v37 = vrot.slane %v8527_v42, 7 }
0x1f2f   :  { %v2087_v1 = vrot.slane %v8529_v63, 2 }
0x1f31   :  { %v2089_v57 = vsel %vm649_vm12, %v2088_v0, %v2087_v1 }
0x1f32   :  { %2090 = vrot.lane.b32.xlu0 %v2089_v57, %s8030_s26 }
0x1fa4   :  { %v2091_v3 = vpop.permute.xlu0 %2090 }
0x1fa5   :  { %7185 = vmatmul.mubr.msk.f32.vlgmr.msra.gmra.mxu0 %vm518_vm14, %v2091_v3  ;;  %v2215_v3 = vrot.slane %v8529_v63, 7 }
0x1fa6   :  { %7199 = vmatpush3.msra.mxu0 %v8432_v50  ;;  %7206 = vmatprep.mubr.msk.f32.mxu0 %vm8028_vm11, %v8027_v14 }
0x1fa7   :  { %7200 = vmatprep.subr.mxu0 %v8027_v14 }
0x1fa8   :  { %7201 = vmatpush3.msra.mxu0 %v8438_v51 }
0x1fa9   :  { %7202 = vmatprep.subr.mxu0 %v8027_v14 }
0x1faa   :  { %7203 = vmatpush3.msra.mxu0 %v8442_v52 }
0x1fab   :  { %7204 = vmatprep.subr.mxu0 %v8027_v14 }
0x1fac   :  { %7205 = vmatpush3.msra.mxu0 %v8446_v53 }
0x1fad   :  { %7220 = vmatprep.subr.mxu0 %v8027_v14 }
0x2065   :  { %v2160_v7 = vpop.f32.mrf.mxu0 }
0x2066   :  { %v2161_v9 = vadd.f32 %v8450_v54, %v2160_v7 }
0x2067   :  { %v7186_v11 = vpop.f32.mrf.mxu0 }
0x2068   :  { %v2165_v12 = vrot.slane %v2161_v9, 5  ;;  %v2166_v13 = vrot.slane %v2161_v9, 6 }
0x206a   :  { %2185 = vrot.lane.b32.xlu0 %v2166_v13, %s8029_s25  ;;  %2183 = vrot.lane.b32.xlu1 %v2165_v12, %s8029_s25  ;;  %v2169_v15 = vadd.f32 %v2165_v12, %v8173_v2  ;;  %v2170_v16 = vadd.f32 %v2166_v13, %v8178_v8 }
0x206c   :  { %v6691_v17 = vmul.f32 -1.442695, %v2169_v15  ;;  %v6692_v18 = vmul.f32 -1.442695, %v2170_v16 }
0x206e   :  { %7704 = vpow2.f32 %v6691_v17 }
0x206f   :  { %7706 = vpow2.f32 %v6692_v18 }
0x207b   :  { %v7705_v19 = vpop.eup %7704 }
0x207c   :  { %v7707_v21 = vpop.eup %7706  ;;  %v2177_v24 = vadd.f32 1.0, %v7705_v19 }
0x207d   :  { %v2178_v27 = vadd.f32 1.0, %v7707_v21 }
0x207e   :  { %7708 = vrcp.f32 %v2177_v24 }
0x207f   :  { %7710 = vrcp.f32 %v2178_v27 }
0x208b   :  { %v7709_v10 = vpop.eup %7708 }
0x208c   :  { %v7711_v29 = vpop.eup %7710  ;;  %v2203_v57 = vsub.f32 1.0, %v7709_v10  ;;  %v2218_v12 = vmul.f32 %v7709_v10, %v2215_v3 }
0x208d   :  { %v2204_v0 = vsub.f32 1.0, %v7711_v29  ;;  %v2219_v7 = vmul.f32 %v7711_v29, %v2081_v37 }
0x20dc   :  { %v2186_v4 = vpop.permute.xlu0 %2185  ;;  %v2184_v30 = vpop.permute.xlu1 %2183 }
0x20dd   :  { %v2190_v35 = vmul.f32 %v7711_v29, %v2186_v4  ;;  %v2189_v39 = vmul.f32 %v7709_v10, %v2184_v30 }
0x20df   :  { %2195 = vrot.lane.b32.xlu0 %v2190_v35, %s8029_s25  ;;  %2193 = vrot.lane.b32.xlu1 %v2189_v39, %s8029_s25 }
0x2151   :  { %v2196_v59 = vpop.permute.xlu0 %2195  ;;  %v2194_v60 = vpop.permute.xlu1 %2193 }
0x2152   :  { %v2200_v41 = vadd.f32 %v2196_v59, %v8178_v8  ;;  %v2199_v61 = vadd.f32 %v2194_v60, %v8173_v2 }
0x2154   :  { %7712 = vtanh.f32 %v2200_v41 }
0x2155   :  { %7714 = vtanh.f32 %v2199_v61 }
0x2161   :  { %v7713_v62 = vpop.eup %7712 }
0x2162   :  { %v7715_v47 = vpop.eup %7714  ;;  %2209 = vrot.lane.b32.xlu0 %v7713_v62, %s8030_s26 }
0x2163   :  { %2207 = vrot.lane.b32.xlu1 %v7715_v47, %s8030_s26 }
0x21d4   :  { %v2210_v1 = vpop.permute.xlu0 %2209 }
0x21d5   :  { %v2214_v9 = vmul.f32 %v2210_v1, %v2204_v0  ;;  %v2208_v11 = vpop.permute.xlu1 %2207 }
0x21d6   :  { %v2213_v13 = vmul.f32 %v2208_v11, %v2203_v57 }
0x21d7   :  { %v8561_v15 = vadd.f32 %v2219_v7, %v2214_v9 }
0x21d8   :  { %v8563_v16 = vadd.f32 %v2218_v12, %v2213_v13 }
0x21d9   :  { %v2231_v17 = vrot.slane %v8561_v15, 2 }
0x21da   :  { %v2230_v18 = vrot.slane %v8563_v16, 3 }
0x21dc   :  { %v2232_v19 = vsel %vm649_vm12, %v2231_v17, %v2230_v18 }
0x21dd   :  { %2233 = vrot.lane.b32.xlu1 %v2232_v19, %s8030_s26  ;;  %v2224_v19 = vrot.slane %v8561_v15, 7 }
0x224f   :  { %v2234_v21 = vpop.permute.xlu1 %2233 }
0x2250   :  { %7196 = vmatmul.mubr.msk.f32.vlgmr.msra.gmra.mxu1 %vm518_vm14, %v2234_v21 }
0x2251   :  { %7210 = vmatpush3.msra.mxu1 %v8432_v50  ;;  %7217 = vmatprep.mubr.msk.f32.mxu1 %vm8028_vm11, %v8027_v14 }
0x2252   :  { %7211 = vmatprep.subr.mxu1 %v8027_v14 }
0x2253   :  { %7212 = vmatpush3.msra.mxu1 %v8438_v51 }
0x2254   :  { %7213 = vmatprep.subr.mxu1 %v8027_v14 }
0x2255   :  { %7214 = vmatpush3.msra.mxu1 %v8442_v52 }
0x2256   :  { %7215 = vmatprep.subr.mxu1 %v8027_v14 }
0x2257   :  { %7216 = vmatpush3.msra.mxu1 %v8446_v53 }
0x2310   :  { %v2303_v24 = vpop.f32.mrf.mxu1 }
0x2311   :  { %v2304_v27 = vadd.f32 %v8450_v54, %v2303_v24 }
0x2312   :  { %v7197_v10 = vpop.f32.mrf.mxu1 }
0x2313   :  { %v2308_v29 = vrot.slane %v2304_v27, 4  ;;  %v2309_v4 = vrot.slane %v2304_v27, 5  ;;  %v2358_v10 = vrot.slane %v8563_v16, 7 }
0x2315   :  { %2328 = vrot.lane.b32.xlu1 %v2309_v4, %s8029_s25  ;;  %2326 = vrot.lane.b32.xlu0 %v2308_v29, %s8029_s25  ;;  %v2312_v30 = vadd.f32 %v2308_v29, %v8173_v2  ;;  %v2313_v35 = vadd.f32 %v2309_v4, %v8178_v8 }
0x2317   :  { %v6694_v39 = vmul.f32 -1.442695, %v2312_v30  ;;  %v6695_v59 = vmul.f32 -1.442695, %v2313_v35 }
0x2319   :  { %7716 = vpow2.f32 %v6694_v39 }
0x231a   :  { %7718 = vpow2.f32 %v6695_v59 }
0x2326   :  { %v7717_v60 = vpop.eup %7716 }
0x2327   :  { %v7719_v41 = vpop.eup %7718  ;;  %v2320_v61 = vadd.f32 1.0, %v7717_v60 }
0x2328   :  { %v2321_v62 = vadd.f32 1.0, %v7719_v41 }
0x2329   :  { %7720 = vrcp.f32 %v2320_v61 }
0x232a   :  { %7722 = vrcp.f32 %v2321_v62 }
0x2336   :  { %v7721_v47 = vpop.eup %7720 }
0x2337   :  { %v7723_v0 = vpop.eup %7722  ;;  %v2346_v27 = vsub.f32 1.0, %v7721_v47  ;;  %v2361_v35 = vmul.f32 %v7721_v47, %v2358_v10 }
0x2338   :  { %v2347_v21 = vsub.f32 1.0, %v7723_v0  ;;  %v2362_v29 = vmul.f32 %v7723_v0, %v2224_v19 }
0x2387   :  { %v2329_v1 = vpop.permute.xlu1 %2328  ;;  %v2327_v57 = vpop.permute.xlu0 %2326 }
0x2388   :  { %v2333_v3 = vmul.f32 %v7723_v0, %v2329_v1  ;;  %v2332_v7 = vmul.f32 %v7721_v47, %v2327_v57 }
0x238a   :  { %2338 = vrot.lane.b32.xlu1 %v2333_v3, %s8029_s25  ;;  %2336 = vrot.lane.b32.xlu0 %v2332_v7, %s8029_s25 }
0x23fc   :  { %v2339_v9 = vpop.permute.xlu1 %2338  ;;  %v2337_v11 = vpop.permute.xlu0 %2336 }
0x23fd   :  { %v2343_v12 = vadd.f32 %v2339_v9, %v8178_v8  ;;  %v2342_v13 = vadd.f32 %v2337_v11, %v8173_v2 }
0x23ff   :  { %7724 = vtanh.f32 %v2343_v12 }
0x2400   :  { %7726 = vtanh.f32 %v2342_v13 }
0x240c   :  { %v7725_v17 = vpop.eup %7724 }
0x240d   :  { %v7727_v18 = vpop.eup %7726  ;;  %2352 = vrot.lane.b32.xlu1 %v7725_v17, %s8030_s26 }
0x240e   :  { %2350 = vrot.lane.b32.xlu0 %v7727_v18, %s8030_s26 }
0x247f   :  { %v2353_v24 = vpop.permute.xlu1 %2352 }
0x2480   :  { %v2357_v4 = vmul.f32 %v2353_v24, %v2347_v21  ;;  %v2351_v30 = vpop.permute.xlu0 %2350 }
0x2481   :  { %v2356_v39 = vmul.f32 %v2351_v30, %v2346_v27 }
0x2482   :  { %v8594_v59 = vadd.f32 %v2362_v29, %v2357_v4 }
0x2483   :  { %v8596_v60 = vadd.f32 %v2361_v35, %v2356_v39 }
0x2484   :  { %v2374_v41 = vrot.slane %v8594_v59, 3 }
0x2485   :  { %v2373_v61 = vrot.slane %v8596_v60, 4 }
0x2487   :  { %v2375_v62 = vsel %vm649_vm12, %v2374_v41, %v2373_v61  ;;  %v2367_v61 = vrot.slane %v8594_v59, 7 }
0x2488   :  { %2376 = vrot.lane.b32.xlu0 %v2375_v62, %s8030_s26 }
0x24fa   :  { %v2377_v1 = vpop.permute.xlu0 %2376 }
0x24fb   :  { %7207 = vmatmul.mubr.msk.f32.vlgmr.msra.gmra.mxu0 %vm518_vm14, %v2377_v1 }
0x24fc   :  { %7221 = vmatpush3.msra.mxu0 %v8432_v50  ;;  %7228 = vmatprep.mubr.msk.f32.mxu0 %vm8028_vm11, %v8027_v14 }
0x24fd   :  { %7222 = vmatprep.subr.mxu0 %v8027_v14 }
0x24fe   :  { %7223 = vmatpush3.msra.mxu0 %v8438_v51 }
0x24ff   :  { %7224 = vmatprep.subr.mxu0 %v8027_v14 }
0x2500   :  { %7225 = vmatpush3.msra.mxu0 %v8442_v52 }
0x2501   :  { %7226 = vmatprep.subr.mxu0 %v8027_v14 }
0x2502   :  { %7227 = vmatpush3.msra.mxu0 %v8446_v53 }
0x2503   :  { %7245 = vmatprep.subr.mxu0 %v8027_v14 }
0x25bb   :  { %v2446_v47 = vpop.f32.mrf.mxu0 }
0x25bc   :  { %v2447_v50 = vadd.f32 %v8450_v54, %v2446_v47 }
0x25bd   :  { %v7208_v0 = vpop.f32.mrf.mxu0 }
0x25be   :  { %v2451_v57 = vrot.slane %v2447_v50, 3  ;;  %v2452_v3 = vrot.slane %v2447_v50, 4  ;;  %v2501_v50 = vrot.slane %v8596_v60, 7 }
0x25c0   :  { %2471 = vrot.lane.b32.xlu0 %v2452_v3, %s8029_s25  ;;  %2469 = vrot.lane.b32.xlu1 %v2451_v57, %s8029_s25  ;;  %v2455_v51 = vadd.f32 %v2451_v57, %v8173_v2  ;;  %v2456_v52 = vadd.f32 %v2452_v3, %v8178_v8 }
0x25c2   :  { %v6697_v7 = vmul.f32 -1.442695, %v2455_v51  ;;  %v6698_v9 = vmul.f32 -1.442695, %v2456_v52 }
0x25c4   :  { %7728 = vpow2.f32 %v6697_v7 }
0x25c5   :  { %7730 = vpow2.f32 %v6698_v9 }
0x25d1   :  { %v7729_v53 = vpop.eup %7728 }
0x25d2   :  { %v7731_v11 = vpop.eup %7730  ;;  %v2463_v12 = vadd.f32 1.0, %v7729_v53 }
0x25d3   :  { %v2464_v13 = vadd.f32 1.0, %v7731_v11 }
0x25d4   :  { %7732 = vrcp.f32 %v2463_v12 }
0x25d5   :  { %7734 = vrcp.f32 %v2464_v13 }
0x25e1   :  { %v7733_v17 = vpop.eup %7732 }
0x25e2   :  { %v7735_v18 = vpop.eup %7734  ;;  %v2489_v47 = vsub.f32 1.0, %v7733_v17  ;;  %v2504_v51 = vmul.f32 %v7733_v17, %v2501_v50 }
0x25e3   :  { %v2490_v62 = vsub.f32 1.0, %v7735_v18  ;;  %v2505_v0 = vmul.f32 %v7735_v18, %v2367_v61 }
0x2632   :  { %v2472_v21 = vpop.permute.xlu0 %2471  ;;  %v2470_v24 = vpop.permute.xlu1 %2469 }
0x2633   :  { %v2476_v27 = vmul.f32 %v7735_v18, %v2472_v21  ;;  %v2475_v10 = vmul.f32 %v7733_v17, %v2470_v24 }
0x2635   :  { %2481 = vrot.lane.b32.xlu0 %v2476_v27, %s8029_s25  ;;  %2479 = vrot.lane.b32.xlu1 %v2475_v10, %s8029_s25 }
0x26a7   :  { %v2482_v29 = vpop.permute.xlu0 %2481  ;;  %v2480_v4 = vpop.permute.xlu1 %2479 }
0x26a8   :  { %v2486_v30 = vadd.f32 %v2482_v29, %v8178_v8  ;;  %v2485_v35 = vadd.f32 %v2480_v4, %v8173_v2 }
0x26aa   :  { %7736 = vtanh.f32 %v2486_v30 }
0x26ab   :  { %7738 = vtanh.f32 %v2485_v35 }
0x26b7   :  { %v7737_v39 = vpop.eup %7736 }
0x26b8   :  { %v7739_v41 = vpop.eup %7738  ;;  %2495 = vrot.lane.b32.xlu0 %v7737_v39, %s8030_s26 }
0x26b9   :  { %2493 = vrot.lane.b32.xlu1 %v7739_v41, %s8030_s26 }
0x272a   :  { %v2496_v1 = vpop.permute.xlu0 %2495 }
0x272b   :  { %v2500_v57 = vmul.f32 %v2496_v1, %v2490_v62  ;;  %v2494_v3 = vpop.permute.xlu1 %2493 }
0x272c   :  { %v2499_v52 = vmul.f32 %v2494_v3, %v2489_v47 }
0x272d   :  { %v8628_v7 = vadd.f32 %v2505_v0, %v2500_v57 }
0x272e   :  { %v8630_v9 = vadd.f32 %v2504_v51, %v2499_v52 }
0x272f   :  { %v2517_v53 = vrot.slane %v8628_v7, 4 }
0x2730   :  { %v2516_v11 = vrot.slane %v8630_v9, 5 }
0x2732   :  { %v2518_v12 = vsel %vm649_vm12, %v2517_v53, %v2516_v11 }
0x2733   :  { %2519 = vrot.lane.b32.xlu1 %v2518_v12, %s8030_s26 }
0x27a5   :  { %v2520_v13 = vpop.permute.xlu1 %2519 }
0x27a6   :  { %7218 = vmatmul.mubr.msk.f32.vlgmr.msra.gmra.mxu1 %vm518_vm14, %v2520_v13  ;;  %v789_v13 = vsel %vm788_vm15, %v787_v56, %v8217_v22  ;;  %v2510_v22 = vrot.slane %v8628_v7, 7 }
0x2866   :  { %v2589_v18 = vpop.f32.mrf.mxu1 }
0x2867   :  { %v2590_v21 = vadd.f32 %v8450_v54, %v2589_v18  ;;  %v1078_v18 = vsel %vm1077_vm0, %v1076_v33, %v8287_v58  ;;  %v2644_v58 = vrot.slane %v8630_v9, 7 }
0x2868   :  { %v7219_v17 = vpop.f32.mrf.mxu1 }
0x2869   :  { %v2594_v24 = vrot.slane %v2590_v21, 2  ;;  %v2595_v27 = vrot.slane %v2590_v21, 3  ;;  %v1368_v21 = vsel %vm1367_vm1, %v1366_v26, %v8355_v44 }
0x286b   :  { %2614 = vrot.lane.b32.xlu1 %v2595_v27, %s8029_s25  ;;  %2612 = vrot.lane.b32.xlu0 %v2594_v24, %s8029_s25  ;;  %v2598_v10 = vadd.f32 %v2594_v24, %v8173_v2  ;;  %v2599_v29 = vadd.f32 %v2595_v27, %v8178_v8 }
0x286d   :  { %v6700_v4 = vmul.f32 -1.442695, %v2598_v10  ;;  %v6701_v30 = vmul.f32 -1.442695, %v2599_v29 }
0x286f   :  { %7740 = vpow2.f32 %v6700_v4 }
0x2870   :  { %7742 = vpow2.f32 %v6701_v30 }
0x287c   :  { %v7741_v35 = vpop.eup %7740 }
0x287d   :  { %v7743_v39 = vpop.eup %7742  ;;  %v2606_v41 = vadd.f32 1.0, %v7741_v35 }
0x287e   :  { %v2607_v62 = vadd.f32 1.0, %v7743_v39  ;;  %v933_v39 = vsel %vm932_vm4, %v931_v45, %v8253_v6  ;;  %v2809_v6 = vld [vmem:[#allocation4 + $0x60] sm:$0xff]  ;;  %v1513_v45 = vsel %vm1512_vm8, %v1511_v20, %v8389_v46 }
0x287f   :  { %7744 = vrcp.f32 %v2606_v41  ;;  %v2812_v41 = vld [vmem:[#allocation4 + $0x78] sm:$0xff]  ;;  %v8714_v20 = vld [vmem:[#allocation4 + $0x80] sm:$0xff] }
0x2880   :  { %7746 = vrcp.f32 %v2607_v62  ;;  %v2811_v62 = vld [vmem:[#allocation4 + $0x70] sm:$0xff]  ;;  %7231 = vmatprep.subr.mxu1 %v2812_v41 }
0x2881   :  { %7232 = vmatpush3.msra.mxu1 %v2812_v41 }
0x2882   :  { %7233 = vmatprep.subr.mxu1 %v2811_v62 }
0x2883   :  { %7234 = vmatpush3.msra.mxu1 %v2811_v62 }
0x288c   :  { %v7745_v54 = vpop.eup %7744 }
0x288d   :  { %v7747_v1 = vpop.eup %7746  ;;  %v2632_v55 = vsub.f32 1.0, %v7745_v54  ;;  %v2647_v43 = vmul.f32 %v7745_v54, %v2644_v58 }
0x288e   :  { %v2633_v23 = vsub.f32 1.0, %v7747_v1  ;;  %v2648_v33 = vmul.f32 %v7747_v1, %v2510_v22 }
0x28dd   :  { %v2615_v47 = vpop.permute.xlu1 %2614  ;;  %v2613_v50 = vpop.permute.xlu0 %2612 }
0x28de   :  { %v2619_v0 = vmul.f32 %v7747_v1, %v2615_v47  ;;  %v2618_v57 = vmul.f32 %v7745_v54, %v2613_v50  ;;  %v2810_v54 = vld [vmem:[#allocation4 + $0x68] sm:$0xff] }
0x28df   :  { %7235 = vmatprep.subr.mxu1 %v2810_v54 }
0x28e0   :  { %2624 = vrot.lane.b32.xlu1 %v2619_v0, %s8029_s25  ;;  %2622 = vrot.lane.b32.xlu0 %v2618_v57, %s8029_s25 }
0x28e1   :  { %7236 = vmatpush3.msra.mxu1 %v2810_v54 }
0x28e2   :  { %7237 = vmatprep.subr.mxu1 %v2809_v6 }
0x28e3   :  { %7238 = vmatpush3.msra.mxu1 %v2809_v6 }
0x28e4   :  { %7256 = vmatprep.subr.mxu1 %v8027_v14 }
0x2952   :  { %v2625_v3 = vpop.permute.xlu1 %2624  ;;  %v2623_v51 = vpop.permute.xlu0 %2622 }
0x2953   :  { %v2629_v52 = vadd.f32 %v2625_v3, %v8178_v8  ;;  %v2628_v53 = vadd.f32 %v2623_v51, %v8173_v2  ;;  %v7967_v3 = vld [vmem:[#allocation4 + $0x58] ss:$0 sm:$0xff] }
0x2955   :  { %7748 = vtanh.f32 %v2629_v52 }
0x2956   :  { %7750 = vtanh.f32 %v2628_v53 }
0x2962   :  { %v7749_v11 = vpop.eup %7748 }
0x2963   :  { %v7751_v12 = vpop.eup %7750  ;;  %2638 = vrot.lane.b32.xlu1 %v7749_v11, %s8030_s26 }
0x2964   :  { %2636 = vrot.lane.b32.xlu0 %v7751_v12, %s8030_s26  ;;  %v8746_v12 = vld [vmem:[#allocation4 + $0xa8] ss:$0 sm:$0xff] }
0x2967   :  { %790 = vrot.lane.b32.xlu1 %v789_v13, %s8030_s26 }
0x296b   :  { %1079 = vrot.lane.b32.xlu1 %v1078_v18, %s8030_s26 }
0x296f   :  { %1369 = vrot.lane.b32.xlu1 %v1368_v21, %s8030_s26 }
0x2973   :  { %1657 = vrot.lane.b32.xlu1 %v8423_v34, %s8030_s26 }
0x29d5   :  { %v2639_v56 = vpop.permute.xlu1 %2638 }
0x29d6   :  { %v2643_v17 = vmul.f32 %v2639_v56, %v2633_v23  ;;  %v2637_v24 = vpop.permute.xlu0 %2636 }
0x29d7   :  { %v2642_v27 = vmul.f32 %v2637_v24, %v2632_v55 }
0x29d8   :  { %v8669_v44 = vadd.f32 %v2648_v33, %v2643_v17  ;;  %v8754_v33 = vld [vmem:[#allocation4 + $0xa0] ss:$0 sm:$0xff] }
0x29d9   :  { %v8671_v26 = vadd.f32 %v2647_v43, %v2642_v27  ;;  %v791_v34 = vpop.permute.xlu1 %790 }
0x29da   :  { %v2660_v10 = vrot.slane %v8669_v44, 5  ;;  %794 = vst.msk [vmem:[#allocation2 + $0x1] sm:$0x6] %vm793_vm2, %v791_v34  ;;  %v2653_v38 = vrot.slane %v8669_v44, 7 }
0x29db   :  { %v2659_v29 = vrot.slane %v8671_v26, 6 }
0x29dc   :  { %v2654_v42 = vsel %vm1512_vm8, %v2653_v38, %v8671_v26 }
0x29dd   :  { %v1080_v4 = vpop.permute.xlu1 %1079  ;;  %v2661_v30 = vsel %vm649_vm12, %v2660_v10, %v2659_v29  ;;  %vm1227_vm12 = vcmask 259076  }
0x29de   :  { %1083 = vst.msk [vmem:[#allocation2 + $0x3] sm:$0x18] %vm1082_vm3, %v1080_v4  ;;  %2662 = vrot.lane.b32.xlu0 %v2661_v30, %s8030_s26 }
0x29e1   :  { %v1370_v35 = vpop.permute.xlu1 %1369 }
0x29e2   :  { %1373 = vst.msk [vmem:[#allocation2 + $0x5] sm:$0x60] %vm1372_vm5, %v1370_v35  ;;  %934 = vrot.lane.b32.xlu0 %v933_v39, %s8030_s26 }
0x29e5   :  { %v1658_v1 = vpop.permute.xlu1 %1657 }
0x29e6   :  { %1664 = vst.msk [vmem:[#allocation2 + $0x7] sm:$0x80] %vm1663_vm7, %v1658_v1  ;;  %1224 = vrot.lane.b32.xlu0 %v1223_v5, %s8030_s26 }
0x29ea   :  { %1514 = vrot.lane.b32.xlu0 %v1513_v45, %s8030_s26 }
0x29ee   :  { %1659 = vrot.lane.b32.xlu0 %v1656_v25, %s8030_s26 }
0x2a50   :  { %v2663_v49 = vpop.permute.xlu0 %2662 }
0x2a51   :  { %7229 = vmatmul.mubr.msk.f32.vlgmr.msra.gmra.mxu0 %vm518_vm14, %v2663_v49 }
0x2a52   :  { %7246 = vmatpush3.msra.mxu0 %v8700_v48  ;;  %7253 = vmatprep.mubr.msk.f32.mxu0 %vm8028_vm11, %v8027_v14 }
0x2a53   :  { %7247 = vmatprep.subr.mxu0 %v8027_v14 }
0x2a54   :  { %7248 = vmatpush3.msra.mxu0 %v8703_v28  ;;  %v935_v46 = vpop.permute.xlu0 %934 }
0x2a55   :  { %7249 = vmatprep.subr.mxu0 %v8027_v14  ;;  %938 = vst.msk [vmem:[#allocation2 + $0x2] sm:$0xc] %vm937_vm10, %v935_v46 }
0x2a56   :  { %7250 = vmatpush3.msra.mxu0 %v8709_v40 }
0x2a57   :  { %7251 = vmatprep.subr.mxu0 %v8027_v14 }
0x2a58   :  { %7252 = vmatpush3.msra.mxu0 %v8714_v20  ;;  %v1225_v32 = vpop.permute.xlu0 %1224 }
0x2a59   :  { %7254 = vmatmul.mubr.f32.vlgmr.msra.gmra.mxu0 %v8027_v14  ;;  %1228 = vst.msk [vmem:[#allocation2 + $0x4] sm:$0x30] %vm1227_vm12, %v1225_v32  ;;  %7267 = vmatprep.subr.mxu0 %v8027_v14 }
0x2a5a   :  { %7268 = vmatpush3.msra.mxu0 %v8700_v48  ;;  %7275 = vmatprep.mubr.msk.f32.mxu0 %vm8028_vm11, %v8027_v14 }
0x2a5b   :  { %7269 = vmatprep.subr.mxu0 %v8027_v14 }
0x2a5c   :  { %v1515_v25 = vpop.permute.xlu0 %1514  ;;  %v2805_v47 = vld [vmem:[#allocation2] sm:$0xff]  ;;  %7270 = vmatpush3.msra.mxu0 %v8703_v28 }
0x2a5d   :  { %1518 = vst.msk [vmem:[#allocation2 + $0x6] sm:$0xc0] %vm1517_vm9, %v1515_v25  ;;  %7239 = vmatprep.mubr.msk.f32.mxu1 %vm518_vm14, %v2805_v47  ;;  %7271 = vmatprep.subr.mxu0 %v8027_v14 }
0x2a5e   :  { %7272 = vmatpush3.msra.mxu0 %v8709_v40 }
0x2a5f   :  { %7273 = vmatprep.subr.mxu0 %v8027_v14 }
0x2a60   :  { %v1660_v50 = vpop.permute.xlu0 %1659  ;;  %7274 = vmatpush3.msra.mxu0 %v8714_v20 }
0x2a61   :  { %1666 = vst.msk [vmem:[#allocation2 + $0xf] sm:$0x1] %vm1665_vm13, %v1660_v50  ;;  %7289 = vmatprep.subr.mxu0 %v8027_v14 }
0x2a68   :  { %v2806_v0 = vld [vmem:[#allocation2 + $0x8] sm:$0xff] }
0x2a69   :  { %7240 = vmatmul.mubr.msk.f32.vlgmr.msra.gmra.mxu1 %vm518_vm14, %v2806_v0 }
0x2a6a   :  { %7257 = vmatpush3.msra.mxu1 %v8700_v48 }
0x2a6b   :  { %7258 = vmatprep.subr.mxu1 %v8027_v14 }
0x2a6c   :  { %7259 = vmatpush3.msra.mxu1 %v8703_v28 }
0x2a6d   :  { %7260 = vmatprep.subr.mxu1 %v8027_v14 }
0x2a6e   :  { %7261 = vmatpush3.msra.mxu1 %v8709_v40 }
0x2a6f   :  { %7262 = vmatprep.subr.mxu1 %v8027_v14 }
0x2a70   :  { %7263 = vmatpush3.msra.mxu1 %v8714_v20 }
0x2a71   :  { %7278 = vmatprep.subr.mxu1 %v8027_v14 }
0x2b11   :  { %v2732_v57 = vpop.f32.mrf.mxu0 }
0x2b12   :  { %v2733_v51 = vadd.f32 %v7967_v3, %v2732_v57 }
0x2b13   :  { %v7230_v52 = vpop.f32.mrf.mxu0 }
0x2b14   :  { %v2737_v53 = vrot.slane %v2733_v51, 1  ;;  %v2738_v11 = vrot.slane %v2733_v51, 2  ;;  %v1940_v52 = vsel %vm788_vm15, %v1939_v31, %v8493_v36  ;;  %v2511_v36 = vsel %vm1367_vm1, %v2510_v22, %v8630_v9 }
0x2b15   :  { %v2368_v31 = vsel %vm1222_vm6, %v2367_v61, %v8596_v60  ;;  %vm9436_vm15 = vcmask 254976  }
0x2b16   :  { %2757 = vrot.lane.b32.xlu1 %v2738_v11, %s8029_s25  ;;  %2755 = vrot.lane.b32.xlu0 %v2737_v53, %s8029_s25  ;;  %v2741_v56 = vadd.f32 %v2737_v53, %v8173_v2  ;;  %v2742_v58 = vadd.f32 %v2738_v11, %v8178_v8  ;;  %v2082_v53 = vsel %vm932_vm4, %v2081_v37, %v8529_v63 }
0x2b18   :  { %v6703_v24 = vmul.f32 -1.442695, %v2741_v56  ;;  %v6704_v43 = vmul.f32 -1.442695, %v2742_v58 }
0x2b19   :  { %v2990_v13 = vpop.f32.mrf.mxu0 }
0x2b1a   :  { %v2991_v18 = vadd.f32 %v8746_v12, %v2990_v13  ;;  %7752 = vpow2.f32 %v6703_v24 }
0x2b1b   :  { %v7255_v21 = vpop.f32.mrf.mxu0  ;;  %7754 = vpow2.f32 %v6704_v43 }
0x2b1c   :  { %3002 = vrot.lane.b32.xlu1 %v2991_v18, %s8029_s25 }
0x2b27   :  { %v7753_v10 = vpop.eup %7752 }
0x2b28   :  { %v7755_v29 = vpop.eup %7754  ;;  %v2749_v4 = vadd.f32 1.0, %v7753_v10 }
0x2b29   :  { %v8750_v23 = vpop.f32.mrf.mxu1  ;;  %v2750_v30 = vadd.f32 1.0, %v7755_v29 }
0x2b2b   :  { %v2901_v55 = vpop.f32.mrf.mxu1 }
0x2b2c   :  { %v8757_v17 = vadd.f32 %v8754_v33, %v2901_v55 }
0x2b2e   :  { %v2994_v27 = vadd.f32 %v2991_v18, %v8757_v17 }
0x2b30   :  { %v6711_v34 = vmul.f32 -1.442695, %v2994_v27 }
0x2b32   :  { %7756 = vpow2.f32 %v6711_v34 }
0x2b33   :  { %7758 = vrcp.f32 %v2749_v4 }
0x2b34   :  { %7760 = vrcp.f32 %v2750_v30 }
0x2b3f   :  { %v7757_v35 = vpop.eup %7756 }
0x2b40   :  { %v2998_v39 = vadd.f32 1.0, %v7757_v35  ;;  %v7759_v41 = vpop.eup %7758 }
0x2b41   :  { %v7761_v62 = vpop.eup %7760  ;;  %v2775_v15 = vsub.f32 1.0, %v7759_v41 }
0x2b42   :  { %7762 = vrcp.f32 %v2998_v39  ;;  %v2776_v63 = vsub.f32 1.0, %v7761_v62 }
0x2b4f   :  { %v7763_v45 = vpop.eup %7762 }
0x2b50   :  { %v3012_v13 = vsub.f32 1.0, %v7763_v45  ;;  %v3018_v21 = vmul.f32 0.0, %v7763_v45 }
0x2b88   :  { %v2758_v54 = vpop.permute.xlu1 %2757  ;;  %v2756_v1 = vpop.permute.xlu0 %2755 }
0x2b89   :  { %v2762_v5 = vmul.f32 %v7761_v62, %v2758_v54  ;;  %v2761_v6 = vmul.f32 %v7759_v41, %v2756_v1 }
0x2b8b   :  { %2767 = vrot.lane.b32.xlu0 %v2762_v5, %s8029_s25  ;;  %2765 = vrot.lane.b32.xlu1 %v2761_v6, %s8029_s25 }
0x2b8e   :  { %v3003_v49 = vpop.permute.xlu1 %3002 }
0x2b8f   :  { %v3005_v46 = vmul.f32 %v7763_v45, %v3003_v49 }
0x2b91   :  { %3007 = vrot.lane.b32.xlu0 %v3005_v46, %s8029_s25 }
0x2bfd   :  { %v2768_v32 = vpop.permute.xlu0 %2767  ;;  %v2766_v25 = vpop.permute.xlu1 %2765 }
0x2bfe   :  { %v2772_v47 = vadd.f32 %v2768_v32, %v8178_v8  ;;  %v2771_v50 = vadd.f32 %v2766_v25, %v8173_v2  ;;  %v2225_v2 = vsel %vm1077_vm0, %v2224_v19, %v8563_v16  ;;  %v2787_v16 = vrot.slane %v8671_v26, 7 }
0x2bff   :  { %v2791_v19 = vmul.f32 %v7761_v62, %v2653_v38 }
0x2c00   :  { %7764 = vtanh.f32 %v2772_v47  ;;  %v2790_v22 = vmul.f32 %v7759_v41, %v2787_v16 }
0x2c01   :  { %7766 = vtanh.f32 %v2771_v50 }
0x2c03   :  { %v3008_v0 = vpop.permute.xlu0 %3007 }
0x2c04   :  { %v3010_v57 = vadd.f32 %v3008_v0, %v8757_v17 }
0x2c06   :  { %7768 = vtanh.f32 %v3010_v57 }
0x2c0d   :  { %v7765_v3 = vpop.eup %7764 }
0x2c0e   :  { %v7767_v51 = vpop.eup %7766  ;;  %2781 = vrot.lane.b32.xlu1 %v7765_v3, %s8030_s26 }
0x2c0f   :  { %2779 = vrot.lane.b32.xlu0 %v7767_v51, %s8030_s26 }
0x2c13   :  { %v7769_v8 = vpop.eup %7768  ;;  %1941 = vrot.lane.b32.xlu0 %v1940_v52, %s8030_s26 }
0x2c14   :  { %3014 = vrot.lane.b32.xlu1 %v7769_v8, %s8030_s26 }
0x2c17   :  { %2226 = vrot.lane.b32.xlu0 %v2225_v2, %s8030_s26 }
0x2c18   :  { %2083 = vrot.lane.b32.xlu1 %v2082_v53, %s8030_s26 }
0x2c1b   :  { %2512 = vrot.lane.b32.xlu0 %v2511_v36, %s8030_s26 }
0x2c1c   :  { %2369 = vrot.lane.b32.xlu1 %v2368_v31, %s8030_s26 }
0x2c20   :  { %2655 = vrot.lane.b32.xlu1 %v2654_v42, %s8030_s26 }
0x2c80   :  { %v2782_v37 = vpop.permute.xlu1 %2781 }
0x2c81   :  { %v2786_v7 = vmul.f32 %v2782_v37, %v2776_v63  ;;  %v2780_v9 = vpop.permute.xlu0 %2779 }
0x2c82   :  { %v2785_v44 = vmul.f32 %v2780_v9, %v2775_v15 }
0x2c83   :  { %v2793_v59 = vadd.f32 %v2791_v19, %v2786_v7 }
0x2c84   :  { %v2792_v11 = vadd.f32 %v2790_v22, %v2785_v44 }
0x2c85   :  { %v2796_v60 = vrot.slane %v2793_v59, 7  ;;  %v1942_v61 = vpop.permute.xlu0 %1941 }
0x2c86   :  { %1944 = vst.msk [vmem:[#allocation2 + $0x11] sm:$0x6] %vm793_vm2, %v1942_v61  ;;  %v3015_v18 = vpop.permute.xlu1 %3014  ;;  %2797 = vrot.lane.b32.xlu0 %v2792_v11, %s8030_s26  ;;  %vm4771_vm2 = vcmask 130048  }
0x2c87   :  { %v3017_v56 = vmul.f32 %v3015_v18, %v3012_v13  ;;  %2799 = vrot.lane.b32.xlu1 %v2796_v60, %s8030_s26 }
0x2c89   :  { %v3019_v26 = vadd.f32 %v3018_v21, %v3017_v56  ;;  %v2227_v55 = vpop.permute.xlu0 %2226 }
0x2c8a   :  { %2229 = vst.msk [vmem:[#allocation2 + $0x13] sm:$0x18] %vm1082_vm3, %v2227_v55  ;;  %v2084_v58 = vpop.permute.xlu1 %2083  ;;  %vm6623_vm3 = vcmask 9216  }
0x2c8b   :  { %2086 = vst.msk [vmem:[#allocation2 + $0x12] sm:$0xc] %vm937_vm10, %v2084_v58  ;;  %3021 = vrot.lane.b32.xlu0 %v3019_v26, %s8030_s26  ;;  %v3123_v57 = vrot.slane %v3019_v26, 6 }
0x2c8d   :  { %v2513_v24 = vpop.permute.xlu0 %2512 }
0x2c8e   :  { %2515 = vst.msk [vmem:[#allocation2 + $0x15] sm:$0x60] %vm1372_vm5, %v2513_v24  ;;  %v2370_v43 = vpop.permute.xlu1 %2369 }
0x2c8f   :  { %2372 = vst.msk [vmem:[#allocation2 + $0x14] sm:$0x30] %vm1227_vm12, %v2370_v43 }
0x2c92   :  { %v2656_v27 = vpop.permute.xlu1 %2655  ;;  %v2807_v34 = vld [vmem:[#allocation2 + $0x10] sm:$0xff] }
0x2c93   :  { %2658 = vst.msk [vmem:[#allocation2 + $0x16] sm:$0xc0] %vm1517_vm9, %v2656_v27  ;;  %7242 = vmatprep.mubr.msk.f32.mxu1 %vm518_vm14, %v2807_v34 }
0x2cf8   :  { %v2798_v10 = vpop.permute.xlu0 %2797 }
0x2cf9   :  { %2803 = vst.msk [vmem:[#allocation2 + $0x17] sm:$0x80] %vm1663_vm7, %v2798_v10  ;;  %v2800_v29 = vpop.permute.xlu1 %2799 }
0x2cfa   :  { %2804 = vst.msk [vmem:[#allocation2 + $0x1f] sm:$0x1] %vm1665_vm13, %v2800_v29  ;;  %vm9437_vm13 = vmmov %vm9436_vm15 }
0x2cfb   :  { %vm9438_vm0 = vmmov %vm9437_vm13 }
0x2cfc   :  { %vm9439_vm1 = vmmov %vm9438_vm0 }
0x2cfd   :  { %v3022_v4 = vpop.permute.xlu0 %3021 }
0x2cfe   :  { %3024 = vst.msk [vmem:[#allocation3] sm:$0x3] %vm9436_vm15, %v3022_v4 }
0x2d01   :  { %v2808_v30 = vld [vmem:[#allocation2 + $0x18] sm:$0xff] }
0x2d02   :  { %7243 = vmatmul.mubr.msk.f32.gmra.mxu1 %vm518_vm14, %v2808_v30 }
0x2d03   :  { %7264 = vmatprep.mubr.msk.f32.mxu1 %vm8028_vm11, %v8027_v14 }
0x2d06   :  { %7265 = vmatmul.mubr.msk.f32.vlgmr.msra.gmra.mxu1 %vm518_vm14, %v3022_v4 }
0x2d07   :  { %7279 = vmatpush3.msra.mxu1 %v8700_v48  ;;  %7286 = vmatprep.mubr.msk.f32.mxu1 %vm8028_vm11, %v8027_v14 }
0x2d08   :  { %7280 = vmatprep.subr.mxu1 %v8027_v14 }
0x2d09   :  { %7281 = vmatpush3.msra.mxu1 %v8703_v28 }
0x2d0a   :  { %7282 = vmatprep.subr.mxu1 %v8027_v14 }
0x2d0b   :  { %7283 = vmatpush3.msra.mxu1 %v8709_v40 }
0x2d0c   :  { %7284 = vmatprep.subr.mxu1 %v8027_v14 }
0x2d0d   :  { %7285 = vmatpush3.msra.mxu1 %v8714_v20 }
0x2d0e   :  { %7300 = vmatprep.subr.mxu1 %v8027_v14 }
0x2dc2   :  { %v8826_v35 = vpop.f32.mrf.mxu1 }
0x2dc4   :  { %v8828_v39 = vpop.f32.mrf.mxu1 }
0x2dc6   :  { %v3093_v41 = vpop.f32.mrf.mxu1 }
0x2dc7   :  { %v3094_v62 = vadd.f32 %v8746_v12, %v3093_v41 }
0x2dc8   :  { %v7266_v54 = vpop.f32.mrf.mxu1 }
0x2dc9   :  { %v3098_v1 = vrot.slane %v3094_v62, 6 }
0x2dcb   :  { %3107 = vrot.lane.b32.xlu1 %v3098_v1, %s8029_s25  ;;  %v3100_v5 = vadd.f32 %v3098_v1, %v8757_v17 }
0x2dcd   :  { %v6713_v6 = vmul.f32 -1.442695, %v3100_v5 }
0x2dcf   :  { %7770 = vpow2.f32 %v6713_v6 }
0x2ddc   :  { %v7771_v45 = vpop.eup %7770 }
0x2ddd   :  { %v3104_v49 = vadd.f32 1.0, %v7771_v45 }
0x2ddf   :  { %7772 = vrcp.f32 %v3104_v49 }
0x2dec   :  { %v7773_v46 = vpop.eup %7772 }
0x2ded   :  { %v3117_v3 = vsub.f32 1.0, %v7773_v46  ;;  %v3125_v52 = vmul.f32 %v7773_v46, %v3123_v57 }
0x2e3d   :  { %v3108_v32 = vpop.permute.xlu1 %3107 }
0x2e3e   :  { %v3110_v25 = vmul.f32 %v7773_v46, %v3108_v32 }
0x2e40   :  { %3112 = vrot.lane.b32.xlu0 %v3110_v25, %s8029_s25 }
0x2eb2   :  { %v3113_v47 = vpop.permute.xlu0 %3112 }
0x2eb3   :  { %v3115_v50 = vadd.f32 %v3113_v47, %v8757_v17 }
0x2eb5   :  { %7774 = vtanh.f32 %v3115_v50 }
0x2ec2   :  { %v7775_v0 = vpop.eup %7774 }
0x2ec3   :  { %3119 = vrot.lane.b32.xlu1 %v7775_v0, %s8030_s26 }
0x2f35   :  { %v3120_v51 = vpop.permute.xlu1 %3119 }
0x2f36   :  { %v3122_v8 = vmul.f32 %v3120_v51, %v3117_v3  ;;  %v8899_v3 = vadd.f32 %v8750_v23, %v8754_v33 }
0x2f38   :  { %v8836_v2 = vadd.f32 %v3125_v52, %v3122_v8 }
0x2f3a   :  { %v3132_v53 = vrot.slane %v8836_v2, 2  ;;  %v3233_v61 = vrot.slane %v8836_v2, 6 }
0x2f3c   :  { %3133 = vrot.lane.b32.xlu0 %v3132_v53, %s8030_s26 }
0x2fae   :  { %v3134_v36 = vpop.permute.xlu0 %3133 }
0x2faf   :  { %7276 = vmatmul.mubr.msk.f32.vlgmr.msra.gmra.mxu0 %vm518_vm14, %v3134_v36 }
0x2fb0   :  { %7290 = vmatpush3.msra.mxu0 %v8700_v48  ;;  %7297 = vmatprep.mubr.msk.f32.mxu0 %vm8028_vm11, %v8027_v14 }
0x2fb1   :  { %7291 = vmatprep.subr.mxu0 %v8027_v14 }
0x2fb2   :  { %7292 = vmatpush3.msra.mxu0 %v8703_v28 }
0x2fb3   :  { %7293 = vmatprep.subr.mxu0 %v8027_v14 }
0x2fb4   :  { %7294 = vmatpush3.msra.mxu0 %v8709_v40 }
0x2fb5   :  { %7295 = vmatprep.subr.mxu0 %v8027_v14 }
0x2fb6   :  { %7296 = vmatpush3.msra.mxu0 %v8714_v20 }
0x2fb7   :  { %7311 = vmatprep.subr.mxu0 %v8027_v14 }
0x306f   :  { %v3203_v38 = vpop.f32.mrf.mxu0 }
0x3070   :  { %v3204_v31 = vadd.f32 %v8746_v12, %v3203_v38 }
0x3071   :  { %v7277_v42 = vpop.f32.mrf.mxu0 }
0x3072   :  { %v3208_v63 = vrot.slane %v3204_v31, 4 }
0x3074   :  { %3217 = vrot.lane.b32.xlu1 %v3208_v63, %s8029_s25  ;;  %v3210_v37 = vadd.f32 %v3208_v63, %v8757_v17 }
0x3076   :  { %v6715_v15 = vmul.f32 -1.442695, %v3210_v37 }
0x3078   :  { %7776 = vpow2.f32 %v6715_v15 }
0x3085   :  { %v7777_v16 = vpop.eup %7776 }
0x3086   :  { %v3214_v19 = vadd.f32 1.0, %v7777_v16 }
0x3088   :  { %7778 = vrcp.f32 %v3214_v19 }
0x3095   :  { %v7779_v7 = vpop.eup %7778 }
0x3096   :  { %v3227_v60 = vsub.f32 1.0, %v7779_v7  ;;  %v3235_v18 = vmul.f32 %v7779_v7, %v3233_v61 }
0x30e6   :  { %v3218_v9 = vpop.permute.xlu1 %3217 }
0x30e7   :  { %v3220_v22 = vmul.f32 %v7779_v7, %v3218_v9 }
0x30e9   :  { %3222 = vrot.lane.b32.xlu0 %v3220_v22, %s8029_s25 }
0x315b   :  { %v3223_v44 = vpop.permute.xlu0 %3222 }
0x315c   :  { %v3225_v59 = vadd.f32 %v3223_v44, %v8757_v17 }
0x315e   :  { %7780 = vtanh.f32 %v3225_v59 }
0x316b   :  { %v7781_v11 = vpop.eup %7780 }
0x316c   :  { %3229 = vrot.lane.b32.xlu1 %v7781_v11, %s8030_s26 }
0x31de   :  { %v3230_v13 = vpop.permute.xlu1 %3229 }
0x31df   :  { %v3232_v21 = vmul.f32 %v3230_v13, %v3227_v60 }
0x31e1   :  { %v8858_v56 = vadd.f32 %v3235_v18, %v3232_v21 }
0x31e3   :  { %v3242_v26 = vrot.slane %v8858_v56, 4  ;;  %v3343_v45 = vrot.slane %v8858_v56, 6 }
0x31e5   :  { %3243 = vrot.lane.b32.xlu0 %v3242_v26, %s8030_s26 }
0x3257   :  { %v3244_v55 = vpop.permute.xlu0 %3243 }
0x3258   :  { %7287 = vmatmul.mubr.msk.f32.vlgmr.msra.gmra.mxu1 %vm518_vm14, %v3244_v55 }
0x3259   :  { %7301 = vmatpush3.msra.mxu1 %v8700_v48  ;;  %7308 = vmatprep.mubr.msk.f32.mxu1 %vm8028_vm11, %v8027_v14 }
0x325a   :  { %7302 = vmatprep.subr.mxu1 %v8027_v14 }
0x325b   :  { %7303 = vmatpush3.msra.mxu1 %v8703_v28 }
0x325c   :  { %7304 = vmatprep.subr.mxu1 %v8027_v14 }
0x325d   :  { %7305 = vmatpush3.msra.mxu1 %v8709_v40 }
0x325e   :  { %7306 = vmatprep.subr.mxu1 %v8027_v14 }
0x325f   :  { %7307 = vmatpush3.msra.mxu1 %v8714_v20 }
0x3260   :  { %7322 = vmatprep.subr.mxu1 %v8027_v14 }
0x3318   :  { %v3313_v58 = vpop.f32.mrf.mxu1 }
0x3319   :  { %v3314_v24 = vadd.f32 %v8746_v12, %v3313_v58 }
0x331a   :  { %v7288_v43 = vpop.f32.mrf.mxu1 }
0x331b   :  { %v3318_v27 = vrot.slane %v3314_v24, 2 }
0x331d   :  { %3327 = vrot.lane.b32.xlu1 %v3318_v27, %s8029_s25  ;;  %v3320_v34 = vadd.f32 %v3318_v27, %v8757_v17 }
0x331f   :  { %v6717_v10 = vmul.f32 -1.442695, %v3320_v34 }
0x3321   :  { %7782 = vpow2.f32 %v6717_v10 }
0x332e   :  { %v7783_v29 = vpop.eup %7782 }
0x332f   :  { %v3324_v4 = vadd.f32 1.0, %v7783_v29 }
0x3331   :  { %7784 = vrcp.f32 %v3324_v4 }
0x333e   :  { %v7785_v30 = vpop.eup %7784 }
0x333f   :  { %v3337_v6 = vsub.f32 1.0, %v7785_v30  ;;  %v3345_v46 = vmul.f32 %v7785_v30, %v3343_v45 }
0x338f   :  { %v3328_v41 = vpop.permute.xlu1 %3327 }
0x3390   :  { %v3330_v62 = vmul.f32 %v7785_v30, %v3328_v41 }
0x3392   :  { %3332 = vrot.lane.b32.xlu0 %v3330_v62, %s8029_s25 }
0x3404   :  { %v3333_v54 = vpop.permute.xlu0 %3332 }
0x3405   :  { %v3335_v1 = vadd.f32 %v3333_v54, %v8757_v17 }
0x3407   :  { %7786 = vtanh.f32 %v3335_v1 }
0x3414   :  { %v7787_v5 = vpop.eup %7786 }
0x3415   :  { %3339 = vrot.lane.b32.xlu1 %v7787_v5, %s8030_s26 }
0x3487   :  { %v3340_v49 = vpop.permute.xlu1 %3339 }
0x3488   :  { %v3342_v32 = vmul.f32 %v3340_v49, %v3337_v6 }
0x348a   :  { %v8880_v25 = vadd.f32 %v3345_v46, %v3342_v32 }
0x348c   :  { %v3352_v47 = vrot.slane %v8880_v25, 6 }
0x348e   :  { %3353 = vrot.lane.b32.xlu0 %v3352_v47, %s8030_s26 }
0x3500   :  { %v3354_v50 = vpop.permute.xlu0 %3353 }
0x3501   :  { %7298 = vmatmul.mubr.msk.f32.vlgmr.msra.gmra.mxu0 %vm518_vm14, %v3354_v50 }
0x3502   :  { %7312 = vmatpush3.msra.mxu0 %v8700_v48  ;;  %7319 = vmatprep.mubr.msk.f32.mxu0 %vm8028_vm11, %v8027_v14 }
0x3503   :  { %7313 = vmatprep.subr.mxu0 %v8027_v14 }
0x3504   :  { %7314 = vmatpush3.msra.mxu0 %v8703_v28 }
0x3505   :  { %7315 = vmatprep.subr.mxu0 %v8027_v14 }
0x3506   :  { %7316 = vmatpush3.msra.mxu0 %v8709_v40 }
0x3507   :  { %7317 = vmatprep.subr.mxu0 %v8027_v14 }
0x3508   :  { %7318 = vmatpush3.msra.mxu0 %v8714_v20 }
0x3509   :  { %7333 = vmatprep.subr.mxu0 %v8027_v14 }
0x35c1   :  { %v3423_v17 = vpop.f32.mrf.mxu0 }
0x35c2   :  { %v3424_v0 = vadd.f32 %v8746_v12, %v3423_v17 }
0x35c3   :  { %v7299_v57 = vpop.f32.mrf.mxu0 }
0x35c4   :  { %3435 = vrot.lane.b32.xlu1 %v3424_v0, %s8029_s25  ;;  %v3427_v51 = vadd.f32 %v3424_v0, %v8899_v3 }
0x35c6   :  { %v6719_v52 = vmul.f32 -1.442695, %v3427_v51 }
0x35c8   :  { %7788 = vpow2.f32 %v6719_v52 }
0x35d5   :  { %v7789_v8 = vpop.eup %7788 }
0x35d6   :  { %v3431_v53 = vadd.f32 1.0, %v7789_v8 }
0x35d8   :  { %7790 = vrcp.f32 %v3431_v53 }
0x35e5   :  { %v7791_v36 = vpop.eup %7790 }
0x35e6   :  { %v3445_v23 = vsub.f32 1.0, %v7791_v36  ;;  %v3452_v16 = vmul.f32 %v7791_v36, %v3352_v47 }
0x3636   :  { %v3436_v38 = vpop.permute.xlu1 %3435 }
0x3637   :  { %v3438_v31 = vmul.f32 %v7791_v36, %v3436_v38 }
0x3639   :  { %3440 = vrot.lane.b32.xlu0 %v3438_v31, %s8029_s25 }
0x36ab   :  { %v3441_v42 = vpop.permute.xlu0 %3440 }
0x36ac   :  { %v3443_v63 = vadd.f32 %v3441_v42, %v8899_v3 }
0x36ae   :  { %7792 = vtanh.f32 %v3443_v63 }
0x36bb   :  { %v7793_v37 = vpop.eup %7792 }
0x36bc   :  { %3447 = vrot.lane.b32.xlu1 %v7793_v37, %s8030_s26 }
0x372e   :  { %v3448_v15 = vpop.permute.xlu1 %3447 }
0x372f   :  { %v3450_v19 = vmul.f32 %v3448_v15, %v3445_v23 }
0x3731   :  { %v3453_v7 = vadd.f32 %v3452_v16, %v3450_v19 }
0x3733   :  { %3455 = vrot.lane.b32.xlu0 %v3453_v7, %s8030_s26  ;;  %v3557_v27 = vrot.slane %v3453_v7, 6 }
0x37a5   :  { %v3456_v9 = vpop.permute.xlu0 %3455 }
0x37a6   :  { %3458 = vst.msk [vmem:[#allocation3 + $0x8] sm:$0x3] %vm9437_vm13, %v3456_v9  ;;  %7309 = vmatmul.mubr.msk.f32.vlgmr.msra.gmra.mxu1 %vm518_vm14, %v3456_v9 }
0x37a7   :  { %7323 = vmatpush3.msra.mxu1 %v8700_v48  ;;  %7330 = vmatprep.mubr.msk.f32.mxu1 %vm8028_vm11, %v8027_v14 }
0x37a8   :  { %7324 = vmatprep.subr.mxu1 %v8027_v14 }
0x37a9   :  { %7325 = vmatpush3.msra.mxu1 %v8703_v28 }
0x37aa   :  { %7326 = vmatprep.subr.mxu1 %v8027_v14 }
0x37ab   :  { %7327 = vmatpush3.msra.mxu1 %v8709_v40 }
0x37ac   :  { %7328 = vmatprep.subr.mxu1 %v8027_v14 }
0x37ad   :  { %7329 = vmatpush3.msra.mxu1 %v8714_v20 }
0x37ae   :  { %7344 = vmatprep.subr.mxu1 %v8027_v14 }
0x3866   :  { %v3527_v22 = vpop.f32.mrf.mxu1 }
0x3867   :  { %v3528_v44 = vadd.f32 %v8746_v12, %v3527_v22 }
0x3868   :  { %v7310_v59 = vpop.f32.mrf.mxu1 }
0x3869   :  { %v3532_v11 = vrot.slane %v3528_v44, 6 }
0x386b   :  { %3541 = vrot.lane.b32.xlu1 %v3532_v11, %s8029_s25  ;;  %v3534_v60 = vadd.f32 %v3532_v11, %v8899_v3 }
0x386d   :  { %v6721_v61 = vmul.f32 -1.442695, %v3534_v60 }
0x386f   :  { %7794 = vpow2.f32 %v6721_v61 }
0x387c   :  { %v7795_v13 = vpop.eup %7794 }
0x387d   :  { %v3538_v18 = vadd.f32 1.0, %v7795_v13 }
0x387f   :  { %7796 = vrcp.f32 %v3538_v18 }
0x388c   :  { %v7797_v21 = vpop.eup %7796 }
0x388d   :  { %v3551_v34 = vsub.f32 1.0, %v7797_v21  ;;  %v3559_v29 = vmul.f32 %v7797_v21, %v3557_v27 }
0x38dd   :  { %v3542_v26 = vpop.permute.xlu1 %3541 }
0x38de   :  { %v3544_v55 = vmul.f32 %v7797_v21, %v3542_v26 }
0x38e0   :  { %3546 = vrot.lane.b32.xlu0 %v3544_v55, %s8029_s25 }
0x3952   :  { %v3547_v58 = vpop.permute.xlu0 %3546 }
0x3953   :  { %v3549_v24 = vadd.f32 %v3547_v58, %v8899_v3 }
0x3955   :  { %7798 = vtanh.f32 %v3549_v24 }
0x3962   :  { %v7799_v43 = vpop.eup %7798 }
0x3963   :  { %3553 = vrot.lane.b32.xlu1 %v7799_v43, %s8030_s26 }
0x39d5   :  { %v3554_v10 = vpop.permute.xlu1 %3553 }
0x39d6   :  { %v3556_v4 = vmul.f32 %v3554_v10, %v3551_v34 }
0x39d8   :  { %v8924_v30 = vadd.f32 %v3559_v29, %v3556_v4  ;;  %v8987_v29 = vadd.f32 %v8754_v33, %v8828_v39 }
0x39da   :  { %v3566_v41 = vrot.slane %v8924_v30, 2  ;;  %v3667_v8 = vrot.slane %v8924_v30, 6 }
0x39dc   :  { %3567 = vrot.lane.b32.xlu0 %v3566_v41, %s8030_s26 }
0x3a4e   :  { %v3568_v62 = vpop.permute.xlu0 %3567 }
0x3a4f   :  { %7320 = vmatmul.mubr.msk.f32.vlgmr.msra.gmra.mxu0 %vm518_vm14, %v3568_v62 }
0x3a50   :  { %7334 = vmatpush3.msra.mxu0 %v8700_v48  ;;  %7341 = vmatprep.mubr.msk.f32.mxu0 %vm8028_vm11, %v8027_v14 }
0x3a51   :  { %7335 = vmatprep.subr.mxu0 %v8027_v14 }
0x3a52   :  { %7336 = vmatpush3.msra.mxu0 %v8703_v28 }
0x3a53   :  { %7337 = vmatprep.subr.mxu0 %v8027_v14 }
0x3a54   :  { %7338 = vmatpush3.msra.mxu0 %v8709_v40 }
0x3a55   :  { %7339 = vmatprep.subr.mxu0 %v8027_v14 }
0x3a56   :  { %7340 = vmatpush3.msra.mxu0 %v8714_v20 }
0x3a57   :  { %7355 = vmatprep.subr.mxu0 %v8027_v14 }
0x3b0f   :  { %v3637_v54 = vpop.f32.mrf.mxu0 }
0x3b10   :  { %v3638_v1 = vadd.f32 %v8746_v12, %v3637_v54 }
0x3b11   :  { %v7321_v5 = vpop.f32.mrf.mxu0 }
0x3b12   :  { %v3642_v6 = vrot.slane %v3638_v1, 4 }
0x3b14   :  { %3651 = vrot.lane.b32.xlu1 %v3642_v6, %s8029_s25  ;;  %v3644_v45 = vadd.f32 %v3642_v6, %v8899_v3 }
0x3b16   :  { %v6723_v49 = vmul.f32 -1.442695, %v3644_v45 }
0x3b18   :  { %7800 = vpow2.f32 %v6723_v49 }
0x3b25   :  { %v7801_v46 = vpop.eup %7800 }
0x3b26   :  { %v3648_v32 = vadd.f32 1.0, %v7801_v46 }
0x3b28   :  { %7802 = vrcp.f32 %v3648_v32 }
0x3b35   :  { %v7803_v47 = vpop.eup %7802 }
0x3b36   :  { %v3661_v52 = vsub.f32 1.0, %v7803_v47  ;;  %v3669_v36 = vmul.f32 %v7803_v47, %v3667_v8 }
0x3b86   :  { %v3652_v50 = vpop.permute.xlu1 %3651 }
0x3b87   :  { %v3654_v17 = vmul.f32 %v7803_v47, %v3652_v50 }
0x3b89   :  { %3656 = vrot.lane.b32.xlu0 %v3654_v17, %s8029_s25 }
0x3bfb   :  { %v3657_v0 = vpop.permute.xlu0 %3656 }
0x3bfc   :  { %v3659_v57 = vadd.f32 %v3657_v0, %v8899_v3 }
0x3bfe   :  { %7804 = vtanh.f32 %v3659_v57 }
0x3c0b   :  { %v7805_v51 = vpop.eup %7804 }
0x3c0c   :  { %3663 = vrot.lane.b32.xlu1 %v7805_v51, %s8030_s26 }
0x3c7e   :  { %v3664_v53 = vpop.permute.xlu1 %3663 }
0x3c7f   :  { %v3666_v38 = vmul.f32 %v3664_v53, %v3661_v52 }
0x3c81   :  { %v8946_v31 = vadd.f32 %v3669_v36, %v3666_v38 }
0x3c83   :  { %v3676_v42 = vrot.slane %v8946_v31, 4  ;;  %v3777_v21 = vrot.slane %v8946_v31, 6 }
0x3c85   :  { %3677 = vrot.lane.b32.xlu0 %v3676_v42, %s8030_s26 }
0x3cf7   :  { %v3678_v63 = vpop.permute.xlu0 %3677 }
0x3cf8   :  { %7331 = vmatmul.mubr.msk.f32.vlgmr.msra.gmra.mxu1 %vm518_vm14, %v3678_v63 }
0x3cf9   :  { %7345 = vmatpush3.msra.mxu1 %v8700_v48  ;;  %7352 = vmatprep.mubr.msk.f32.mxu1 %vm8028_vm11, %v8027_v14 }
0x3cfa   :  { %7346 = vmatprep.subr.mxu1 %v8027_v14 }
0x3cfb   :  { %7347 = vmatpush3.msra.mxu1 %v8703_v28 }
0x3cfc   :  { %7348 = vmatprep.subr.mxu1 %v8027_v14 }
0x3cfd   :  { %7349 = vmatpush3.msra.mxu1 %v8709_v40 }
0x3cfe   :  { %7350 = vmatprep.subr.mxu1 %v8027_v14 }
0x3cff   :  { %7351 = vmatpush3.msra.mxu1 %v8714_v20 }
0x3d00   :  { %7366 = vmatprep.subr.mxu1 %v8027_v14 }
0x3db8   :  { %v3747_v37 = vpop.f32.mrf.mxu1 }
0x3db9   :  { %v3748_v23 = vadd.f32 %v8746_v12, %v3747_v37 }
0x3dba   :  { %v7332_v15 = vpop.f32.mrf.mxu1 }
0x3dbb   :  { %v3752_v16 = vrot.slane %v3748_v23, 2 }
0x3dbd   :  { %3761 = vrot.lane.b32.xlu1 %v3752_v16, %s8029_s25  ;;  %v3754_v19 = vadd.f32 %v3752_v16, %v8899_v3 }
0x3dbf   :  { %v6725_v7 = vmul.f32 -1.442695, %v3754_v19 }
0x3dc1   :  { %7806 = vpow2.f32 %v6725_v7 }
0x3dce   :  { %v7807_v9 = vpop.eup %7806 }
0x3dcf   :  { %v3758_v22 = vadd.f32 1.0, %v7807_v9 }
0x3dd1   :  { %7808 = vrcp.f32 %v3758_v22 }
0x3dde   :  { %v7809_v44 = vpop.eup %7808 }
0x3ddf   :  { %v3771_v18 = vsub.f32 1.0, %v7809_v44  ;;  %v3779_v55 = vmul.f32 %v7809_v44, %v3777_v21 }
0x3e2f   :  { %v3762_v59 = vpop.permute.xlu1 %3761 }
0x3e30   :  { %v3764_v11 = vmul.f32 %v7809_v44, %v3762_v59  ;;  %v9017_v44 = vld [vmem:[#allocation4 + $0x98] sm:$0xff]  ;;  %v9023_v59 = vld [vmem:[#allocation4 + $0x90] sm:$0xff] }
0x3e32   :  { %3766 = vrot.lane.b32.xlu0 %v3764_v11, %s8029_s25  ;;  %v9027_v11 = vld [vmem:[#allocation4 + $0x88] sm:$0xff] }
0x3ea4   :  { %v3767_v60 = vpop.permute.xlu0 %3766 }
0x3ea5   :  { %v3769_v61 = vadd.f32 %v3767_v60, %v8899_v3  ;;  %v9031_v60 = vld [vmem:[#allocation4 + $0x80] sm:$0xff] }
0x3ea7   :  { %7810 = vtanh.f32 %v3769_v61 }
0x3eb4   :  { %v7811_v13 = vpop.eup %7810 }
0x3eb5   :  { %3773 = vrot.lane.b32.xlu1 %v7811_v13, %s8030_s26 }
0x3f27   :  { %v3774_v26 = vpop.permute.xlu1 %3773 }
0x3f28   :  { %v3776_v58 = vmul.f32 %v3774_v26, %v3771_v18 }
0x3f2a   :  { %v8968_v24 = vadd.f32 %v3779_v55, %v3776_v58 }
0x3f2c   :  { %v3786_v43 = vrot.slane %v8968_v24, 6 }
0x3f2e   :  { %3787 = vrot.lane.b32.xlu0 %v3786_v43, %s8030_s26 }
0x3fa0   :  { %v3788_v27 = vpop.permute.xlu0 %3787 }
0x3fa1   :  { %7342 = vmatmul.mubr.msk.f32.vlgmr.msra.gmra.mxu0 %vm518_vm14, %v3788_v27 }
0x3fa2   :  { %7356 = vmatpush3.msra.mxu0 %v8700_v48  ;;  %7363 = vmatprep.mubr.msk.f32.mxu0 %vm8028_vm11, %v8027_v14 }
0x3fa3   :  { %7357 = vmatprep.subr.mxu0 %v8027_v14 }
0x3fa4   :  { %7358 = vmatpush3.msra.mxu0 %v8703_v28 }
0x3fa5   :  { %7359 = vmatprep.subr.mxu0 %v8027_v14 }
0x3fa6   :  { %7360 = vmatpush3.msra.mxu0 %v8709_v40 }
0x3fa7   :  { %7361 = vmatprep.subr.mxu0 %v8027_v14 }
0x3fa8   :  { %7362 = vmatpush3.msra.mxu0 %v8714_v20 }
0x3fa9   :  { %7377 = vmatprep.subr.mxu0 %v8027_v14 }
0x4061   :  { %v3857_v3 = vpop.f32.mrf.mxu0 }
0x4062   :  { %v3858_v34 = vadd.f32 %v8746_v12, %v3857_v3 }
0x4063   :  { %v7343_v10 = vpop.f32.mrf.mxu0 }
0x4064   :  { %3869 = vrot.lane.b32.xlu1 %v3858_v34, %s8029_s25  ;;  %v3861_v4 = vadd.f32 %v3858_v34, %v8987_v29 }
0x4066   :  { %v6727_v41 = vmul.f32 -1.442695, %v3861_v4 }
0x4068   :  { %7812 = vpow2.f32 %v6727_v41 }
0x4075   :  { %v7813_v62 = vpop.eup %7812 }
0x4076   :  { %v3865_v54 = vadd.f32 1.0, %v7813_v62 }
0x4078   :  { %7814 = vrcp.f32 %v3865_v54 }
0x4085   :  { %v7815_v1 = vpop.eup %7814 }
0x4086   :  { %v3879_v33 = vsub.f32 1.0, %v7815_v1  ;;  %v3886_v32 = vmul.f32 %v7815_v1, %v3786_v43 }
0x40d6   :  { %v3870_v5 = vpop.permute.xlu1 %3869 }
0x40d7   :  { %v3872_v6 = vmul.f32 %v7815_v1, %v3870_v5 }
0x40d9   :  { %3874 = vrot.lane.b32.xlu0 %v3872_v6, %s8029_s25 }
0x414b   :  { %v3875_v45 = vpop.permute.xlu0 %3874 }
0x414c   :  { %v3877_v49 = vadd.f32 %v3875_v45, %v8987_v29 }
0x414e   :  { %7816 = vtanh.f32 %v3877_v49 }
0x415b   :  { %v7817_v46 = vpop.eup %7816 }
0x415c   :  { %3881 = vrot.lane.b32.xlu1 %v7817_v46, %s8030_s26 }
0x41ce   :  { %v3882_v39 = vpop.permute.xlu1 %3881 }
0x41cf   :  { %v3884_v47 = vmul.f32 %v3882_v39, %v3879_v33 }
0x41d1   :  { %v3887_v50 = vadd.f32 %v3886_v32, %v3884_v47 }
0x41d3   :  { %3889 = vrot.lane.b32.xlu0 %v3887_v50, %s8030_s26  ;;  %v3991_v37 = vrot.slane %v3887_v50, 6 }
0x4245   :  { %v3890_v17 = vpop.permute.xlu0 %3889 }
0x4246   :  { %3892 = vst.msk [vmem:[#allocation3 + $0x10] sm:$0x3] %vm9438_vm0, %v3890_v17  ;;  %7353 = vmatmul.mubr.msk.f32.vlgmr.msra.gmra.mxu1 %vm518_vm14, %v3890_v17 }
0x4247   :  { %7367 = vmatpush3.msra.mxu1 %v8700_v48  ;;  %7374 = vmatprep.mubr.msk.f32.mxu1 %vm8028_vm11, %v8027_v14 }
0x4248   :  { %7368 = vmatprep.subr.mxu1 %v8027_v14 }
0x4249   :  { %7369 = vmatpush3.msra.mxu1 %v8703_v28 }
0x424a   :  { %7370 = vmatprep.subr.mxu1 %v8027_v14 }
0x424b   :  { %7371 = vmatpush3.msra.mxu1 %v8709_v40 }
0x424c   :  { %7372 = vmatprep.subr.mxu1 %v8027_v14 }
0x424d   :  { %7373 = vmatpush3.msra.mxu1 %v8714_v20 }
0x424e   :  { %7388 = vmatprep.subr.mxu1 %v8027_v14 }
0x4306   :  { %v3961_v0 = vpop.f32.mrf.mxu1 }
0x4307   :  { %v3962_v48 = vadd.f32 %v8746_v12, %v3961_v0 }
0x4308   :  { %v7354_v57 = vpop.f32.mrf.mxu1 }
0x4309   :  { %v3966_v51 = vrot.slane %v3962_v48, 6 }
0x430b   :  { %3975 = vrot.lane.b32.xlu1 %v3966_v51, %s8029_s25  ;;  %v3968_v52 = vadd.f32 %v3966_v51, %v8987_v29 }
0x430d   :  { %v6729_v28 = vmul.f32 -1.442695, %v3968_v52 }
0x430f   :  { %7818 = vpow2.f32 %v6729_v28 }
0x431c   :  { %v7819_v8 = vpop.eup %7818 }
0x431d   :  { %v3972_v53 = vadd.f32 1.0, %v7819_v8 }
0x431f   :  { %7820 = vrcp.f32 %v3972_v53 }
0x432c   :  { %v7821_v40 = vpop.eup %7820 }
0x432d   :  { %v3985_v23 = vsub.f32 1.0, %v7821_v40  ;;  %v3993_v16 = vmul.f32 %v7821_v40, %v3991_v37 }
0x437d   :  { %v3976_v36 = vpop.permute.xlu1 %3975 }
0x437e   :  { %v3978_v38 = vmul.f32 %v7821_v40, %v3976_v36 }
0x4380   :  { %3980 = vrot.lane.b32.xlu0 %v3978_v38, %s8029_s25 }
0x43f2   :  { %v3981_v20 = vpop.permute.xlu0 %3980 }
0x43f3   :  { %v3983_v42 = vadd.f32 %v3981_v20, %v8987_v29 }
0x43f5   :  { %7822 = vtanh.f32 %v3983_v42 }
0x4402   :  { %v7823_v63 = vpop.eup %7822 }
0x4403   :  { %3987 = vrot.lane.b32.xlu1 %v7823_v63, %s8030_s26 }
0x4475   :  { %v3988_v15 = vpop.permute.xlu1 %3987 }
0x4476   :  { %v3990_v19 = vmul.f32 %v3988_v15, %v3985_v23  ;;  %v9078_v23 = vld [vmem:[#allocation4 + $0xa8] ss:$0 sm:$0xff] }
0x4478   :  { %v9012_v7 = vadd.f32 %v3993_v16, %v3990_v19  ;;  %v7973_v19 = vld [vmem:[#allocation4 + $0xa0] ss:$0 sm:$0xff] }
0x447a   :  { %v4000_v9 = vrot.slane %v9012_v7, 2  ;;  %v4101_v54 = vrot.slane %v9012_v7, 6 }
0x447c   :  { %4001 = vrot.lane.b32.xlu0 %v4000_v9, %s8030_s26  ;;  %v9083_v9 = vadd.f32 %v7973_v19, %v8826_v35 }
0x44ee   :  { %v4002_v22 = vpop.permute.xlu0 %4001 }
0x44ef   :  { %7364 = vmatmul.mubr.msk.f32.vlgmr.msra.gmra.mxu0 %vm518_vm14, %v4002_v22 }
0x44f0   :  { %7378 = vmatpush3.msra.mxu0 %v9017_v44  ;;  %7385 = vmatprep.mubr.msk.f32.mxu0 %vm8028_vm11, %v8027_v14 }
0x44f1   :  { %7379 = vmatprep.subr.mxu0 %v8027_v14 }
0x44f2   :  { %7380 = vmatpush3.msra.mxu0 %v9023_v59 }
0x44f3   :  { %7381 = vmatprep.subr.mxu0 %v8027_v14 }
0x44f4   :  { %7382 = vmatpush3.msra.mxu0 %v9027_v11 }
0x44f5   :  { %7383 = vmatprep.subr.mxu0 %v8027_v14 }
0x44f6   :  { %7384 = vmatpush3.msra.mxu0 %v9031_v60 }
0x44f7   :  { %7399 = vmatprep.subr.mxu0 %v8027_v14 }
0x45af   :  { %v4071_v61 = vpop.f32.mrf.mxu0 }
0x45b0   :  { %v4072_v13 = vadd.f32 %v8746_v12, %v4071_v61 }
0x45b1   :  { %v7365_v18 = vpop.f32.mrf.mxu0 }
0x45b2   :  { %v4076_v21 = vrot.slane %v4072_v13, 4 }
0x45b4   :  { %4085 = vrot.lane.b32.xlu1 %v4076_v21, %s8029_s25  ;;  %v4078_v26 = vadd.f32 %v4076_v21, %v8987_v29 }
0x45b6   :  { %v6731_v55 = vmul.f32 -1.442695, %v4078_v26 }
0x45b8   :  { %7824 = vpow2.f32 %v6731_v55 }
0x45c5   :  { %v7825_v58 = vpop.eup %7824 }
0x45c6   :  { %v4082_v43 = vadd.f32 1.0, %v7825_v58 }
0x45c8   :  { %7826 = vrcp.f32 %v4082_v43 }
0x45d5   :  { %v7827_v27 = vpop.eup %7826 }
0x45d6   :  { %v4095_v62 = vsub.f32 1.0, %v7827_v27  ;;  %v4103_v5 = vmul.f32 %v7827_v27, %v4101_v54 }
0x4626   :  { %v4086_v3 = vpop.permute.xlu1 %4085 }
0x4627   :  { %v4088_v34 = vmul.f32 %v7827_v27, %v4086_v3 }
0x4629   :  { %4090 = vrot.lane.b32.xlu0 %v4088_v34, %s8029_s25 }
0x469b   :  { %v4091_v10 = vpop.permute.xlu0 %4090 }
0x469c   :  { %v4093_v4 = vadd.f32 %v4091_v10, %v8987_v29 }
0x469e   :  { %7828 = vtanh.f32 %v4093_v4 }
0x46ab   :  { %v7829_v41 = vpop.eup %7828 }
0x46ac   :  { %4097 = vrot.lane.b32.xlu1 %v7829_v41, %s8030_s26 }
0x471e   :  { %v4098_v1 = vpop.permute.xlu1 %4097 }
0x471f   :  { %v4100_v6 = vmul.f32 %v4098_v1, %v4095_v62 }
0x4721   :  { %v9042_v45 = vadd.f32 %v4103_v5, %v4100_v6 }
0x4723   :  { %v4110_v49 = vrot.slane %v9042_v45, 4  ;;  %v4211_v40 = vrot.slane %v9042_v45, 6 }
0x4725   :  { %4111 = vrot.lane.b32.xlu0 %v4110_v49, %s8030_s26 }
0x4797   :  { %v4112_v46 = vpop.permute.xlu0 %4111 }
0x4798   :  { %7375 = vmatmul.mubr.msk.f32.vlgmr.msra.gmra.mxu1 %vm518_vm14, %v4112_v46 }
0x4799   :  { %7389 = vmatpush3.msra.mxu1 %v9017_v44  ;;  %7396 = vmatprep.mubr.msk.f32.mxu1 %vm8028_vm11, %v8027_v14 }
0x479a   :  { %7390 = vmatprep.subr.mxu1 %v8027_v14 }
0x479b   :  { %7391 = vmatpush3.msra.mxu1 %v9023_v59 }
0x479c   :  { %7392 = vmatprep.subr.mxu1 %v8027_v14 }
0x479d   :  { %7393 = vmatpush3.msra.mxu1 %v9027_v11 }
0x479e   :  { %7394 = vmatprep.subr.mxu1 %v8027_v14 }
0x479f   :  { %7395 = vmatpush3.msra.mxu1 %v9031_v60 }
0x47a0   :  { %7410 = vmatprep.subr.mxu1 %v8027_v14 }
0x4858   :  { %v4181_v33 = vpop.f32.mrf.mxu1 }
0x4859   :  { %v4182_v39 = vadd.f32 %v8746_v12, %v4181_v33 }
0x485a   :  { %v7376_v32 = vpop.f32.mrf.mxu1 }
0x485b   :  { %v4186_v47 = vrot.slane %v4182_v39, 2 }
0x485d   :  { %4195 = vrot.lane.b32.xlu1 %v4186_v47, %s8029_s25  ;;  %v4188_v50 = vadd.f32 %v4186_v47, %v8987_v29 }
0x485f   :  { %v6733_v17 = vmul.f32 -1.442695, %v4188_v50 }
0x4861   :  { %7830 = vpow2.f32 %v6733_v17 }
0x486e   :  { %v7831_v0 = vpop.eup %7830 }
0x486f   :  { %v4192_v48 = vadd.f32 1.0, %v7831_v0 }
0x4871   :  { %7832 = vrcp.f32 %v4192_v48 }
0x487e   :  { %v7833_v57 = vpop.eup %7832 }
0x487f   :  { %v4205_v53 = vsub.f32 1.0, %v7833_v57  ;;  %v4213_v38 = vmul.f32 %v7833_v57, %v4211_v40 }
0x48cf   :  { %v4196_v51 = vpop.permute.xlu1 %4195 }
0x48d0   :  { %v4198_v52 = vmul.f32 %v7833_v57, %v4196_v51 }
0x48d2   :  { %4200 = vrot.lane.b32.xlu0 %v4198_v52, %s8029_s25 }
0x4944   :  { %v4201_v28 = vpop.permute.xlu0 %4200 }
0x4945   :  { %v4203_v8 = vadd.f32 %v4201_v28, %v8987_v29 }
0x4947   :  { %7834 = vtanh.f32 %v4203_v8 }
0x4954   :  { %v7835_v12 = vpop.eup %7834 }
0x4955   :  { %4207 = vrot.lane.b32.xlu1 %v7835_v12, %s8030_s26 }
0x49c7   :  { %v4208_v36 = vpop.permute.xlu1 %4207 }
0x49c8   :  { %v4210_v20 = vmul.f32 %v4208_v36, %v4205_v53 }
0x49ca   :  { %v9064_v42 = vadd.f32 %v4213_v38, %v4210_v20 }
0x49cc   :  { %v4220_v63 = vrot.slane %v9064_v42, 6 }
0x49ce   :  { %4221 = vrot.lane.b32.xlu0 %v4220_v63, %s8030_s26 }
0x4a40   :  { %v4222_v37 = vpop.permute.xlu0 %4221 }
0x4a41   :  { %7386 = vmatmul.mubr.msk.f32.vlgmr.msra.gmra.mxu0 %vm518_vm14, %v4222_v37 }
0x4a42   :  { %7400 = vmatpush3.msra.mxu0 %v9017_v44  ;;  %7407 = vmatprep.mubr.msk.f32.mxu0 %vm8028_vm11, %v8027_v14 }
0x4a43   :  { %7401 = vmatprep.subr.mxu0 %v8027_v14 }
0x4a44   :  { %7402 = vmatpush3.msra.mxu0 %v9023_v59 }
0x4a45   :  { %7403 = vmatprep.subr.mxu0 %v8027_v14 }
0x4a46   :  { %7404 = vmatpush3.msra.mxu0 %v9027_v11 }
0x4a47   :  { %7405 = vmatprep.subr.mxu0 %v8027_v14 }
0x4a48   :  { %7406 = vmatpush3.msra.mxu0 %v9031_v60 }
0x4b01   :  { %v4291_v29 = vpop.f32.mrf.mxu0 }
0x4b02   :  { %v4292_v15 = vadd.f32 %v9078_v23, %v4291_v29 }
0x4b03   :  { %v7387_v16 = vpop.f32.mrf.mxu0 }
0x4b04   :  { %4303 = vrot.lane.b32.xlu1 %v4292_v15, %s8029_s25  ;;  %v4295_v22 = vadd.f32 %v4292_v15, %v9083_v9 }
0x4b06   :  { %v6735_v61 = vmul.f32 -1.442695, %v4295_v22 }
0x4b08   :  { %7836 = vpow2.f32 %v6735_v61 }
0x4b15   :  { %v7837_v13 = vpop.eup %7836 }
0x4b16   :  { %v4299_v18 = vadd.f32 1.0, %v7837_v13 }
0x4b18   :  { %7838 = vrcp.f32 %v4299_v18 }
0x4b25   :  { %v7839_v21 = vpop.eup %7838 }
0x4b26   :  { %v4313_v35 = vsub.f32 1.0, %v7839_v21  ;;  %v4320_v34 = vmul.f32 %v7839_v21, %v4220_v63 }
0x4b76   :  { %v4304_v26 = vpop.permute.xlu1 %4303 }
0x4b77   :  { %v4306_v55 = vmul.f32 %v7839_v21, %v4304_v26 }
0x4b79   :  { %4308 = vrot.lane.b32.xlu0 %v4306_v55, %s8029_s25 }
0x4beb   :  { %v4309_v58 = vpop.permute.xlu0 %4308 }
0x4bec   :  { %v4311_v43 = vadd.f32 %v4309_v58, %v9083_v9 }
0x4bee   :  { %7840 = vtanh.f32 %v4311_v43  ;;  %v4660_v43 = vld [vmem:[#allocation4 + $0xc0] sm:$0xff] }
0x4bfb   :  { %v7841_v27 = vpop.eup %7840 }
0x4bfc   :  { %4315 = vrot.lane.b32.xlu1 %v7841_v27, %s8030_s26  ;;  %v4658_v27 = vld [vmem:[#allocation4 + $0xb0] sm:$0xff] }
0x4c6e   :  { %v4316_v3 = vpop.permute.xlu1 %4315 }
0x4c6f   :  { %v4318_v10 = vmul.f32 %v4316_v3, %v4313_v35  ;;  %v9140_v3 = vld [vmem:[#allocation4 + $0xd8] sm:$0xff] }
0x4c71   :  { %v4321_v4 = vadd.f32 %v4320_v34, %v4318_v10 }
0x4c73   :  { %4323 = vrot.lane.b32.xlu0 %v4321_v4, %s8030_s26  ;;  %v4425_v47 = vrot.slane %v4321_v4, 6 }
0x4ce5   :  { %v4324_v41 = vpop.permute.xlu0 %4323 }
0x4ce6   :  { %4326 = vst.msk [vmem:[#allocation3 + $0x18] sm:$0x3] %vm9439_vm1, %v4324_v41  ;;  %7397 = vmatmul.mubr.msk.f32.vlgmr.msra.gmra.mxu1 %vm518_vm14, %v4324_v41 }
0x4ce7   :  { %7411 = vmatpush3.msra.mxu1 %v9017_v44  ;;  %7418 = vmatprep.mubr.msk.f32.mxu1 %vm8028_vm11, %v8027_v14 }
0x4ce8   :  { %7412 = vmatprep.subr.mxu1 %v8027_v14 }
0x4ce9   :  { %7413 = vmatpush3.msra.mxu1 %v9023_v59 }
0x4cea   :  { %7414 = vmatprep.subr.mxu1 %v8027_v14 }
0x4ceb   :  { %7415 = vmatpush3.msra.mxu1 %v9027_v11 }
0x4cec   :  { %7416 = vmatprep.subr.mxu1 %v8027_v14 }
0x4ced   :  { %7417 = vmatpush3.msra.mxu1 %v9031_v60 }
0x4cee   :  { %7435 = vmatprep.subr.mxu1 %v8027_v14 }
0x4da6   :  { %v4395_v62 = vpop.f32.mrf.mxu1 }
0x4da7   :  { %v4396_v44 = vadd.f32 %v9078_v23, %v4395_v62 }
0x4da8   :  { %v7398_v54 = vpop.f32.mrf.mxu1 }
0x4da9   :  { %v4400_v1 = vrot.slane %v4396_v44, 6  ;;  %v9167_v54 = vld [vmem:[#allocation4 + $0xe8] ss:$0 sm:$0xff] }
0x4dab   :  { %4409 = vrot.lane.b32.xlu1 %v4400_v1, %s8029_s25  ;;  %v4402_v5 = vadd.f32 %v4400_v1, %v9083_v9 }
0x4dad   :  { %v6737_v59 = vmul.f32 -1.442695, %v4402_v5 }
0x4daf   :  { %7842 = vpow2.f32 %v6737_v59 }
0x4dbc   :  { %v7843_v6 = vpop.eup %7842 }
0x4dbd   :  { %v4406_v49 = vadd.f32 1.0, %v7843_v6 }
0x4dbf   :  { %7844 = vrcp.f32 %v4406_v49 }
0x4dcc   :  { %v7845_v11 = vpop.eup %7844 }
0x4dcd   :  { %v4419_v50 = vsub.f32 1.0, %v7845_v11  ;;  %v4427_v0 = vmul.f32 %v7845_v11, %v4425_v47 }
0x4e1d   :  { %v4410_v46 = vpop.permute.xlu1 %4409 }
0x4e1e   :  { %v4412_v33 = vmul.f32 %v7845_v11, %v4410_v46  ;;  %v9173_v11 = vld [vmem:[#allocation4 + $0xe0] ss:$0 sm:$0xff] }
0x4e20   :  { %4414 = vrot.lane.b32.xlu0 %v4412_v33, %s8029_s25 }
0x4e92   :  { %v4415_v60 = vpop.permute.xlu0 %4414 }
0x4e93   :  { %v4417_v39 = vadd.f32 %v4415_v60, %v9083_v9 }
0x4e95   :  { %7846 = vtanh.f32 %v4417_v39 }
0x4ea2   :  { %v7847_v32 = vpop.eup %7846 }
0x4ea3   :  { %4421 = vrot.lane.b32.xlu1 %v7847_v32, %s8030_s26 }
0x4f15   :  { %v4422_v17 = vpop.permute.xlu1 %4421 }
0x4f16   :  { %v4424_v48 = vmul.f32 %v4422_v17, %v4419_v50 }
0x4f18   :  { %v9108_v57 = vadd.f32 %v4427_v0, %v4424_v48 }
0x4f1a   :  { %v4434_v51 = vrot.slane %v9108_v57, 2  ;;  %v4535_v61 = vrot.slane %v9108_v57, 6 }
0x4f1c   :  { %4435 = vrot.lane.b32.xlu0 %v4434_v51, %s8030_s26 }
0x4f8e   :  { %v4436_v52 = vpop.permute.xlu0 %4435 }
0x4f8f   :  { %7408 = vmatmul.mubr.msk.f32.vlgmr.msra.gmra.mxu0 %vm518_vm14, %v4436_v52 }
0x504f   :  { %v4505_v28 = vpop.f32.mrf.mxu0 }
0x5050   :  { %v4506_v8 = vadd.f32 %v9078_v23, %v4505_v28 }
0x5051   :  { %v7409_v12 = vpop.f32.mrf.mxu0 }
0x5052   :  { %v4510_v53 = vrot.slane %v4506_v8, 4 }
0x5054   :  { %4519 = vrot.lane.b32.xlu1 %v4510_v53, %s8029_s25  ;;  %v4512_v40 = vadd.f32 %v4510_v53, %v9083_v9 }
0x5056   :  { %v6739_v36 = vmul.f32 -1.442695, %v4512_v40 }
0x5058   :  { %7848 = vpow2.f32 %v6739_v36 }
0x5065   :  { %v7849_v38 = vpop.eup %7848 }
0x5066   :  { %v4516_v20 = vadd.f32 1.0, %v7849_v38 }
0x5068   :  { %7850 = vrcp.f32 %v4516_v20 }
0x5075   :  { %v7851_v63 = vpop.eup %7850 }
0x5076   :  { %v4529_v22 = vsub.f32 1.0, %v7851_v63  ;;  %v4537_v18 = vmul.f32 %v7851_v63, %v4535_v61 }
0x50c6   :  { %v4520_v37 = vpop.permute.xlu1 %4519 }
0x50c7   :  { %v4522_v29 = vmul.f32 %v7851_v63, %v4520_v37 }
0x50c9   :  { %4524 = vrot.lane.b32.xlu0 %v4522_v29, %s8029_s25 }
0x513b   :  { %v4525_v15 = vpop.permute.xlu0 %4524 }
0x513c   :  { %v4527_v16 = vadd.f32 %v4525_v15, %v9083_v9 }
0x513e   :  { %7852 = vtanh.f32 %v4527_v16 }
0x514b   :  { %v7853_v19 = vpop.eup %7852 }
0x514c   :  { %4531 = vrot.lane.b32.xlu1 %v7853_v19, %s8030_s26 }
0x5150   :  { %3128 = vrot.lane.b32.xlu1 %v8836_v2, %s8030_s26  ;;  %v4661_v2 = vld [vmem:[#allocation4 + $0xc8] sm:$0xff] }
0x5151   :  { %7421 = vmatprep.subr.mxu0 %v4661_v2 }
0x5152   :  { %7422 = vmatpush3.msra.mxu0 %v4661_v2 }
0x5153   :  { %7423 = vmatprep.subr.mxu0 %v4660_v43 }
0x5154   :  { %3348 = vrot.lane.b32.xlu1 %v8880_v25, %s8030_s26  ;;  %7424 = vmatpush3.msra.mxu0 %v4660_v43 }
0x5158   :  { %3672 = vrot.lane.b32.xlu1 %v8946_v31, %s8030_s26  ;;  %v4659_v31 = vld [vmem:[#allocation4 + $0xb8] sm:$0xff] }
0x5159   :  { %7425 = vmatprep.subr.mxu0 %v4659_v31 }
0x515a   :  { %7426 = vmatpush3.msra.mxu0 %v4659_v31 }
0x515b   :  { %7427 = vmatprep.subr.mxu0 %v4658_v27 }
0x515c   :  { %7428 = vmatpush3.msra.mxu0 %v4658_v27 }
0x515d   :  { %7456 = vmatprep.subr.mxu0 %v8027_v14 }
0x51be   :  { %v4532_v13 = vpop.permute.xlu1 %4531 }
0x51bf   :  { %v4534_v21 = vmul.f32 %v4532_v13, %v4529_v22 }
0x51c1   :  { %v9126_v26 = vadd.f32 %v4537_v18, %v4534_v21 }
0x51c2   :  { %v3129_v55 = vpop.permute.xlu1 %3128 }
0x51c3   :  { %v4544_v58 = vrot.slane %v9126_v26, 4  ;;  %3131 = vst.msk [vmem:[#allocation3] sm:$0xc] %vm937_vm10, %v3129_v55 }
0x51c5   :  { %4545 = vrot.lane.b32.xlu0 %v4544_v58, %s8030_s26 }
0x51c6   :  { %v3349_v25 = vpop.permute.xlu1 %3348 }
0x51c7   :  { %3351 = vst.msk [vmem:[#allocation3] sm:$0xc0] %vm1517_vm9, %v3349_v25 }
0x51c9   :  { %3238 = vrot.lane.b32.xlu0 %v8858_v56, %s8030_s26  ;;  %v9143_v56 = vld [vmem:[#allocation4 + $0xd0] sm:$0xff] }
0x51ca   :  { %v3673_v35 = vpop.permute.xlu1 %3672 }
0x51cb   :  { %3675 = vst.msk [vmem:[#allocation3 + $0x8] sm:$0x30] %vm1227_vm12, %v3673_v35 }
0x51cd   :  { %3562 = vrot.lane.b32.xlu0 %v8924_v30, %s8030_s26 }
0x51d1   :  { %3782 = vrot.lane.b32.xlu0 %v8968_v24, %s8030_s26 }
0x5237   :  { %v4546_v34 = vpop.permute.xlu0 %4545 }
0x5238   :  { %7419 = vmatmul.mubr.msk.f32.vlgmr.msra.gmra.mxu1 %vm518_vm14, %v4546_v34 }
0x5239   :  { %7436 = vmatpush3.msra.mxu1 %v9140_v3  ;;  %7439 = vmatprep.mubr.msk.f32.mxu1 %vm8028_vm11, %v8027_v14 }
0x523a   :  { %7437 = vmatprep.subr.mxu1 %v8027_v14 }
0x523b   :  { %7438 = vmatpush3.msra.mxu1 %v9143_v56  ;;  %v3239_v30 = vpop.permute.xlu0 %3238 }
0x523c   :  { %3241 = vst.msk [vmem:[#allocation3] sm:$0x30] %vm1227_vm12, %v3239_v30  ;;  %7440 = vmatmul.mubr.f32.vlgmr.msra.gmra.mxu1 %v8027_v14  ;;  %7442 = vmatprep.subr.mxu1 %v8027_v14 }
0x523d   :  { %7443 = vmatpush3.msra.mxu1 %v9140_v3  ;;  %7446 = vmatprep.mubr.msk.f32.mxu1 %vm8028_vm11, %v8027_v14 }
0x523e   :  { %7444 = vmatprep.subr.mxu1 %v8027_v14 }
0x523f   :  { %v3563_v24 = vpop.permute.xlu0 %3562  ;;  %7445 = vmatpush3.msra.mxu1 %v9143_v56 }
0x5240   :  { %3565 = vst.msk [vmem:[#allocation3 + $0x8] sm:$0xc] %vm937_vm10, %v3563_v24  ;;  %7449 = vmatprep.subr.mxu1 %v8027_v14 }
0x5243   :  { %v3783_v10 = vpop.permute.xlu0 %3782  ;;  %v4654_v4 = vld [vmem:[#allocation3] sm:$0xff] }
0x5244   :  { %3785 = vst.msk [vmem:[#allocation3 + $0x8] sm:$0xc0] %vm1517_vm9, %v3783_v10  ;;  %7429 = vmatprep.mubr.msk.f32.mxu0 %vm518_vm14, %v4654_v4 }
0x524b   :  { %v4655_v41 = vld [vmem:[#allocation3 + $0x8] sm:$0xff] }
0x524c   :  { %7430 = vmatmul.mubr.msk.f32.vlgmr.msra.gmra.mxu0 %vm518_vm14, %v4655_v41 }
0x524d   :  { %7457 = vmatpush3.msra.mxu0 %v9140_v3 }
0x524e   :  { %7458 = vmatprep.subr.mxu0 %v8027_v14 }
0x524f   :  { %7459 = vmatpush3.msra.mxu0 %v9143_v56 }
0x5250   :  { %7470 = vmatprep.subr.mxu0 %v8027_v14 }
0x52f8   :  { %v4615_v62 = vpop.f32.mrf.mxu1 }
0x52f9   :  { %v4616_v21 = vadd.f32 %v9078_v23, %v4615_v62 }
0x52fa   :  { %v7420_v44 = vpop.f32.mrf.mxu1 }
0x52fb   :  { %v4620_v58 = vrot.slane %v4616_v21, 2 }
0x52fc   :  { %v4840_v1 = vpop.f32.mrf.mxu1 }
0x52fd   :  { %v4841_v5 = vadd.f32 %v9167_v54, %v4840_v1  ;;  %v4622_v2 = vadd.f32 %v4620_v58, %v9083_v9 }
0x52fe   :  { %v7441_v59 = vpop.f32.mrf.mxu1 }
0x52ff   :  { %4852 = vrot.lane.b32.xlu1 %v4841_v5, %s8030_s26  ;;  %v6741_v43 = vmul.f32 -1.442695, %v4622_v2 }
0x530c   :  { %v9171_v6 = vpop.f32.mrf.mxu0 }
0x530e   :  { %v4748_v49 = vpop.f32.mrf.mxu0 }
0x530f   :  { %v9176_v46 = vadd.f32 %v9173_v11, %v4748_v49 }
0x5311   :  { %v4844_v33 = vadd.f32 %v4841_v5, %v9176_v46 }
0x5313   :  { %v6748_v60 = vmul.f32 -1.442695, %v4844_v33 }
0x5315   :  { %7854 = vpow2.f32 %v6748_v60 }
0x5322   :  { %v7855_v39 = vpop.eup %7854 }
0x5323   :  { %v4848_v32 = vadd.f32 1.0, %v7855_v39 }
0x5325   :  { %7856 = vrcp.f32 %v4848_v32 }
0x5332   :  { %v7857_v47 = vpop.eup %7856 }
0x5333   :  { %v4862_v52 = vsub.f32 1.0, %v7857_v47  ;;  %v4868_v8 = vmul.f32 0.0, %v7857_v47 }
0x5371   :  { %v4853_v50 = vpop.permute.xlu1 %4852 }
0x5372   :  { %v4855_v17 = vmul.f32 %v7857_v47, %v4853_v50 }
0x5374   :  { %4857 = vrot.lane.b32.xlu0 %v4855_v17, %s8031_s27 }
0x53e6   :  { %v4858_v0 = vpop.permute.xlu0 %4857 }
0x53e7   :  { %v4860_v48 = vadd.f32 %v4858_v0, %v9176_v46 }
0x53e9   :  { %7858 = vtanh.f32 %v4860_v48 }
0x53f6   :  { %v7859_v51 = vpop.eup %7858 }
0x53f7   :  { %4864 = vrot.lane.b32.xlu1 %v7859_v51, %s8032_s28 }
0x5469   :  { %v4865_v28 = vpop.permute.xlu1 %4864 }
0x546a   :  { %v4867_v12 = vmul.f32 %v4865_v28, %v4862_v52 }
0x546c   :  { %v4869_v53 = vadd.f32 %v4868_v8, %v4867_v12 }
0x546e   :  { %4871 = vrot.lane.b32.xlu0 %v4869_v53, %s8032_s28  ;;  %v4971_v27 = vrot.slane %v4869_v53, 6 }
0x54e0   :  { %v4872_v40 = vpop.permute.xlu0 %4871 }
0x54e1   :  { %7447 = vmatmul.mubr.msk.f32.vlgmr.msra.gmra.mxu1 %vm4771_vm2, %v4872_v40  ;;  %v4645_v40 = vrot.slane %v9126_v26, 6 }
0x54e2   :  { %7450 = vmatpush3.msra.mxu1 %v9140_v3  ;;  %7453 = vmatprep.mubr.msk.f32.mxu1 %vm8028_vm11, %v8027_v14 }
0x54e3   :  { %7451 = vmatprep.subr.mxu1 %v8027_v14 }
0x54e4   :  { %7452 = vmatpush3.msra.mxu1 %v9143_v56 }
0x54e5   :  { %7463 = vmatprep.subr.mxu1 %v8027_v14 }
0x55a1   :  { %v4941_v36 = vpop.f32.mrf.mxu1 }
0x55a2   :  { %v4942_v38 = vadd.f32 %v9167_v54, %v4941_v36 }
0x55a3   :  { %v7448_v20 = vpop.f32.mrf.mxu1 }
0x55a4   :  { %v4946_v63 = vrot.slane %v4942_v38, 6 }
0x55a6   :  { %4955 = vrot.lane.b32.xlu1 %v4946_v63, %s8030_s26  ;;  %v4948_v37 = vadd.f32 %v4946_v63, %v9176_v46 }
0x55a8   :  { %v6750_v29 = vmul.f32 -1.442695, %v4948_v37 }
0x55aa   :  { %7860 = vpow2.f32 %v6750_v29 }
0x55b7   :  { %v7861_v15 = vpop.eup %7860 }
0x55b8   :  { %v4952_v16 = vadd.f32 1.0, %v7861_v15 }
0x55ba   :  { %7862 = vrcp.f32 %v4952_v16 }
0x55c7   :  { %v7863_v19 = vpop.eup %7862 }
0x55c8   :  { %v4965_v35 = vsub.f32 1.0, %v7863_v19  ;;  %v4973_v24 = vmul.f32 %v7863_v19, %v4971_v27 }
0x5618   :  { %v4956_v22 = vpop.permute.xlu1 %4955 }
0x5619   :  { %v4958_v61 = vmul.f32 %v7863_v19, %v4956_v22 }
0x561b   :  { %4960 = vrot.lane.b32.xlu0 %v4958_v61, %s8031_s27 }
0x568d   :  { %v4961_v13 = vpop.permute.xlu0 %4960 }
0x568e   :  { %v4963_v18 = vadd.f32 %v4961_v13, %v9176_v46 }
0x5690   :  { %7864 = vtanh.f32 %v4963_v18 }
0x5691   :  { %7866 = vpow2.f32 %v6741_v43 }
0x569d   :  { %v7865_v55 = vpop.eup %7864 }
0x569e   :  { %4967 = vrot.lane.b32.xlu1 %v7865_v55, %s8032_s28  ;;  %v7867_v25 = vpop.eup %7866 }
0x569f   :  { %v4626_v31 = vadd.f32 1.0, %v7867_v25 }
0x56a1   :  { %7868 = vrcp.f32 %v4626_v31 }
0x56a2   :  { %4629 = vrot.lane.b32.xlu1 %v4620_v58, %s8029_s25 }
0x56ae   :  { %v7869_v23 = vpop.eup %7868 }
0x56af   :  { %v4639_v53 = vsub.f32 1.0, %v7869_v23  ;;  %v4647_v38 = vmul.f32 %v7869_v23, %v4645_v40 }
0x5710   :  { %v4968_v34 = vpop.permute.xlu1 %4967 }
0x5711   :  { %v4970_v30 = vmul.f32 %v4968_v34, %v4965_v35 }
0x5713   :  { %v4974_v10 = vadd.f32 %v4973_v24, %v4970_v30 }
0x5714   :  { %v4630_v4 = vpop.permute.xlu1 %4629 }
0x5715   :  { %v4976_v41 = vrot.slane %v4974_v10, 2  ;;  %v4632_v62 = vmul.f32 %v7869_v23, %v4630_v4  ;;  %v5077_v63 = vrot.slane %v4974_v10, 6 }
0x5717   :  { %4634 = vrot.lane.b32.xlu1 %v4632_v62, %s8029_s25  ;;  %4977 = vrot.lane.b32.xlu0 %v4976_v41, %s8032_s28 }
0x5789   :  { %v4635_v44 = vpop.permute.xlu1 %4634  ;;  %v4978_v1 = vpop.permute.xlu0 %4977 }
0x578a   :  { %v4637_v5 = vadd.f32 %v4635_v44, %v9083_v9  ;;  %7454 = vmatmul.mubr.msk.f32.vlgmr.msra.gmra.mxu1 %vm4771_vm2, %v4978_v1 }
0x578b   :  { %7464 = vmatpush3.msra.mxu1 %v9140_v3  ;;  %7467 = vmatprep.mubr.msk.f32.mxu1 %vm8028_vm11, %v8027_v14 }
0x578c   :  { %7870 = vtanh.f32 %v4637_v5  ;;  %7465 = vmatprep.subr.mxu1 %v8027_v14 }
0x578d   :  { %7466 = vmatpush3.msra.mxu1 %v9143_v56 }
0x578e   :  { %7477 = vmatprep.subr.mxu1 %v8027_v14 }
0x5799   :  { %v7871_v59 = vpop.eup %7870 }
0x579a   :  { %4641 = vrot.lane.b32.xlu1 %v7871_v59, %s8030_s26 }
0x579e   :  { %3996 = vrot.lane.b32.xlu1 %v9012_v7, %s8030_s26 }
0x57a2   :  { %4216 = vrot.lane.b32.xlu1 %v9064_v42, %s8030_s26 }
0x57a6   :  { %4540 = vrot.lane.b32.xlu1 %v9126_v26, %s8030_s26 }
0x580c   :  { %v4642_v9 = vpop.permute.xlu1 %4641 }
0x580d   :  { %v4644_v36 = vmul.f32 %v4642_v9, %v4639_v53 }
0x580f   :  { %v4648_v20 = vadd.f32 %v4647_v38, %v4644_v36 }
0x5810   :  { %v3997_v49 = vpop.permute.xlu1 %3996 }
0x5811   :  { %3999 = vst.msk [vmem:[#allocation3 + $0x10] sm:$0xc] %vm937_vm10, %v3997_v49 }
0x5814   :  { %v4217_v33 = vpop.permute.xlu1 %4216 }
0x5815   :  { %4219 = vst.msk [vmem:[#allocation3 + $0x10] sm:$0xc0] %vm1517_vm9, %v4217_v33 }
0x5818   :  { %v4541_v60 = vpop.permute.xlu1 %4540 }
0x5819   :  { %4543 = vst.msk [vmem:[#allocation3 + $0x18] sm:$0x30] %vm1227_vm12, %v4541_v60 }
0x584a   :  { %v5047_v39 = vpop.f32.mrf.mxu1 }
0x584b   :  { %v5048_v32 = vadd.f32 %v9167_v54, %v5047_v39 }
0x584c   :  { %v7455_v7 = vpop.f32.mrf.mxu1 }
0x584d   :  { %v5052_v47 = vrot.slane %v5048_v32, 4  ;;  %v9268_v32 = vadd.f32 %v9171_v6, %v9173_v11 }
0x584f   :  { %5061 = vrot.lane.b32.xlu0 %v5052_v47, %s8030_s26  ;;  %v5054_v42 = vadd.f32 %v5052_v47, %v9176_v46 }
0x5851   :  { %v6752_v50 = vmul.f32 -1.442695, %v5054_v42 }
0x5853   :  { %7872 = vpow2.f32 %v6752_v50 }
0x5860   :  { %v7873_v17 = vpop.eup %7872 }
0x5861   :  { %v5058_v0 = vadd.f32 1.0, %v7873_v17 }
0x5863   :  { %7874 = vrcp.f32 %v5058_v0 }
0x5870   :  { %v7875_v48 = vpop.eup %7874 }
0x5871   :  { %v5071_v37 = vsub.f32 1.0, %v7875_v48  ;;  %v5079_v15 = vmul.f32 %v7875_v48, %v5077_v63 }
0x58c1   :  { %v5062_v51 = vpop.permute.xlu0 %5061 }
0x58c2   :  { %v5064_v52 = vmul.f32 %v7875_v48, %v5062_v51 }
0x58c4   :  { %5066 = vrot.lane.b32.xlu0 %v5064_v52, %s8031_s27 }
0x5936   :  { %v5067_v28 = vpop.permute.xlu0 %5066 }
0x5937   :  { %v5069_v8 = vadd.f32 %v5067_v28, %v9176_v46 }
0x5939   :  { %7876 = vtanh.f32 %v5069_v8 }
0x5946   :  { %v7877_v12 = vpop.eup %7876 }
0x5947   :  { %5073 = vrot.lane.b32.xlu0 %v7877_v12, %s8032_s28 }
0x594b   :  { %4106 = vrot.lane.b32.xlu0 %v9042_v45, %s8030_s26 }
0x594f   :  { %4430 = vrot.lane.b32.xlu0 %v9108_v57, %s8030_s26 }
0x5953   :  { %4650 = vrot.lane.b32.xlu0 %v4648_v20, %s8030_s26 }
0x59b9   :  { %v5074_v29 = vpop.permute.xlu0 %5073 }
0x59ba   :  { %v5076_v16 = vmul.f32 %v5074_v29, %v5071_v37 }
0x59bc   :  { %v5080_v19 = vadd.f32 %v5079_v15, %v5076_v16 }
0x59bd   :  { %v4107_v22 = vpop.permute.xlu0 %4106 }
0x59be   :  { %v5082_v61 = vrot.slane %v5080_v19, 4  ;;  %4109 = vst.msk [vmem:[#allocation3 + $0x10] sm:$0x30] %vm1227_vm12, %v4107_v22  ;;  %v5183_v62 = vrot.slane %v5080_v19, 6 }
0x59c0   :  { %5083 = vrot.lane.b32.xlu1 %v5082_v61, %s8032_s28 }
0x59c1   :  { %v4431_v45 = vpop.permute.xlu0 %4430 }
0x59c2   :  { %4433 = vst.msk [vmem:[#allocation3 + $0x18] sm:$0xc] %vm937_vm10, %v4431_v45 }
0x59c5   :  { %v4651_v26 = vpop.permute.xlu0 %4650  ;;  %v4656_v57 = vld [vmem:[#allocation3 + $0x10] sm:$0xff] }
0x59c6   :  { %4653 = vst.msk [vmem:[#allocation3 + $0x18] sm:$0xc0] %vm1517_vm9, %v4651_v26  ;;  %7432 = vmatprep.mubr.msk.f32.mxu0 %vm518_vm14, %v4656_v57 }
0x59cd   :  { %v4657_v13 = vld [vmem:[#allocation3 + $0x18] sm:$0xff] }
0x59ce   :  { %7433 = vmatmul.mubr.msk.f32.gmra.mxu0 %vm518_vm14, %v4657_v13 }
0x59cf   :  { %7460 = vmatprep.mubr.msk.f32.mxu0 %vm8028_vm11, %v8027_v14 }
0x5a32   :  { %v5084_v18 = vpop.permute.xlu1 %5083 }
0x5a33   :  { %7461 = vmatmul.mubr.msk.f32.vlgmr.msra.gmra.mxu0 %vm4771_vm2, %v5084_v18 }
0x5a34   :  { %7471 = vmatpush3.msra.mxu0 %v9140_v3  ;;  %7474 = vmatprep.mubr.msk.f32.mxu0 %vm8028_vm11, %v8027_v14 }
0x5a35   :  { %7472 = vmatprep.subr.mxu0 %v8027_v14 }
0x5a36   :  { %7473 = vmatpush3.msra.mxu0 %v9143_v56 }
0x5a37   :  { %7484 = vmatprep.subr.mxu0 %v8027_v14 }
0x5a8e   :  { %v9246_v21 = vpop.f32.mrf.mxu0 }
0x5a90   :  { %v9248_v55 = vpop.f32.mrf.mxu0 }
0x5af3   :  { %v5153_v58 = vpop.f32.mrf.mxu0 }
0x5af4   :  { %v5154_v2 = vadd.f32 %v9167_v54, %v5153_v58 }
0x5af5   :  { %v7462_v43 = vpop.f32.mrf.mxu0 }
0x5af6   :  { %v5158_v25 = vrot.slane %v5154_v2, 2 }
0x5af8   :  { %5167 = vrot.lane.b32.xlu0 %v5158_v25, %s8030_s26  ;;  %v5160_v31 = vadd.f32 %v5158_v25, %v9176_v46 }
0x5afa   :  { %v6754_v27 = vmul.f32 -1.442695, %v5160_v31 }
0x5afc   :  { %7878 = vpow2.f32 %v6754_v27 }
0x5b09   :  { %v7879_v35 = vpop.eup %7878 }
0x5b0a   :  { %v5164_v34 = vadd.f32 1.0, %v7879_v35 }
0x5b0c   :  { %7880 = vrcp.f32 %v5164_v34 }
0x5b19   :  { %v7881_v30 = vpop.eup %7880 }
0x5b1a   :  { %v5177_v44 = vsub.f32 1.0, %v7881_v30  ;;  %v5185_v5 = vmul.f32 %v7881_v30, %v5183_v62 }
0x5b6a   :  { %v5168_v24 = vpop.permute.xlu0 %5167 }
0x5b6b   :  { %v5170_v10 = vmul.f32 %v7881_v30, %v5168_v24 }
0x5b6d   :  { %5172 = vrot.lane.b32.xlu1 %v5170_v10, %s8031_s27 }
0x5bdf   :  { %v5173_v23 = vpop.permute.xlu1 %5172 }
0x5be0   :  { %v5175_v4 = vadd.f32 %v5173_v23, %v9176_v46 }
0x5be2   :  { %7882 = vtanh.f32 %v5175_v4 }
0x5bef   :  { %v7883_v41 = vpop.eup %7882 }
0x5bf0   :  { %5179 = vrot.lane.b32.xlu0 %v7883_v41, %s8032_s28 }
0x5c62   :  { %v5180_v1 = vpop.permute.xlu0 %5179 }
0x5c63   :  { %v5182_v59 = vmul.f32 %v5180_v1, %v5177_v44 }
0x5c65   :  { %v5186_v9 = vadd.f32 %v5185_v5, %v5182_v59 }
0x5c67   :  { %v5188_v49 = vrot.slane %v5186_v9, 6 }
0x5c69   :  { %5189 = vrot.lane.b32.xlu1 %v5188_v49, %s8032_s28 }
0x5cdb   :  { %v5190_v33 = vpop.permute.xlu1 %5189 }
0x5cdc   :  { %7468 = vmatmul.mubr.msk.f32.vlgmr.msra.gmra.mxu1 %vm4771_vm2, %v5190_v33 }
0x5cdd   :  { %7478 = vmatpush3.msra.mxu1 %v9140_v3  ;;  %7481 = vmatprep.mubr.msk.f32.mxu1 %vm8028_vm11, %v8027_v14 }
0x5cde   :  { %7479 = vmatprep.subr.mxu1 %v8027_v14 }
0x5cdf   :  { %7480 = vmatpush3.msra.mxu1 %v9143_v56 }
0x5ce0   :  { %7491 = vmatprep.subr.mxu1 %v8027_v14 }
0x5d9c   :  { %v5259_v46 = vpop.f32.mrf.mxu1 }
0x5d9d   :  { %v5260_v60 = vadd.f32 %v9167_v54, %v5259_v46 }
0x5d9e   :  { %v7469_v39 = vpop.f32.mrf.mxu1 }
0x5d9f   :  { %5271 = vrot.lane.b32.xlu0 %v5260_v60, %s8030_s26  ;;  %v5263_v7 = vadd.f32 %v5260_v60, %v9268_v32 }
0x5da1   :  { %v6756_v47 = vmul.f32 -1.442695, %v5263_v7 }
0x5da3   :  { %7884 = vpow2.f32 %v6756_v47 }
0x5db0   :  { %v7885_v42 = vpop.eup %7884 }
0x5db1   :  { %v5267_v50 = vadd.f32 1.0, %v7885_v42 }
0x5db3   :  { %7886 = vrcp.f32 %v5267_v50 }
0x5dc0   :  { %v7887_v17 = vpop.eup %7886 }
0x5dc1   :  { %v5281_v6 = vsub.f32 1.0, %v7887_v17  ;;  %v5288_v12 = vmul.f32 %v7887_v17, %v5188_v49 }
0x5e11   :  { %v5272_v0 = vpop.permute.xlu0 %5271 }
0x5e12   :  { %v5274_v48 = vmul.f32 %v7887_v17, %v5272_v0 }
0x5e14   :  { %5276 = vrot.lane.b32.xlu1 %v5274_v48, %s8031_s27 }
0x5e86   :  { %v5277_v51 = vpop.permute.xlu1 %5276 }
0x5e87   :  { %v5279_v52 = vadd.f32 %v5277_v51, %v9268_v32 }
0x5e89   :  { %7888 = vtanh.f32 %v5279_v52 }
0x5e96   :  { %v7889_v28 = vpop.eup %7888 }
0x5e97   :  { %5283 = vrot.lane.b32.xlu0 %v7889_v28, %s8032_s28 }
0x5f09   :  { %v5284_v8 = vpop.permute.xlu0 %5283 }
0x5f0a   :  { %v5286_v53 = vmul.f32 %v5284_v8, %v5281_v6 }
0x5f0c   :  { %v5289_v40 = vadd.f32 %v5288_v12, %v5286_v53 }
0x5f0e   :  { %5291 = vrot.lane.b32.xlu1 %v5289_v40, %s8032_s28  ;;  %v5391_v18 = vrot.slane %v5289_v40, 6 }
0x5f80   :  { %v5292_v36 = vpop.permute.xlu1 %5291 }
0x5f81   :  { %7475 = vmatmul.mubr.msk.f32.vlgmr.msra.gmra.mxu0 %vm4771_vm2, %v5292_v36 }
0x5f82   :  { %7485 = vmatpush3.msra.mxu0 %v9140_v3  ;;  %7488 = vmatprep.mubr.msk.f32.mxu0 %vm8028_vm11, %v8027_v14 }
0x5f83   :  { %7486 = vmatprep.subr.mxu0 %v8027_v14 }
0x5f84   :  { %7487 = vmatpush3.msra.mxu0 %v9143_v56 }
0x5f85   :  { %7498 = vmatprep.subr.mxu0 %v8027_v14 }
0x6041   :  { %v5361_v38 = vpop.f32.mrf.mxu0 }
0x6042   :  { %v5362_v20 = vadd.f32 %v9167_v54, %v5361_v38 }
0x6043   :  { %v7476_v63 = vpop.f32.mrf.mxu0 }
0x6044   :  { %v5366_v37 = vrot.slane %v5362_v20, 6 }
0x6046   :  { %5375 = vrot.lane.b32.xlu0 %v5366_v37, %s8030_s26  ;;  %v5368_v29 = vadd.f32 %v5366_v37, %v9268_v32 }
0x6048   :  { %v6758_v15 = vmul.f32 -1.442695, %v5368_v29 }
0x604a   :  { %7890 = vpow2.f32 %v6758_v15 }
0x6057   :  { %v7891_v16 = vpop.eup %7890 }
0x6058   :  { %v5372_v19 = vadd.f32 1.0, %v7891_v16 }
0x605a   :  { %7892 = vrcp.f32 %v5372_v19 }
0x6067   :  { %v7893_v22 = vpop.eup %7892 }
0x6068   :  { %v5385_v58 = vsub.f32 1.0, %v7893_v22  ;;  %v5393_v25 = vmul.f32 %v7893_v22, %v5391_v18 }
0x60b8   :  { %v5376_v61 = vpop.permute.xlu0 %5375 }
0x60b9   :  { %v5378_v45 = vmul.f32 %v7893_v22, %v5376_v61 }
0x60bb   :  { %5380 = vrot.lane.b32.xlu1 %v5378_v45, %s8031_s27 }
0x612d   :  { %v5381_v26 = vpop.permute.xlu1 %5380 }
0x612e   :  { %v5383_v57 = vadd.f32 %v5381_v26, %v9268_v32 }
0x6130   :  { %7894 = vtanh.f32 %v5383_v57  ;;  %v9328_v57 = vadd.f32 %v9173_v11, %v9248_v55 }
0x613d   :  { %v7895_v13 = vpop.eup %7894 }
0x613e   :  { %5387 = vrot.lane.b32.xlu0 %v7895_v13, %s8032_s28 }
0x61b0   :  { %v5388_v2 = vpop.permute.xlu0 %5387 }
0x61b1   :  { %v5390_v43 = vmul.f32 %v5388_v2, %v5385_v58 }
0x61b3   :  { %v5394_v31 = vadd.f32 %v5393_v25, %v5390_v43 }
0x61b5   :  { %v5396_v27 = vrot.slane %v5394_v31, 2  ;;  %v5497_v33 = vrot.slane %v5394_v31, 6 }
0x61b7   :  { %5397 = vrot.lane.b32.xlu1 %v5396_v27, %s8032_s28 }
0x6229   :  { %v5398_v35 = vpop.permute.xlu1 %5397 }
0x622a   :  { %7482 = vmatmul.mubr.msk.f32.vlgmr.msra.gmra.mxu1 %vm4771_vm2, %v5398_v35 }
0x622b   :  { %7492 = vmatpush3.msra.mxu1 %v9140_v3  ;;  %7495 = vmatprep.mubr.msk.f32.mxu1 %vm8028_vm11, %v8027_v14 }
0x622c   :  { %7493 = vmatprep.subr.mxu1 %v8027_v14 }
0x622d   :  { %7494 = vmatpush3.msra.mxu1 %v9143_v56 }
0x622e   :  { %7505 = vmatprep.subr.mxu1 %v8027_v14 }
0x62ea   :  { %v5467_v34 = vpop.f32.mrf.mxu1 }
0x62eb   :  { %v5468_v30 = vadd.f32 %v9167_v54, %v5467_v34 }
0x62ec   :  { %v7483_v24 = vpop.f32.mrf.mxu1 }
0x62ed   :  { %v5472_v10 = vrot.slane %v5468_v30, 4 }
0x62ef   :  { %5481 = vrot.lane.b32.xlu0 %v5472_v10, %s8030_s26  ;;  %v5474_v23 = vadd.f32 %v5472_v10, %v9268_v32 }
0x62f1   :  { %v6760_v4 = vmul.f32 -1.442695, %v5474_v23 }
0x62f3   :  { %7896 = vpow2.f32 %v6760_v4 }
0x6300   :  { %v7897_v41 = vpop.eup %7896 }
0x6301   :  { %v5478_v62 = vadd.f32 1.0, %v7897_v41 }
0x6303   :  { %7898 = vrcp.f32 %v5478_v62 }
0x6310   :  { %v7899_v44 = vpop.eup %7898 }
0x6311   :  { %v5491_v46 = vsub.f32 1.0, %v7899_v44  ;;  %v5499_v39 = vmul.f32 %v7899_v44, %v5497_v33 }
0x6361   :  { %v5482_v1 = vpop.permute.xlu0 %5481 }
0x6362   :  { %v5484_v5 = vmul.f32 %v7899_v44, %v5482_v1 }
0x6364   :  { %5486 = vrot.lane.b32.xlu1 %v5484_v5, %s8031_s27 }
0x63d6   :  { %v5487_v59 = vpop.permute.xlu1 %5486 }
0x63d7   :  { %v5489_v9 = vadd.f32 %v5487_v59, %v9268_v32 }
0x63d9   :  { %7900 = vtanh.f32 %v5489_v9 }
0x63e6   :  { %v7901_v49 = vpop.eup %7900 }
0x63e7   :  { %5493 = vrot.lane.b32.xlu0 %v7901_v49, %s8032_s28 }
0x6459   :  { %v5494_v60 = vpop.permute.xlu0 %5493 }
0x645a   :  { %v5496_v7 = vmul.f32 %v5494_v60, %v5491_v46 }
0x645c   :  { %v5500_v47 = vadd.f32 %v5499_v39, %v5496_v7 }
0x645e   :  { %v5502_v42 = vrot.slane %v5500_v47, 4  ;;  %v5603_v63 = vrot.slane %v5500_v47, 6 }
0x6460   :  { %5503 = vrot.lane.b32.xlu1 %v5502_v42, %s8032_s28 }
0x64d2   :  { %v5504_v50 = vpop.permute.xlu1 %5503 }
0x64d3   :  { %7489 = vmatmul.mubr.msk.f32.vlgmr.msra.gmra.mxu0 %vm4771_vm2, %v5504_v50 }
0x64d4   :  { %7499 = vmatpush3.msra.mxu0 %v9140_v3  ;;  %7502 = vmatprep.mubr.msk.f32.mxu0 %vm8028_vm11, %v8027_v14 }
0x64d5   :  { %7500 = vmatprep.subr.mxu0 %v8027_v14 }
0x64d6   :  { %7501 = vmatpush3.msra.mxu0 %v9143_v56 }
0x64d7   :  { %7512 = vmatprep.subr.mxu0 %v8027_v14 }
0x6593   :  { %v5573_v17 = vpop.f32.mrf.mxu0 }
0x6594   :  { %v5574_v0 = vadd.f32 %v9167_v54, %v5573_v17 }
0x6595   :  { %v7490_v48 = vpop.f32.mrf.mxu0 }
0x6596   :  { %v5578_v51 = vrot.slane %v5574_v0, 2 }
0x6598   :  { %5587 = vrot.lane.b32.xlu0 %v5578_v51, %s8030_s26  ;;  %v5580_v52 = vadd.f32 %v5578_v51, %v9268_v32 }
0x659a   :  { %v6762_v28 = vmul.f32 -1.442695, %v5580_v52 }
0x659c   :  { %7902 = vpow2.f32 %v6762_v28 }
0x65a9   :  { %v7903_v6 = vpop.eup %7902 }
0x65aa   :  { %v5584_v8 = vadd.f32 1.0, %v7903_v6 }
0x65ac   :  { %7904 = vrcp.f32 %v5584_v8 }
0x65b9   :  { %v7905_v12 = vpop.eup %7904 }
0x65ba   :  { %v5597_v37 = vsub.f32 1.0, %v7905_v12  ;;  %v5605_v15 = vmul.f32 %v7905_v12, %v5603_v63 }
0x660a   :  { %v5588_v53 = vpop.permute.xlu0 %5587 }
0x660b   :  { %v5590_v40 = vmul.f32 %v7905_v12, %v5588_v53 }
0x660d   :  { %5592 = vrot.lane.b32.xlu1 %v5590_v40, %s8031_s27 }
0x667f   :  { %v5593_v36 = vpop.permute.xlu1 %5592 }
0x6680   :  { %v5595_v38 = vadd.f32 %v5593_v36, %v9268_v32 }
0x6682   :  { %7906 = vtanh.f32 %v5595_v38 }
0x668f   :  { %v7907_v20 = vpop.eup %7906 }
0x6690   :  { %5599 = vrot.lane.b32.xlu0 %v7907_v20, %s8032_s28 }
0x6702   :  { %v5600_v29 = vpop.permute.xlu0 %5599 }
0x6703   :  { %v5602_v16 = vmul.f32 %v5600_v29, %v5597_v37 }
0x6705   :  { %v5606_v19 = vadd.f32 %v5605_v15, %v5602_v16 }
0x6707   :  { %v5608_v22 = vrot.slane %v5606_v19, 6 }
0x6709   :  { %5609 = vrot.lane.b32.xlu1 %v5608_v22, %s8032_s28 }
0x677b   :  { %v5610_v61 = vpop.permute.xlu1 %5609 }
0x677c   :  { %7496 = vmatmul.mubr.msk.f32.vlgmr.msra.gmra.mxu1 %vm4771_vm2, %v5610_v61 }
0x677d   :  { %7506 = vmatpush3.msra.mxu1 %v9140_v3  ;;  %7509 = vmatprep.mubr.msk.f32.mxu1 %vm8028_vm11, %v8027_v14 }
0x677e   :  { %7507 = vmatprep.subr.mxu1 %v8027_v14 }
0x677f   :  { %7508 = vmatpush3.msra.mxu1 %v9143_v56 }
0x6780   :  { %7519 = vmatprep.subr.mxu1 %v8027_v14 }
0x683c   :  { %v5679_v32 = vpop.f32.mrf.mxu1 }
0x683d   :  { %v5680_v45 = vadd.f32 %v9167_v54, %v5679_v32 }
0x683e   :  { %v7497_v26 = vpop.f32.mrf.mxu1 }
0x683f   :  { %5691 = vrot.lane.b32.xlu0 %v5680_v45, %s8030_s26  ;;  %v5683_v13 = vadd.f32 %v5680_v45, %v9328_v57 }
0x6841   :  { %v6764_v18 = vmul.f32 -1.442695, %v5683_v13 }
0x6843   :  { %7908 = vpow2.f32 %v6764_v18 }
0x6850   :  { %v7909_v58 = vpop.eup %7908 }
0x6851   :  { %v5687_v2 = vadd.f32 1.0, %v7909_v58 }
0x6853   :  { %7910 = vrcp.f32 %v5687_v2 }
0x6860   :  { %v7911_v43 = vpop.eup %7910 }
0x6861   :  { %v5701_v55 = vsub.f32 1.0, %v7911_v43  ;;  %v5708_v24 = vmul.f32 %v7911_v43, %v5608_v22 }
0x68b1   :  { %v5692_v25 = vpop.permute.xlu0 %5691 }
0x68b2   :  { %v5694_v31 = vmul.f32 %v7911_v43, %v5692_v25 }
0x68b4   :  { %5696 = vrot.lane.b32.xlu1 %v5694_v31, %s8031_s27 }
0x6926   :  { %v5697_v27 = vpop.permute.xlu1 %5696 }
0x6927   :  { %v5699_v35 = vadd.f32 %v5697_v27, %v9328_v57 }
0x6929   :  { %7912 = vtanh.f32 %v5699_v35 }
0x6936   :  { %v7913_v34 = vpop.eup %7912 }
0x6937   :  { %5703 = vrot.lane.b32.xlu0 %v7913_v34, %s8032_s28 }
0x69a9   :  { %v5704_v30 = vpop.permute.xlu0 %5703 }
0x69aa   :  { %v5706_v10 = vmul.f32 %v5704_v30, %v5701_v55 }
0x69ac   :  { %v5709_v23 = vadd.f32 %v5708_v24, %v5706_v10 }
0x69ae   :  { %5711 = vrot.lane.b32.xlu1 %v5709_v23, %s8032_s28  ;;  %v5811_v42 = vrot.slane %v5709_v23, 6 }
0x6a20   :  { %v5712_v4 = vpop.permute.xlu1 %5711 }
0x6a21   :  { %7503 = vmatmul.mubr.msk.f32.vlgmr.msra.gmra.mxu0 %vm4771_vm2, %v5712_v4 }
0x6a22   :  { %7513 = vmatpush3.msra.mxu0 %v9140_v3  ;;  %7516 = vmatprep.mubr.msk.f32.mxu0 %vm8028_vm11, %v8027_v14 }
0x6a23   :  { %7514 = vmatprep.subr.mxu0 %v8027_v14 }
0x6a24   :  { %7515 = vmatpush3.msra.mxu0 %v9143_v56 }
0x6a25   :  { %7526 = vmatprep.subr.mxu0 %v8027_v14 }
0x6ae1   :  { %v5781_v41 = vpop.f32.mrf.mxu0 }
0x6ae2   :  { %v5782_v62 = vadd.f32 %v9167_v54, %v5781_v41 }
0x6ae3   :  { %v7504_v44 = vpop.f32.mrf.mxu0 }
0x6ae4   :  { %v5786_v1 = vrot.slane %v5782_v62, 6 }
0x6ae6   :  { %5795 = vrot.lane.b32.xlu0 %v5786_v1, %s8030_s26  ;;  %v5788_v5 = vadd.f32 %v5786_v1, %v9328_v57 }
0x6ae8   :  { %v6766_v59 = vmul.f32 -1.442695, %v5788_v5 }
0x6aea   :  { %7914 = vpow2.f32 %v6766_v59 }
0x6af7   :  { %v7915_v9 = vpop.eup %7914 }
0x6af8   :  { %v5792_v49 = vadd.f32 1.0, %v7915_v9 }
0x6afa   :  { %7916 = vrcp.f32 %v5792_v49 }
0x6b07   :  { %v7917_v33 = vpop.eup %7916 }
0x6b08   :  { %v5805_v50 = vsub.f32 1.0, %v7917_v33  ;;  %v5813_v48 = vmul.f32 %v7917_v33, %v5811_v42 }
0x6b58   :  { %v5796_v46 = vpop.permute.xlu0 %5795 }
0x6b59   :  { %v5798_v60 = vmul.f32 %v7917_v33, %v5796_v46 }
0x6b5b   :  { %5800 = vrot.lane.b32.xlu1 %v5798_v60, %s8031_s27 }
0x6bcd   :  { %v5801_v39 = vpop.permute.xlu1 %5800 }
0x6bce   :  { %v5803_v7 = vadd.f32 %v5801_v39, %v9328_v57  ;;  %v9388_v39 = vadd.f32 %v9246_v21, %v9173_v11 }
0x6bd0   :  { %7918 = vtanh.f32 %v5803_v7 }
0x6bdd   :  { %v7919_v47 = vpop.eup %7918 }
0x6bde   :  { %5807 = vrot.lane.b32.xlu0 %v7919_v47, %s8032_s28 }
0x6c50   :  { %v5808_v17 = vpop.permute.xlu0 %5807 }
0x6c51   :  { %v5810_v0 = vmul.f32 %v5808_v17, %v5805_v50 }
0x6c53   :  { %v5814_v51 = vadd.f32 %v5813_v48, %v5810_v0 }
0x6c55   :  { %v5816_v52 = vrot.slane %v5814_v51, 2  ;;  %v5917_v22 = vrot.slane %v5814_v51, 6 }
0x6c57   :  { %5817 = vrot.lane.b32.xlu1 %v5816_v52, %s8032_s28 }
0x6cc9   :  { %v5818_v28 = vpop.permute.xlu1 %5817 }
0x6cca   :  { %7510 = vmatmul.mubr.msk.f32.vlgmr.msra.gmra.mxu1 %vm4771_vm2, %v5818_v28 }
0x6ccb   :  { %7520 = vmatpush3.msra.mxu1 %v9140_v3  ;;  %7523 = vmatprep.mubr.msk.f32.mxu1 %vm8028_vm11, %v8027_v14 }
0x6ccc   :  { %7521 = vmatprep.subr.mxu1 %v8027_v14 }
0x6ccd   :  { %7522 = vmatpush3.msra.mxu1 %v9143_v56 }
0x6cce   :  { %7533 = vmatprep.subr.mxu1 %v8027_v14 }
0x6d8a   :  { %v5887_v6 = vpop.f32.mrf.mxu1 }
0x6d8b   :  { %v5888_v8 = vadd.f32 %v9167_v54, %v5887_v6 }
0x6d8c   :  { %v7511_v12 = vpop.f32.mrf.mxu1 }
0x6d8d   :  { %v5892_v53 = vrot.slane %v5888_v8, 4  ;;  %v7974_v12 = vld [vmem:[#allocation4 + $0xd8] sm:$0xff] }
0x6d8f   :  { %5901 = vrot.lane.b32.xlu0 %v5892_v53, %s8030_s26  ;;  %v5894_v40 = vadd.f32 %v5892_v53, %v9328_v57  ;;  %v7975_v53 = vld [vmem:[#allocation4 + $0xd0] sm:$0xff] }
0x6d91   :  { %v6768_v36 = vmul.f32 -1.442695, %v5894_v40 }
0x6d93   :  { %7920 = vpow2.f32 %v6768_v36 }
0x6da0   :  { %v7921_v38 = vpop.eup %7920 }
0x6da1   :  { %v5898_v20 = vadd.f32 1.0, %v7921_v38 }
0x6da3   :  { %7922 = vrcp.f32 %v5898_v20 }
0x6db0   :  { %v7923_v63 = vpop.eup %7922 }
0x6db1   :  { %v5911_v61 = vsub.f32 1.0, %v7923_v63  ;;  %v5919_v45 = vmul.f32 %v7923_v63, %v5917_v22 }
0x6e01   :  { %v5902_v37 = vpop.permute.xlu0 %5901 }
0x6e02   :  { %v5904_v29 = vmul.f32 %v7923_v63, %v5902_v37 }
0x6e04   :  { %5906 = vrot.lane.b32.xlu1 %v5904_v29, %s8031_s27 }
0x6e76   :  { %v5907_v15 = vpop.permute.xlu1 %5906 }
0x6e77   :  { %v5909_v16 = vadd.f32 %v5907_v15, %v9328_v57 }
0x6e79   :  { %7924 = vtanh.f32 %v5909_v16 }
0x6e86   :  { %v7925_v19 = vpop.eup %7924 }
0x6e87   :  { %5913 = vrot.lane.b32.xlu0 %v7925_v19, %s8032_s28 }
0x6ef9   :  { %v5914_v32 = vpop.permute.xlu0 %5913 }
0x6efa   :  { %v5916_v26 = vmul.f32 %v5914_v32, %v5911_v61 }
0x6efc   :  { %v5920_v13 = vadd.f32 %v5919_v45, %v5916_v26 }
0x6efe   :  { %v5922_v18 = vrot.slane %v5920_v13, 4  ;;  %v6023_v62 = vrot.slane %v5920_v13, 6 }
0x6f00   :  { %5923 = vrot.lane.b32.xlu1 %v5922_v18, %s8032_s28 }
0x6f72   :  { %v5924_v58 = vpop.permute.xlu1 %5923 }
0x6f73   :  { %7517 = vmatmul.mubr.msk.f32.vlgmr.msra.gmra.mxu0 %vm4771_vm2, %v5924_v58 }
0x6f74   :  { %7527 = vmatpush3.msra.mxu0 %v9140_v3  ;;  %7530 = vmatprep.mubr.msk.f32.mxu0 %vm8028_vm11, %v8027_v14 }
0x6f75   :  { %7528 = vmatprep.subr.mxu0 %v8027_v14 }
0x6f76   :  { %7529 = vmatpush3.msra.mxu0 %v9143_v56 }
0x6f77   :  { %7540 = vmatprep.subr.mxu0 %v8027_v14 }
0x7033   :  { %v5993_v2 = vpop.f32.mrf.mxu0 }
0x7034   :  { %v5994_v43 = vadd.f32 %v9167_v54, %v5993_v2 }
0x7035   :  { %v7518_v25 = vpop.f32.mrf.mxu0 }
0x7036   :  { %v5998_v31 = vrot.slane %v5994_v43, 2 }
0x7038   :  { %6007 = vrot.lane.b32.xlu0 %v5998_v31, %s8030_s26  ;;  %v6000_v27 = vadd.f32 %v5998_v31, %v9328_v57 }
0x703a   :  { %v6770_v35 = vmul.f32 -1.442695, %v6000_v27  ;;  %v7976_v27 = vld [vmem:[#allocation4 + $0xe8] ss:$0 sm:$0xff] }
0x703c   :  { %7926 = vpow2.f32 %v6770_v35 }
0x7049   :  { %v7927_v34 = vpop.eup %7926 }
0x704a   :  { %v6004_v55 = vadd.f32 1.0, %v7927_v34 }
0x704c   :  { %7928 = vrcp.f32 %v6004_v55 }
0x7059   :  { %v7929_v30 = vpop.eup %7928 }
0x705a   :  { %v6017_v44 = vsub.f32 1.0, %v7929_v30  ;;  %v6025_v5 = vmul.f32 %v7929_v30, %v6023_v62 }
0x70aa   :  { %v6008_v24 = vpop.permute.xlu0 %6007 }
0x70ab   :  { %v6010_v10 = vmul.f32 %v7929_v30, %v6008_v24 }
0x70ad   :  { %6012 = vrot.lane.b32.xlu1 %v6010_v10, %s8031_s27 }
0x711f   :  { %v6013_v23 = vpop.permute.xlu1 %6012 }
0x7120   :  { %v6015_v4 = vadd.f32 %v6013_v23, %v9328_v57 }
0x7122   :  { %7930 = vtanh.f32 %v6015_v4 }
0x712f   :  { %v7931_v41 = vpop.eup %7930 }
0x7130   :  { %6019 = vrot.lane.b32.xlu0 %v7931_v41, %s8032_s28 }
0x71a2   :  { %v6020_v1 = vpop.permute.xlu0 %6019 }
0x71a3   :  { %v6022_v59 = vmul.f32 %v6020_v1, %v6017_v44 }
0x71a5   :  { %v6026_v9 = vadd.f32 %v6025_v5, %v6022_v59 }
0x71a7   :  { %v6028_v49 = vrot.slane %v6026_v9, 6 }
0x71a9   :  { %6029 = vrot.lane.b32.xlu1 %v6028_v49, %s8032_s28 }
0x721b   :  { %v6030_v33 = vpop.permute.xlu1 %6029 }
0x721c   :  { %7524 = vmatmul.mubr.msk.f32.vlgmr.msra.gmra.mxu1 %vm4771_vm2, %v6030_v33 }
0x721d   :  { %7534 = vmatpush3.msra.mxu1 %v9140_v3  ;;  %7537 = vmatprep.mubr.msk.f32.mxu1 %vm8028_vm11, %v8027_v14 }
0x721e   :  { %7535 = vmatprep.subr.mxu1 %v8027_v14 }
0x721f   :  { %7536 = vmatpush3.msra.mxu1 %v9143_v56 }
0x7220   :  { %7547 = vmatprep.subr.mxu1 %v8027_v14 }
0x72dc   :  { %v6099_v57 = vpop.f32.mrf.mxu1 }
0x72dd   :  { %v6100_v46 = vadd.f32 %v9167_v54, %v6099_v57 }
0x72de   :  { %v7525_v60 = vpop.f32.mrf.mxu1 }
0x72df   :  { %6111 = vrot.lane.b32.xlu0 %v6100_v46, %s8030_s26  ;;  %v6103_v3 = vadd.f32 %v6100_v46, %v9388_v39 }
0x72e1   :  { %v6772_v7 = vmul.f32 -1.442695, %v6103_v3 }
0x72e3   :  { %7932 = vpow2.f32 %v6772_v7 }
0x72f0   :  { %v7933_v47 = vpop.eup %7932 }
0x72f1   :  { %v6107_v42 = vadd.f32 1.0, %v7933_v47 }
0x72f3   :  { %7934 = vrcp.f32 %v6107_v42 }
0x7300   :  { %v7935_v56 = vpop.eup %7934 }
0x7301   :  { %v6121_v11 = vsub.f32 1.0, %v7935_v56  ;;  %v6128_v52 = vmul.f32 %v7935_v56, %v6028_v49 }
0x7351   :  { %v6112_v50 = vpop.permute.xlu0 %6111 }
0x7352   :  { %v6114_v17 = vmul.f32 %v7935_v56, %v6112_v50 }
0x7354   :  { %6116 = vrot.lane.b32.xlu1 %v6114_v17, %s8031_s27 }
0x73c6   :  { %v6117_v0 = vpop.permute.xlu1 %6116 }
0x73c7   :  { %v6119_v48 = vadd.f32 %v6117_v0, %v9388_v39 }
0x73c9   :  { %7936 = vtanh.f32 %v6119_v48 }
0x73d6   :  { %v7937_v51 = vpop.eup %7936 }
0x73d7   :  { %6123 = vrot.lane.b32.xlu0 %v7937_v51, %s8032_s28 }
0x7449   :  { %v6124_v21 = vpop.permute.xlu0 %6123 }
0x744a   :  { %v6126_v28 = vmul.f32 %v6124_v21, %v6121_v11 }
0x744c   :  { %v6129_v6 = vadd.f32 %v6128_v52, %v6126_v28 }
0x744e   :  { %6131 = vrot.lane.b32.xlu1 %v6129_v6, %s8032_s28  ;;  %v6231_v45 = vrot.slane %v6129_v6, 6  ;;  %v6448_v6 = vld [vmem:[#allocation4 + $0xf8] sm:$0xff] }
0x74c0   :  { %v6132_v8 = vpop.permute.xlu1 %6131 }
0x74c1   :  { %7531 = vmatmul.mubr.msk.f32.vlgmr.msra.gmra.mxu0 %vm4771_vm2, %v6132_v8  ;;  %v6447_v8 = vld [vmem:[#allocation4 + $0xf0] sm:$0xff] }
0x74c2   :  { %7541 = vmatpush3.msra.mxu0 %v7974_v12  ;;  %7544 = vmatprep.mubr.msk.f32.mxu0 %vm8028_vm11, %v8027_v14 }
0x74c3   :  { %7542 = vmatprep.subr.mxu0 %v8027_v14 }
0x74c4   :  { %7543 = vmatpush3.msra.mxu0 %v7975_v53 }
0x74c5   :  { %7554 = vmatprep.subr.mxu0 %v8027_v14 }
0x7581   :  { %v6201_v40 = vpop.f32.mrf.mxu0 }
0x7582   :  { %v6202_v36 = vadd.f32 %v9167_v54, %v6201_v40 }
0x7583   :  { %v7532_v38 = vpop.f32.mrf.mxu0 }
0x7584   :  { %v6206_v20 = vrot.slane %v6202_v36, 6 }
0x7586   :  { %6215 = vrot.lane.b32.xlu0 %v6206_v20, %s8030_s26  ;;  %v6208_v63 = vadd.f32 %v6206_v20, %v9388_v39 }
0x7588   :  { %v6774_v37 = vmul.f32 -1.442695, %v6208_v63 }
0x758a   :  { %7938 = vpow2.f32 %v6774_v37 }
0x7597   :  { %v7939_v29 = vpop.eup %7938 }
0x7598   :  { %v6212_v15 = vadd.f32 1.0, %v7939_v29  ;;  %v6533_v29 = vld [vmem:[#allocation4 + $0x108] sm:$0xff] }
0x759a   :  { %7940 = vrcp.f32 %v6212_v15  ;;  %v6779_v15 = vld [vmem:[#allocation4 + $0x100] ss:$0 sm:$0xff] }
0x75a7   :  { %v7941_v16 = vpop.eup %7940 }
0x75a8   :  { %v6225_v26 = vsub.f32 1.0, %v7941_v16  ;;  %v6233_v58 = vmul.f32 %v7941_v16, %v6231_v45 }
0x75f8   :  { %v6216_v19 = vpop.permute.xlu0 %6215 }
0x75f9   :  { %v6218_v22 = vmul.f32 %v7941_v16, %v6216_v19 }
0x75fb   :  { %6220 = vrot.lane.b32.xlu1 %v6218_v22, %s8031_s27 }
0x766d   :  { %v6221_v61 = vpop.permute.xlu1 %6220 }
0x766e   :  { %v6223_v32 = vadd.f32 %v6221_v61, %v9388_v39 }
0x7670   :  { %7942 = vtanh.f32 %v6223_v32  ;;  %v6781_v32 = vld [vmem:[#allocation4 + $0x110] ss:$0 sm:$0xff] }
0x767d   :  { %v7943_v54 = vpop.eup %7942 }
0x767e   :  { %6227 = vrot.lane.b32.xlu0 %v7943_v54, %s8032_s28 }
0x76f0   :  { %v6228_v13 = vpop.permute.xlu0 %6227 }
0x76f1   :  { %v6230_v18 = vmul.f32 %v6228_v13, %v6225_v26 }
0x76f3   :  { %v6234_v2 = vadd.f32 %v6233_v58, %v6230_v18 }
0x76f5   :  { %v6236_v43 = vrot.slane %v6234_v2, 2  ;;  %v6337_v59 = vrot.slane %v6234_v2, 6  ;;  %v6612_v2 = vlaneseq }
0x76f7   :  { %6237 = vrot.lane.b32.xlu1 %v6236_v43, %s8032_s28  ;;  %v6613_v43 = vand.u32 127, %v6612_v2 }
0x76f9   :  { %vm6614_vm14 = vcmp.lt.s32.totalorder %v6613_v43, 1 }
0x7769   :  { %v6238_v25 = vpop.permute.xlu1 %6237 }
0x776a   :  { %7538 = vmatmul.mubr.msk.f32.vlgmr.msra.gmra.mxu1 %vm4771_vm2, %v6238_v25 }
0x776b   :  { %7551 = vmatprep.mubr.msk.f32.mxu1 %vm8028_vm11, %v8027_v14  ;;  %7548 = vmatpush3.msra.mxu1 %v6448_v6 }
0x776c   :  { %7549 = vmatprep.subr.mxu1 %v8027_v14 }
0x776d   :  { %7550 = vmatpush3.msra.mxu1 %v6447_v8 }
0x782a   :  { %v6307_v31 = vpop.f32.mrf.mxu1 }
0x782b   :  { %v6308_v35 = vadd.f32 %v7976_v27, %v6307_v31 }
0x782c   :  { %v7539_v34 = vpop.f32.mrf.mxu1 }
0x782d   :  { %v6312_v55 = vrot.slane %v6308_v35, 4 }
0x782f   :  { %6321 = vrot.lane.b32.xlu0 %v6312_v55, %s8030_s26  ;;  %v6314_v30 = vadd.f32 %v6312_v55, %v9388_v39 }
0x7831   :  { %v6776_v24 = vmul.f32 -1.442695, %v6314_v30 }
0x7833   :  { %7944 = vpow2.f32 %v6776_v24 }
0x7840   :  { %v7945_v10 = vpop.eup %7944 }
0x7841   :  { %v6318_v23 = vadd.f32 1.0, %v7945_v10 }
0x7843   :  { %7946 = vrcp.f32 %v6318_v23 }
0x7850   :  { %v7947_v4 = vpop.eup %7946 }
0x7851   :  { %v6331_v9 = vsub.f32 1.0, %v7947_v4  ;;  %v6339_v33 = vmul.f32 %v7947_v4, %v6337_v59 }
0x78a1   :  { %v6322_v41 = vpop.permute.xlu0 %6321 }
0x78a2   :  { %v6324_v62 = vmul.f32 %v7947_v4, %v6322_v41 }
0x78a4   :  { %6326 = vrot.lane.b32.xlu1 %v6324_v62, %s8031_s27 }
0x7916   :  { %v6327_v44 = vpop.permute.xlu1 %6326 }
0x7917   :  { %v6329_v1 = vadd.f32 %v6327_v44, %v9388_v39 }
0x7919   :  { %7948 = vtanh.f32 %v6329_v1 }
0x7926   :  { %v7949_v5 = vpop.eup %7948 }
0x7927   :  { %6333 = vrot.lane.b32.xlu0 %v7949_v5, %s8032_s28 }
0x7999   :  { %v6334_v49 = vpop.permute.xlu0 %6333 }
0x799a   :  { %v6336_v57 = vmul.f32 %v6334_v49, %v6331_v9 }
0x799c   :  { %v6340_v46 = vadd.f32 %v6339_v33, %v6336_v57 }
0x799e   :  { %v6342_v60 = vrot.slane %v6340_v46, 4  ;;  %v6443_v53 = vrot.slane %v6340_v46, 6 }
0x79a0   :  { %6343 = vrot.lane.b32.xlu1 %v6342_v60, %s8032_s28 }
0x7a12   :  { %v6344_v3 = vpop.permute.xlu1 %6343 }
0x7a13   :  { %7545 = vmatmul.mubr.msk.f32.vlgmr.msra.gmra.mxu0 %vm4771_vm2, %v6344_v3 }
0x7a14   :  { %7556 = vmatprep.mubr.msk.f32.mxu0 %vm8028_vm11, %v8027_v14  ;;  %7555 = vmatpush3.msra.mxu0 %v6533_v29  ;;  %vm9440_vm11 = vcmask 64512  }
0x7ad3   :  { %v6413_v7 = vpop.f32.mrf.mxu0 }
0x7ad4   :  { %v6414_v47 = vadd.f32 %v7976_v27, %v6413_v7 }
0x7ad5   :  { %v7546_v42 = vpop.f32.mrf.mxu0 }
0x7ad6   :  { %v6418_v56 = vrot.slane %v6414_v47, 2 }
0x7ad8   :  { %6427 = vrot.lane.b32.xlu0 %v6418_v56, %s8030_s26  ;;  %v6420_v50 = vadd.f32 %v6418_v56, %v9388_v39 }
0x7ada   :  { %v6778_v17 = vmul.f32 -1.442695, %v6420_v50 }
0x7adc   :  { %7950 = vpow2.f32 %v6778_v17 }
0x7ae9   :  { %v7951_v0 = vpop.eup %7950 }
0x7aea   :  { %v6424_v48 = vadd.f32 1.0, %v7951_v0 }
0x7aec   :  { %7952 = vrcp.f32 %v6424_v48 }
0x7af9   :  { %v7953_v51 = vpop.eup %7952 }
0x7afa   :  { %v6437_v40 = vsub.f32 1.0, %v7953_v51  ;;  %v6445_v38 = vmul.f32 %v7953_v51, %v6443_v53 }
0x7b4a   :  { %v6428_v11 = vpop.permute.xlu0 %6427 }
0x7b4b   :  { %v6430_v21 = vmul.f32 %v7953_v51, %v6428_v11 }
0x7b4d   :  { %6432 = vrot.lane.b32.xlu1 %v6430_v21, %s8031_s27 }
0x7bbf   :  { %v6433_v52 = vpop.permute.xlu1 %6432 }
0x7bc0   :  { %v6435_v28 = vadd.f32 %v6433_v52, %v9388_v39 }
0x7bc2   :  { %7954 = vtanh.f32 %v6435_v28 }
0x7bcf   :  { %v7955_v12 = vpop.eup %7954 }
0x7bd0   :  { %6439 = vrot.lane.b32.xlu0 %v7955_v12, %s8032_s28 }
0x7c42   :  { %v6440_v36 = vpop.permute.xlu0 %6439 }
0x7c43   :  { %v6442_v20 = vmul.f32 %v6440_v36, %v6437_v40 }
0x7c45   :  { %v6446_v63 = vadd.f32 %v6445_v38, %v6442_v20 }
0x7c47   :  { %v6455_v37 = vrot.slane %v6446_v63, 6 }
0x7c49   :  { %6456 = vrot.lane.b32.xlu1 %v6455_v37, %s8032_s28 }
0x7cbb   :  { %v6457_v39 = vpop.permute.xlu1 %6456 }
0x7cbc   :  { %7552 = vmatmul.mubr.msk.f32.vlgmr.msra.gmra.mxu1 %vm4771_vm2, %v6457_v39 }
0x7d7c   :  { %v6526_v14 = vpop.f32.mrf.mxu1 }
0x7d7d   :  { %v6527_v16 = vadd.f32 %v6779_v15, %v6526_v14 }
0x7d7e   :  { %v7553_v19 = vpop.f32.mrf.mxu1 }
0x7d7f   :  { %vm6530_vm9 = vcmp.ge.f32.partialorder %v6527_v16, 0.0  ;;  %v6531_v22 = vmul.f32 0.01, %v6527_v16 }
0x7d81   :  { %v6532_v61 = vsel %vm6530_vm9, %v6527_v16, %v6531_v22 }
0x7d82   :  { %7557 = vmatmul.mubr.msk.f32.vlgmr.msra.gmra.mxu0 %vm9440_vm11, %v6532_v61 }
0x7e42   :  { %v6608_v54 = vpop.f32.mrf.mxu0 }
0x7e43   :  { %v6609_v45 = vadd.f32 %v6781_v32, %v6608_v54 }
0x7e44   :  { %v7558_v26 = vpop.f32.mrf.mxu0 }
0x7e45   :  { %v6783_v13 = vmul.f32 -1.442695, %v6609_v45 }
0x7e47   :  { %7956 = vpow2.f32 %v6783_v13 }
0x7e48   :  { %7958 = vtanh.f32 %v6609_v45 }
0x7e54   :  { %v7957_v18 = vpop.eup %7956 }
0x7e55   :  { %v6619_v58 = vadd.f32 1.0, %v7957_v18  ;;  %v7959_v25 = vpop.eup %7958 }
0x7e57   :  { %7960 = vrcp.f32 %v6619_v58 }
0x7e64   :  { %v7961_v31 = vpop.eup %7960 }
0x7e65   :  { %v6622_v27 = vsel %vm6614_vm14, %v7959_v25, %v7961_v31 }
0x7e66   :  { %6624 = vst.msk [vmem:[#allocation7] sm:$0x3] %vm6623_vm3, %v6622_v27 }
0x7e67   :  { %8008 = shalt.err (!%p8005_p9)
}
0x7e68   :  { %6634 = dma.vmem_to_hbm [thread:$0]  %s6632_s30, 32, %s9433_s2, [#allocation6]  }
0x7e69   :  { %8019 = dma.done.wait [#allocation6], 32  }
0x7e6a   :  { %8020 = vsyncadd [#allocation6], 4294967264 }
0x7e6b   :  { %6638 = vsyncpa [#allocation5], 1 }
0x7e6c   :  { %6639 = vsyncpa [#allocation6], 1 }

</bundles_post_ra>
